<compile_context>
chip_gen: v7x
topology: tpu7x:2x2x1
jax: 0.10.0
libtpu: 0.0.40
codegen_flags: <defaults>
</compile_context>

<pallas_src>
import functools

import jax
import jax.numpy as jnp
from jax import lax
from jax.experimental import pallas as pl
from jax.experimental.pallas import tpu as pltpu

EPS = 1e-5
HEAD = 128          # zero margin before the flat grid data (>= gw+1), lane-aligned
TAIL = 128          # zero margin after the flat grid data (>= 2*gw+2)


# --------------------------------- fused kernel ---------------------------------

def _fused_kernel(xe_ref, ye_ref, wt_ref, w1_ref, w2_ref, bt_ref,
                  g1_ref, be1_ref, g2_ref, be2_ref, mask_ref,
                  out_ref, up_ext, h_ext, *, gw, L, head, cnt):
    cout = out_ref.shape[0]
    base = head - gw - 1            # tap (kh, kw) -> static lane offset base + kh*gw + kw

    def tap_slices(ref, k):
        return [ref[:, base + kh * gw + kw: base + kh * gw + kw + L]
                for kh in range(k) for kw in range(k)]

    def conv(pieces, w_ref):
        # stack all k*k taps (and channel groups) along the contraction axis and
        # issue ONE MXU dot: (Cout, K) @ (K, L)
        return jnp.dot(w_ref[...], jnp.concatenate(pieces, axis=0),
                       preferred_element_type=jnp.float32)

    def bn_relu(a, g_ref, b_ref):
        # training-mode BatchNorm over the valid pixels of both batch grids:
        # one masked lane reduction over the stacked [a ; a*a] operand.
        sq = jnp.sum(jnp.concatenate([a, a * a], axis=0) * mask,
                     axis=1, keepdims=True)                      # (2*Cout, 1)
        mean = sq[:cout] / cnt
        var = sq[cout:] / cnt - mean * mean                      # biased (training BN)
        sc = g_ref[...] * lax.rsqrt(var + EPS)
        sh = b_ref[...] - mean * sc
        return jnp.maximum(a * sc + sh, 0.0)

    mask = mask_ref[...]                                         # (1, L)

    # pre-zero the persistent extended conv operands once (head/tail margins and
    # grid borders must be zero; the data region is overwritten below).
    up_ext[...] = jnp.zeros(up_ext.shape, up_ext.dtype)
    h_ext[...] = jnp.zeros(h_ext.shape, h_ext.dtype)

    # ---- transposed conv: one K = 16*Cin dot over the stacked 4x4 taps of the
    # (already dilated + padded) x grid; bias kept, result masked to valid pixels.
    up = (conv(tap_slices(xe_ref, 4), wt_ref) + bt_ref[...]) * mask
    up_ext[:, head:head + L] = up

    # ---- concat(up, y) + conv1: interleave the 3x3 taps of the two channel
    # groups into one K = 9*(Cout+Cin) operand -> single dot.  conv bias dropped
    # (cancelled exactly by the training-mode BN mean subtraction).
    up_t, y_t = tap_slices(up_ext, 3), tap_slices(ye_ref, 3)
    pieces = []
    for t in range(9):
        pieces += [up_t[t], y_t[t]]
    a1 = conv(pieces, w1_ref)
    h_ext[:, head:head + L] = bn_relu(a1, g1_ref, be1_ref) * mask

    # ---- conv2 + BN2 + ReLU; the full gh x gw grid is stored lane-dense and the
    # 32x32 crop happens in the XLA wrapper (free slice).
    a2 = conv(tap_slices(h_ext, 3), w2_ref)
    out_ref[...] = bn_relu(a2, g2_ref, be2_ref)


# ---------------------------------- wrapper ----------------------------------

def _full_spec(shape):
    nd = len(shape)
    return pl.BlockSpec(shape, lambda i: (0,) * nd)


def upsample_block_small(x, y, params):
    """x: (N, Cin, H, W), y: (N, Cin, 2H, 2W), float32 NCHW -> (N, Cout, 2H, 2W)."""
    n, cin, h, w = x.shape
    cout = params['wt'].shape[1]
    h2, w2 = 2 * h, 2 * w
    gh, gw = h2 + 3, w2 + 3          # padded "full rows" grid (holds the dilated x)
    gl = gh * gw
    L = n * gl                       # both batch grids stacked along the lane axis
    E = HEAD + L + TAIL
    f32 = jnp.float32

    # ---- layout plumbing (XLA side, zero FLOPs): zero-dilated / zero-padded
    # input grids, batches stacked on lanes, with zero head/tail margins so every
    # conv tap inside the kernel is a single static lane slice.
    xg = jnp.zeros((n, cin, gh, gw), f32).at[:, :, 2:2 + h2:2, 2:2 + w2:2].set(x)
    xe = jnp.pad(xg.transpose(1, 0, 2, 3).reshape(cin, L), ((0, 0), (HEAD, TAIL)))
    yg = jnp.pad(y, ((0, 0), (0, 0), (1, gh - 1 - h2), (1, gw - 1 - w2)))
    ye = jnp.pad(yg.transpose(1, 0, 2, 3).reshape(cin, L), ((0, 0), (HEAD, TAIL)))

    # per-conv weights flattened to a single (Cout, k*k*Cin_layer) contraction;
    # transconv = spatially flipped + in/out swapped kernel.
    wt = jnp.transpose(params['wt'][:, :, ::-1, ::-1], (1, 2, 3, 0)).reshape(cout, 16 * cin)
    w1 = jnp.transpose(params['w1'], (0, 2, 3, 1)).reshape(cout, 9 * (cout + cin))
    w2m = jnp.transpose(params['w2'], (0, 2, 3, 1)).reshape(cout, 9 * cout)
    bt = params['bt'].reshape(cout, 1)
    g1, be1 = params['g1'].reshape(cout, 1), params['be1'].reshape(cout, 1)
    g2, be2 = params['g2'].reshape(cout, 1), params['be2'].reshape(cout, 1)

    # validity mask of the 2H x 2W data region inside each batch's gh x gw grid
    rr, cc = jnp.arange(gh), jnp.arange(gw)
    m = ((rr >= 1) & (rr <= h2))[:, None] & ((cc >= 1) & (cc <= w2))[None, :]
    mask = jnp.tile(m.reshape(1, gl).astype(f32), (1, n))

    kernel = functools.partial(_fused_kernel, gw=gw, L=L, head=HEAD,
                               cnt=float(n * h2 * w2))
    inputs = (xe, ye, wt, w1, w2m, bt, g1, be1, g2, be2, mask)

    out = pl.pallas_call(
        kernel,
        out_shape=jax.ShapeDtypeStruct((cout, L), f32),
        grid=(1,),
        in_specs=[_full_spec(a.shape) for a in inputs],
        out_specs=_full_spec((cout, L)),
        scratch_shapes=[pltpu.VMEM((cout, E), f32),   # transconv output grid (+margins)
                        pltpu.VMEM((cout, E), f32)],  # BN1/ReLU output grid (+margins)
        compiler_params=pltpu.CompilerParams(dimension_semantics=("arbitrary",)),
        # TODO(synk): engaging a second TensorCore (v7x) needs a parallel grid axis
        # plus a cross-core BatchNorm reduction; at this size the sync would cost
        # more than the 2x compute split, so the kernel stays single-core.
    )(*inputs)

    # full-grid lane-dense output; crop/reshape to NCHW in XLA (free slice).
    out = out.reshape(cout, n, gh, gw).transpose(1, 0, 2, 3)
    return out[:, :, 1:1 + h2, 1:1 + w2]


# --------------------------- pure-JAX reference (check) ---------------------------

def reference(x, y, p):
    dn = ('NCHW', 'OIHW', 'NCHW')
    wt = jnp.transpose(p['wt'][:, :, ::-1, ::-1], (1, 0, 2, 3))
    up = lax.conv_general_dilated(x, wt, (1, 1), ((2, 2), (2, 2)),
                                  lhs_dilation=(2, 2), dimension_numbers=dn)
    up = up + p['bt'][None, :, None, None]
    t = jnp.concatenate([up, y], axis=1)

    def cbr(t, wgt, b, gamma, beta):
        t = lax.conv_general_dilated(t, wgt, (1, 1), ((1, 1), (1, 1)),
                                     dimension_numbers=dn) + b[None, :, None, None]
        m = jnp.mean(t, axis=(0, 2, 3), keepdims=True)
        v = jnp.mean((t - m) ** 2, axis=(0, 2, 3), keepdims=True)
        t = (t - m) * lax.rsqrt(v + 1e-5)
        return jnp.maximum(t * gamma[None, :, None, None] + beta[None, :, None, None], 0.0)

    t = cbr(t, p['w1'], p['b1'], p['g1'], p['be1'])
    return cbr(t, p['w2'], p['b2'], p['g2'], p['be2'])


# ------------------------------------ main ------------------------------------

if __name__ == "__main__":
    key = jax.random.PRNGKey(0)
    ks = jax.random.split(key, 12)

    N, CIN, H, W = 2, 4, 16, 16
    COUT = CIN                       # cat channels = 2*CIN matches conv1 in_channels

    params = dict(
        wt=jax.random.normal(ks[0], (CIN, COUT, 4, 4), jnp.float32) * 0.1,   # transconv (Cin,Cout,4,4)
        bt=jax.random.normal(ks[1], (COUT,), jnp.float32) * 0.1,
        w1=jax.random.normal(ks[2], (COUT, 2 * CIN, 3, 3), jnp.float32) * 0.1,
        b1=jax.random.normal(ks[3], (COUT,), jnp.float32) * 0.1,
        g1=1.0 + 0.1 * jax.random.normal(ks[4], (COUT,), jnp.float32),
        be1=0.1 * jax.random.normal(ks[5], (COUT,), jnp.float32),
        w2=jax.random.normal(ks[6], (COUT, COUT, 3, 3), jnp.float32) * 0.1,
        b2=jax.random.normal(ks[7], (COUT,), jnp.float32) * 0.1,
        g2=1.0 + 0.1 * jax.random.normal(ks[8], (COUT,), jnp.float32),
        be2=0.1 * jax.random.normal(ks[9], (COUT,), jnp.float32),
    )

    x = jax.random.normal(ks[10], (N, CIN, H, W), jnp.float32)
    y = jax.random.normal(ks[11], (N, CIN, 2 * H, 2 * W), jnp.float32)

    out = jax.block_until_ready(jax.jit(upsample_block_small)(x, y, params))
    ref = jax.block_until_ready(reference(x, y, params))

    assert out.shape == (N, COUT, 2 * H, 2 * W), out.shape
    err = float(jnp.max(jnp.abs(out - ref)))
    assert jnp.allclose(out, ref, atol=1e-3, rtol=1e-3), err
    print("KERNEL_OK")
</pallas_src>

<mosaic_0001>
module attributes {stable_mosaic.version = 11 : i64} {
  func.func @_fused_kernel(%arg0: i32, %arg1: memref<4x2706xf32, #tpu.memory_space<vmem>>, %arg2: memref<4x2706xf32, #tpu.memory_space<vmem>>, %arg3: memref<4x64xf32, #tpu.memory_space<vmem>>, %arg4: memref<4x72xf32, #tpu.memory_space<vmem>>, %arg5: memref<4x36xf32, #tpu.memory_space<vmem>>, %arg6: memref<4x1xf32, #tpu.memory_space<vmem>>, %arg7: memref<4x1xf32, #tpu.memory_space<vmem>>, %arg8: memref<4x1xf32, #tpu.memory_space<vmem>>, %arg9: memref<4x1xf32, #tpu.memory_space<vmem>>, %arg10: memref<4x1xf32, #tpu.memory_space<vmem>>, %arg11: memref<1x2450xf32, #tpu.memory_space<vmem>>, %arg12: memref<4x2450xf32, #tpu.memory_space<vmem>>, %arg13: memref<4x2706xf32, #tpu.memory_space<vmem>>, %arg14: memref<4x2706xf32, #tpu.memory_space<vmem>>) attributes {dimension_semantics = [#tpu.dimension_semantics<arbitrary>], iteration_bounds = array<i64: 1>, scalar_prefetch = 0 : i64, scratch_operands = 2 : i64, tpu.core_type = #tpu.core_type<tc>, window_params = [{pipeline_mode = #tpu.pipeline_mode<synchronous>, transform_indices = @transform_0, window_bounds = array<i64: 4, 2706>}, {pipeline_mode = #tpu.pipeline_mode<synchronous>, transform_indices = @transform_1, window_bounds = array<i64: 4, 2706>}, {pipeline_mode = #tpu.pipeline_mode<synchronous>, transform_indices = @transform_2, window_bounds = array<i64: 4, 64>}, {pipeline_mode = #tpu.pipeline_mode<synchronous>, transform_indices = @transform_3, window_bounds = array<i64: 4, 72>}, {pipeline_mode = #tpu.pipeline_mode<synchronous>, transform_indices = @transform_4, window_bounds = array<i64: 4, 36>}, {pipeline_mode = #tpu.pipeline_mode<synchronous>, transform_indices = @transform_5, window_bounds = array<i64: 4, 1>}, {pipeline_mode = #tpu.pipeline_mode<synchronous>, transform_indices = @transform_6, window_bounds = array<i64: 4, 1>}, {pipeline_mode = #tpu.pipeline_mode<synchronous>, transform_indices = @transform_7, window_bounds = array<i64: 4, 1>}, {pipeline_mode = #tpu.pipeline_mode<synchronous>, transform_indices = @transform_8, window_bounds = array<i64: 4, 1>}, {pipeline_mode = #tpu.pipeline_mode<synchronous>, transform_indices = @transform_9, window_bounds = array<i64: 4, 1>}, {pipeline_mode = #tpu.pipeline_mode<synchronous>, transform_indices = @transform_10, window_bounds = array<i64: 1, 2450>}, {pipeline_mode = #tpu.pipeline_mode<synchronous>, transform_indices = @transform_11, window_bounds = array<i64: 4, 2450>}]} {
    %c0 = arith.constant 0 : index
    %c0_0 = arith.constant 0 : index
    %0 = vector.load %arg11[%c0, %c0_0] : memref<1x2450xf32, #tpu.memory_space<vmem>>, vector<1x2450xf32>
    %cst = arith.constant 0.000000e+00 : f32
    %1 = vector.broadcast %cst : f32 to vector<4x2706xf32>
    %c0_1 = arith.constant 0 : index
    %c0_2 = arith.constant 0 : index
    %2 = vector.load %arg13[%c0_1, %c0_2] : memref<4x2706xf32, #tpu.memory_space<vmem>>, vector<4x2706xf32>
    tpu.vector_store %arg13[%c0_1, %c0_2], %1 {strides = array<i32>} : memref<4x2706xf32, #tpu.memory_space<vmem>>, vector<4x2706xf32>,
    %cst_3 = arith.constant 0.000000e+00 : f32
    %3 = vector.broadcast %cst_3 : f32 to vector<4x2706xf32>
    %c0_4 = arith.constant 0 : index
    %c0_5 = arith.constant 0 : index
    %4 = vector.load %arg14[%c0_4, %c0_5] : memref<4x2706xf32, #tpu.memory_space<vmem>>, vector<4x2706xf32>
    tpu.vector_store %arg14[%c0_4, %c0_5], %3 {strides = array<i32>} : memref<4x2706xf32, #tpu.memory_space<vmem>>, vector<4x2706xf32>,
    %c0_6 = arith.constant 0 : index
    %c92 = arith.constant 92 : index
    %5 = vector.load %arg1[%c0_6, %c92] : memref<4x2706xf32, #tpu.memory_space<vmem>>, vector<4x2450xf32>
    %c0_7 = arith.constant 0 : index
    %c93 = arith.constant 93 : index
    %6 = vector.load %arg1[%c0_7, %c93] : memref<4x2706xf32, #tpu.memory_space<vmem>>, vector<4x2450xf32>
    %c0_8 = arith.constant 0 : index
    %c94 = arith.constant 94 : index
    %7 = vector.load %arg1[%c0_8, %c94] : memref<4x2706xf32, #tpu.memory_space<vmem>>, vector<4x2450xf32>
    %c0_9 = arith.constant 0 : index
    %c95 = arith.constant 95 : index
    %8 = vector.load %arg1[%c0_9, %c95] : memref<4x2706xf32, #tpu.memory_space<vmem>>, vector<4x2450xf32>
    %c0_10 = arith.constant 0 : index
    %c127 = arith.constant 127 : index
    %9 = vector.load %arg1[%c0_10, %c127] : memref<4x2706xf32, #tpu.memory_space<vmem>>, vector<4x2450xf32>
    %c0_11 = arith.constant 0 : index
    %c128 = arith.constant 128 : index
    %10 = vector.load %arg1[%c0_11, %c128] : memref<4x2706xf32, #tpu.memory_space<vmem>>, vector<4x2450xf32>
    %c0_12 = arith.constant 0 : index
    %c129 = arith.constant 129 : index
    %11 = vector.load %arg1[%c0_12, %c129] : memref<4x2706xf32, #tpu.memory_space<vmem>>, vector<4x2450xf32>
    %c0_13 = arith.constant 0 : index
    %c130 = arith.constant 130 : index
    %12 = vector.load %arg1[%c0_13, %c130] : memref<4x2706xf32, #tpu.memory_space<vmem>>, vector<4x2450xf32>
    %c0_14 = arith.constant 0 : index
    %c162 = arith.constant 162 : index
    %13 = vector.load %arg1[%c0_14, %c162] : memref<4x2706xf32, #tpu.memory_space<vmem>>, vector<4x2450xf32>
    %c0_15 = arith.constant 0 : index
    %c163 = arith.constant 163 : index
    %14 = vector.load %arg1[%c0_15, %c163] : memref<4x2706xf32, #tpu.memory_space<vmem>>, vector<4x2450xf32>
    %c0_16 = arith.constant 0 : index
    %c164 = arith.constant 164 : index
    %15 = vector.load %arg1[%c0_16, %c164] : memref<4x2706xf32, #tpu.memory_space<vmem>>, vector<4x2450xf32>
    %c0_17 = arith.constant 0 : index
    %c165 = arith.constant 165 : index
    %16 = vector.load %arg1[%c0_17, %c165] : memref<4x2706xf32, #tpu.memory_space<vmem>>, vector<4x2450xf32>
    %c0_18 = arith.constant 0 : index
    %c197 = arith.constant 197 : index
    %17 = vector.load %arg1[%c0_18, %c197] : memref<4x2706xf32, #tpu.memory_space<vmem>>, vector<4x2450xf32>
    %c0_19 = arith.constant 0 : index
    %c198 = arith.constant 198 : index
    %18 = vector.load %arg1[%c0_19, %c198] : memref<4x2706xf32, #tpu.memory_space<vmem>>, vector<4x2450xf32>
    %c0_20 = arith.constant 0 : index
    %c199 = arith.constant 199 : index
    %19 = vector.load %arg1[%c0_20, %c199] : memref<4x2706xf32, #tpu.memory_space<vmem>>, vector<4x2450xf32>
    %c0_21 = arith.constant 0 : index
    %c200 = arith.constant 200 : index
    %20 = vector.load %arg1[%c0_21, %c200] : memref<4x2706xf32, #tpu.memory_space<vmem>>, vector<4x2450xf32>
    %c0_22 = arith.constant 0 : index
    %c0_23 = arith.constant 0 : index
    %21 = vector.load %arg3[%c0_22, %c0_23] : memref<4x64xf32, #tpu.memory_space<vmem>>, vector<4x64xf32>
    %22 = tpu.concatenate %5, %6, %7, %8, %9, %10, %11, %12, %13, %14, %15, %16, %17, %18, %19, %20 in 0 : vector<4x2450xf32>, vector<4x2450xf32>, vector<4x2450xf32>, vector<4x2450xf32>, vector<4x2450xf32>, vector<4x2450xf32>, vector<4x2450xf32>, vector<4x2450xf32>, vector<4x2450xf32>, vector<4x2450xf32>, vector<4x2450xf32>, vector<4x2450xf32>, vector<4x2450xf32>, vector<4x2450xf32>, vector<4x2450xf32>, vector<4x2450xf32> -> vector<64x2450xf32>
    %cst_24 = arith.constant dense<0.000000e+00> : vector<4x2450xf32>
    %23 = tpu.matmul %21, %22, %cst_24 {dimension_numbers = #tpu.dot_dimension_numbers<[1], [0], [0], [1], [0, 0, 1, 1], [], []>} : vector<4x64xf32>, vector<64x2450xf32>, vector<4x2450xf32> -> vector<4x2450xf32>
    %c0_25 = arith.constant 0 : index
    %c0_26 = arith.constant 0 : index
    %24 = vector.load %arg6[%c0_25, %c0_26] : memref<4x1xf32, #tpu.memory_space<vmem>>, vector<4x1xf32>
    %25 = vector.broadcast %24 : vector<4x1xf32> to vector<4x2450xf32>
    %26 = arith.addf %23, %25 : vector<4x2450xf32>
    %27 = vector.broadcast %0 : vector<1x2450xf32> to vector<4x2450xf32>
    %28 = arith.mulf %26, %27 : vector<4x2450xf32>
    %c0_27 = arith.constant 0 : index
    %c128_28 = arith.constant 128 : index
    %29 = vector.load %arg13[%c0_27, %c128_28] : memref<4x2706xf32, #tpu.memory_space<vmem>>, vector<4x2450xf32>
    tpu.vector_store %arg13[%c0_27, %c128_28], %28 {strides = array<i32>} : memref<4x2706xf32, #tpu.memory_space<vmem>>, vector<4x2450xf32>,
    %c0_29 = arith.constant 0 : index
    %c92_30 = arith.constant 92 : index
    %30 = vector.load %arg13[%c0_29, %c92_30] : memref<4x2706xf32, #tpu.memory_space<vmem>>, vector<4x2450xf32>
    %c0_31 = arith.constant 0 : index
    %c93_32 = arith.constant 93 : index
    %31 = vector.load %arg13[%c0_31, %c93_32] : memref<4x2706xf32, #tpu.memory_space<vmem>>, vector<4x2450xf32>
    %c0_33 = arith.constant 0 : index
    %c94_34 = arith.constant 94 : index
    %32 = vector.load %arg13[%c0_33, %c94_34] : memref<4x2706xf32, #tpu.memory_space<vmem>>, vector<4x2450xf32>
    %c0_35 = arith.constant 0 : index
    %c127_36 = arith.constant 127 : index
    %33 = vector.load %arg13[%c0_35, %c127_36] : memref<4x2706xf32, #tpu.memory_space<vmem>>, vector<4x2450xf32>
    %c0_37 = arith.constant 0 : index
    %c128_38 = arith.constant 128 : index
    %34 = vector.load %arg13[%c0_37, %c128_38] : memref<4x2706xf32, #tpu.memory_space<vmem>>, vector<4x2450xf32>
    %c0_39 = arith.constant 0 : index
    %c129_40 = arith.constant 129 : index
    %35 = vector.load %arg13[%c0_39, %c129_40] : memref<4x2706xf32, #tpu.memory_space<vmem>>, vector<4x2450xf32>
    %c0_41 = arith.constant 0 : index
    %c162_42 = arith.constant 162 : index
    %36 = vector.load %arg13[%c0_41, %c162_42] : memref<4x2706xf32, #tpu.memory_space<vmem>>, vector<4x2450xf32>
    %c0_43 = arith.constant 0 : index
    %c163_44 = arith.constant 163 : index
    %37 = vector.load %arg13[%c0_43, %c163_44] : memref<4x2706xf32, #tpu.memory_space<vmem>>, vector<4x2450xf32>
    %c0_45 = arith.constant 0 : index
    %c164_46 = arith.constant 164 : index
    %38 = vector.load %arg13[%c0_45, %c164_46] : memref<4x2706xf32, #tpu.memory_space<vmem>>, vector<4x2450xf32>
    %c0_47 = arith.constant 0 : index
    %c92_48 = arith.constant 92 : index
    %39 = vector.load %arg2[%c0_47, %c92_48] : memref<4x2706xf32, #tpu.memory_space<vmem>>, vector<4x2450xf32>
    %c0_49 = arith.constant 0 : index
    %c93_50 = arith.constant 93 : index
    %40 = vector.load %arg2[%c0_49, %c93_50] : memref<4x2706xf32, #tpu.memory_space<vmem>>, vector<4x2450xf32>
    %c0_51 = arith.constant 0 : index
    %c94_52 = arith.constant 94 : index
    %41 = vector.load %arg2[%c0_51, %c94_52] : memref<4x2706xf32, #tpu.memory_space<vmem>>, vector<4x2450xf32>
    %c0_53 = arith.constant 0 : index
    %c127_54 = arith.constant 127 : index
    %42 = vector.load %arg2[%c0_53, %c127_54] : memref<4x2706xf32, #tpu.memory_space<vmem>>, vector<4x2450xf32>
    %c0_55 = arith.constant 0 : index
    %c128_56 = arith.constant 128 : index
    %43 = vector.load %arg2[%c0_55, %c128_56] : memref<4x2706xf32, #tpu.memory_space<vmem>>, vector<4x2450xf32>
    %c0_57 = arith.constant 0 : index
    %c129_58 = arith.constant 129 : index
    %44 = vector.load %arg2[%c0_57, %c129_58] : memref<4x2706xf32, #tpu.memory_space<vmem>>, vector<4x2450xf32>
    %c0_59 = arith.constant 0 : index
    %c162_60 = arith.constant 162 : index
    %45 = vector.load %arg2[%c0_59, %c162_60] : memref<4x2706xf32, #tpu.memory_space<vmem>>, vector<4x2450xf32>
    %c0_61 = arith.constant 0 : index
    %c163_62 = arith.constant 163 : index
    %46 = vector.load %arg2[%c0_61, %c163_62] : memref<4x2706xf32, #tpu.memory_space<vmem>>, vector<4x2450xf32>
    %c0_63 = arith.constant 0 : index
    %c164_64 = arith.constant 164 : index
    %47 = vector.load %arg2[%c0_63, %c164_64] : memref<4x2706xf32, #tpu.memory_space<vmem>>, vector<4x2450xf32>
    %c0_65 = arith.constant 0 : index
    %c0_66 = arith.constant 0 : index
    %48 = vector.load %arg4[%c0_65, %c0_66] : memref<4x72xf32, #tpu.memory_space<vmem>>, vector<4x72xf32>
    %49 = tpu.concatenate %30, %39, %31, %40, %32, %41, %33, %42, %34, %43, %35, %44, %36, %45, %37, %46 in 0 : vector<4x2450xf32>, vector<4x2450xf32>, vector<4x2450xf32>, vector<4x2450xf32>, vector<4x2450xf32>, vector<4x2450xf32>, vector<4x2450xf32>, vector<4x2450xf32>, vector<4x2450xf32>, vector<4x2450xf32>, vector<4x2450xf32>, vector<4x2450xf32>, vector<4x2450xf32>, vector<4x2450xf32>, vector<4x2450xf32>, vector<4x2450xf32> -> vector<64x2450xf32>
    %50 = tpu.concatenate %38, %47 in 0 : vector<4x2450xf32>, vector<4x2450xf32> -> vector<8x2450xf32>
    %51 = tpu.concatenate %49, %50 in 0 : vector<64x2450xf32>, vector<8x2450xf32> -> vector<72x2450xf32>
    %cst_67 = arith.constant dense<0.000000e+00> : vector<4x2450xf32>
    %52 = tpu.matmul %48, %51, %cst_67 {dimension_numbers = #tpu.dot_dimension_numbers<[1], [0], [0], [1], [0, 0, 1, 1], [], []>} : vector<4x72xf32>, vector<72x2450xf32>, vector<4x2450xf32> -> vector<4x2450xf32>
    %53 = arith.mulf %52, %52 : vector<4x2450xf32>
    %54 = tpu.concatenate %52, %53 in 0 : vector<4x2450xf32>, vector<4x2450xf32> -> vector<8x2450xf32>
    %55 = vector.broadcast %0 : vector<1x2450xf32> to vector<8x2450xf32>
    %56 = arith.mulf %54, %55 : vector<8x2450xf32>
    %cst_68 = arith.constant dense<0.000000e+00> : vector<8xf32>
    %57 = vector.multi_reduction <add>, %56, %cst_68 [1] : vector<8x2450xf32> to vector<8xf32>
    %58 = vector.shape_cast %57 : vector<8xf32> to vector<8x1xf32>
    %59 = vector.extract_strided_slice %58 {offsets = [0, 0], sizes = [4, 1], strides = [1, 1]} : vector<8x1xf32> to vector<4x1xf32>
    %cst_69 = arith.constant 2.048000e+03 : f32
    %60 = vector.broadcast %cst_69 : f32 to vector<4x1xf32>
    %61 = arith.divf %59, %60 : vector<4x1xf32>
    %62 = vector.extract_strided_slice %58 {offsets = [4, 0], sizes = [4, 1], strides = [1, 1]} : vector<8x1xf32> to vector<4x1xf32>
    %cst_70 = arith.constant 2.048000e+03 : f32
    %63 = vector.broadcast %cst_70 : f32 to vector<4x1xf32>
    %64 = arith.divf %62, %63 : vector<4x1xf32>
    %65 = arith.mulf %61, %61 : vector<4x1xf32>
    %66 = arith.subf %64, %65 : vector<4x1xf32>
    %c0_71 = arith.constant 0 : index
    %c0_72 = arith.constant 0 : index
    %67 = vector.load %arg7[%c0_71, %c0_72] : memref<4x1xf32, #tpu.memory_space<vmem>>, vector<4x1xf32>
    %cst_73 = arith.constant 9.99999974E-6 : f32
    %68 = vector.broadcast %cst_73 : f32 to vector<4x1xf32>
    %69 = arith.addf %66, %68 : vector<4x1xf32>
    %70 = math.rsqrt %69 : vector<4x1xf32>
    %71 = arith.mulf %67, %70 : vector<4x1xf32>
    %c0_74 = arith.constant 0 : index
    %c0_75 = arith.constant 0 : index
    %72 = vector.load %arg8[%c0_74, %c0_75] : memref<4x1xf32, #tpu.memory_space<vmem>>, vector<4x1xf32>
    %73 = arith.mulf %61, %71 : vector<4x1xf32>
    %74 = arith.subf %72, %73 : vector<4x1xf32>
    %75 = vector.broadcast %71 : vector<4x1xf32> to vector<4x2450xf32>
    %76 = arith.mulf %52, %75 : vector<4x2450xf32>
    %77 = vector.broadcast %74 : vector<4x1xf32> to vector<4x2450xf32>
    %78 = arith.addf %76, %77 : vector<4x2450xf32>
    %cst_76 = arith.constant 0.000000e+00 : f32
    %79 = vector.broadcast %cst_76 : f32 to vector<4x2450xf32>
    %80 = arith.maximumf %78, %79 : vector<4x2450xf32>
    %81 = vector.broadcast %0 : vector<1x2450xf32> to vector<4x2450xf32>
    %82 = arith.mulf %80, %81 : vector<4x2450xf32>
    %c0_77 = arith.constant 0 : index
    %c128_78 = arith.constant 128 : index
    %83 = vector.load %arg14[%c0_77, %c128_78] : memref<4x2706xf32, #tpu.memory_space<vmem>>, vector<4x2450xf32>
    tpu.vector_store %arg14[%c0_77, %c128_78], %82 {strides = array<i32>} : memref<4x2706xf32, #tpu.memory_space<vmem>>, vector<4x2450xf32>,
    %c0_79 = arith.constant 0 : index
    %c92_80 = arith.constant 92 : index
    %84 = vector.load %arg14[%c0_79, %c92_80] : memref<4x2706xf32, #tpu.memory_space<vmem>>, vector<4x2450xf32>
    %c0_81 = arith.constant 0 : index
    %c93_82 = arith.constant 93 : index
    %85 = vector.load %arg14[%c0_81, %c93_82] : memref<4x2706xf32, #tpu.memory_space<vmem>>, vector<4x2450xf32>
    %c0_83 = arith.constant 0 : index
    %c94_84 = arith.constant 94 : index
    %86 = vector.load %arg14[%c0_83, %c94_84] : memref<4x2706xf32, #tpu.memory_space<vmem>>, vector<4x2450xf32>
    %c0_85 = arith.constant 0 : index
    %c127_86 = arith.constant 127 : index
    %87 = vector.load %arg14[%c0_85, %c127_86] : memref<4x2706xf32, #tpu.memory_space<vmem>>, vector<4x2450xf32>
    %c0_87 = arith.constant 0 : index
    %c128_88 = arith.constant 128 : index
    %88 = vector.load %arg14[%c0_87, %c128_88] : memref<4x2706xf32, #tpu.memory_space<vmem>>, vector<4x2450xf32>
    %c0_89 = arith.constant 0 : index
    %c129_90 = arith.constant 129 : index
    %89 = vector.load %arg14[%c0_89, %c129_90] : memref<4x2706xf32, #tpu.memory_space<vmem>>, vector<4x2450xf32>
    %c0_91 = arith.constant 0 : index
    %c162_92 = arith.constant 162 : index
    %90 = vector.load %arg14[%c0_91, %c162_92] : memref<4x2706xf32, #tpu.memory_space<vmem>>, vector<4x2450xf32>
    %c0_93 = arith.constant 0 : index
    %c163_94 = arith.constant 163 : index
    %91 = vector.load %arg14[%c0_93, %c163_94] : memref<4x2706xf32, #tpu.memory_space<vmem>>, vector<4x2450xf32>
    %c0_95 = arith.constant 0 : index
    %c164_96 = arith.constant 164 : index
    %92 = vector.load %arg14[%c0_95, %c164_96] : memref<4x2706xf32, #tpu.memory_space<vmem>>, vector<4x2450xf32>
    %c0_97 = arith.constant 0 : index
    %c0_98 = arith.constant 0 : index
    %93 = vector.load %arg5[%c0_97, %c0_98] : memref<4x36xf32, #tpu.memory_space<vmem>>, vector<4x36xf32>
    %94 = tpu.concatenate %84, %85, %86, %87, %88, %89, %90, %91, %92 in 0 : vector<4x2450xf32>, vector<4x2450xf32>, vector<4x2450xf32>, vector<4x2450xf32>, vector<4x2450xf32>, vector<4x2450xf32>, vector<4x2450xf32>, vector<4x2450xf32>, vector<4x2450xf32> -> vector<36x2450xf32>
    %cst_99 = arith.constant dense<0.000000e+00> : vector<4x2450xf32>
    %95 = tpu.matmul %93, %94, %cst_99 {dimension_numbers = #tpu.dot_dimension_numbers<[1], [0], [0], [1], [0, 0, 1, 1], [], []>} : vector<4x36xf32>, vector<36x2450xf32>, vector<4x2450xf32> -> vector<4x2450xf32>
    %96 = arith.mulf %95, %95 : vector<4x2450xf32>
    %97 = tpu.concatenate %95, %96 in 0 : vector<4x2450xf32>, vector<4x2450xf32> -> vector<8x2450xf32>
    %98 = vector.broadcast %0 : vector<1x2450xf32> to vector<8x2450xf32>
    %99 = arith.mulf %97, %98 : vector<8x2450xf32>
    %cst_100 = arith.constant dense<0.000000e+00> : vector<8xf32>
    %100 = vector.multi_reduction <add>, %99, %cst_100 [1] : vector<8x2450xf32> to vector<8xf32>
    %101 = vector.shape_cast %100 : vector<8xf32> to vector<8x1xf32>
    %102 = vector.extract_strided_slice %101 {offsets = [0, 0], sizes = [4, 1], strides = [1, 1]} : vector<8x1xf32> to vector<4x1xf32>
    %cst_101 = arith.constant 2.048000e+03 : f32
    %103 = vector.broadcast %cst_101 : f32 to vector<4x1xf32>
    %104 = arith.divf %102, %103 : vector<4x1xf32>
    %105 = vector.extract_strided_slice %101 {offsets = [4, 0], sizes = [4, 1], strides = [1, 1]} : vector<8x1xf32> to vector<4x1xf32>
    %cst_102 = arith.constant 2.048000e+03 : f32
    %106 = vector.broadcast %cst_102 : f32 to vector<4x1xf32>
    %107 = arith.divf %105, %106 : vector<4x1xf32>
    %108 = arith.mulf %104, %104 : vector<4x1xf32>
    %109 = arith.subf %107, %108 : vector<4x1xf32>
    %c0_103 = arith.constant 0 : index
    %c0_104 = arith.constant 0 : index
    %110 = vector.load %arg9[%c0_103, %c0_104] : memref<4x1xf32, #tpu.memory_space<vmem>>, vector<4x1xf32>
    %cst_105 = arith.constant 9.99999974E-6 : f32
    %111 = vector.broadcast %cst_105 : f32 to vector<4x1xf32>
    %112 = arith.addf %109, %111 : vector<4x1xf32>
    %113 = math.rsqrt %112 : vector<4x1xf32>
    %114 = arith.mulf %110, %113 : vector<4x1xf32>
    %c0_106 = arith.constant 0 : index
    %c0_107 = arith.constant 0 : index
    %115 = vector.load %arg10[%c0_106, %c0_107] : memref<4x1xf32, #tpu.memory_space<vmem>>, vector<4x1xf32>
    %116 = arith.mulf %104, %114 : vector<4x1xf32>
    %117 = arith.subf %115, %116 : vector<4x1xf32>
    %118 = vector.broadcast %114 : vector<4x1xf32> to vector<4x2450xf32>
    %119 = arith.mulf %95, %118 : vector<4x2450xf32>
    %120 = vector.broadcast %117 : vector<4x1xf32> to vector<4x2450xf32>
    %121 = arith.addf %119, %120 : vector<4x2450xf32>
    %cst_108 = arith.constant 0.000000e+00 : f32
    %122 = vector.broadcast %cst_108 : f32 to vector<4x2450xf32>
    %123 = arith.maximumf %121, %122 : vector<4x2450xf32>
    %c0_109 = arith.constant 0 : index
    %c0_110 = arith.constant 0 : index
    %124 = vector.load %arg12[%c0_109, %c0_110] : memref<4x2450xf32, #tpu.memory_space<vmem>>, vector<4x2450xf32>
    tpu.vector_store %arg12[%c0_109, %c0_110], %123 {strides = array<i32>} : memref<4x2450xf32, #tpu.memory_space<vmem>>, vector<4x2450xf32>,
    return
  }
  func.func @transform_0(%arg0: i32) -> (i32, i32) {
    %c0_i32 = arith.constant 0 : i32
    %c0_i32_0 = arith.constant 0 : i32
    %c0_i32_1 = arith.constant 0 : i32
    return %c0_i32, %c0_i32_0 : i32, i32
  }
  func.func @transform_1(%arg0: i32) -> (i32, i32) {
    %c0_i32 = arith.constant 0 : i32
    %c0_i32_0 = arith.constant 0 : i32
    %c0_i32_1 = arith.constant 0 : i32
    return %c0_i32, %c0_i32_0 : i32, i32
  }
  func.func @transform_2(%arg0: i32) -> (i32, i32) {
    %c0_i32 = arith.constant 0 : i32
    %c0_i32_0 = arith.constant 0 : i32
    %c0_i32_1 = arith.constant 0 : i32
    return %c0_i32, %c0_i32_0 : i32, i32
  }
  func.func @transform_3(%arg0: i32) -> (i32, i32) {
    %c0_i32 = arith.constant 0 : i32
    %c0_i32_0 = arith.constant 0 : i32
    %c0_i32_1 = arith.constant 0 : i32
    return %c0_i32, %c0_i32_0 : i32, i32
  }
  func.func @transform_4(%arg0: i32) -> (i32, i32) {
    %c0_i32 = arith.constant 0 : i32
    %c0_i32_0 = arith.constant 0 : i32
    %c0_i32_1 = arith.constant 0 : i32
    return %c0_i32, %c0_i32_0 : i32, i32
  }
  func.func @transform_5(%arg0: i32) -> (i32, i32) {
    %c0_i32 = arith.constant 0 : i32
    %c0_i32_0 = arith.constant 0 : i32
    %c0_i32_1 = arith.constant 0 : i32
    return %c0_i32, %c0_i32_0 : i32, i32
  }
  func.func @transform_6(%arg0: i32) -> (i32, i32) {
    %c0_i32 = arith.constant 0 : i32
    %c0_i32_0 = arith.constant 0 : i32
    %c0_i32_1 = arith.constant 0 : i32
    return %c0_i32, %c0_i32_0 : i32, i32
  }
  func.func @transform_7(%arg0: i32) -> (i32, i32) {
    %c0_i32 = arith.constant 0 : i32
    %c0_i32_0 = arith.constant 0 : i32
    %c0_i32_1 = arith.constant 0 : i32
    return %c0_i32, %c0_i32_0 : i32, i32
  }
  func.func @transform_8(%arg0: i32) -> (i32, i32) {
    %c0_i32 = arith.constant 0 : i32
    %c0_i32_0 = arith.constant 0 : i32
    %c0_i32_1 = arith.constant 0 : i32
    return %c0_i32, %c0_i32_0 : i32, i32
  }
  func.func @transform_9(%arg0: i32) -> (i32, i32) {
    %c0_i32 = arith.constant 0 : i32
    %c0_i32_0 = arith.constant 0 : i32
    %c0_i32_1 = arith.constant 0 : i32
    return %c0_i32, %c0_i32_0 : i32, i32
  }
  func.func @transform_10(%arg0: i32) -> (i32, i32) {
    %c0_i32 = arith.constant 0 : i32
    %c0_i32_0 = arith.constant 0 : i32
    %c0_i32_1 = arith.constant 0 : i32
    return %c0_i32, %c0_i32_0 : i32, i32
  }
  func.func @transform_11(%arg0: i32) -> (i32, i32) {
    %c0_i32 = arith.constant 0 : i32
    %c0_i32_0 = arith.constant 0 : i32
    %c0_i32_1 = arith.constant 0 : i32
    return %c0_i32, %c0_i32_0 : i32, i32
  }
}

</mosaic_0001>

<bundles_post_ra>
// kernel: upsample_block_small.1
= control target key start
LH: loop header
LB: loop body
LE: loop exit
PB: predicated region body
PF: predicated region fallthrough
CT: control target
= control target key end

     0   :  { %s12327_s29 = smov 127   ;;  %s12328_s19 = smov 126   ;;  %vm168_vm0 = vcmask 1039360   ;;  %vm51_vm1 = vcmask 1043456   ;;  %vm248_vm2 = vcmask 1031168   ;;  %vm328_vm3 = vcmask 1022976   ;;  %s21015_s0 = inlined_call_operand.vmem [shape: f32[4,2706], index: 0, kind: input, shape index: {}]   ;;  %s21016_s5 = inlined_call_operand.vmem [shape: f32[4,1], index: 5, kind: input, shape index: {}]   ;;  %s21017_s1 = inlined_call_operand.vmem [shape: f32[4,2706], index: 1, kind: input, shape index: {}]   ;;  %s21018_s2 = inlined_call_operand.vmem [shape: f32[4,64], index: 2, kind: input, shape index: {}]   ;;  %s21019_s10 = inlined_call_operand.vmem [shape: f32[1,2450], index: 10, kind: input, shape index: {}]   ;;  %s21020_s3 = inlined_call_operand.vmem [shape: f32[4,72], index: 3, kind: input, shape index: {}]   ;;  %s21021_s6 = inlined_call_operand.vmem [shape: f32[4,1], index: 6, kind: input, shape index: {}]   ;;  %s21022_s7 = inlined_call_operand.vmem [shape: f32[4,1], index: 7, kind: input, shape index: {}]   ;;  %s21023_s4 = inlined_call_operand.vmem [shape: f32[4,36], index: 4, kind: input, shape index: {}]   ;;  %s21024_s8 = inlined_call_operand.vmem [shape: f32[4,1], index: 8, kind: input, shape index: {}]   ;;  %s21025_s9 = inlined_call_operand.vmem [shape: f32[4,1], index: 9, kind: input, shape index: {}]   ;;  %s21026_s11 = inlined_call_operand.vmem [shape: f32[4,2450], index: 11, kind: output, shape index: {}]  }
   0x1   :  { %v12408_v0 = vld [vmem:[%s21015_s0 + $0x10] sm:$0xff]  ;;  %v12413_v1 = vld [vmem:[%s21015_s0] sm:$0xff]  ;;  %v12418_v2 = vld [vmem:[%s21015_s0 + $0x18] sm:$0xff]  ;;  %s12329_s20 = smov 125   ;;  %s12330_s21 = smov 93   ;;  %vm411_vm4 = vcmask 760832  }
   0x2   :  { %v120_v3 = vcombine.low %v12408_v0, %v12408_v0  ;;  %v118_v4 = vcombine.low %v12413_v1, %v12413_v1  ;;  %v121_v5 = vcombine.low %v12418_v2, %v12418_v2  ;;  %v12429_v6 = vld [vmem:[%s21015_s0 + $0x8] sm:$0xff]  ;;  %v12441_v9 = vld [vmem:[%s21015_s0 + $0x20] sm:$0xff]  ;;  %v12459_v16 = vld [vmem:[%s21015_s0 + $0x38] sm:$0xff]  ;;  %v12502_v31 = vcombine.high %v12413_v1, %v12413_v1  ;;  %s12331_s16 = smov 92   ;;  %s12333_s30 = smov 90  }
   0x3   :  { %v12434_v7 = vld [vmem:[%s21015_s0 + $0x28] sm:$0xff]  ;;  %v119_v8 = vcombine.low %v12429_v6, %v12429_v6  ;;  %v122_v15 = vcombine.low %v12441_v9, %v12441_v9  ;;  %v12464_v17 = vld [vmem:[%s21015_s0 + $0x30] sm:$0xff]  ;;  %v125_v18 = vcombine.low %v12459_v16, %v12459_v16  ;;  %v12482_v23 = vld [vmem:[%s21015_s0 + $0x40] sm:$0xff]  ;;  %v12494_v28 = vcombine.high %v12429_v6, %v12429_v6  ;;  %s12334_s12 = smov 58   ;;  %s12335_s13 = smov 57  }
   0x4   :  { %v12444_v10 = vpack.i.bf16 %v12408_v0, %v120_v3  ;;  %v9377_v11 = vpack.i.bf16 %v12413_v1, %v118_v4  ;;  %v123_v12 = vcombine.low %v12434_v7, %v12434_v7  ;;  %v9392_v13 = vpack.i.bf16 %v12418_v2, %v121_v5  ;;  %v12477_v22 = vld [vmem:[%s21015_s0 + $0x48] sm:$0xff]  ;;  %v79_v52 = vld [vmem:[%s21015_s0 + $0x14] sm:$0xff]  ;;  %v76_v58 = vld [vmem:[%s21015_s0 + $0x50] sm:$0xf]  ;;  %s12337_s14 = smov 56   ;;  %s12338_s15 = smov 55  }
   0x5   :  { %v9382_v14 = vpack.i.bf16 %v12429_v6, %v119_v8  ;;  %v9397_v20 = vpack.i.bf16 %v12441_v9, %v122_v15  ;;  %v124_v21 = vcombine.low %v12464_v17, %v12464_v17  ;;  %v9412_v24 = vpack.i.bf16 %v12459_v16, %v125_v18  ;;  %v77_v50 = vld [vmem:[%s21015_s0 + $0x4] sm:$0xff]  ;;  %v78_v53 = vld [vmem:[%s21015_s0 + $0xc] sm:$0xff]  ;;  %v80_v59 = vld [vmem:[%s21015_s0 + $0x1c] sm:$0xff]  ;;  %s12339_s17 = smov 23   ;;  %s12340_s18 = smov 22  }
   0x6   :  { %9388 = vrot.lane.b32.xlu1 %v12444_v10, %s12327_s29  ;;  %9378 = vrot.lane.b32.xlu0 %v9377_v11, %s12327_s29  ;;  %v9402_v19 = vpack.i.bf16 %v12434_v7, %v123_v12  ;;  %v127_v26 = vcombine.low %v12477_v22, %v12477_v22  ;;  %v126_v27 = vcombine.low %v12482_v23, %v12482_v23  ;;  %v81_v57 = vld [vmem:[%s21015_s0 + $0x24] sm:$0xff]  ;;  %v83_v3 = vld [vmem:[%s21015_s0 + $0x34] sm:$0xff]  ;;  %s12342_s22 = smov 20   ;;  %vm512_vm5 = vcmask 752640  }
   0x7   :  { %v9407_v25 = vpack.i.bf16 %v12464_v17, %v124_v21  ;;  %v9432_v32 = vpack.i.bf16 %v12494_v28, %v12429_v6  ;;  %v9427_v33 = vpack.i.bf16 %v12502_v31, %v12413_v1  ;;  %v12512_v34 = vcombine.high %v12418_v2, %v12418_v2  ;;  %v82_v4 = vld [vmem:[%s21015_s0 + $0x2c] sm:$0xff]  ;;  %v85_v12 = vld [vmem:[%s21015_s0 + $0x44] sm:$0xff] }
   0x8   :  { %v9422_v29 = vpack.i.bf16 %v12477_v22, %v127_v26  ;;  %v9417_v30 = vpack.i.bf16 %v12482_v23, %v126_v27  ;;  %v12516_v35 = vcombine.high %v12408_v0, %v12408_v0  ;;  %v12520_v36 = vcombine.high %v12434_v7, %v12434_v7 }
   0x9   :  { %v9442_v37 = vpack.i.bf16 %v12512_v34, %v12418_v2  ;;  %v12530_v39 = vcombine.high %v12441_v9, %v12441_v9  ;;  %v12534_v40 = vcombine.high %v12459_v16, %v12459_v16  ;;  %v12544_v43 = vcombine.high %v12464_v17, %v12464_v17 }
   0xa   :  { %9393 = vrot.lane.b32.xlu1 %v9392_v13, %s12327_s29  ;;  %9383 = vrot.lane.b32.xlu0 %v9382_v14, %s12327_s29  ;;  %v9437_v38 = vpack.i.bf16 %v12516_v35, %v12408_v0  ;;  %v9452_v41 = vpack.i.bf16 %v12520_v36, %v12434_v7  ;;  %v12548_v44 = vcombine.high %v12477_v22, %v12477_v22  ;;  %vm602_vm6 = vcmask 744448  }
   0xb   :  { %v9447_v42 = vpack.i.bf16 %v12530_v39, %v12441_v9  ;;  %v9462_v45 = vpack.i.bf16 %v12534_v40, %v12459_v16  ;;  %v9457_v46 = vpack.i.bf16 %v12544_v43, %v12464_v17  ;;  %v12558_v47 = vcombine.high %v12482_v23, %v12482_v23 }
   0xc   :  { %v9472_v48 = vpack.i.bf16 %v12548_v44, %v12477_v22  ;;  %v462_v51 = vcombine.low %v77_v50, %v77_v50  ;;  %v464_v55 = vcombine.low %v79_v52, %v79_v52  ;;  %v463_v56 = vcombine.low %v78_v53, %v78_v53 }
   0xd   :  { %v9467_v49 = vpack.i.bf16 %v12558_v47, %v12482_v23  ;;  %v466_v60 = vcombine.low %v81_v57, %v81_v57  ;;  %v465_v63 = vcombine.low %v80_v59, %v80_v59  ;;  %v468_v5 = vcombine.low %v83_v3, %v83_v3 }
   0xe   :  { %9403 = vrot.lane.b32.xlu1 %v9402_v19, %s12327_s29  ;;  %9398 = vrot.lane.b32.xlu0 %v9397_v20, %s12327_s29  ;;  %v12588_v54 = vpack.i.bf16 %v77_v50, %v462_v51  ;;  %v12602_v61 = vpack.i.bf16 %v79_v52, %v464_v55  ;;  %v12604_v62 = vpack.i.bf16 %v78_v53, %v463_v56  ;;  %vm682_vm7 = vcmask 736256  }
   0xf   :  { %v12616_v8 = vpack.i.bf16 %v81_v57, %v466_v60  ;;  %v12630_v15 = vpack.i.bf16 %v83_v3, %v468_v5  ;;  %v554_v27 = vcombine.high %v79_v52, %v79_v52  ;;  %v560_v51 = vcombine.high %v85_v12, %v85_v12 }
  0x10   :  { %vm762_vm8 = vcmask 474112   ;;  %vm842_vm9 = vcmask 465920   ;;  %vm922_vm10 = vcmask 457728   ;;  %vm1002_vm11 = vcmask 449536  }
  0x11   :  { %vm1082_vm12 = vcmask 187392   ;;  %vm1162_vm13 = vcmask 179200   ;;  %vm1242_vm14 = vcmask 171008   ;;  %vm1322_vm15 = vcmask 162816  }
  0x12   :  { %9413 = vrot.lane.b32.xlu1 %v9412_v24, %s12327_s29  ;;  %9408 = vrot.lane.b32.xlu0 %v9407_v25, %s12327_s29 }
  0x16   :  { %9423 = vrot.lane.b32.xlu1 %v9422_v29, %s12327_s29  ;;  %9418 = vrot.lane.b32.xlu0 %v9417_v30, %s12327_s29 }
  0x1a   :  { %9433 = vrot.lane.b32.xlu1 %v9432_v32, %s12328_s19  ;;  %9428 = vrot.lane.b32.xlu0 %v9427_v33, %s12328_s19 }
  0x1e   :  { %9443 = vrot.lane.b32.xlu1 %v9442_v37, %s12328_s19  ;;  %9438 = vrot.lane.b32.xlu0 %v9437_v38, %s12328_s19 }
  0x22   :  { %9453 = vrot.lane.b32.xlu1 %v9452_v41, %s12328_s19  ;;  %9448 = vrot.lane.b32.xlu0 %v9447_v42, %s12328_s19 }
  0x26   :  { %9463 = vrot.lane.b32.xlu1 %v9462_v45, %s12328_s19  ;;  %9458 = vrot.lane.b32.xlu0 %v9457_v46, %s12328_s19 }
  0x2a   :  { %9473 = vrot.lane.b32.xlu1 %v9472_v48, %s12328_s19  ;;  %9468 = vrot.lane.b32.xlu0 %v9467_v49, %s12328_s19 }
  0x2e   :  { %9483 = vrot.lane.b32.xlu1 %v9382_v14, %s12329_s20  ;;  %9478 = vrot.lane.b32.xlu0 %v9377_v11, %s12329_s20  ;;  %v467_v11 = vcombine.low %v82_v4, %v82_v4  ;;  %v470_v14 = vcombine.low %v85_v12, %v85_v12 }
  0x30   :  { %v12632_v18 = vpack.i.bf16 %v82_v4, %v467_v11  ;;  %v12637_v21 = vpack.i.bf16 %v85_v12, %v470_v14 }
  0x32   :  { %9493 = vrot.lane.b32.xlu1 %v9392_v13, %s12329_s20  ;;  %9488 = vrot.lane.b32.xlu0 %v12444_v10, %s12329_s20  ;;  %v12618_v10 = vpack.i.bf16 %v80_v59, %v465_v63  ;;  %v84_v13 = vld [vmem:[%s21015_s0 + $0x3c] sm:$0xff] }
  0x36   :  { %9503 = vrot.lane.b32.xlu1 %v9402_v19, %s12329_s20  ;;  %9498 = vrot.lane.b32.xlu0 %v9397_v20, %s12329_s20  ;;  %v469_v19 = vcombine.low %v84_v13, %v84_v13  ;;  %v86_v20 = vld [vmem:[%s21015_s0 + $0x4c] sm:$0xff]  ;;  %s12332_s0 = smov 91  }
  0x37   :  { %v471_v26 = vcombine.low %v86_v20, %v86_v20  ;;  %v561_v56 = vcombine.high %v86_v20, %v86_v20 }
  0x3a   :  { %9513 = vrot.lane.b32.xlu1 %v9412_v24, %s12329_s20  ;;  %9508 = vrot.lane.b32.xlu0 %v9407_v25, %s12329_s20  ;;  %v12643_v24 = vpack.i.bf16 %v84_v13, %v469_v19  ;;  %v552_v25 = vcombine.high %v77_v50, %v77_v50 }
  0x3e   :  { %9523 = vrot.lane.b32.xlu1 %v9422_v29, %s12329_s20  ;;  %9518 = vrot.lane.b32.xlu0 %v9417_v30, %s12329_s20  ;;  %v12649_v29 = vpack.i.bf16 %v552_v25, %v77_v50  ;;  %v12651_v30 = vpack.i.bf16 %v86_v20, %v471_v26  ;;  %s12341_s20 = smov 21  }
  0x40   :  { %21561 = vst [vmem:[#allocation4_spill] sm:$0xff] %v12649_v29  ;;  %21562 = vst [vmem:[#allocation5_spill] sm:$0xff] %v12651_v30 }
  0x42   :  { %9533 = vrot.lane.b32.xlu1 %v9432_v32, %s12330_s21  ;;  %9528 = vrot.lane.b32.xlu0 %v9427_v33, %s12330_s21  ;;  %v553_v32 = vcombine.high %v78_v53, %v78_v53  ;;  %v556_v33 = vcombine.high %v81_v57, %v81_v57 }
  0x46   :  { %9543 = vrot.lane.b32.xlu1 %v9442_v37, %s12330_s21  ;;  %9538 = vrot.lane.b32.xlu0 %v9437_v38, %s12330_s21  ;;  %v12657_v37 = vpack.i.bf16 %v554_v27, %v79_v52  ;;  %v12659_v38 = vpack.i.bf16 %v553_v32, %v78_v53  ;;  %v559_v52 = vcombine.high %v84_v13, %v84_v13 }
  0x47   :  { %v12681_v53 = vpack.i.bf16 %v560_v51, %v85_v12 }
  0x48   :  { %21563 = vst [vmem:[#allocation6_spill] sm:$0xff] %v12657_v37  ;;  %21564 = vst [vmem:[#allocation7_spill] sm:$0xff] %v12659_v38  ;;  %v12683_v55 = vpack.i.bf16 %v559_v52, %v84_v13 }
  0x4a   :  { %9553 = vrot.lane.b32.xlu1 %v9452_v41, %s12330_s21  ;;  %9548 = vrot.lane.b32.xlu0 %v9447_v42, %s12330_s21  ;;  %v555_v41 = vcombine.high %v80_v59, %v80_v59  ;;  %v558_v42 = vcombine.high %v83_v3, %v83_v3 }
  0x4e   :  { %9563 = vrot.lane.b32.xlu1 %v9462_v45, %s12330_s21  ;;  %9558 = vrot.lane.b32.xlu0 %v9457_v46, %s12330_s21  ;;  %v12665_v45 = vpack.i.bf16 %v556_v33, %v81_v57  ;;  %v12667_v46 = vpack.i.bf16 %v555_v41, %v80_v59  ;;  %v12693_v59 = vpack.i.bf16 %v561_v56, %v86_v20 }
  0x50   :  { %21565 = vst [vmem:[#allocation8_spill] sm:$0xff] %v12665_v45  ;;  %21566 = vst [vmem:[#allocation9_spill] sm:$0xff] %v12667_v46 }
  0x52   :  { %9573 = vrot.lane.b32.xlu1 %v9472_v48, %s12330_s21  ;;  %9568 = vrot.lane.b32.xlu0 %v9467_v49, %s12330_s21  ;;  %v557_v48 = vcombine.high %v82_v4, %v82_v4  ;;  %v12669_v49 = vpack.i.bf16 %v558_v42, %v83_v3 }
  0x54   :  { %21567 = vst [vmem:[#allocation10_spill] sm:$0xff] %v12669_v49  ;;  %v12675_v50 = vpack.i.bf16 %v557_v48, %v82_v4 }
  0x56   :  { %9578 = vrot.lane.b32.xlu1 %v12588_v54, %s12331_s16  ;;  %409 = vrot.lane.b32.xlu0 %v76_v58, %s12330_s21  ;;  %21568 = vst [vmem:[#allocation11_spill] sm:$0xff] %v12675_v50 }
  0x5a   :  { %9588 = vrot.lane.b32.xlu1 %v12602_v61, %s12331_s16  ;;  %9583 = vrot.lane.b32.xlu0 %v12604_v62, %s12331_s16 }
  0x5e   :  { %9598 = vrot.lane.b32.xlu1 %v12616_v8, %s12331_s16  ;;  %9593 = vrot.lane.b32.xlu0 %v12618_v10, %s12331_s16 }
  0x62   :  { %9608 = vrot.lane.b32.xlu1 %v12630_v15, %s12331_s16  ;;  %9603 = vrot.lane.b32.xlu0 %v12632_v18, %s12331_s16 }
  0x66   :  { %9618 = vrot.lane.b32.xlu1 %v12637_v21, %s12331_s16  ;;  %9613 = vrot.lane.b32.xlu0 %v12643_v24, %s12331_s16 }
  0x6a   :  { %9628 = vrot.lane.b32.xlu1 %v12649_v29, %s12332_s0  ;;  %9623 = vrot.lane.b32.xlu0 %v12651_v30, %s12331_s16 }
  0x6e   :  { %9638 = vrot.lane.b32.xlu1 %v12657_v37, %s12332_s0  ;;  %9633 = vrot.lane.b32.xlu0 %v12659_v38, %s12332_s0 }
  0x72   :  { %9648 = vrot.lane.b32.xlu1 %v12665_v45, %s12332_s0  ;;  %9643 = vrot.lane.b32.xlu0 %v12667_v46, %s12332_s0 }
  0x76   :  { %9658 = vrot.lane.b32.xlu1 %v12669_v49, %s12332_s0  ;;  %9653 = vrot.lane.b32.xlu0 %v12675_v50, %s12332_s0 }
  0x78   :  { %v12685_v57 = vpop.permute.xlu1 %9388  ;;  %v12687_v58 = vpop.permute.xlu0 %9378 }
  0x7a   :  { %9668 = vrot.lane.b32.xlu1 %v12681_v53, %s12332_s0  ;;  %9663 = vrot.lane.b32.xlu0 %v12683_v55, %s12332_s0 }
  0x7c   :  { %v12695_v60 = vpop.permute.xlu1 %9393  ;;  %v12697_v63 = vpop.permute.xlu0 %9383 }
  0x7e   :  { %9678 = vrot.lane.b32.xlu1 %v12588_v54, %s12333_s30  ;;  %9673 = vrot.lane.b32.xlu0 %v12693_v59, %s12332_s0 }
  0x80   :  { %v12702_v3 = vpop.permute.xlu1 %9403  ;;  %v12704_v4 = vpop.permute.xlu0 %9398 }
  0x82   :  { %9688 = vrot.lane.b32.xlu1 %v12602_v61, %s12333_s30  ;;  %9683 = vrot.lane.b32.xlu0 %v12604_v62, %s12333_s30 }
  0x84   :  { %v12708_v5 = vpop.permute.xlu1 %9413  ;;  %v12710_v11 = vpop.permute.xlu0 %9408 }
  0x86   :  { %9698 = vrot.lane.b32.xlu1 %v12616_v8, %s12333_s30  ;;  %9693 = vrot.lane.b32.xlu0 %v12618_v10, %s12333_s30 }
  0x88   :  { %v12714_v12 = vpop.permute.xlu1 %9423  ;;  %v12716_v13 = vpop.permute.xlu0 %9418 }
  0x8a   :  { %9708 = vrot.lane.b32.xlu1 %v12630_v15, %s12333_s30  ;;  %9703 = vrot.lane.b32.xlu0 %v12632_v18, %s12333_s30 }
  0x8c   :  { %v12720_v14 = vpop.permute.xlu1 %9433  ;;  %v12722_v19 = vpop.permute.xlu0 %9428 }
  0x8e   :  { %9718 = vrot.lane.b32.xlu1 %v12637_v21, %s12333_s30  ;;  %9713 = vrot.lane.b32.xlu0 %v12643_v24, %s12333_s30 }
  0x90   :  { %v12726_v20 = vpop.permute.xlu1 %9443  ;;  %v12728_v25 = vpop.permute.xlu0 %9438 }
  0x92   :  { %9728 = vrot.lane.b32.xlu1 %v12649_v29, %s12334_s12  ;;  %9723 = vrot.lane.b32.xlu0 %v12651_v30, %s12333_s30 }
  0x94   :  { %v12733_v26 = vpop.permute.xlu1 %9453  ;;  %v12735_v27 = vpop.permute.xlu0 %9448 }
  0x96   :  { %9738 = vrot.lane.b32.xlu1 %v12657_v37, %s12334_s12  ;;  %9733 = vrot.lane.b32.xlu0 %v12659_v38, %s12334_s12 }
  0x98   :  { %v12741_v32 = vpop.permute.xlu1 %9463  ;;  %v12743_v33 = vpop.permute.xlu0 %9458 }
  0x9a   :  { %9748 = vrot.lane.b32.xlu1 %v12665_v45, %s12334_s12  ;;  %9743 = vrot.lane.b32.xlu0 %v12667_v46, %s12334_s12 }
  0x9c   :  { %v12749_v41 = vpop.permute.xlu1 %9473  ;;  %v12751_v42 = vpop.permute.xlu0 %9468 }
  0x9d   :  { %21569 = vst [vmem:[#allocation12_spill] sm:$0xff] %v12749_v41  ;;  %21570 = vst [vmem:[#allocation13_spill] sm:$0xff] %v12751_v42 }
  0x9e   :  { %9758 = vrot.lane.b32.xlu1 %v12669_v49, %s12334_s12  ;;  %9753 = vrot.lane.b32.xlu0 %v12675_v50, %s12334_s12 }
  0xa0   :  { %v12757_v48 = vpop.permute.xlu1 %9483  ;;  %v12759_v51 = vpop.permute.xlu0 %9478 }
  0xa1   :  { %21571 = vst [vmem:[#allocation14_spill] sm:$0xff] %v12757_v48  ;;  %21572 = vst [vmem:[#allocation15_spill] sm:$0xff] %v12759_v51 }
  0xa2   :  { %9768 = vrot.lane.b32.xlu1 %v12681_v53, %s12334_s12  ;;  %9763 = vrot.lane.b32.xlu0 %v12683_v55, %s12334_s12 }
  0xa4   :  { %v12765_v52 = vpop.permute.xlu1 %9493  ;;  %v12767_v56 = vpop.permute.xlu0 %9488 }
  0xa5   :  { %21573 = vst [vmem:[#allocation16_spill] sm:$0xff] %v12765_v52  ;;  %21574 = vst [vmem:[#allocation17_spill] sm:$0xff] %v12767_v56 }
  0xa6   :  { %9778 = vrot.lane.b32.xlu1 %v12588_v54, %s12335_s13  ;;  %9773 = vrot.lane.b32.xlu0 %v12693_v59, %s12334_s12 }
  0xa8   :  { %v12773_v42 = vpop.permute.xlu1 %9503  ;;  %v12775_v41 = vpop.permute.xlu0 %9498 }
  0xa9   :  { %21575 = vst [vmem:[#allocation18_spill] sm:$0xff] %v12773_v42  ;;  %21576 = vst [vmem:[#allocation19_spill] sm:$0xff] %v12775_v41  ;;  %v12336_v41 = vmov 0  }
  0xaa   :  { %9788 = vrot.lane.b32.xlu1 %v12602_v61, %s12335_s13  ;;  %9783 = vrot.lane.b32.xlu0 %v12604_v62, %s12335_s13 }
  0xab   :  { %10127 = vset.pattern.permute.xlu1 %v12336_v41  ;;  %11633 = vset.pattern.permute.xlu0 %v12336_v41 }
  0xac   :  { %v12781_v52 = vpop.permute.xlu1 %9513  ;;  %v12783_v56 = vpop.permute.xlu0 %9508 }
  0xad   :  { %21577 = vst [vmem:[#allocation20_spill] sm:$0xff] %v12781_v52  ;;  %21578 = vst [vmem:[#allocation21_spill] sm:$0xff] %v12783_v56 }
  0xae   :  { %9798 = vrot.lane.b32.xlu1 %v12616_v8, %s12335_s13  ;;  %9793 = vrot.lane.b32.xlu0 %v12618_v10, %s12335_s13 }
  0xb0   :  { %v12789_v51 = vpop.permute.xlu1 %9523  ;;  %v12791_v42 = vpop.permute.xlu0 %9518 }
  0xb1   :  { %21579 = vst [vmem:[#allocation22_spill] sm:$0xff] %v12789_v51  ;;  %21580 = vst [vmem:[#allocation23_spill] sm:$0xff] %v12791_v42 }
  0xb2   :  { %9808 = vrot.lane.b32.xlu1 %v12630_v15, %s12335_s13  ;;  %9803 = vrot.lane.b32.xlu0 %v12632_v18, %s12335_s13 }
  0xb4   :  { %v12797_v52 = vpop.permute.xlu1 %9533  ;;  %v12799_v56 = vpop.permute.xlu0 %9528 }
  0xb5   :  { %21581 = vst [vmem:[#allocation24_spill] sm:$0xff] %v12797_v52  ;;  %21582 = vst [vmem:[#allocation25_spill] sm:$0xff] %v12799_v56 }
  0xb6   :  { %9818 = vrot.lane.b32.xlu1 %v12637_v21, %s12335_s13  ;;  %9813 = vrot.lane.b32.xlu0 %v12643_v24, %s12335_s13 }
  0xb8   :  { %v12805_v51 = vpop.permute.xlu1 %9543  ;;  %v12807_v42 = vpop.permute.xlu0 %9538 }
  0xb9   :  { %21583 = vst [vmem:[#allocation26_spill] sm:$0xff] %v12805_v51  ;;  %21584 = vst [vmem:[#allocation27_spill] sm:$0xff] %v12807_v42 }
  0xba   :  { %9828 = vrot.lane.b32.xlu1 %v12649_v29, %s12337_s14  ;;  %9823 = vrot.lane.b32.xlu0 %v12651_v30, %s12335_s13 }
  0xbc   :  { %v12813_v52 = vpop.permute.xlu1 %9553  ;;  %v12815_v41 = vpop.permute.xlu0 %9548 }
  0xbd   :  { %21585 = vst [vmem:[#allocation28_spill] sm:$0xff] %v12813_v52  ;;  %21586 = vst [vmem:[#allocation29_spill] sm:$0xff] %v12815_v41 }
  0xbe   :  { %9838 = vrot.lane.b32.xlu1 %v12657_v37, %s12337_s14  ;;  %9833 = vrot.lane.b32.xlu0 %v12659_v38, %s12337_s14 }
  0xc0   :  { %v12821_v51 = vpop.permute.xlu1 %9563  ;;  %v12823_v42 = vpop.permute.xlu0 %9558 }
  0xc1   :  { %21587 = vst [vmem:[#allocation30_spill] sm:$0xff] %v12821_v51  ;;  %21588 = vst [vmem:[#allocation31_spill] sm:$0xff] %v12823_v42 }
  0xc2   :  { %9848 = vrot.lane.b32.xlu1 %v12665_v45, %s12337_s14  ;;  %9843 = vrot.lane.b32.xlu0 %v12667_v46, %s12337_s14 }
  0xc4   :  { %v12829_v56 = vpop.permute.xlu1 %9573  ;;  %v12831_v52 = vpop.permute.xlu0 %9568 }
  0xc5   :  { %21589 = vst [vmem:[#allocation32_spill] sm:$0xff] %v12829_v56  ;;  %21590 = vst [vmem:[#allocation33_spill] sm:$0xff] %v12831_v52 }
  0xc6   :  { %9858 = vrot.lane.b32.xlu1 %v12669_v49, %s12337_s14  ;;  %9853 = vrot.lane.b32.xlu0 %v12675_v50, %s12337_s14 }
  0xc8   :  { %v12837_v41 = vpop.permute.xlu1 %9578  ;;  %v12839_v51 = vpop.permute.xlu0 %409 }
  0xc9   :  { %21591 = vst [vmem:[#allocation34_spill] sm:$0xff] %v12837_v41  ;;  %21592 = vst [vmem:[#allocation35_spill] sm:$0xff] %v12839_v51 }
  0xca   :  { %9868 = vrot.lane.b32.xlu1 %v12681_v53, %s12337_s14  ;;  %9863 = vrot.lane.b32.xlu0 %v12683_v55, %s12337_s14 }
  0xcc   :  { %v12845_v42 = vpop.permute.xlu1 %9588  ;;  %v12847_v56 = vpop.permute.xlu0 %9583 }
  0xcd   :  { %21593 = vst [vmem:[#allocation36_spill] sm:$0xff] %v12845_v42  ;;  %21594 = vst [vmem:[#allocation37_spill] sm:$0xff] %v12847_v56 }
  0xce   :  { %9878 = vrot.lane.b32.xlu1 %v12588_v54, %s12338_s15  ;;  %9873 = vrot.lane.b32.xlu0 %v12693_v59, %s12337_s14 }
  0xd0   :  { %v12852_v52 = vpop.permute.xlu1 %9598  ;;  %v12854_v41 = vpop.permute.xlu0 %9593 }
  0xd1   :  { %21595 = vst [vmem:[#allocation38_spill] sm:$0xff] %v12852_v52  ;;  %21596 = vst [vmem:[#allocation39_spill] sm:$0xff] %v12854_v41 }
  0xd2   :  { %9888 = vrot.lane.b32.xlu1 %v12602_v61, %s12338_s15  ;;  %9883 = vrot.lane.b32.xlu0 %v12604_v62, %s12338_s15 }
  0xd4   :  { %v12858_v51 = vpop.permute.xlu1 %9608  ;;  %v12860_v48 = vpop.permute.xlu0 %9603 }
  0xd5   :  { %21597 = vst [vmem:[#allocation40_spill] sm:$0xff] %v12858_v51  ;;  %21598 = vst [vmem:[#allocation41_spill] sm:$0xff] %v12860_v48 }
  0xd6   :  { %9898 = vrot.lane.b32.xlu1 %v12616_v8, %s12338_s15  ;;  %9893 = vrot.lane.b32.xlu0 %v12618_v10, %s12338_s15 }
  0xd8   :  { %v12864_v42 = vpop.permute.xlu1 %9618  ;;  %v12866_v56 = vpop.permute.xlu0 %9613 }
  0xd9   :  { %21599 = vst [vmem:[#allocation42_spill] sm:$0xff] %v12864_v42  ;;  %21600 = vst [vmem:[#allocation43_spill] sm:$0xff] %v12866_v56 }
  0xda   :  { %9908 = vrot.lane.b32.xlu1 %v12630_v15, %s12338_s15  ;;  %9903 = vrot.lane.b32.xlu0 %v12632_v18, %s12338_s15 }
  0xdc   :  { %v12870_v52 = vpop.permute.xlu1 %9628  ;;  %v12872_v41 = vpop.permute.xlu0 %9623 }
  0xdd   :  { %21601 = vst [vmem:[#allocation44_spill] sm:$0xff] %v12870_v52  ;;  %21602 = vst [vmem:[#allocation45_spill] sm:$0xff] %v12872_v41  ;;  %v9390_v41 = vunpack.i.l.bf16 %v12685_v57 }
  0xde   :  { %9918 = vrot.lane.b32.xlu1 %v12637_v21, %s12338_s15  ;;  %9913 = vrot.lane.b32.xlu0 %v12643_v24, %s12338_s15 }
  0xe0   :  { %v12876_v51 = vpop.permute.xlu1 %9638  ;;  %v12878_v48 = vpop.permute.xlu0 %9633 }
  0xe1   :  { %21603 = vst [vmem:[#allocation46_spill] sm:$0xff] %v12876_v51  ;;  %21604 = vst [vmem:[#allocation47_spill] sm:$0xff] %v12878_v48  ;;  %v9391_v48 = vunpack.i.h.bf16 %v12685_v57 }
  0xe2   :  { %9928 = vrot.lane.b32.xlu1 %v12649_v29, %s12339_s17  ;;  %9923 = vrot.lane.b32.xlu0 %v12651_v30, %s12338_s15  ;;  %v9381_v30 = vunpack.i.h.bf16 %v12687_v58 }
  0xe4   :  { %v12883_v56 = vpop.permute.xlu1 %9648  ;;  %v12885_v42 = vpop.permute.xlu0 %9643 }
  0xe5   :  { %21605 = vst [vmem:[#allocation48_spill] sm:$0xff] %v12883_v56  ;;  %21606 = vst [vmem:[#allocation49_spill] sm:$0xff] %v12885_v42  ;;  %v9380_v56 = vunpack.i.l.bf16 %v12687_v58  ;;  %v9395_v58 = vunpack.i.l.bf16 %v12695_v60 }
  0xe6   :  { %9938 = vrot.lane.b32.xlu1 %v12657_v37, %s12339_s17  ;;  %9933 = vrot.lane.b32.xlu0 %v12659_v38, %s12339_s17  ;;  %v9386_v38 = vunpack.i.h.bf16 %v12697_v63  ;;  %v9396_v37 = vunpack.i.h.bf16 %v12695_v60 }
  0xe7   :  { %v169_v57 = vsel %vm168_vm0, %v9380_v56, %v9381_v30 }
  0xe8   :  { %v12891_v52 = vpop.permute.xlu1 %9658  ;;  %v12893_v51 = vpop.permute.xlu0 %9653  ;;  %v172_v56 = vsel %vm168_vm0, %v9386_v38, %v9390_v41  ;;  %v12925_v29 = vsel %vm51_vm1, %v12413_v1, %v169_v57  ;;  %v9405_v1 = vunpack.i.l.bf16 %v12702_v3  ;;  %v9401_v57 = vunpack.i.h.bf16 %v12704_v4 }
  0xe9   :  { %21607 = vst [vmem:[#allocation50_spill] sm:$0xff] %v12891_v52  ;;  %21608 = vst [vmem:[#allocation51_spill] sm:$0xff] %v12893_v51  ;;  %v173_v51 = vsel %vm168_vm0, %v9390_v41, %v9391_v48  ;;  %v9406_v41 = vunpack.i.h.bf16 %v12702_v3 }
  0xea   :  { %9948 = vrot.lane.b32.xlu1 %v12665_v45, %s12339_s17  ;;  %9943 = vrot.lane.b32.xlu0 %v12667_v46, %s12339_s17  ;;  %v9385_v45 = vunpack.i.l.bf16 %v12697_v63  ;;  %v12929_v60 = vsel %vm51_vm1, %v12408_v0, %v173_v51  ;;  %v175_v63 = vsel %vm168_vm0, %v9395_v58, %v9396_v37  ;;  %v174_v51 = vsel %vm168_vm0, %v9391_v48, %v9395_v58 }
  0xeb   :  { %v9415_v48 = vunpack.i.l.bf16 %v12708_v5 }
  0xec   :  { %v12903_v42 = vpop.permute.xlu1 %9668  ;;  %v12905_v52 = vpop.permute.xlu0 %9663 }
  0xed   :  { %21609 = vst [vmem:[#allocation52_spill] sm:$0xff] %v12903_v42  ;;  %21610 = vst [vmem:[#allocation53_spill] sm:$0xff] %v12905_v52  ;;  %v9400_v52 = vunpack.i.l.bf16 %v12704_v4  ;;  %v9416_v4 = vunpack.i.h.bf16 %v12708_v5 }
  0xee   :  { %9958 = vrot.lane.b32.xlu1 %v12669_v49, %s12339_s17  ;;  %9953 = vrot.lane.b32.xlu0 %v12675_v50, %s12339_s17  ;;  %v170_v50 = vsel %vm168_vm0, %v9381_v30, %v9385_v45  ;;  %v171_v49 = vsel %vm168_vm0, %v9385_v45, %v9386_v38  ;;  %v9410_v30 = vunpack.i.l.bf16 %v12710_v11  ;;  %v12950_v45 = vsel %vm51_vm1, %v12494_v28, %v172_v56 }
  0xef   :  { %v176_v0 = vsel %vm168_vm0, %v9396_v37, %v9400_v52  ;;  %v12958_v3 = vsel %vm51_vm1, %v12502_v31, %v170_v50  ;;  %v12962_v37 = vsel %vm51_vm1, %v12418_v2, %v175_v63  ;;  %v179_v28 = vsel %vm168_vm0, %v9405_v1, %v9406_v41 }
  0xf0   :  { %v12918_v42 = vpop.permute.xlu1 %9678  ;;  %v12920_v46 = vpop.permute.xlu0 %9673  ;;  %v178_v2 = vsel %vm168_vm0, %v9401_v57, %v9405_v1  ;;  %v177_v31 = vsel %vm168_vm0, %v9400_v52, %v9401_v57  ;;  %v180_v50 = vsel %vm168_vm0, %v9406_v41, %v9410_v30  ;;  %v9420_v63 = vunpack.i.l.bf16 %v12716_v13 }
  0xf1   :  { %21611 = vst [vmem:[#allocation54_spill] sm:$0xff] %v12918_v42  ;;  %21612 = vst [vmem:[#allocation55_spill] sm:$0xff] %v12920_v46  ;;  %v12954_v42 = vsel %vm51_vm1, %v12429_v6, %v171_v49  ;;  %v12972_v6 = vsel %vm51_vm1, %v12512_v34, %v176_v0  ;;  %v9411_v49 = vunpack.i.h.bf16 %v12710_v11  ;;  %v12992_v11 = vsel %vm51_vm1, %v12516_v35, %v174_v51 }
  0xf2   :  { %9968 = vrot.lane.b32.xlu1 %v12681_v53, %s12339_s17  ;;  %9963 = vrot.lane.b32.xlu0 %v12683_v55, %s12339_s17  ;;  %v183_v52 = vsel %vm168_vm0, %v9415_v48, %v9416_v4  ;;  %v9426_v41 = vunpack.i.h.bf16 %v12714_v12  ;;  %v9425_v57 = vunpack.i.l.bf16 %v12714_v12  ;;  %v9421_v0 = vunpack.i.h.bf16 %v12716_v13 }
  0xf3   :  { %v182_v1 = vsel %vm168_vm0, %v9411_v49, %v9415_v48  ;;  %v181_v34 = vsel %vm168_vm0, %v9410_v30, %v9411_v49  ;;  %v13006_v35 = vsel %vm51_vm1, %v12434_v7, %v179_v28  ;;  %v13010_v51 = vsel %vm51_vm1, %v12520_v36, %v180_v50 }
  0xf4   :  { %v12944_v46 = vpop.permute.xlu1 %9688  ;;  %v12946_v38 = vpop.permute.xlu0 %9683  ;;  %v13020_v48 = vsel %vm51_vm1, %v12441_v9, %v177_v31  ;;  %v184_v30 = vsel %vm168_vm0, %v9416_v4, %v9420_v63  ;;  %v9436_v7 = vunpack.i.h.bf16 %v12720_v14  ;;  %v9435_v28 = vunpack.i.l.bf16 %v12720_v14 }
  0xf5   :  { %21613 = vst [vmem:[#allocation56_spill] sm:$0xff] %v12944_v46  ;;  %21614 = vst [vmem:[#allocation57_spill] sm:$0xff] %v12946_v38  ;;  %v13027_v36 = vsel %vm51_vm1, %v12530_v39, %v178_v2  ;;  %v13031_v49 = vsel %vm51_vm1, %v12548_v44, %v9426_v41  ;;  %v187_v50 = vsel %vm168_vm0, %v9425_v57, %v9426_v41  ;;  %v9431_v9 = vunpack.i.h.bf16 %v12722_v19  ;;  %v21643_v46 = vld [vmem:[#allocation16_spill] sm:$0xff] }
  0xf6   :  { %9978 = vrot.lane.b32.xlu1 %v12588_v54, %s12340_s18  ;;  %9973 = vrot.lane.b32.xlu0 %v12693_v59, %s12339_s17  ;;  %21619 = vst [vmem:[#allocation62_spill] sm:$0xff] %v13020_v48  ;;  %21620 = vst [vmem:[#allocation63_spill] sm:$0xff] %v13027_v36  ;;  %v186_v56 = vsel %vm168_vm0, %v9421_v0, %v9425_v57  ;;  %v185_v14 = vsel %vm168_vm0, %v9420_v63, %v9421_v0  ;;  %v9430_v39 = vunpack.i.l.bf16 %v12722_v19 }
  0xf7   :  { %21621 = vst [vmem:[#allocation64_spill] sm:$0xff] %v13031_v49  ;;  %v13046_v4 = vsel %vm51_vm1, %v12459_v16, %v183_v52  ;;  %v13056_v57 = vsel %vm51_vm1, %v12534_v40, %v184_v30  ;;  %v13059_v19 = vsel %vm248_vm2, %v9435_v28, %v9436_v7  ;;  %v9446_v63 = vunpack.i.h.bf16 %v12726_v20 }
  0xf8   :  { %v12979_v5 = vpop.permute.xlu1 %9698  ;;  %v12981_v58 = vpop.permute.xlu0 %9693  ;;  %21622 = vst [vmem:[#allocation65_spill] sm:$0xff] %v13046_v4  ;;  %21625 = vst [vmem:[#allocation68_spill] sm:$0xff] %v13056_v57  ;;  %v9445_v0 = vunpack.i.l.bf16 %v12726_v20  ;;  %v9441_v16 = vunpack.i.h.bf16 %v12728_v25  ;;  %v13065_v52 = vsel %vm248_vm2, %v9431_v9, %v9435_v28  ;;  %v9440_v44 = vunpack.i.l.bf16 %v12728_v25 }
  0xf9   :  { %21615 = vst [vmem:[#allocation58_spill] sm:$0xff] %v12979_v5  ;;  %21616 = vst [vmem:[#allocation59_spill] sm:$0xff] %v12981_v58  ;;  %v13074_v40 = vsel %vm51_vm1, %v12464_v17, %v181_v34  ;;  %v13078_v20 = vsel %vm51_vm1, %v12544_v43, %v182_v1  ;;  %v13081_v30 = vsel %vm248_vm2, %v9430_v39, %v9431_v9  ;;  %v9456_v41 = vunpack.i.h.bf16 %v12733_v26 }
  0xfa   :  { %9988 = vrot.lane.b32.xlu1 %v12602_v61, %s12340_s18  ;;  %9983 = vrot.lane.b32.xlu0 %v12604_v62, %s12340_s18  ;;  %21626 = vst [vmem:[#allocation69_spill] sm:$0xff] %v13074_v40  ;;  %21627 = vst [vmem:[#allocation70_spill] sm:$0xff] %v13078_v20  ;;  %v13087_v28 = vsel %vm51_vm1, %v12477_v22, %v187_v50  ;;  %v13097_v43 = vsel %vm51_vm1, %v12482_v23, %v185_v14  ;;  %v9451_v23 = vunpack.i.h.bf16 %v12735_v27  ;;  %v21644_v40 = vld [vmem:[#allocation17_spill] sm:$0xff] }
  0xfb   :  { %21628 = vst [vmem:[#allocation71_spill] sm:$0xff] %v13087_v28  ;;  %21631 = vst [vmem:[#allocation74_spill] sm:$0xff] %v13097_v43  ;;  %v13101_v1 = vsel %vm51_vm1, %v12558_v47, %v186_v56  ;;  %v13104_v9 = vsel %vm248_vm2, %v9445_v0, %v9446_v63  ;;  %v13107_v22 = vsel %vm248_vm2, %v9441_v16, %v9445_v0  ;;  %v9450_v47 = vunpack.i.l.bf16 %v12735_v27 }
  0xfc   :  { %v13012_v12 = vpop.permute.xlu1 %9708  ;;  %v13014_v13 = vpop.permute.xlu0 %9703  ;;  %21632 = vst [vmem:[#allocation75_spill] sm:$0xff] %v13101_v1  ;;  %v13112_v50 = vsel %vm248_vm2, %v9436_v7, %v9440_v44  ;;  %v13115_v39 = vsel %vm248_vm2, %v9440_v44, %v9441_v16  ;;  %v9466_v44 = vunpack.i.h.bf16 %v12741_v32  ;;  %v9465_v0 = vunpack.i.l.bf16 %v12741_v32 }
  0xfd   :  { %21617 = vst [vmem:[#allocation60_spill] sm:$0xff] %v13012_v12  ;;  %21618 = vst [vmem:[#allocation61_spill] sm:$0xff] %v13014_v13  ;;  %v9461_v27 = vunpack.i.h.bf16 %v12743_v33  ;;  %v9460_v25 = vunpack.i.l.bf16 %v12743_v33  ;;  %v13145_v12 = vsel %vm248_vm2, %v9446_v63, %v9450_v47  ;;  %v13148_v32 = vsel %vm248_vm2, %v9450_v47, %v9451_v23  ;;  %v21638_v33 = vld [vmem:[#allocation5_spill] sm:$0xff] }
  0xfe   :  { %9998 = vrot.lane.b32.xlu1 %v12616_v8, %s12340_s18  ;;  %9993 = vrot.lane.b32.xlu0 %v12618_v10, %s12340_s18  ;;  %v21640_v63 = vld [vmem:[#allocation13_spill] sm:$0xff]  ;;  %v9496_v38 = vunpack.i.h.bf16 %v21643_v46 }
  0xff   :  { %v9471_v58 = vunpack.i.h.bf16 %v21640_v63  ;;  %v13170_v5 = vsel %vm248_vm2, %v9456_v41, %v9460_v25 }
 0x100   :  { %v13048_v2 = vpop.permute.xlu1 %9718  ;;  %v13050_v31 = vpop.permute.xlu0 %9713 }
 0x101   :  { %21623 = vst [vmem:[#allocation66_spill] sm:$0xff] %v13048_v2  ;;  %21624 = vst [vmem:[#allocation67_spill] sm:$0xff] %v13050_v31  ;;  %v9455_v2 = vunpack.i.l.bf16 %v12733_v26 }
 0x102   :  { %10008 = vrot.lane.b32.xlu1 %v12630_v15, %s12340_s18  ;;  %10003 = vrot.lane.b32.xlu0 %v12632_v18, %s12340_s18 }
 0x103   :  { %v13128_v14 = vsel %vm248_vm2, %v9455_v2, %v9456_v41  ;;  %v13142_v13 = vsel %vm248_vm2, %v9451_v23, %v9455_v2  ;;  %v13157_v2 = vsel %vm248_vm2, %v9465_v0, %v9466_v44  ;;  %v9470_v23 = vunpack.i.l.bf16 %v21640_v63 }
 0x104   :  { %v13091_v17 = vpop.permute.xlu1 %9728  ;;  %v13093_v34 = vpop.permute.xlu0 %9723  ;;  %v9495_v63 = vunpack.i.l.bf16 %v21643_v46  ;;  %v13183_v41 = vsel %vm248_vm2, %v9460_v25, %v9461_v27 }
 0x105   :  { %21629 = vst [vmem:[#allocation72_spill] sm:$0xff] %v13091_v17  ;;  %21630 = vst [vmem:[#allocation73_spill] sm:$0xff] %v13093_v34  ;;  %v21635_v17 = vld [vmem:[#allocation14_spill] sm:$0xff]  ;;  %v21636_v34 = vld [vmem:[#allocation15_spill] sm:$0xff] }
 0x106   :  { %10018 = vrot.lane.b32.xlu1 %v12637_v21, %s12340_s18  ;;  %10013 = vrot.lane.b32.xlu0 %v12643_v24, %s12340_s18  ;;  %v9485_v56 = vunpack.i.l.bf16 %v21635_v17  ;;  %v9481_v31 = vunpack.i.h.bf16 %v21636_v34  ;;  %v9480_v7 = vunpack.i.l.bf16 %v21636_v34  ;;  %v9486_v47 = vunpack.i.h.bf16 %v21635_v17 }
 0x107   :  { %v9491_v17 = vunpack.i.h.bf16 %v21644_v40 }
 0x108   :  { %v13133_v16 = vpop.permute.xlu1 %9738  ;;  %v13135_v26 = vpop.permute.xlu0 %9733  ;;  %v330_v28 = vsel %vm328_vm3, %v9481_v31, %v9485_v56  ;;  %v329_v49 = vsel %vm328_vm3, %v9480_v7, %v9481_v31  ;;  %v264_v7 = vsel %vm248_vm2, %v9466_v44, %v9470_v23 }
 0x109   :  { %21633 = vst [vmem:[#allocation76_spill] sm:$0xff] %v13133_v16  ;;  %21634 = vst [vmem:[#allocation77_spill] sm:$0xff] %v13135_v26  ;;  %v21637_v26 = vld [vmem:[#allocation4_spill] sm:$0xff]  ;;  %v13204_v25 = vsel %vm51_vm1, %v13081_v30, %v329_v49  ;;  %v334_v49 = vsel %vm328_vm3, %v9491_v17, %v9495_v63  ;;  %v21655_v30 = vld [vmem:[#allocation18_spill] sm:$0xff] }
 0x10a   :  { %10028 = vrot.lane.b32.xlu1 %v21637_v26, %s12341_s20  ;;  %10023 = vrot.lane.b32.xlu0 %v21638_v33, %s12340_s18  ;;  %v21639_v16 = vld [vmem:[#allocation12_spill] sm:$0xff]  ;;  %v13167_v26 = vsel %vm248_vm2, %v9461_v27, %v9465_v0  ;;  %v21646_v0 = vld [vmem:[#allocation7_spill] sm:$0xff]  ;;  %v335_v27 = vsel %vm328_vm3, %v9495_v63, %v9496_v38 }
 0x10b   :  { %v9475_v34 = vunpack.i.l.bf16 %v21639_v16  ;;  %v21647_v20 = vunpack.i.h.bf16 %v21639_v16  ;;  %21650 = vst [vmem:[#allocation12_spill] sm:$0xff] %v13204_v25 }
 0x10c   :  { %v13162_v43 = vpop.permute.xlu1 %9748  ;;  %v13164_v1 = vpop.permute.xlu0 %9743 }
 0x10d   :  { %21641 = vst [vmem:[#allocation14_spill] sm:$0xff] %v13162_v43  ;;  %21642 = vst [vmem:[#allocation15_spill] sm:$0xff] %v13164_v1  ;;  %v9490_v43 = vunpack.i.l.bf16 %v21644_v40  ;;  %v21645_v1 = vld [vmem:[#allocation6_spill] sm:$0xff]  ;;  %v13188_v31 = vsel %vm248_vm2, %v9475_v34, %v21647_v20  ;;  %v13191_v46 = vsel %vm248_vm2, %v9471_v58, %v9475_v34  ;;  %v13195_v40 = vsel %vm248_vm2, %v9470_v23, %v9471_v58  ;;  %v21652_v34 = vld [vmem:[#allocation19_spill] sm:$0xff] }
 0x10e   :  { %10038 = vrot.lane.b32.xlu1 %v21645_v1, %s12341_s20  ;;  %10033 = vrot.lane.b32.xlu0 %v21646_v0, %s12341_s20  ;;  %v331_v1 = vsel %vm328_vm3, %v9485_v56, %v9486_v47  ;;  %v13208_v20 = vsel %vm51_vm1, %v13065_v52, %v330_v28  ;;  %v9500_v56 = vunpack.i.l.bf16 %v21652_v34  ;;  %v21653_v23 = vld [vmem:[#allocation8_spill] sm:$0xff]  ;;  %v9505_v52 = vunpack.i.l.bf16 %v21655_v30 }
 0x10f   :  { %21651 = vst [vmem:[#allocation13_spill] sm:$0xff] %v13208_v20  ;;  %v332_v44 = vsel %vm328_vm3, %v9486_v47, %v9490_v43  ;;  %v333_v58 = vsel %vm328_vm3, %v9490_v43, %v9491_v17  ;;  %v13223_v28 = vsel %vm51_vm1, %v13059_v19, %v331_v1  ;;  %v9501_v43 = vunpack.i.h.bf16 %v21652_v34  ;;  %v21659_v34 = vld [vmem:[#allocation23_spill] sm:$0xff] }
 0x110   :  { %v13198_v4 = vpop.permute.xlu1 %9758  ;;  %v13200_v0 = vpop.permute.xlu0 %9753  ;;  %v13235_v63 = vsel %vm51_vm1, %v13112_v50, %v332_v44  ;;  %v13239_v17 = vsel %vm51_vm1, %v13104_v9, %v335_v27  ;;  %v13243_v19 = vsel %vm51_vm1, %v13115_v39, %v333_v58  ;;  %v336_v1 = vsel %vm328_vm3, %v9496_v38, %v9500_v56  ;;  %v21662_v27 = vld [vmem:[#allocation20_spill] sm:$0xff] }
 0x111   :  { %21648 = vst [vmem:[#allocation4_spill] sm:$0xff] %v13198_v4  ;;  %21649 = vst [vmem:[#allocation5_spill] sm:$0xff] %v13200_v0  ;;  %v21654_v0 = vld [vmem:[#allocation9_spill] sm:$0xff]  ;;  %v9506_v4 = vunpack.i.h.bf16 %v21655_v30  ;;  %v9520_v30 = vunpack.i.l.bf16 %v21659_v34  ;;  %v13253_v50 = vsel %vm51_vm1, %v13107_v22, %v334_v49  ;;  %v9515_v44 = vunpack.i.l.bf16 %v21662_v27  ;;  %v21665_v49 = vld [vmem:[#allocation22_spill] sm:$0xff] }
 0x112   :  { %10048 = vrot.lane.b32.xlu1 %v21653_v23, %s12341_s20  ;;  %10043 = vrot.lane.b32.xlu0 %v21654_v0, %s12341_s20  ;;  %v21658_v0 = vld [vmem:[#allocation21_spill] sm:$0xff]  ;;  %v21660_v23 = vld [vmem:[#allocation10_spill] sm:$0xff]  ;;  %v338_v38 = vsel %vm328_vm3, %v9501_v43, %v9505_v52  ;;  %v337_v58 = vsel %vm328_vm3, %v9500_v56, %v9501_v43  ;;  %v9526_v20 = vunpack.i.h.bf16 %v21665_v49  ;;  %v9525_v36 = vunpack.i.l.bf16 %v21665_v49 }
 0x113   :  { %v9510_v48 = vunpack.i.l.bf16 %v21658_v0  ;;  %v339_v9 = vsel %vm328_vm3, %v9505_v52, %v9506_v4  ;;  %v9511_v39 = vunpack.i.h.bf16 %v21658_v0  ;;  %v13272_v52 = vsel %vm51_vm1, %v13145_v12, %v336_v1 }
 0x114   :  { %v13226_v47 = vpop.permute.xlu1 %9768  ;;  %v13228_v57 = vpop.permute.xlu0 %9763  ;;  %v13283_v43 = vsel %vm51_vm1, %v13128_v14, %v339_v9  ;;  %v9521_v1 = vunpack.i.h.bf16 %v21659_v34  ;;  %v347_v14 = vsel %vm328_vm3, %v9525_v36, %v9526_v20  ;;  %v21668_v9 = vld [vmem:[#allocation24_spill] sm:$0xff] }
 0x115   :  { %21656 = vst [vmem:[#allocation16_spill] sm:$0xff] %v13226_v47  ;;  %21657 = vst [vmem:[#allocation17_spill] sm:$0xff] %v13228_v57  ;;  %v21661_v57 = vld [vmem:[#allocation11_spill] sm:$0xff]  ;;  %v9516_v47 = vunpack.i.h.bf16 %v21662_v27  ;;  %v340_v22 = vsel %vm328_vm3, %v9506_v4, %v9510_v48  ;;  %v342_v0 = vsel %vm328_vm3, %v9511_v39, %v9515_v44  ;;  %v341_v12 = vsel %vm328_vm3, %v9510_v48, %v9511_v39 }
 0x116   :  { %10058 = vrot.lane.b32.xlu1 %v21660_v23, %s12341_s20  ;;  %10053 = vrot.lane.b32.xlu0 %v21661_v57, %s12341_s20  ;;  %v13297_v4 = vsel %vm51_vm1, %v13170_v5, %v340_v22  ;;  %v13302_v48 = vsel %vm51_vm1, %v13148_v32, %v337_v58  ;;  %v9535_v39 = vunpack.i.l.bf16 %v21668_v9  ;;  %v13319_v5 = vsel %vm51_vm1, %v13183_v41, %v341_v12  ;;  %v21686_v57 = vld [vmem:[#allocation34_spill] sm:$0xff] }
 0x117   :  { %v344_v56 = vsel %vm328_vm3, %v9516_v47, %v9520_v30  ;;  %v343_v27 = vsel %vm328_vm3, %v9515_v44, %v9516_v47  ;;  %v13306_v47 = vsel %vm51_vm1, %v13142_v13, %v338_v38  ;;  %v9536_v44 = vunpack.i.h.bf16 %v21668_v9  ;;  %21669 = vst [vmem:[#allocation9_spill] sm:$0xff] %v13319_v5  ;;  %v21671_v38 = vld [vmem:[#allocation25_spill] sm:$0xff]  ;;  %v21697_v5 = vld [vmem:[#allocation38_spill] sm:$0xff] }
 0x118   :  { %v13261_v23 = vpop.permute.xlu1 %9778  ;;  %v13263_v25 = vpop.permute.xlu0 %9773  ;;  %v13309_v34 = vsel %vm51_vm1, %v264_v7, %v344_v56  ;;  %v13323_v13 = vsel %vm51_vm1, %v13167_v26, %v342_v0  ;;  %v346_v32 = vsel %vm328_vm3, %v9521_v1, %v9525_v36  ;;  %v345_v7 = vsel %vm328_vm3, %v9520_v30, %v9521_v1  ;;  %v21685_v36 = vld [vmem:[#allocation30_spill] sm:$0xff] }
 0x119   :  { %21663 = vst [vmem:[#allocation6_spill] sm:$0xff] %v13261_v23  ;;  %21664 = vst [vmem:[#allocation7_spill] sm:$0xff] %v13263_v25  ;;  %v9531_v58 = vunpack.i.h.bf16 %v21671_v38  ;;  %v9530_v30 = vunpack.i.l.bf16 %v21671_v38  ;;  %v13355_v0 = vsel %vm411_vm4, %v9535_v39, %v9536_v44  ;;  %v13363_v12 = vsel %vm51_vm1, %v13195_v40, %v345_v7  ;;  %v21680_v38 = vld [vmem:[#allocation27_spill] sm:$0xff]  ;;  %v21682_v40 = vld [vmem:[#allocation29_spill] sm:$0xff] }
 0x11a   :  { %10068 = vrot.lane.b32.xlu1 %v12681_v53, %s12341_s20  ;;  %10063 = vrot.lane.b32.xlu0 %v12683_v55, %s12341_s20  ;;  %21670 = vst [vmem:[#allocation18_spill] sm:$0xff] %v13323_v13  ;;  %21677 = vst [vmem:[#allocation20_spill] sm:$0xff] %v13363_v12  ;;  %v13367_v1 = vsel %vm51_vm1, %v13191_v46, %v346_v32  ;;  %v9551_v7 = vunpack.i.h.bf16 %v21682_v40  ;;  %v9550_v32 = vunpack.i.l.bf16 %v21682_v40  ;;  %v9566_v55 = vunpack.i.h.bf16 %v21685_v36  ;;  %v21687_v40 = vld [vmem:[#allocation31_spill] sm:$0xff] }
 0x11b   :  { %21678 = vst [vmem:[#allocation22_spill] sm:$0xff] %v13367_v1  ;;  %v21694_v1 = vld [vmem:[#allocation39_spill] sm:$0xff]  ;;  %v9601_v13 = vunpack.i.h.bf16 %v21697_v5  ;;  %vm2008_vm3 = vcmask 293888  }
 0x11c   :  { %v13289_v49 = vpop.permute.xlu1 %9788  ;;  %v13291_v53 = vpop.permute.xlu0 %9783 }
 0x11d   :  { %21666 = vst [vmem:[#allocation19_spill] sm:$0xff] %v13289_v49  ;;  %21667 = vst [vmem:[#allocation8_spill] sm:$0xff] %v13291_v53  ;;  %v13417_v53 = vsel %vm411_vm4, %v9550_v32, %v9551_v7 }
 0x11e   :  { %10078 = vrot.lane.b32.xlu1 %v12588_v54, %s12342_s22  ;;  %10073 = vrot.lane.b32.xlu0 %v12693_v59, %s12341_s20  ;;  %v13330_v54 = vsel %vm51_vm1, %v13157_v2, %v343_v27  ;;  %v21672_v59 = vunpack.i.h.bf16 %v21639_v16  ;;  %v21679_v27 = vld [vmem:[#allocation26_spill] sm:$0xff]  ;;  %v21681_v16 = vld [vmem:[#allocation28_spill] sm:$0xff] }
 0x11f   :  { %v9545_v9 = vunpack.i.l.bf16 %v21679_v27  ;;  %v9555_v2 = vunpack.i.l.bf16 %v21681_v16 }
 0x120   :  { %v13335_v22 = vsel %vm51_vm1, %v21672_v59, %v9526_v20  ;;  %v13337_v41 = vpop.permute.xlu1 %9798  ;;  %v13339_v56 = vpop.permute.xlu0 %9793  ;;  %v13352_v20 = vsel %vm51_vm1, %v13188_v31, %v347_v14  ;;  %v413_v31 = vsel %vm411_vm4, %v9531_v58, %v9535_v39  ;;  %v9546_v14 = vunpack.i.h.bf16 %v21679_v27 }
 0x121   :  { %21673 = vst [vmem:[#allocation21_spill] sm:$0xff] %v13335_v22  ;;  %21674 = vst [vmem:[#allocation23_spill] sm:$0xff] %v13337_v41  ;;  %v9541_v59 = vunpack.i.h.bf16 %v21680_v38  ;;  %v412_v39 = vsel %vm411_vm4, %v9530_v30, %v9531_v58  ;;  %v9581_v41 = vunpack.i.h.bf16 %v21686_v57 }
 0x122   :  { %21675 = vst [vmem:[#allocation10_spill] sm:$0xff] %v13339_v56  ;;  %21676 = vst [vmem:[#allocation11_spill] sm:$0xff] %v13352_v20  ;;  %10088 = vrot.lane.b32.xlu1 %v12602_v61, %s12342_s22  ;;  %10083 = vrot.lane.b32.xlu0 %v12604_v62, %s12342_s22  ;;  %v9540_v61 = vunpack.i.l.bf16 %v21680_v38  ;;  %v9556_v62 = vunpack.i.h.bf16 %v21681_v16  ;;  %v9565_v16 = vunpack.i.l.bf16 %v21685_v36  ;;  %v13396_v58 = vsel %vm411_vm4, %v9545_v9, %v9546_v14 }
 0x123   :  { %v13399_v30 = vsel %vm411_vm4, %v9541_v59, %v9545_v9  ;;  %v9561_v38 = vunpack.i.h.bf16 %v21687_v40  ;;  %v9560_v36 = vunpack.i.l.bf16 %v21687_v40  ;;  %v419_v9 = vsel %vm411_vm4, %v9546_v14, %v9550_v32  ;;  %v21690_v40 = vld [vmem:[#allocation32_spill] sm:$0xff]  ;;  %v21692_v32 = vld [vmem:[#allocation33_spill] sm:$0xff] }
 0x124   :  { %v13377_v26 = vpop.permute.xlu1 %9808  ;;  %v13379_v46 = vpop.permute.xlu0 %9803  ;;  %v415_v27 = vsel %vm411_vm4, %v9536_v44, %v9540_v61  ;;  %v9576_v49 = vunpack.i.h.bf16 %v21690_v40  ;;  %v9575_v44 = vunpack.i.l.bf16 %v21690_v40  ;;  %v9571_v40 = vunpack.i.h.bf16 %v21692_v32 }
 0x125   :  { %21683 = vst [vmem:[#allocation24_spill] sm:$0xff] %v13377_v26  ;;  %21684 = vst [vmem:[#allocation25_spill] sm:$0xff] %v13379_v46  ;;  %v9580_v26 = vunpack.i.l.bf16 %v21686_v57  ;;  %v416_v57 = vsel %vm411_vm4, %v9540_v61, %v9541_v59  ;;  %v13406_v46 = vsel %vm411_vm4, %v9555_v2, %v9556_v62  ;;  %v13422_v59 = vsel %vm411_vm4, %v9565_v16, %v9566_v55 }
 0x126   :  { %10098 = vrot.lane.b32.xlu1 %v12616_v8, %s12342_s22  ;;  %10093 = vrot.lane.b32.xlu0 %v12618_v10, %s12342_s22  ;;  %v13409_v8 = vsel %vm411_vm4, %v9551_v7, %v9555_v2  ;;  %v21691_v2 = vld [vmem:[#allocation37_spill] sm:$0xff]  ;;  %v13432_v14 = vsel %vm411_vm4, %v9561_v38, %v9565_v16  ;;  %v13435_v7 = vsel %vm411_vm4, %v9556_v62, %v9560_v36  ;;  %v9595_v20 = vunpack.i.l.bf16 %v21694_v1 }
 0x127   :  { %v513_v61 = vsel %vm512_vm5, %v9580_v26, %v9581_v41  ;;  %v9586_v25 = vunpack.i.h.bf16 %v21691_v2  ;;  %v13440_v23 = vsel %vm411_vm4, %v9560_v36, %v9561_v38  ;;  %v13450_v62 = vsel %vm411_vm4, %v9575_v44, %v9576_v49 }
 0x128   :  { %v13411_v10 = vpop.permute.xlu1 %9818  ;;  %v13413_v56 = vpop.permute.xlu0 %9813  ;;  %v13453_v22 = vsel %vm51_vm1, %v412_v39, %v9580_v26  ;;  %v13457_v38 = vsel %vm51_vm1, %v413_v31, %v513_v61  ;;  %v13468_v26 = vsel %vm411_vm4, %v9571_v40, %v9575_v44  ;;  %v21698_v31 = vld [vmem:[#allocation35_spill] sm:$0xff]  ;;  %v21701_v61 = vld [vmem:[#allocation41_spill] sm:$0xff] }
 0x129   :  { %21688 = vst [vmem:[#allocation26_spill] sm:$0xff] %v13411_v10  ;;  %21689 = vst [vmem:[#allocation27_spill] sm:$0xff] %v13413_v56  ;;  %v9585_v10 = vunpack.i.l.bf16 %v21691_v2  ;;  %v9570_v56 = vunpack.i.l.bf16 %v21692_v32  ;;  %v21693_v2 = vld [vmem:[#allocation36_spill] sm:$0xff]  ;;  %v9596_v32 = vunpack.i.h.bf16 %v21694_v1  ;;  %v13478_v39 = vsel %vm411_vm4, %v9576_v49, %v21698_v31 }
 0x12a   :  { %10108 = vrot.lane.b32.xlu1 %v12630_v15, %s12342_s22  ;;  %10103 = vrot.lane.b32.xlu0 %v12632_v18, %s12342_s22  ;;  %v9591_v12 = vunpack.i.h.bf16 %v21693_v2  ;;  %v9590_v15 = vunpack.i.l.bf16 %v21693_v2 }
 0x12b   :  { %v514_v36 = vsel %vm512_vm5, %v9581_v41, %v9585_v10  ;;  %v515_v2 = vsel %vm512_vm5, %v9585_v10, %v9586_v25  ;;  %v13471_v1 = vsel %vm411_vm4, %v9566_v55, %v9570_v56  ;;  %v13474_v41 = vsel %vm411_vm4, %v9570_v56, %v9571_v40  ;;  %v21707_v56 = vld [vmem:[#allocation45_spill] sm:$0xff] }
 0x12c   :  { %v13445_v18 = vpop.permute.xlu1 %9828  ;;  %v13447_v16 = vpop.permute.xlu0 %9823  ;;  %v518_v10 = vsel %vm512_vm5, %v9591_v12, %v9595_v20  ;;  %v519_v49 = vsel %vm512_vm5, %v9595_v20, %v9596_v32  ;;  %v9605_v40 = vunpack.i.l.bf16 %v21701_v61  ;;  %v13496_v31 = vsel %vm51_vm1, %v13355_v0, %v514_v36 }
 0x12d   :  { %21695 = vst [vmem:[#allocation28_spill] sm:$0xff] %v13445_v18  ;;  %21696 = vst [vmem:[#allocation29_spill] sm:$0xff] %v13447_v16  ;;  %v9600_v18 = vunpack.i.l.bf16 %v21697_v5  ;;  %v517_v5 = vsel %vm512_vm5, %v9590_v15, %v9591_v12  ;;  %v13499_v16 = vsel %vm51_vm1, %v415_v27, %v515_v2  ;;  %v13510_v0 = vsel %vm51_vm1, %v13396_v58, %v518_v10  ;;  %v21704_v2 = vld [vmem:[#allocation43_spill] sm:$0xff] }
 0x12e   :  { %10118 = vrot.lane.b32.xlu1 %v12637_v21, %s12342_s22  ;;  %10113 = vrot.lane.b32.xlu0 %v12643_v24, %s12342_s22  ;;  %v1522_v21 = vld [vmem:[%s21016_s5] sm:$0xf]  ;;  %v516_v24 = vsel %vm512_vm5, %v9586_v25, %v9590_v15  ;;  %v21702_v15 = vld [vmem:[#allocation40_spill] sm:$0xff]  ;;  %v13527_v58 = vsel %vm51_vm1, %v419_v9, %v519_v49  ;;  %v9625_v9 = vunpack.i.l.bf16 %v21707_v56  ;;  %s12343_s5 = smov 36   ;;  %v21736_v49 = vld [vmem:[#allocation51_spill] sm:$0xff] }
 0x12f   :  { %v521_v25 = vsel %vm512_vm5, %v9600_v18, %v9601_v13  ;;  %v520_v12 = vsel %vm512_vm5, %v9596_v32, %v9600_v18  ;;  %v9611_v20 = vunpack.i.h.bf16 %v21702_v15  ;;  %v13513_v27 = vsel %vm51_vm1, %v416_v57, %v516_v24  ;;  %v21703_v32 = vld [vmem:[#allocation42_spill] sm:$0xff] }
 0x130   :  { %v13486_v44 = vpop.permute.xlu1 %9838  ;;  %v13488_v55 = vpop.permute.xlu0 %9833  ;;  %v13517_v18 = vsel %vm51_vm1, %v13399_v30, %v517_v5  ;;  %v9620_v36 = vunpack.i.l.bf16 %v21703_v32  ;;  %v522_v57 = vsel %vm512_vm5, %v9601_v13, %v9605_v40  ;;  %v9621_v24 = vunpack.i.h.bf16 %v21703_v32  ;;  %v21735_v32 = vld [vmem:[#allocation50_spill] sm:$0xff] }
 0x131   :  { %21699 = vst [vmem:[#allocation30_spill] sm:$0xff] %v13486_v44  ;;  %21700 = vst [vmem:[#allocation34_spill] sm:$0xff] %v13488_v55  ;;  %v9610_v55 = vunpack.i.l.bf16 %v21702_v15  ;;  %v9606_v44 = vunpack.i.h.bf16 %v21701_v61  ;;  %v9615_v61 = vunpack.i.l.bf16 %v21704_v2  ;;  %v13533_v30 = vsel %vm51_vm1, %v13417_v53, %v520_v12 }
 0x132   :  { %1525 = vperm.xlu1 %10127, %v1522_v21   ;;  %10123 = vrot.lane.b32.xlu0 %v21638_v33, %s12342_s22  ;;  %v9616_v21 = vunpack.i.h.bf16 %v21704_v2  ;;  %v13537_v5 = vsel %vm51_vm1, %v13409_v8, %v521_v25  ;;  %v21708_v13 = vpack.i.bf16 %v12950_v45, %v12954_v42  ;;  %v21709_v53 = vpack.i.bf16 %v12958_v3, %v12925_v29 }
 0x133   :  { %v524_v10 = vsel %vm512_vm5, %v9606_v44, %v9610_v55  ;;  %v523_v2 = vsel %vm512_vm5, %v9605_v40, %v9606_v44  ;;  %v525_v8 = vsel %vm512_vm5, %v9610_v55, %v9611_v20  ;;  %v526_v42 = vsel %vm512_vm5, %v9611_v20, %v9615_v61 }
 0x134   :  { %v13522_v33 = vpop.permute.xlu1 %9848  ;;  %v13524_v15 = vpop.permute.xlu0 %9843  ;;  %v528_v40 = vsel %vm512_vm5, %v9616_v21, %v9620_v36  ;;  %v527_v45 = vsel %vm512_vm5, %v9615_v61, %v9616_v21  ;;  %v13567_v3 = vsel %vm51_vm1, %v13406_v46, %v522_v57  ;;  %v529_v55 = vsel %vm512_vm5, %v9620_v36, %v9621_v24 }
 0x135   :  { %21705 = vst [vmem:[#allocation31_spill] sm:$0xff] %v13522_v33  ;;  %21706 = vst [vmem:[#allocation32_spill] sm:$0xff] %v13524_v15  ;;  %v9626_v15 = vunpack.i.h.bf16 %v21707_v56  ;;  %v13572_v12 = vsel %vm51_vm1, %v13435_v7, %v523_v2  ;;  %v13578_v20 = vsel %vm51_vm1, %v13440_v23, %v524_v10  ;;  %v530_v21 = vsel %vm512_vm5, %v9621_v24, %v9625_v9  ;;  %v21716_v23 = vld [vmem:[#allocation44_spill] sm:$0xff] }
 0x136   :  { %10134 = vrot.lane.b32.xlu1 %v21708_v13, %s12343_s5  ;;  %10129 = vrot.lane.b32.xlu0 %v21709_v53, %s12343_s5  ;;  %21712 = vst [vmem:[#allocation36_spill] sm:$0xff] %v13578_v20  ;;  %v21713_v46 = vpack.i.bf16 %v12972_v6, %v12962_v37  ;;  %v21714_v7 = vpack.i.bf16 %v12992_v11, %v12929_v60  ;;  %v9631_v57 = vunpack.i.h.bf16 %v21716_v23  ;;  %v9630_v60 = vunpack.i.l.bf16 %v21716_v23  ;;  %v21719_v6 = vld [vmem:[#allocation46_spill] sm:$0xff] }
 0x137   :  { %v531_v61 = vsel %vm512_vm5, %v9625_v9, %v9626_v15  ;;  %v13592_v36 = vsel %vm51_vm1, %v13432_v14, %v525_v8  ;;  %v13597_v24 = vsel %vm51_vm1, %v13422_v59, %v526_v42  ;;  %v13601_v15 = vsel %vm51_vm1, %v13471_v1, %v527_v45  ;;  %v21723_v1 = vld [vmem:[#allocation47_spill] sm:$0xff]  ;;  %v21753_v20 = vld [vmem:[#allocation74_spill] sm:$0xff] }
 0x138   :  { %v13561_v25 = vpop.permute.xlu1 %9858  ;;  %v13563_v29 = vpop.permute.xlu0 %9853  ;;  %21715 = vst [vmem:[#allocation39_spill] sm:$0xff] %v13592_v36  ;;  %21717 = vst [vmem:[#allocation38_spill] sm:$0xff] %v13597_v24  ;;  %v13605_v37 = vsel %vm51_vm1, %v13474_v41, %v528_v40  ;;  %v9641_v11 = vunpack.i.h.bf16 %v21719_v6  ;;  %v9640_v14 = vunpack.i.l.bf16 %v21719_v6  ;;  %v13616_v59 = vsel %vm51_vm1, %v13468_v26, %v529_v55  ;;  %v21727_v26 = vld [vmem:[#allocation63_spill] sm:$0xff]  ;;  %v21728_v40 = vld [vmem:[#allocation62_spill] sm:$0xff] }
 0x139   :  { %21710 = vst [vmem:[#allocation37_spill] sm:$0xff] %v13561_v25  ;;  %21711 = vst [vmem:[#allocation33_spill] sm:$0xff] %v13563_v29  ;;  %v9636_v9 = vunpack.i.h.bf16 %v21723_v1  ;;  %v9635_v13 = vunpack.i.l.bf16 %v21723_v1  ;;  %v13622_v41 = vsel %vm51_vm1, %v13450_v62, %v530_v21  ;;  %v13626_v53 = vsel %vm51_vm1, %v13478_v39, %v531_v61  ;;  %v21730_v55 = vld [vmem:[#allocation48_spill] sm:$0xff]  ;;  %v21745_v29 = vld [vmem:[#allocation57_spill] sm:$0xff] }
 0x13a   :  { %10144 = vrot.lane.b32.xlu1 %v21713_v46, %s12343_s5  ;;  %10139 = vrot.lane.b32.xlu0 %v21714_v7, %s12343_s5  ;;  %21718 = vst [vmem:[#allocation35_spill] sm:$0xff] %v13605_v37  ;;  %21722 = vst [vmem:[#allocation42_spill] sm:$0xff] %v13616_v59  ;;  %v21726_v8 = vpack.i.bf16 %v13010_v51, %v13006_v35  ;;  %v21729_v42 = vpack.i.bf16 %v21727_v26, %v21728_v40  ;;  %v9651_v21 = vunpack.i.h.bf16 %v21730_v55  ;;  %v21731_v35 = vld [vmem:[#allocation49_spill] sm:$0xff] }
 0x13b   :  { %21724 = vst [vmem:[#allocation43_spill] sm:$0xff] %v13622_v41  ;;  %21725 = vst [vmem:[#allocation45_spill] sm:$0xff] %v13626_v53  ;;  %v9650_v61 = vunpack.i.l.bf16 %v21730_v55  ;;  %v9646_v51 = vunpack.i.h.bf16 %v21731_v35  ;;  %v9645_v46 = vunpack.i.l.bf16 %v21731_v35  ;;  %v603_v7 = vsel %vm602_vm6, %v9630_v60, %v9631_v57  ;;  %v21734_v55 = vld [vmem:[#allocation54_spill] sm:$0xff]  ;;  %v21750_v41 = vld [vmem:[#allocation71_spill] sm:$0xff] }
 0x13c   :  { %v13610_v10 = vpop.permute.xlu1 %9868  ;;  %v13612_v2 = vpop.permute.xlu0 %9863  ;;  %v13648_v23 = vsel %vm602_vm6, %v9640_v14, %v9641_v11  ;;  %v606_v40 = vsel %vm602_vm6, %v9636_v9, %v9640_v14  ;;  %v9681_v35 = vunpack.i.h.bf16 %v21734_v55  ;;  %v9680_v39 = vunpack.i.l.bf16 %v21734_v55  ;;  %v21740_v14 = vld [vmem:[#allocation70_spill] sm:$0xff]  ;;  %v21752_v53 = vld [vmem:[#allocation75_spill] sm:$0xff] }
 0x13d   :  { %21720 = vst [vmem:[#allocation41_spill] sm:$0xff] %v13610_v10  ;;  %21721 = vst [vmem:[#allocation40_spill] sm:$0xff] %v13612_v2  ;;  %v605_v62 = vsel %vm602_vm6, %v9635_v13, %v9636_v9  ;;  %v9661_v45 = vunpack.i.h.bf16 %v21735_v32  ;;  %v9660_v56 = vunpack.i.l.bf16 %v21735_v32  ;;  %v9656_v44 = vunpack.i.h.bf16 %v21736_v49 }
 0x13e   :  { %10154 = vrot.lane.b32.xlu1 %v21726_v8, %s12343_s5  ;;  %10149 = vrot.lane.b32.xlu0 %v21729_v42, %s12343_s5  ;;  %v604_v42 = vsel %vm602_vm6, %v9631_v57, %v9635_v13  ;;  %v21737_v8 = vld [vmem:[#allocation68_spill] sm:$0xff]  ;;  %v21741_v57 = vld [vmem:[#allocation69_spill] sm:$0xff]  ;;  %v13675_v55 = vsel %vm602_vm6, %v9650_v61, %v9651_v21  ;;  %v13678_v9 = vsel %vm602_vm6, %v9646_v51, %v9650_v61  ;;  %v9655_v13 = vunpack.i.l.bf16 %v21736_v49 }
 0x13f   :  { %v21742_v2 = vpack.i.bf16 %v21740_v14, %v21741_v57  ;;  %v13681_v32 = vsel %vm602_vm6, %v9641_v11, %v9645_v46  ;;  %v9685_v14 = vunpack.i.l.bf16 %v21745_v29  ;;  %v683_v25 = vsel %vm682_vm7, %v9680_v39, %v9681_v35  ;;  %v21748_v11 = vld [vmem:[#allocation56_spill] sm:$0xff] }
 0x140   :  { %v13650_v6 = vpop.permute.xlu1 %9878  ;;  %v13652_v1 = vpop.permute.xlu0 %9873  ;;  %v9690_v33 = vunpack.i.l.bf16 %v21748_v11  ;;  %v9686_v49 = vunpack.i.h.bf16 %v21745_v29  ;;  %v609_v37 = vsel %vm602_vm6, %v9645_v46, %v9646_v51  ;;  %v13701_v59 = vsel %vm602_vm6, %v9656_v44, %v9660_v56 }
 0x141   :  { %21732 = vst [vmem:[#allocation44_spill] sm:$0xff] %v13650_v6  ;;  %21733 = vst [vmem:[#allocation46_spill] sm:$0xff] %v13652_v1  ;;  %v21738_v1 = vld [vmem:[#allocation65_spill] sm:$0xff]  ;;  %v21743_v6 = vld [vmem:[#allocation52_spill] sm:$0xff]  ;;  %v21754_v36 = vpack.i.bf16 %v21752_v53, %v21753_v20  ;;  %v13713_v29 = vsel %vm602_vm6, %v9651_v21, %v9655_v13  ;;  %v13716_v51 = vsel %vm602_vm6, %v9655_v13, %v9656_v44 }
 0x142   :  { %v21739_v26 = vpack.i.bf16 %v21737_v8, %v21738_v1  ;;  %10159 = vrot.lane.b32.xlu0 %v21742_v2, %s12343_s5  ;;  %v9671_v10 = vunpack.i.h.bf16 %v21743_v6  ;;  %v9670_v1 = vunpack.i.l.bf16 %v21743_v6  ;;  %v21744_v8 = vld [vmem:[#allocation53_spill] sm:$0xff]  ;;  %v13698_v6 = vsel %vm602_vm6, %v9660_v56, %v9661_v45  ;;  %v21755_v56 = vld [vmem:[#allocation55_spill] sm:$0xff] }
 0x143   :  { %v9665_v61 = vunpack.i.l.bf16 %v21744_v8  ;;  %v9676_v46 = vunpack.i.h.bf16 %v21755_v56  ;;  %v13732_v53 = vsel %vm51_vm1, %v603_v7, %v683_v25  ;;  %v686_v13 = vsel %vm682_vm7, %v9686_v49, %v9690_v33  ;;  %v21761_v7 = vld [vmem:[#allocation12_spill] sm:$0xff] }
 0x144   :  { %10164 = vrot.lane.b32.xlu1 %v21739_v26, %s12343_s5  ;;  %v9666_v26 = vunpack.i.h.bf16 %v21744_v8  ;;  %v13688_v2 = vpop.permute.xlu1 %9888  ;;  %v13690_v57 = vpop.permute.xlu0 %9883  ;;  %v13721_v24 = vsel %vm602_vm6, %v9670_v1, %v9671_v10  ;;  %v21759_v25 = vpack.i.bf16 %v13235_v63, %v13223_v28 }
 0x145   :  { %21746 = vst [vmem:[#allocation47_spill] sm:$0xff] %v13688_v2  ;;  %21747 = vst [vmem:[#allocation63_spill] sm:$0xff] %v13690_v57  ;;  %v9691_v2 = vunpack.i.h.bf16 %v21748_v11  ;;  %v21749_v57 = vld [vmem:[#allocation64_spill] sm:$0xff]  ;;  %v9675_v11 = vunpack.i.l.bf16 %v21755_v56  ;;  %v616_v21 = vsel %vm602_vm6, %v9661_v45, %v9665_v61  ;;  %v21760_v45 = vld [vmem:[#allocation13_spill] sm:$0xff] }
 0x146   :  { %v21751_v8 = vpack.i.bf16 %v21749_v57, %v21750_v41  ;;  %10169 = vrot.lane.b32.xlu0 %v21754_v36, %s12343_s5  ;;  %v13724_v41 = vsel %vm51_vm1, %v9630_v60, %v9680_v39  ;;  %v684_v57 = vsel %vm682_vm7, %v9681_v35, %v9685_v14  ;;  %v13735_v44 = vsel %vm602_vm6, %v9666_v26, %v9670_v1  ;;  %v21758_v35 = vld [vmem:[#allocation59_spill] sm:$0xff] }
 0x147   :  { %v13741_v60 = vsel %vm602_vm6, %v9665_v61, %v9666_v26  ;;  %v687_v39 = vsel %vm682_vm7, %v9690_v33, %v9691_v2  ;;  %v9696_v56 = vunpack.i.h.bf16 %v21758_v35  ;;  %v21762_v1 = vpack.i.bf16 %v21760_v45, %v21761_v7 }
 0x148   :  { %10174 = vrot.lane.b32.xlu1 %v21751_v8, %s12343_s5  ;;  %v13727_v20 = vpop.permute.xlu1 %9898  ;;  %v13729_v36 = vpop.permute.xlu0 %9893  ;;  %v685_v8 = vsel %vm682_vm7, %v9685_v14, %v9686_v49  ;;  %v620_v14 = vsel %vm602_vm6, %v9671_v10, %v9675_v11  ;;  %v621_v26 = vsel %vm602_vm6, %v9675_v11, %v9676_v46  ;;  %v13757_v33 = vsel %vm51_vm1, %v604_v42, %v684_v57  ;;  %v21763_v49 = vld [vmem:[#allocation58_spill] sm:$0xff]  ;;  %v21766_v46 = vld [vmem:[#allocation60_spill] sm:$0xff]  ;;  %v21767_v57 = vld [vmem:[#allocation61_spill] sm:$0xff] }
 0x149   :  { %21756 = vst [vmem:[#allocation62_spill] sm:$0xff] %v13727_v20  ;;  %21757 = vst [vmem:[#allocation48_spill] sm:$0xff] %v13729_v36  ;;  %v9695_v20 = vunpack.i.l.bf16 %v21758_v35  ;;  %v9701_v35 = vunpack.i.h.bf16 %v21763_v49  ;;  %v9700_v28 = vunpack.i.l.bf16 %v21763_v49  ;;  %v13768_v45 = vsel %vm51_vm1, %v605_v62, %v685_v8  ;;  %v21768_v8 = vld [vmem:[#allocation67_spill] sm:$0xff] }
 0x14a   :  { %10179 = vrot.lane.b32.xlu0 %v21762_v1, %s12343_s5  ;;  %v13771_v10 = vsel %vm51_vm1, %v606_v40, %v686_v13  ;;  %v9711_v42 = vunpack.i.h.bf16 %v21766_v46  ;;  %v9710_v11 = vunpack.i.l.bf16 %v21766_v46  ;;  %v9705_v7 = vunpack.i.l.bf16 %v21767_v57 }
 0x14b   :  { %v13778_v1 = vsel %vm51_vm1, %v13648_v23, %v687_v39  ;;  %v688_v49 = vsel %vm682_vm7, %v9691_v2, %v9695_v20  ;;  %v689_v61 = vsel %vm682_vm7, %v9695_v20, %v9696_v56  ;;  %v9706_v62 = vunpack.i.h.bf16 %v21767_v57  ;;  %v21771_v23 = vld [vmem:[#allocation66_spill] sm:$0xff] }
 0x14c   :  { %10184 = vrot.lane.b32.xlu1 %v21759_v25, %s12343_s5  ;;  %v13763_v63 = vpop.permute.xlu1 %9908  ;;  %v13765_v25 = vpop.permute.xlu0 %9903  ;;  %v21769_v40 = vpack.i.bf16 %v13272_v52, %v13239_v17  ;;  %v21770_v13 = vpack.i.bf16 %v13253_v50, %v13243_v19  ;;  %v9721_v39 = vunpack.i.h.bf16 %v21771_v23  ;;  %v9720_v2 = vunpack.i.l.bf16 %v21771_v23  ;;  %v21772_v17 = vld [vmem:[#allocation73_spill] sm:$0xff] }
 0x14d   :  { %21764 = vst [vmem:[#allocation49_spill] sm:$0xff] %v13763_v63  ;;  %21765 = vst [vmem:[#allocation54_spill] sm:$0xff] %v13765_v25  ;;  %v9715_v63 = vunpack.i.l.bf16 %v21768_v8  ;;  %v9716_v20 = vunpack.i.h.bf16 %v21768_v8  ;;  %v691_v57 = vsel %vm682_vm7, %v9700_v28, %v9701_v35  ;;  %v690_v25 = vsel %vm682_vm7, %v9696_v56, %v9700_v28 }
 0x14e   :  { %10189 = vrot.lane.b32.xlu0 %v21770_v13, %s12343_s5  ;;  %v9726_v52 = vunpack.i.h.bf16 %v21772_v17  ;;  %v695_v50 = vsel %vm682_vm7, %v9710_v11, %v9711_v42  ;;  %v692_v13 = vsel %vm682_vm7, %v9701_v35, %v9705_v7  ;;  %v13809_v8 = vsel %vm51_vm1, %v13681_v32, %v688_v49 }
 0x14f   :  { %v13812_v23 = vsel %vm51_vm1, %v609_v37, %v689_v61  ;;  %v694_v56 = vsel %vm682_vm7, %v9706_v62, %v9710_v11  ;;  %v693_v28 = vsel %vm682_vm7, %v9705_v7, %v9706_v62  ;;  %v21775_v46 = vpack.i.bf16 %v13297_v4, %v13283_v43 }
 0x150   :  { %10194 = vrot.lane.b32.xlu1 %v21769_v40, %s12343_s5  ;;  %v9725_v40 = vunpack.i.l.bf16 %v21772_v17  ;;  %v13801_v36 = vpop.permute.xlu1 %9918  ;;  %v13803_v19 = vpop.permute.xlu0 %9913  ;;  %v696_v17 = vsel %vm682_vm7, %v9711_v42, %v9715_v63  ;;  %v21776_v35 = vpack.i.bf16 %v13306_v47, %v13302_v48  ;;  %v699_v32 = vsel %vm682_vm7, %v9720_v2, %v9721_v39 }
 0x151   :  { %21773 = vst [vmem:[#allocation50_spill] sm:$0xff] %v13801_v36  ;;  %21774 = vst [vmem:[#allocation51_spill] sm:$0xff] %v13803_v19  ;;  %v698_v37 = vsel %vm682_vm7, %v9716_v20, %v9720_v2  ;;  %v697_v61 = vsel %vm682_vm7, %v9715_v63, %v9716_v20  ;;  %v13830_v11 = vsel %vm51_vm1, %v13678_v9, %v690_v25 }
 0x152   :  { %10199 = vrot.lane.b32.xlu0 %v21776_v35, %s12343_s5  ;;  %v700_v42 = vsel %vm682_vm7, %v9721_v39, %v9725_v40  ;;  %v701_v4 = vsel %vm682_vm7, %v9725_v40, %v9726_v52  ;;  %v13840_v48 = vsel %vm51_vm1, %v13713_v29, %v692_v13  ;;  %v13844_v47 = vsel %vm51_vm1, %v13675_v55, %v691_v57  ;;  %v21780_v29 = vld [vmem:[#allocation18_spill] sm:$0xff]  ;;  %v21783_v39 = vld [vmem:[#allocation72_spill] sm:$0xff] }
 0x153   :  { %v13848_v9 = vsel %vm51_vm1, %v13716_v51, %v693_v28  ;;  %v13851_v63 = vsel %vm51_vm1, %v616_v21, %v696_v17  ;;  %v13855_v25 = vsel %vm51_vm1, %v13701_v59, %v694_v56  ;;  %v13859_v49 = vsel %vm51_vm1, %v13698_v6, %v695_v50  ;;  %v21781_v51 = vld [vmem:[#allocation9_spill] sm:$0xff]  ;;  %v21788_v28 = vld [vmem:[#allocation14_spill] sm:$0xff] }
 0x154   :  { %10204 = vrot.lane.b32.xlu1 %v21775_v46, %s12343_s5  ;;  %v13834_v43 = vpop.permute.xlu1 %9928  ;;  %v13836_v7 = vpop.permute.xlu0 %9923  ;;  %v21779_v55 = vpack.i.bf16 %v13309_v34, %v13330_v54  ;;  %v21782_v62 = vpack.i.bf16 %v21780_v29, %v21781_v51  ;;  %v13871_v21 = vsel %vm51_vm1, %v13741_v60, %v697_v61  ;;  %v13875_v59 = vsel %vm51_vm1, %v13735_v44, %v698_v37  ;;  %v21784_v60 = vld [vmem:[#allocation76_spill] sm:$0xff]  ;;  %v21785_v44 = vld [vmem:[#allocation77_spill] sm:$0xff] }
 0x155   :  { %21777 = vst [vmem:[#allocation68_spill] sm:$0xff] %v13834_v43  ;;  %21778 = vst [vmem:[#allocation65_spill] sm:$0xff] %v13836_v7  ;;  %v13879_v6 = vsel %vm51_vm1, %v13721_v24, %v699_v32  ;;  %v9731_v34 = vunpack.i.h.bf16 %v21783_v39  ;;  %v21150_v54 = vunpack.i.l.bf16 %v21783_v39  ;;  %v13884_v2 = vsel %vm51_vm1, %v620_v14, %v700_v42  ;;  %v21789_v32 = vld [vmem:[#allocation15_spill] sm:$0xff]  ;;  %v21790_v61 = vld [vmem:[#allocation21_spill] sm:$0xff] }
 0x156   :  { %10209 = vrot.lane.b32.xlu0 %v21782_v62, %s12343_s5  ;;  %v13887_v20 = vsel %vm51_vm1, %v621_v26, %v701_v4  ;;  %v9741_v46 = vunpack.i.h.bf16 %v21784_v60  ;;  %v9740_v57 = vunpack.i.l.bf16 %v21784_v60  ;;  %v9736_v52 = vunpack.i.h.bf16 %v21785_v44  ;;  %v21791_v42 = vld [vmem:[#allocation11_spill] sm:$0xff]  ;;  %v21794_v29 = vld [vmem:[#allocation20_spill] sm:$0xff] }
 0x157   :  { %v9735_v40 = vunpack.i.l.bf16 %v21785_v44  ;;  %v9751_v17 = vunpack.i.h.bf16 %v21788_v28  ;;  %v9750_v35 = vunpack.i.l.bf16 %v21788_v28  ;;  %v9746_v37 = vunpack.i.h.bf16 %v21789_v32  ;;  %v21798_v44 = vld [vmem:[#allocation4_spill] sm:$0xff]  ;;  %v21808_v43 = vld [vmem:[#allocation19_spill] sm:$0xff] }
 0x158   :  { %10214 = vrot.lane.b32.xlu1 %v21779_v55, %s12343_s5  ;;  %v13893_v24 = vpop.permute.xlu1 %9938  ;;  %v13895_v50 = vpop.permute.xlu0 %9933  ;;  %v21792_v4 = vpack.i.bf16 %v21790_v61, %v21791_v42  ;;  %v21793_v55 = vld [vmem:[#allocation22_spill] sm:$0xff]  ;;  %v763_v60 = vsel %vm762_vm8, %v21150_v54, %v9731_v34  ;;  %v13928_v42 = vsel %vm762_vm8, %v9740_v57, %v9741_v46  ;;  %v9761_v28 = vunpack.i.h.bf16 %v21798_v44  ;;  %v21809_v7 = vld [vmem:[#allocation8_spill] sm:$0xff] }
 0x159   :  { %21786 = vst [vmem:[#allocation70_spill] sm:$0xff] %v13893_v24  ;;  %21787 = vst [vmem:[#allocation69_spill] sm:$0xff] %v13895_v50  ;;  %v21795_v51 = vpack.i.bf16 %v21793_v55, %v21794_v29  ;;  %v13934_v55 = vsel %vm762_vm8, %v9731_v34, %v9735_v40  ;;  %v9745_v29 = vunpack.i.l.bf16 %v21789_v32  ;;  %v9760_v56 = vunpack.i.l.bf16 %v21798_v44  ;;  %v21799_v61 = vld [vmem:[#allocation6_spill] sm:$0xff] }
 0x15a   :  { %v9781_v26 = vunpack.i.h.bf16 %v21799_v61  ;;  %v9780_v14 = vunpack.i.l.bf16 %v21799_v61  ;;  %v13947_v13 = vsel %vm762_vm8, %v9750_v35, %v9751_v17  ;;  %v13950_v34 = vsel %vm762_vm8, %v9746_v37, %v9750_v35  ;;  %v21802_v61 = vld [vmem:[#allocation5_spill] sm:$0xff] }
 0x15b   :  { %10219 = vrot.lane.b32.xlu0 %v21795_v51, %s12343_s5  ;;  %v21800_v32 = vpack.i.bf16 %v13499_v16, %v13496_v31  ;;  %v21801_v44 = vpack.i.bf16 %v13457_v38, %v13453_v22  ;;  %v9756_v54 = vunpack.i.h.bf16 %v21802_v61  ;;  %v13968_v50 = vsel %vm762_vm8, %v9745_v29, %v9746_v37  ;;  %v21804_v16 = vld [vmem:[#allocation17_spill] sm:$0xff] }
 0x15c   :  { %10224 = vrot.lane.b32.xlu1 %v21792_v4, %s12343_s5  ;;  %v13931_v4 = vsel %vm762_vm8, %v9736_v52, %v9740_v57  ;;  %v13937_v51 = vpop.permute.xlu1 %9948  ;;  %v13939_v62 = vpop.permute.xlu0 %9943  ;;  %v765_v57 = vsel %vm762_vm8, %v9735_v40, %v9736_v52  ;;  %v9755_v52 = vunpack.i.l.bf16 %v21802_v61  ;;  %v21803_v40 = vld [vmem:[#allocation16_spill] sm:$0xff]  ;;  %v9766_v31 = vunpack.i.h.bf16 %v21804_v16 }
 0x15d   :  { %21796 = vst [vmem:[#allocation52_spill] sm:$0xff] %v13937_v51  ;;  %21797 = vst [vmem:[#allocation53_spill] sm:$0xff] %v13939_v62  ;;  %v9771_v62 = vunpack.i.h.bf16 %v21803_v40  ;;  %v9770_v35 = vunpack.i.l.bf16 %v21803_v40  ;;  %v13965_v51 = vsel %vm762_vm8, %v9741_v46, %v9745_v29  ;;  %v843_v61 = vsel %vm842_vm9, %v9780_v14, %v9781_v26  ;;  %v21807_v40 = vld [vmem:[#allocation7_spill] sm:$0xff] }
 0x15e   :  { %v9776_v24 = vunpack.i.h.bf16 %v21807_v40  ;;  %v9775_v46 = vunpack.i.l.bf16 %v21807_v40  ;;  %v9791_v37 = vunpack.i.h.bf16 %v21808_v43  ;;  %v9790_v29 = vunpack.i.l.bf16 %v21808_v43 }
 0x15f   :  { %10229 = vrot.lane.b32.xlu0 %v21801_v44, %s12343_s5  ;;  %v13977_v44 = vsel %vm762_vm8, %v9760_v56, %v9761_v28  ;;  %v9786_v36 = vunpack.i.h.bf16 %v21809_v7  ;;  %v13995_v40 = vsel %vm762_vm8, %v9756_v54, %v9760_v56  ;;  %v13998_v19 = vsel %vm762_vm8, %v9751_v17, %v9755_v52 }
 0x160   :  { %10234 = vrot.lane.b32.xlu1 %v21800_v32, %s12343_s5  ;;  %v9765_v32 = vunpack.i.l.bf16 %v21804_v16  ;;  %v13972_v22 = vpop.permute.xlu1 %9958  ;;  %v13974_v38 = vpop.permute.xlu0 %9953  ;;  %v9785_v16 = vunpack.i.l.bf16 %v21809_v7  ;;  %v14001_v43 = vsel %vm762_vm8, %v9755_v52, %v9756_v54  ;;  %v14004_v7 = vsel %vm762_vm8, %v9770_v35, %v9771_v62 }
 0x161   :  { %21805 = vst [vmem:[#allocation57_spill] sm:$0xff] %v13972_v22  ;;  %21806 = vst [vmem:[#allocation56_spill] sm:$0xff] %v13974_v38  ;;  %v21810_v38 = vpack.i.bf16 %v13527_v58, %v13510_v0  ;;  %v21811_v22 = vpack.i.bf16 %v13517_v18, %v13513_v27  ;;  %v14007_v0 = vsel %vm762_vm8, %v9766_v31, %v9770_v35  ;;  %v21812_v18 = vunpack.i.l.bf16 %v21783_v39 }
 0x162   :  { %v14010_v58 = vsel %vm762_vm8, %v9761_v28, %v9765_v32  ;;  %v14013_v27 = vsel %vm762_vm8, %v9765_v32, %v9766_v31  ;;  %v14025_v52 = vsel %vm762_vm8, %v9771_v62, %v9775_v46  ;;  %v14028_v35 = vsel %vm762_vm8, %v9775_v46, %v9776_v24  ;;  %v21816_v28 = vld [vmem:[#allocation10_spill] sm:$0xff] }
 0x163   :  { %10239 = vrot.lane.b32.xlu0 %v21811_v22, %s12343_s5  ;;  %v14018_v56 = vsel %vm51_vm1, %v21812_v18, %v9780_v14  ;;  %v9795_v22 = vunpack.i.l.bf16 %v21816_v28  ;;  %v14032_v31 = vsel %vm51_vm1, %v763_v60, %v843_v61  ;;  %v847_v39 = vsel %vm842_vm9, %v9790_v29, %v9791_v37  ;;  %v21819_v60 = vld [vmem:[#allocation23_spill] sm:$0xff]  ;;  %v21820_v18 = vld [vmem:[#allocation24_spill] sm:$0xff] }
 0x164   :  { %10244 = vrot.lane.b32.xlu1 %v21810_v38, %s12343_s5  ;;  %21813 = vst [vmem:[#allocation64_spill] sm:$0xff] %v14018_v56  ;;  %v14020_v17 = vpop.permute.xlu1 %9968  ;;  %v14022_v54 = vpop.permute.xlu0 %9963  ;;  %v844_v14 = vsel %vm842_vm9, %v9781_v26, %v9785_v16  ;;  %v845_v32 = vsel %vm842_vm9, %v9785_v16, %v9786_v36  ;;  %v21817_v38 = vpack.i.bf16 %v13572_v12, %v13567_v3  ;;  %v9801_v61 = vunpack.i.h.bf16 %v21819_v60 }
 0x165   :  { %21814 = vst [vmem:[#allocation71_spill] sm:$0xff] %v14020_v17  ;;  %21815 = vst [vmem:[#allocation75_spill] sm:$0xff] %v14022_v54  ;;  %v21818_v24 = vpack.i.bf16 %v13537_v5, %v13533_v30  ;;  %v846_v62 = vsel %vm842_vm9, %v9786_v36, %v9790_v29  ;;  %v9800_v46 = vunpack.i.l.bf16 %v21819_v60  ;;  %v9796_v26 = vunpack.i.h.bf16 %v21816_v28  ;;  %v21821_v17 = vld [vmem:[#allocation25_spill] sm:$0xff]  ;;  %v21828_v30 = vld [vmem:[#allocation36_spill] sm:$0xff] }
 0x166   :  { %v9811_v16 = vunpack.i.h.bf16 %v21820_v18  ;;  %v9810_v54 = vunpack.i.l.bf16 %v21820_v18  ;;  %v9806_v3 = vunpack.i.h.bf16 %v21821_v17  ;;  %v848_v5 = vsel %vm842_vm9, %v9791_v37, %v9795_v22  ;;  %v21827_v37 = vld [vmem:[#allocation39_spill] sm:$0xff] }
 0x167   :  { %10249 = vrot.lane.b32.xlu0 %v21818_v24, %s12343_s5  ;;  %v9805_v36 = vunpack.i.l.bf16 %v21821_v17  ;;  %v14062_v29 = vsel %vm51_vm1, %v13934_v55, %v844_v14  ;;  %v14065_v28 = vsel %vm51_vm1, %v765_v57, %v845_v32  ;;  %v21824_v24 = vld [vmem:[#allocation27_spill] sm:$0xff]  ;;  %v21829_v17 = vpack.i.bf16 %v21827_v37, %v21828_v30 }
 0x168   :  { %10254 = vrot.lane.b32.xlu1 %v21817_v38, %s12343_s5  ;;  %v14052_v12 = vpop.permute.xlu1 %9978  ;;  %v14054_v38 = vpop.permute.xlu0 %9973  ;;  %v9816_v60 = vunpack.i.h.bf16 %v21824_v24  ;;  %v9815_v18 = vunpack.i.l.bf16 %v21824_v24  ;;  %v14079_v55 = vsel %vm51_vm1, %v13931_v4, %v846_v62  ;;  %v14083_v57 = vsel %vm51_vm1, %v13928_v42, %v847_v39  ;;  %v21830_v24 = vld [vmem:[#allocation26_spill] sm:$0xff] }
 0x169   :  { %21822 = vst [vmem:[#allocation74_spill] sm:$0xff] %v14052_v12  ;;  %21823 = vst [vmem:[#allocation55_spill] sm:$0xff] %v14054_v38  ;;  %v21825_v38 = vld [vmem:[#allocation38_spill] sm:$0xff]  ;;  %v851_v14 = vsel %vm842_vm9, %v9800_v46, %v9801_v61  ;;  %v849_v32 = vsel %vm842_vm9, %v9795_v22, %v9796_v26  ;;  %v855_v30 = vsel %vm842_vm9, %v9810_v54, %v9811_v16  ;;  %vm2321_vm7 = vcmask 523264  }
 0x16a   :  { %v21826_v12 = vpack.i.bf16 %v13601_v15, %v21825_v38  ;;  %v9821_v15 = vunpack.i.h.bf16 %v21830_v24  ;;  %v850_v38 = vsel %vm842_vm9, %v9796_v26, %v9800_v46  ;;  %v854_v37 = vsel %vm842_vm9, %v9806_v3, %v9810_v54 }
 0x16b   :  { %10259 = vrot.lane.b32.xlu0 %v21829_v17, %s12343_s5  ;;  %v14098_v42 = vsel %vm51_vm1, %v13965_v51, %v848_v5  ;;  %v852_v22 = vsel %vm842_vm9, %v9801_v61, %v9805_v36  ;;  %v853_v39 = vsel %vm842_vm9, %v9805_v36, %v9806_v3  ;;  %v21833_v17 = vld [vmem:[#allocation29_spill] sm:$0xff]  ;;  %v856_v26 = vsel %vm842_vm9, %v9811_v16, %v9815_v18  ;;  %v21837_v51 = vld [vmem:[#allocation42_spill] sm:$0xff]  ;;  %v21838_v5 = vld [vmem:[#allocation35_spill] sm:$0xff] }
 0x16c   :  { %10264 = vrot.lane.b32.xlu1 %v21826_v12, %s12343_s5  ;;  %v9820_v12 = vunpack.i.l.bf16 %v21830_v24  ;;  %v14092_v4 = vpop.permute.xlu1 %9988  ;;  %v14094_v62 = vpop.permute.xlu0 %9983  ;;  %v9826_v24 = vunpack.i.h.bf16 %v21833_v17  ;;  %v9825_v46 = vunpack.i.l.bf16 %v21833_v17  ;;  %v857_v54 = vsel %vm842_vm9, %v9815_v18, %v9816_v60 }
 0x16d   :  { %21831 = vst [vmem:[#allocation59_spill] sm:$0xff] %v14092_v4  ;;  %21832 = vst [vmem:[#allocation13_spill] sm:$0xff] %v14094_v62  ;;  %v21834_v4 = vld [vmem:[#allocation45_spill] sm:$0xff]  ;;  %v21835_v62 = vld [vmem:[#allocation43_spill] sm:$0xff]  ;;  %v21839_v61 = vpack.i.bf16 %v21837_v51, %v21838_v5  ;;  %v14116_v3 = vsel %vm51_vm1, %v13968_v50, %v849_v32  ;;  %v14122_v18 = vsel %vm51_vm1, %v13950_v34, %v850_v38 }
 0x16e   :  { %v21836_v56 = vpack.i.bf16 %v21834_v4, %v21835_v62  ;;  %v859_v36 = vsel %vm842_vm9, %v9820_v12, %v9821_v15  ;;  %v858_v16 = vsel %vm842_vm9, %v9816_v60, %v9820_v12  ;;  %v14134_v50 = vsel %vm51_vm1, %v13998_v19, %v852_v22  ;;  %v21841_v12 = vld [vmem:[#allocation28_spill] sm:$0xff]  ;;  %v21855_v51 = vld [vmem:[#allocation33_spill] sm:$0xff] }
 0x16f   :  { %10269 = vrot.lane.b32.xlu0 %v21839_v61, %s12343_s5  ;;  %v14138_v32 = vsel %vm51_vm1, %v14001_v43, %v853_v39  ;;  %v14142_v34 = vsel %vm51_vm1, %v13995_v40, %v854_v37  ;;  %v860_v60 = vsel %vm842_vm9, %v9821_v15, %v9825_v46  ;;  %v14152_v19 = vsel %vm51_vm1, %v14010_v58, %v856_v26  ;;  %v21845_v39 = vld [vmem:[#allocation34_spill] sm:$0xff] }
 0x170   :  { %10274 = vrot.lane.b32.xlu1 %v21836_v56, %s12343_s5  ;;  %v14126_v56 = vsel %vm51_vm1, %v13947_v13, %v851_v14  ;;  %v14128_v4 = vpop.permute.xlu1 %9998  ;;  %v14130_v62 = vpop.permute.xlu0 %9993  ;;  %v14146_v13 = vsel %vm51_vm1, %v13977_v44, %v855_v30  ;;  %v861_v14 = vsel %vm842_vm9, %v9825_v46, %v9826_v24  ;;  %v14156_v43 = vsel %vm51_vm1, %v14013_v27, %v857_v54  ;;  %v21844_v30 = vld [vmem:[#allocation30_spill] sm:$0xff]  ;;  %v21857_v54 = vld [vmem:[#allocation44_spill] sm:$0xff] }
 0x171   :  { %21840 = vst [vmem:[#allocation12_spill] sm:$0xff] %v14128_v4  ;;  %v9831_v38 = vunpack.i.h.bf16 %v21841_v12  ;;  %v21168_v40 = vunpack.i.l.bf16 %v21841_v12  ;;  %v21842_v44 = vpack.i.bf16 %v13768_v45, %v13757_v33  ;;  %v21843_v15 = vpack.i.bf16 %v13732_v53, %v13724_v41  ;;  %v21860_v46 = vld [vmem:[#allocation40_spill] sm:$0xff]  ;;  %v21861_v53 = vld [vmem:[#allocation63_spill] sm:$0xff] }
 0x172   :  { %v14170_v58 = vsel %vm51_vm1, %v14007_v0, %v858_v16  ;;  %v14174_v27 = vsel %vm51_vm1, %v14004_v7, %v859_v36  ;;  %v9841_v37 = vunpack.i.h.bf16 %v21844_v30  ;;  %v9840_v22 = vunpack.i.l.bf16 %v21844_v30 }
 0x173   :  { %10279 = vrot.lane.b32.xlu0 %v21843_v15, %s12343_s5  ;;  %v9836_v33 = vunpack.i.h.bf16 %v21845_v39  ;;  %v9835_v45 = vunpack.i.l.bf16 %v21845_v39  ;;  %v14190_v7 = vsel %vm51_vm1, %v14025_v52, %v860_v60  ;;  %v14194_v24 = vsel %vm51_vm1, %v14028_v35, %v861_v14  ;;  %v21851_v15 = vld [vmem:[#allocation32_spill] sm:$0xff] }
 0x174   :  { %10284 = vrot.lane.b32.xlu1 %v21842_v44, %s12343_s5  ;;  %v14180_v17 = vpop.permute.xlu1 %10008  ;;  %v14182_v41 = vpop.permute.xlu0 %10003  ;;  %v923_v52 = vsel %vm922_vm10, %v21168_v40, %v9831_v38  ;;  %v21848_v35 = vpack.i.bf16 %v13812_v23, %v13809_v8  ;;  %v21849_v5 = vpack.i.bf16 %v13778_v1, %v13771_v10  ;;  %v14220_v16 = vsel %vm922_vm10, %v9840_v22, %v9841_v37  ;;  %v21850_v10 = vld [vmem:[#allocation31_spill] sm:$0xff] }
 0x175   :  { %21846 = vst [vmem:[#allocation58_spill] sm:$0xff] %v14180_v17  ;;  %21847 = vst [vmem:[#allocation60_spill] sm:$0xff] %v14182_v41  ;;  %v926_v60 = vsel %vm922_vm10, %v9836_v33, %v9840_v22  ;;  %v924_v14 = vsel %vm922_vm10, %v9831_v38, %v9835_v45  ;;  %v925_v23 = vsel %vm922_vm10, %v9835_v45, %v9836_v33  ;;  %v9851_v1 = vunpack.i.h.bf16 %v21850_v10  ;;  %v21854_v22 = vld [vmem:[#allocation37_spill] sm:$0xff] }
 0x176   :  { %v9850_v44 = vunpack.i.l.bf16 %v21850_v10  ;;  %v9846_v30 = vunpack.i.h.bf16 %v21851_v15  ;;  %v9861_v36 = vunpack.i.h.bf16 %v21854_v22  ;;  %v9860_v38 = vunpack.i.l.bf16 %v21854_v22  ;;  %v21856_v45 = vld [vmem:[#allocation41_spill] sm:$0xff] }
 0x177   :  { %10289 = vrot.lane.b32.xlu0 %v21849_v5, %s12343_s5  ;;  %v9845_v5 = vunpack.i.l.bf16 %v21851_v15  ;;  %v9856_v8 = vunpack.i.h.bf16 %v21855_v51  ;;  %v9855_v33 = vunpack.i.l.bf16 %v21855_v51  ;;  %v9871_v61 = vunpack.i.h.bf16 %v21856_v45 }
 0x178   :  { %10294 = vrot.lane.b32.xlu1 %v21848_v35, %s12343_s5  ;;  %v14230_v39 = vpop.permute.xlu1 %10018  ;;  %v14232_v35 = vpop.permute.xlu0 %10013  ;;  %v9881_v10 = vunpack.i.h.bf16 %v21857_v54  ;;  %v9880_v26 = vunpack.i.l.bf16 %v21857_v54  ;;  %v21858_v0 = vpack.i.bf16 %v13848_v9, %v13840_v48  ;;  %v21859_v15 = vpack.i.bf16 %v13844_v47, %v13830_v11  ;;  %v21862_v48 = vld [vmem:[#allocation47_spill] sm:$0xff] }
 0x179   :  { %21852 = vst [vmem:[#allocation61_spill] sm:$0xff] %v14230_v39  ;;  %21853 = vst [vmem:[#allocation67_spill] sm:$0xff] %v14232_v35  ;;  %v9870_v22 = vunpack.i.l.bf16 %v21856_v45  ;;  %v9866_v51 = vunpack.i.h.bf16 %v21860_v46  ;;  %v9886_v40 = vunpack.i.h.bf16 %v21861_v53  ;;  %v9885_v39 = vunpack.i.l.bf16 %v21861_v53 }
 0x17a   :  { %v14255_v54 = vsel %vm922_vm10, %v9850_v44, %v9851_v1  ;;  %v14258_v35 = vsel %vm922_vm10, %v9846_v30, %v9850_v44  ;;  %v9891_v9 = vunpack.i.h.bf16 %v21862_v48  ;;  %v928_v45 = vsel %vm922_vm10, %v9841_v37, %v9845_v5 }
 0x17b   :  { %10299 = vrot.lane.b32.xlu0 %v21859_v15, %s12343_s5  ;;  %v929_v15 = vsel %vm922_vm10, %v9845_v5, %v9846_v30  ;;  %v14269_v53 = vsel %vm922_vm10, %v9860_v38, %v9861_v36  ;;  %v14272_v17 = vsel %vm922_vm10, %v9856_v8, %v9860_v38  ;;  %v14275_v44 = vsel %vm922_vm10, %v9851_v1, %v9855_v33  ;;  %v21867_v38 = vld [vmem:[#allocation46_spill] sm:$0xff] }
 0x17c   :  { %10304 = vrot.lane.b32.xlu1 %v21858_v0, %s12343_s5  ;;  %v9890_v0 = vunpack.i.l.bf16 %v21862_v48  ;;  %v14262_v11 = vpop.permute.xlu1 %10028  ;;  %v14264_v47 = vpop.permute.xlu0 %10023  ;;  %v14278_v41 = vsel %vm922_vm10, %v9855_v33, %v9856_v8  ;;  %v9865_v48 = vunpack.i.l.bf16 %v21860_v46  ;;  %v21865_v37 = vpack.i.bf16 %v13871_v21, %v13851_v63 }
 0x17d   :  { %21863 = vst [vmem:[#allocation66_spill] sm:$0xff] %v14262_v11  ;;  %21864 = vst [vmem:[#allocation73_spill] sm:$0xff] %v14264_v47  ;;  %v1003_v11 = vsel %vm1002_vm11, %v9880_v26, %v9881_v10  ;;  %v21866_v30 = vpack.i.bf16 %v13859_v49, %v13855_v25  ;;  %v14291_v1 = vsel %vm922_vm10, %v9870_v22, %v9871_v61  ;;  %v9876_v33 = vunpack.i.h.bf16 %v21867_v38 }
 0x17e   :  { %v14294_v8 = vsel %vm922_vm10, %v9866_v51, %v9870_v22  ;;  %v1004_v46 = vsel %vm1002_vm11, %v9881_v10, %v9885_v39  ;;  %v1005_v5 = vsel %vm1002_vm11, %v9885_v39, %v9886_v40  ;;  %v9875_v63 = vunpack.i.l.bf16 %v21867_v38  ;;  %v21869_v10 = vld [vmem:[#allocation48_spill] sm:$0xff] }
 0x17f   :  { %10309 = vrot.lane.b32.xlu0 %v21866_v30, %s12343_s5  ;;  %v1007_v21 = vsel %vm1002_vm11, %v9890_v0, %v9891_v9  ;;  %v21868_v30 = vunpack.i.l.bf16 %v21841_v12  ;;  %v9896_v47 = vunpack.i.h.bf16 %v21869_v10  ;;  %v9895_v39 = vunpack.i.l.bf16 %v21869_v10 }
 0x180   :  { %10314 = vrot.lane.b32.xlu1 %v21865_v37, %s12343_s5  ;;  %v1006_v37 = vsel %vm1002_vm11, %v9886_v40, %v9890_v0  ;;  %v14302_v25 = vpop.permute.xlu1 %10038  ;;  %v14304_v49 = vpop.permute.xlu0 %10033  ;;  %v14314_v4 = vsel %vm51_vm1, %v923_v52, %v1003_v11  ;;  %v14317_v38 = vsel %vm922_vm10, %v9861_v36, %v9865_v48  ;;  %v21870_v40 = vpack.i.bf16 %v13887_v20, %v13884_v2  ;;  %v21872_v52 = vld [vmem:[#allocation62_spill] sm:$0xff] }
 0x181   :  { %v14309_v22 = vsel %vm51_vm1, %v21868_v30, %v9880_v26  ;;  %v21871_v12 = vpack.i.bf16 %v13879_v6, %v13875_v59  ;;  %v14328_v26 = vsel %vm51_vm1, %v924_v14, %v1004_v46  ;;  %v14331_v0 = vsel %vm51_vm1, %v925_v23, %v1005_v5  ;;  %v21873_v5 = vld [vmem:[#allocation54_spill] sm:$0xff] }
 0x182   :  { %v9901_v11 = vunpack.i.h.bf16 %v21872_v52  ;;  %v9900_v36 = vunpack.i.l.bf16 %v21872_v52  ;;  %v14336_v30 = vsel %vm51_vm1, %v926_v60, %v1006_v37  ;;  %v14340_v2 = vsel %vm51_vm1, %v14220_v16, %v1007_v21  ;;  %v21876_v37 = vld [vmem:[#allocation64_spill] sm:$0xff]  ;;  %v21878_v52 = vld [vmem:[#allocation51_spill] sm:$0xff] }
 0x183   :  { %10319 = vrot.lane.b32.xlu0 %v21871_v12, %s12343_s5  ;;  %v937_v59 = vsel %vm922_vm10, %v9865_v48, %v9866_v51  ;;  %v14344_v6 = vsel %vm922_vm10, %v9871_v61, %v9875_v63  ;;  %v14347_v20 = vsel %vm922_vm10, %v9875_v63, %v9876_v33  ;;  %v1008_v46 = vsel %vm1002_vm11, %v9891_v9, %v9895_v39  ;;  %v21874_v61 = vld [vmem:[#allocation49_spill] sm:$0xff] }
 0x184   :  { %10324 = vrot.lane.b32.xlu1 %v21870_v40, %s12343_s5  ;;  %v14349_v14 = vpop.permute.xlu1 %10048  ;;  %v14351_v23 = vpop.permute.xlu0 %10043  ;;  %v1009_v16 = vsel %vm1002_vm11, %v9895_v39, %v9896_v47  ;;  %v9906_v21 = vunpack.i.h.bf16 %v21873_v5  ;;  %v9905_v51 = vunpack.i.l.bf16 %v21873_v5  ;;  %v9911_v48 = vunpack.i.h.bf16 %v21874_v61 }
 0x185   :  { %v9910_v33 = vunpack.i.l.bf16 %v21874_v61  ;;  %v21875_v63 = vpack.i.bf16 %v14065_v28, %v14062_v29  ;;  %v21877_v10 = vpack.i.bf16 %v14032_v31, %v21876_v37  ;;  %v1011_v40 = vsel %vm1002_vm11, %v9900_v36, %v9901_v11  ;;  %v21879_v28 = vld [vmem:[#allocation50_spill] sm:$0xff] }
 0x186   :  { %v1010_v12 = vsel %vm1002_vm11, %v9896_v47, %v9900_v36  ;;  %v9916_v5 = vunpack.i.h.bf16 %v21878_v52  ;;  %v9915_v29 = vunpack.i.l.bf16 %v21878_v52  ;;  %v9921_v61 = vunpack.i.h.bf16 %v21879_v28  ;;  %v21881_v36 = vld [vmem:[#allocation65_spill] sm:$0xff] }
 0x187   :  { %10329 = vrot.lane.b32.xlu0 %v21877_v10, %s12343_s5  ;;  %v14382_v37 = vsel %vm51_vm1, %v928_v45, %v1008_v46  ;;  %v14385_v10 = vsel %vm51_vm1, %v929_v15, %v1009_v16  ;;  %v1012_v39 = vsel %vm1002_vm11, %v9901_v11, %v9905_v51  ;;  %v1013_v47 = vsel %vm1002_vm11, %v9905_v51, %v9906_v21 }
 0x188   :  { %10334 = vrot.lane.b32.xlu1 %v21875_v63, %s12343_s5  ;;  %v9920_v63 = vunpack.i.l.bf16 %v21879_v28  ;;  %v14379_v31 = vpop.permute.xlu0 %10053  ;;  %v9926_v60 = vunpack.i.h.bf16 %v21881_v36  ;;  %v9925_v52 = vunpack.i.l.bf16 %v21881_v36  ;;  %v14391_v9 = vpop.permute.xlu1 %10058  ;;  %v1015_v28 = vsel %vm1002_vm11, %v9910_v33, %v9911_v48 }
 0x189   :  { %21880 = vst [vmem:[#allocation18_spill] sm:$0xff] %v14379_v31  ;;  %v1014_v31 = vsel %vm1002_vm11, %v9906_v21, %v9910_v33  ;;  %v21882_v45 = vpack.i.bf16 %v14116_v3, %v14098_v42  ;;  %v21883_v15 = vpack.i.bf16 %v14083_v57, %v14079_v55  ;;  %v14405_v11 = vsel %vm51_vm1, %v14258_v35, %v1010_v12  ;;  %v21885_v12 = vld [vmem:[#allocation68_spill] sm:$0xff] }
 0x18a   :  { %v1016_v46 = vsel %vm1002_vm11, %v9911_v48, %v9915_v29  ;;  %v1017_v16 = vsel %vm1002_vm11, %v9915_v29, %v9916_v5  ;;  %v14413_v42 = vsel %vm51_vm1, %v14255_v54, %v1011_v40  ;;  %v1019_v3 = vsel %vm1002_vm11, %v9920_v63, %v9921_v61 }
 0x18b   :  { %10339 = vrot.lane.b32.xlu0 %v21883_v15, %s12343_s5  ;;  %v1018_v55 = vsel %vm1002_vm11, %v9916_v5, %v9920_v63  ;;  %v14421_v35 = vsel %vm51_vm1, %v14275_v44, %v1012_v39  ;;  %v14425_v51 = vsel %vm51_vm1, %v14278_v41, %v1013_v47  ;;  %v1020_v48 = vsel %vm1002_vm11, %v9921_v61, %v9925_v52  ;;  %v21888_v39 = vld [vmem:[#allocation70_spill] sm:$0xff] }
 0x18c   :  { %10344 = vrot.lane.b32.xlu1 %v21882_v45, %s12343_s5  ;;  %v14417_v57 = vpop.permute.xlu0 %10063  ;;  %v1021_v33 = vsel %vm1002_vm11, %v9925_v52, %v9926_v60  ;;  %v14431_v54 = vsel %vm51_vm1, %v14272_v17, %v1014_v31  ;;  %v14435_v40 = vsel %vm51_vm1, %v14269_v53, %v1015_v28  ;;  %v9931_v5 = vunpack.i.h.bf16 %v21885_v12  ;;  %v14456_v63 = vpop.permute.xlu1 %10068  ;;  %v21892_v28 = vld [vmem:[#allocation52_spill] sm:$0xff] }
 0x18d   :  { %21884 = vst [vmem:[#allocation9_spill] sm:$0xff] %v14417_v57  ;;  %v21177_v44 = vunpack.i.l.bf16 %v21885_v12  ;;  %v21886_v41 = vpack.i.bf16 %v14138_v32, %v14134_v50  ;;  %v21887_v60 = vpack.i.bf16 %v14126_v56, %v14122_v18  ;;  %v14449_v17 = vsel %vm51_vm1, %v14317_v38, %v1016_v46  ;;  %21889 = vst [vmem:[#allocation72_spill] sm:$0xff] %v14456_v63  ;;  %v21890_v56 = vld [vmem:[#allocation69_spill] sm:$0xff] }
 0x18e   :  { %v14452_v53 = vsel %vm51_vm1, %v937_v59, %v1017_v16  ;;  %v9941_v29 = vunpack.i.h.bf16 %v21888_v39  ;;  %v9940_v61 = vunpack.i.l.bf16 %v21888_v39  ;;  %v14460_v50 = vsel %vm51_vm1, %v14294_v8, %v1018_v55  ;;  %v21895_v55 = vld [vmem:[#allocation53_spill] sm:$0xff] }
 0x18f   :  { %10349 = vrot.lane.b32.xlu0 %v21887_v60, %s12343_s5  ;;  %v14464_v18 = vsel %vm51_vm1, %v14291_v1, %v1019_v3  ;;  %v9936_v32 = vunpack.i.h.bf16 %v21890_v56  ;;  %v14473_v31 = vsel %vm51_vm1, %v14344_v6, %v1020_v48  ;;  %v14477_v47 = vsel %vm51_vm1, %v14347_v20, %v1021_v33 }
 0x190   :  { %10354 = vrot.lane.b32.xlu1 %v21886_v41, %s12343_s5  ;;  %v14467_v38 = vpop.permute.xlu0 %10073  ;;  %v9935_v8 = vunpack.i.l.bf16 %v21890_v56  ;;  %v1083_v6 = vsel %vm1082_vm12, %v21177_v44, %v9931_v5  ;;  %v9951_v45 = vunpack.i.h.bf16 %v21892_v28  ;;  %v9950_v20 = vunpack.i.l.bf16 %v21892_v28  ;;  %v14520_v41 = vpop.permute.xlu1 %10078 }
 0x191   :  { %21891 = vst [vmem:[#allocation76_spill] sm:$0xff] %v14467_v38  ;;  %v21893_v15 = vpack.i.bf16 %v14156_v43, %v14152_v19  ;;  %v21894_v46 = vpack.i.bf16 %v14146_v13, %v14142_v34  ;;  %v14502_v3 = vsel %vm1082_vm12, %v9940_v61, %v9941_v29  ;;  %v9946_v48 = vunpack.i.h.bf16 %v21895_v55  ;;  %v21896_v43 = vld [vmem:[#allocation57_spill] sm:$0xff]  ;;  %v21897_v13 = vld [vmem:[#allocation56_spill] sm:$0xff] }
 0x192   :  { %v9945_v33 = vunpack.i.l.bf16 %v21895_v55  ;;  %v14509_v19 = vsel %vm1082_vm12, %v9936_v32, %v9940_v61  ;;  %v9961_v60 = vunpack.i.h.bf16 %v21896_v43  ;;  %v9960_v34 = vunpack.i.l.bf16 %v21896_v43  ;;  %v21899_v43 = vld [vmem:[#allocation71_spill] sm:$0xff] }
 0x193   :  { %10359 = vrot.lane.b32.xlu0 %v21894_v46, %s12343_s5  ;;  %v9956_v39 = vunpack.i.h.bf16 %v21897_v13  ;;  %v1084_v28 = vsel %vm1082_vm12, %v9931_v5, %v9935_v8  ;;  %v21898_v46 = vld [vmem:[#allocation74_spill] sm:$0xff]  ;;  %v14523_v61 = vsel %vm1082_vm12, %v9950_v20, %v9951_v45  ;;  %v9955_v52 = vunpack.i.l.bf16 %v21897_v13  ;;  %v21902_v13 = vld [vmem:[#allocation13_spill] sm:$0xff] }
 0x194   :  { %10364 = vrot.lane.b32.xlu1 %v21893_v15, %s12343_s5  ;;  %v14514_v56 = vpop.permute.xlu0 %10083  ;;  %v1085_v15 = vsel %vm1082_vm12, %v9935_v8, %v9936_v32  ;;  %v9981_v55 = vunpack.i.h.bf16 %v21898_v46  ;;  %v9980_v16 = vunpack.i.l.bf16 %v21898_v46  ;;  %v9971_v36 = vunpack.i.h.bf16 %v21899_v43  ;;  %v14579_v57 = vpop.permute.xlu1 %10088 }
 0x195   :  { %v9970_v59 = vunpack.i.l.bf16 %v21899_v43  ;;  %v21900_v5 = vpack.i.bf16 %v14194_v24, %v14190_v7  ;;  %v21901_v32 = vpack.i.bf16 %v14174_v27, %v14170_v58  ;;  %v14537_v8 = vsel %vm1082_vm12, %v9946_v48, %v9950_v20  ;;  %v21903_v58 = vld [vmem:[#allocation75_spill] sm:$0xff] }
 0x196   :  { %v1088_v46 = vsel %vm1082_vm12, %v9941_v29, %v9945_v33  ;;  %v9986_v1 = vunpack.i.h.bf16 %v21902_v13  ;;  %v9985_v21 = vunpack.i.l.bf16 %v21902_v13  ;;  %v14543_v43 = vsel %vm1082_vm12, %v9945_v33, %v9946_v48 }
 0x197   :  { %10369 = vrot.lane.b32.xlu0 %v21901_v32, %s12343_s5  ;;  %v14546_v7 = vsel %vm1082_vm12, %v9960_v34, %v9961_v60  ;;  %v14549_v24 = vsel %vm1082_vm12, %v9956_v39, %v9960_v34  ;;  %v9966_v27 = vunpack.i.h.bf16 %v21903_v58  ;;  %v9965_v20 = vunpack.i.l.bf16 %v21903_v58  ;;  %v21905_v32 = vld [vmem:[#allocation59_spill] sm:$0xff] }
 0x198   :  { %10374 = vrot.lane.b32.xlu1 %v21900_v5, %s12343_s5  ;;  %v14552_v5 = vpop.permute.xlu0 %10093  ;;  %v1163_v29 = vsel %vm1162_vm13, %v9980_v16, %v9981_v55  ;;  %v9991_v44 = vunpack.i.h.bf16 %v21905_v32  ;;  %v9990_v13 = vunpack.i.l.bf16 %v21905_v32  ;;  %v14559_v48 = vsel %vm1082_vm12, %v9951_v45, %v9955_v52  ;;  %v21908_v32 = vld [vmem:[#allocation55_spill] sm:$0xff] }
 0x199   :  { %21904 = vst [vmem:[#allocation77_spill] sm:$0xff] %v14552_v5  ;;  %v14562_v33 = vsel %vm1082_vm12, %v9955_v52, %v9956_v39  ;;  %v14565_v34 = vsel %vm1082_vm12, %v9970_v59, %v9971_v36  ;;  %v21906_v38 = vpack.i.bf16 %v14331_v0, %v14328_v26  ;;  %v21907_v58 = vpack.i.bf16 %v14314_v4, %v14309_v22 }
 0x19a   :  { %v9976_v5 = vunpack.i.h.bf16 %v21908_v32  ;;  %v9975_v45 = vunpack.i.l.bf16 %v21908_v32  ;;  %v1164_v52 = vsel %vm1162_vm13, %v9981_v55, %v9985_v21  ;;  %v1165_v39 = vsel %vm1162_vm13, %v9985_v21, %v9986_v1  ;;  %v21910_v32 = vld [vmem:[#allocation12_spill] sm:$0xff] }
 0x19b   :  { %10379 = vrot.lane.b32.xlu0 %v21907_v58, %s12343_s5  ;;  %v14582_v63 = vsel %vm1082_vm12, %v9966_v27, %v9970_v59  ;;  %v21909_v26 = vunpack.i.l.bf16 %v21885_v12  ;;  %v9995_v4 = vunpack.i.l.bf16 %v14130_v62  ;;  %v1096_v55 = vsel %vm1082_vm12, %v9961_v60, %v9965_v20 }
 0x19c   :  { %10384 = vrot.lane.b32.xlu1 %v21906_v38, %s12343_s5  ;;  %v14590_v22 = vpop.permute.xlu0 %10103  ;;  %v14593_v38 = vsel %vm51_vm1, %v1083_v6, %v1163_v29  ;;  %v1097_v21 = vsel %vm1082_vm12, %v9965_v20, %v9966_v27  ;;  %v1167_v58 = vsel %vm1162_vm13, %v9990_v13, %v9991_v44  ;;  %v1166_v59 = vsel %vm1162_vm13, %v9986_v1, %v9990_v13 }
 0x19d   :  { %v14587_v0 = vsel %vm51_vm1, %v21909_v26, %v9980_v16  ;;  %v10000_v12 = vunpack.i.l.bf16 %v21910_v32  ;;  %v9996_v16 = vunpack.i.h.bf16 %v14130_v62  ;;  %v21911_v26 = vpack.i.bf16 %v14385_v10, %v14382_v37 }
 0x19e   :  { %v21912_v6 = vpack.i.bf16 %v14340_v2, %v14336_v30  ;;  %v14610_v60 = vsel %vm51_vm1, %v1084_v28, %v1164_v52  ;;  %v14613_v27 = vsel %vm51_vm1, %v1085_v15, %v1165_v39  ;;  %v14616_v1 = vsel %vm1082_vm12, %v9971_v36, %v9975_v45  ;;  %v21913_v2 = vld [vmem:[#allocation60_spill] sm:$0xff]  ;;  %v21914_v15 = vld [vmem:[#allocation58_spill] sm:$0xff] }
 0x19f   :  { %v14619_v62 = vsel %vm1082_vm12, %v9975_v45, %v9976_v5  ;;  %v10001_v37 = vunpack.i.h.bf16 %v21910_v32  ;;  %v1168_v30 = vsel %vm1162_vm13, %v9991_v44, %v9995_v4  ;;  %v10006_v20 = vunpack.i.h.bf16 %v21913_v2  ;;  %v14635_v45 = vpop.permute.xlu1 %10098 }
 0x1a0   :  { %10394 = vrot.lane.b32.xlu1 %v21911_v26, %s12343_s5  ;;  %10389 = vrot.lane.b32.xlu0 %v21912_v6, %s12343_s5  ;;  %v10005_v28 = vunpack.i.l.bf16 %v21913_v2  ;;  %v14627_v29 = vpop.permute.xlu0 %10113  ;;  %v14631_v36 = vsel %vm51_vm1, %v14509_v19, %v1166_v59  ;;  %v10011_v5 = vunpack.i.h.bf16 %v21914_v15  ;;  %v10010_v13 = vunpack.i.l.bf16 %v21914_v15  ;;  %v21915_v26 = vld [vmem:[#allocation67_spill] sm:$0xff] }
 0x1a1   :  { %v14641_v44 = vsel %vm51_vm1, %v14502_v3, %v1167_v58  ;;  %v1170_v39 = vsel %vm1162_vm13, %v9996_v16, %v10000_v12  ;;  %v1169_v32 = vsel %vm1162_vm13, %v9995_v4, %v9996_v16  ;;  %v10016_v19 = vunpack.i.h.bf16 %v21915_v26  ;;  %v21918_v58 = vld [vmem:[#allocation61_spill] sm:$0xff] }
 0x1a2   :  { %v10015_v59 = vunpack.i.l.bf16 %v21915_v26  ;;  %v21916_v6 = vpack.i.bf16 %v14425_v51, %v14421_v35  ;;  %v21917_v2 = vpack.i.bf16 %v14413_v42, %v14405_v11  ;;  %v1171_v3 = vsel %vm1162_vm13, %v10000_v12, %v10001_v37  ;;  %v21919_v35 = vld [vmem:[#allocation73_spill] sm:$0xff] }
 0x1a3   :  { %v10021_v15 = vunpack.i.h.bf16 %v21918_v58  ;;  %v10020_v4 = vunpack.i.l.bf16 %v21918_v58  ;;  %v14659_v16 = vsel %vm51_vm1, %v1088_v46, %v1168_v30  ;;  %v1172_v26 = vsel %vm1162_vm13, %v10001_v37, %v10005_v28 }
 0x1a4   :  { %10404 = vrot.lane.b32.xlu1 %v21916_v6, %s12343_s5  ;;  %10399 = vrot.lane.b32.xlu0 %v21917_v2, %s12343_s5  ;;  %v1173_v10 = vsel %vm1162_vm13, %v10005_v28, %v10006_v20  ;;  %v10026_v51 = vunpack.i.h.bf16 %v21919_v35  ;;  %v10025_v6 = vunpack.i.l.bf16 %v21919_v35  ;;  %v14665_v52 = vpop.permute.xlu0 %10123  ;;  %v1175_v11 = vsel %vm1162_vm13, %v10010_v13, %v10011_v5 }
 0x1a5   :  { %v1174_v42 = vsel %vm1162_vm13, %v10006_v20, %v10010_v13  ;;  %v14671_v12 = vsel %vm51_vm1, %v14543_v43, %v1169_v32  ;;  %v14675_v46 = vsel %vm51_vm1, %v14537_v8, %v1170_v39  ;;  %v1176_v37 = vsel %vm1162_vm13, %v10011_v5, %v10015_v59  ;;  %v14693_v13 = vpop.permute.xlu1 %10108 }
 0x1a6   :  { %v1177_v30 = vsel %vm1162_vm13, %v10015_v59, %v10016_v19  ;;  %v21920_v28 = vpack.i.bf16 %v14452_v53, %v14449_v17  ;;  %v21921_v20 = vpack.i.bf16 %v14435_v40, %v14431_v54  ;;  %v14689_v43 = vsel %vm51_vm1, %v14523_v61, %v1171_v3 }
 0x1a7   :  { %v1179_v8 = vsel %vm1162_vm13, %v10020_v4, %v10021_v15  ;;  %v1178_v5 = vsel %vm1162_vm13, %v10016_v19, %v10020_v4  ;;  %v14697_v39 = vsel %vm51_vm1, %v14559_v48, %v1172_v26  ;;  %v14701_v17 = vsel %vm51_vm1, %v14562_v33, %v1173_v10  ;;  %v21922_v48 = vld [vmem:[#allocation66_spill] sm:$0xff] }
 0x1a8   :  { %10414 = vrot.lane.b32.xlu1 %v21920_v28, %s12343_s5  ;;  %10409 = vrot.lane.b32.xlu0 %v21921_v20, %s12343_s5  ;;  %v1180_v54 = vsel %vm1162_vm13, %v10021_v15, %v10025_v6  ;;  %v1181_v40 = vsel %vm1162_vm13, %v10025_v6, %v10026_v51  ;;  %v14705_v53 = vpop.permute.xlu0 %10129  ;;  %v14709_v61 = vsel %vm51_vm1, %v14549_v24, %v1174_v42  ;;  %v10031_v19 = vunpack.i.h.bf16 %v21922_v48 }
 0x1a9   :  { %v14713_v32 = vsel %vm51_vm1, %v14546_v7, %v1175_v11  ;;  %v10030_v59 = vunpack.i.l.bf16 %v21922_v48  ;;  %v14718_v33 = vsel %vm51_vm1, %v1096_v55, %v1176_v37  ;;  %v14721_v10 = vsel %vm51_vm1, %v1097_v21, %v1177_v30 }
 0x1aa   :  { %v10041_v2 = vunpack.i.h.bf16 %v14302_v25  ;;  %v10040_v3 = vunpack.i.l.bf16 %v14302_v25  ;;  %v21923_v7 = vpack.i.bf16 %v14477_v47, %v14473_v31  ;;  %v21924_v24 = vpack.i.bf16 %v14464_v18, %v14460_v50 }
 0x1ab   :  { %v14735_v55 = vsel %vm51_vm1, %v14582_v63, %v1178_v5  ;;  %v14739_v21 = vsel %vm51_vm1, %v14565_v34, %v1179_v8  ;;  %v10443_v25 = vpack.i.bf16 %v14671_v12, %v14659_v16  ;;  %v10438_v31 = vpack.i.bf16 %v14641_v44, %v14631_v36  ;;  %v14766_v44 = vpop.permute.xlu1 %10118 }
 0x1ac   :  { %10424 = vrot.lane.b32.xlu1 %v21923_v7, %s12343_s5  ;;  %10419 = vrot.lane.b32.xlu0 %v21924_v24, %s12343_s5  ;;  %v14747_v47 = vsel %vm51_vm1, %v14616_v1, %v1180_v54  ;;  %v14751_v50 = vsel %vm51_vm1, %v14619_v62, %v1181_v40  ;;  %v10036_v63 = vunpack.i.h.bf16 %v14304_v49  ;;  %v10035_v18 = vunpack.i.l.bf16 %v14304_v49  ;;  %v14755_v34 = vpop.permute.xlu0 %10139  ;;  %v21929_v40 = vld [vmem:[#allocation72_spill] sm:$0xff]  ;;  %v21930_v7 = vld [vmem:[#allocation9_spill] sm:$0xff] }
 0x1ad   :  { %v10453_v58 = vpack.i.bf16 %v14701_v17, %v14697_v39  ;;  %v10448_v36 = vpack.i.bf16 %v14689_v43, %v14675_v46  ;;  %v14764_v1 = vsel %vm1242_vm14, %v10030_v59, %v10031_v19  ;;  %v10463_v62 = vpack.i.bf16 %v14721_v10, %v14718_v33 }
 0x1ae   :  { %v10458_v49 = vpack.i.bf16 %v14713_v32, %v14709_v61  ;;  %v14775_v4 = vsel %vm1242_vm14, %v10040_v3, %v10041_v2  ;;  %v10051_v16 = vunpack.i.h.bf16 %v14349_v14  ;;  %v10050_v26 = vunpack.i.l.bf16 %v14349_v14 }
 0x1af   :  { %v21925_v35 = vpack.i.bf16 %v14613_v27, %v14610_v60  ;;  %v21926_v51 = vpack.i.bf16 %v14593_v38, %v14587_v0  ;;  %v10473_v6 = vpack.i.bf16 %v14751_v50, %v14747_v47  ;;  %v10046_v11 = vunpack.i.h.bf16 %v14351_v23  ;;  %v21927_v27 = vld [vmem:[#allocation18_spill] sm:$0xff] }
 0x1b0   :  { %v10045_v42 = vunpack.i.l.bf16 %v14351_v23  ;;  %v10061_v12 = vunpack.i.h.bf16 %v14391_v9  ;;  %v10060_v14 = vunpack.i.l.bf16 %v14391_v9  ;;  %v1246_v46 = vsel %vm1242_vm14, %v10036_v63, %v10040_v3  ;;  %v14797_v38 = vpop.permute.xlu0 %10149 }
 0x1b1   :  { %10434 = vrot.lane.b32.xlu1 %v21925_v35, %s12343_s5  ;;  %10429 = vrot.lane.b32.xlu0 %v21926_v51, %s12343_s5  ;;  %v1244_v60 = vsel %vm1242_vm14, %v10031_v19, %v10035_v18  ;;  %v10056_v37 = vunpack.i.h.bf16 %v21927_v27  ;;  %v10055_v0 = vunpack.i.l.bf16 %v21927_v27  ;;  %v10081_v30 = vunpack.i.h.bf16 %v14520_v41  ;;  %v14803_v43 = vpop.permute.xlu1 %1525 }
 0x1b2   :  { %v10080_v28 = vunpack.i.l.bf16 %v14520_v41  ;;  %v10091_v23 = vunpack.i.h.bf16 %v14579_v57  ;;  %v10090_v20 = vunpack.i.l.bf16 %v14579_v57  ;;  %21928 = vst [vmem:[#allocation14_spill] sm:$0xff] %v14803_v43  ;;  %v1245_v9 = vsel %vm1242_vm14, %v10035_v18, %v10036_v63 }
 0x1b3   :  { %v14807_v8 = vsel %vm1242_vm14, %v10050_v26, %v10051_v16  ;;  %v10086_v5 = vunpack.i.h.bf16 %v14514_v56  ;;  %v10085_v39 = vunpack.i.l.bf16 %v14514_v56  ;;  %v14814_v41 = vsel %vm1242_vm14, %v10046_v11, %v10050_v26 }
 0x1b4   :  { %v1248_v57 = vsel %vm1242_vm14, %v10041_v2, %v10045_v42  ;;  %v1249_v17 = vsel %vm1242_vm14, %v10045_v42, %v10046_v11  ;;  %v14819_v54 = vsel %vm1242_vm14, %v10060_v14, %v10061_v12  ;;  %v10071_v19 = vunpack.i.h.bf16 %v21929_v40 }
 0x1b5   :  { %10444 = vrot.lane.b32.xlu1 %v10443_v25, %s12343_s5  ;;  %10439 = vrot.lane.b32.xlu0 %v10438_v31, %s12343_s5  ;;  %v10070_v3 = vunpack.i.l.bf16 %v21929_v40  ;;  %v10066_v56 = vunpack.i.h.bf16 %v21930_v7  ;;  %v10065_v24 = vunpack.i.l.bf16 %v21930_v7  ;;  %v14825_v25 = vpop.permute.xlu0 %10159  ;;  %v14828_v31 = vsel %vm1242_vm14, %v10056_v37, %v10060_v14  ;;  %v14835_v26 = vpop.permute.xlu1 %10134  ;;  %v21931_v14 = vld [vmem:[#allocation77_spill] sm:$0xff] }
 0x1b6   :  { %v14831_v2 = vsel %vm1242_vm14, %v10051_v16, %v10055_v0  ;;  %v1323_v63 = vsel %vm1322_vm15, %v10080_v28, %v10081_v30  ;;  %v1327_v18 = vsel %vm1322_vm15, %v10090_v20, %v10091_v23  ;;  %v1326_v35 = vsel %vm1322_vm15, %v10086_v5, %v10090_v20 }
 0x1b7   :  { %v1324_v51 = vsel %vm1322_vm15, %v10081_v30, %v10085_v39  ;;  %v1325_v11 = vsel %vm1322_vm15, %v10085_v39, %v10086_v5  ;;  %v10101_v42 = vunpack.i.h.bf16 %v14635_v45  ;;  %v10100_v16 = vunpack.i.l.bf16 %v14635_v45 }
 0x1b8   :  { %v10096_v27 = vunpack.i.h.bf16 %v21931_v14  ;;  %v10095_v7 = vunpack.i.l.bf16 %v21931_v14  ;;  %v14847_v15 = vsel %vm1242_vm14, %v10055_v0, %v10056_v37  ;;  %v14852_v30 = vsel %vm1242_vm14, %v10070_v3, %v10071_v19 }
 0x1b9   :  { %10454 = vrot.lane.b32.xlu1 %v10453_v58, %s12343_s5  ;;  %10449 = vrot.lane.b32.xlu0 %v10448_v36, %s12343_s5  ;;  %v14855_v58 = vsel %vm1242_vm14, %v10066_v56, %v10070_v3  ;;  %v14858_v36 = vsel %vm1242_vm14, %v10061_v12, %v10065_v24  ;;  %v14860_v20 = vpop.permute.xlu0 %10169  ;;  %v14863_v45 = vsel %vm1242_vm14, %v10065_v24, %v10066_v56  ;;  %v14868_v0 = vpop.permute.xlu1 %10144  ;;  %v21933_v3 = vld [vmem:[#allocation76_spill] sm:$0xff]  ;;  %v10111_v10 = vunpack.i.h.bf16 %v14693_v13 }
 0x1ba   :  { %21932 = vst [vmem:[#allocation15_spill] sm:$0xff] %v14860_v20  ;;  %v1502_v37 = vsel %vm51_vm1, %v10030_v59, %v10080_v28  ;;  %v1504_v5 = vsel %vm51_vm1, %v1244_v60, %v1324_v51  ;;  %v1503_v39 = vsel %vm51_vm1, %v14764_v1, %v1323_v63  ;;  %v10076_v14 = vunpack.i.h.bf16 %v21933_v3 }
 0x1bb   :  { %v1505_v48 = vsel %vm51_vm1, %v1245_v9, %v1325_v11  ;;  %v1506_v59 = vsel %vm51_vm1, %v1246_v46, %v1326_v35  ;;  %v1507_v1 = vsel %vm51_vm1, %v14775_v4, %v1327_v18  ;;  %v1331_v12 = vsel %vm1322_vm15, %v10100_v16, %v10101_v42 }
 0x1bc   :  { %v1330_v60 = vsel %vm1322_vm15, %v10096_v27, %v10100_v16  ;;  %v1328_v28 = vsel %vm1322_vm15, %v10091_v23, %v10095_v7  ;;  %v1329_v33 = vsel %vm1322_vm15, %v10095_v7, %v10096_v27  ;;  %v10110_v61 = vunpack.i.l.bf16 %v14693_v13 }
 0x1bd   :  { %10464 = vrot.lane.b32.xlu1 %v10463_v62, %s12343_s5  ;;  %10459 = vrot.lane.b32.xlu0 %v10458_v49, %s12343_s5  ;;  %v10106_v32 = vunpack.i.h.bf16 %v14590_v22  ;;  %v10105_v62 = vunpack.i.l.bf16 %v14590_v22  ;;  %v14894_v49 = vpop.permute.xlu0 %10179  ;;  %v10075_v4 = vunpack.i.l.bf16 %v21933_v3  ;;  %v14897_v46 = vpop.permute.xlu1 %10154  ;;  %v10483_v9 = vpack.i.bf16 %v1505_v48, %v1504_v5 }
 0x1be   :  { %v10478_v56 = vpack.i.bf16 %v1503_v39, %v1502_v37  ;;  %v10488_v24 = vpack.i.bf16 %v1507_v1, %v1506_v59  ;;  %v10116_v23 = vunpack.i.h.bf16 %v14627_v29  ;;  %v10115_v63 = vunpack.i.l.bf16 %v14627_v29 }
 0x1bf   :  { %v21934_v22 = vpack.i.bf16 %v14739_v21, %v14735_v55  ;;  %v1508_v13 = vsel %vm51_vm1, %v1248_v57, %v1328_v28  ;;  %v1509_v18 = vsel %vm51_vm1, %v1249_v17, %v1329_v33  ;;  %v21187_v35 = vunpack.i.h.bf16 %v14755_v34 }
 0x1c0   :  { %v10141_v51 = vunpack.i.l.bf16 %v14755_v34  ;;  %v1510_v29 = vsel %vm51_vm1, %v14814_v41, %v1330_v60  ;;  %v1511_v47 = vsel %vm51_vm1, %v14807_v8, %v1331_v12  ;;  %v1335_v50 = vsel %vm1322_vm15, %v10110_v61, %v10111_v10 }
 0x1c1   :  { %10474 = vrot.lane.b32.xlu1 %v10473_v6, %s12343_s5  ;;  %10469 = vrot.lane.b32.xlu0 %v21934_v22, %s12343_s5  ;;  %v1334_v6 = vsel %vm1322_vm15, %v10106_v32, %v10110_v61  ;;  %v1332_v55 = vsel %vm1322_vm15, %v10101_v42, %v10105_v62  ;;  %v1333_v21 = vsel %vm1322_vm15, %v10105_v62, %v10106_v32  ;;  %v14921_v57 = vpop.permute.xlu0 %10189  ;;  %v10121_v17 = vunpack.i.h.bf16 %v14766_v44  ;;  %v14927_v27 = vpop.permute.xlu1 %10164 }
 0x1c2   :  { %v10120_v11 = vunpack.i.l.bf16 %v14766_v44  ;;  %v21186_v16 = vunpack.i.h.bf16 %v14921_v57  ;;  %v10191_v41 = vunpack.i.l.bf16 %v14921_v57  ;;  %v1336_v8 = vsel %vm1322_vm15, %v10111_v10, %v10115_v63 }
 0x1c3   :  { %v1337_v7 = vsel %vm1322_vm15, %v10115_v63, %v10116_v23  ;;  %v10126_v42 = vunpack.i.h.bf16 %v14665_v52  ;;  %v10125_v37 = vunpack.i.l.bf16 %v14665_v52  ;;  %v14938_v44 = vsel %vm2008_vm3, %v10141_v51, %v21187_v35 }
 0x1c4   :  { %v14943_v5 = vsel %vm2008_vm3, %v10191_v41, %v21186_v16  ;;  %v10493_v39 = vpack.i.bf16 %v1509_v18, %v1508_v13  ;;  %v1512_v48 = vsel %vm51_vm1, %v14831_v2, %v1332_v55  ;;  %v1513_v52 = vsel %vm51_vm1, %v14847_v15, %v1333_v21 }
 0x1c5   :  { %10484 = vrot.lane.b32.xlu1 %v10483_v9, %s12343_s5  ;;  %10479 = vrot.lane.b32.xlu0 %v10478_v56, %s12343_s5  ;;  %v14947_v59 = vpop.permute.xlu0 %10199  ;;  %v14953_v1 = vsel %vm51_vm1, %v14828_v31, %v1334_v6  ;;  %v14957_v12 = vsel %vm51_vm1, %v14819_v54, %v1335_v50  ;;  %v1339_v28 = vsel %vm1322_vm15, %v10120_v11, %v10121_v17  ;;  %v14963_v33 = vpop.permute.xlu1 %10174  ;;  %v10132_v61 = vunpack.i.h.bf16 %v14705_v53 }
 0x1c6   :  { %v1338_v2 = vsel %vm1322_vm15, %v10116_v23, %v10120_v11  ;;  %v14967_v15 = vsel %vm51_vm1, %v14858_v36, %v1336_v8  ;;  %v1517_v31 = vsel %vm51_vm1, %v14863_v45, %v1337_v7  ;;  %v1340_v10 = vsel %vm1322_vm15, %v10121_v17, %v10125_v37 }
 0x1c7   :  { %v1341_v54 = vsel %vm1322_vm15, %v10125_v37, %v10126_v42  ;;  %v10131_v32 = vunpack.i.l.bf16 %v14705_v53  ;;  %v10137_v62 = vunpack.i.h.bf16 %v14835_v26  ;;  %v10136_v36 = vunpack.i.l.bf16 %v14835_v26 }
 0x1c8   :  { %v10182_v9 = vunpack.i.h.bf16 %v14894_v49  ;;  %v10181_v45 = vunpack.i.l.bf16 %v14894_v49  ;;  %v1260_v56 = vsel %vm1242_vm14, %v10071_v19, %v10075_v4  ;;  %v1261_v53 = vsel %vm1242_vm14, %v10075_v4, %v10076_v14 }
 0x1c9   :  { %10494 = vrot.lane.b32.xlu1 %v10493_v39, %s12343_s5  ;;  %10489 = vrot.lane.b32.xlu0 %v10488_v24, %s12343_s5  ;;  %v14987_v23 = vpop.permute.xlu0 %10209  ;;  %v10503_v63 = vpack.i.bf16 %v1513_v52, %v1512_v48  ;;  %v10498_v24 = vpack.i.bf16 %v1511_v47, %v1510_v29  ;;  %v10185_v22 = vpop.permute.xlu1 %10184  ;;  %v10513_v13 = vpack.i.bf16 %v1517_v31, %v14967_v15  ;;  %v21182_v7 = vmov 0.0  }
 0x1ca   :  { %v10508_v26 = vpack.i.bf16 %v14957_v12, %v14953_v1  ;;  %v1518_v49 = vsel %vm51_vm1, %v14855_v58, %v1338_v2  ;;  %v1519_v40 = vsel %vm51_vm1, %v14852_v30, %v1339_v28  ;;  %v10187_v19 = vunpack.i.h.bf16 %v10185_v22  ;;  %2389 = vmatprep.mubr.f32.mxu0 %v21182_v7  ;;  %41 = vst [vmem:[#allocation2] sm:$0xff] %v21182_v7 }
 0x1cb   :  { %v10186_v3 = vunpack.i.l.bf16 %v10185_v22  ;;  %v1520_v14 = vsel %vm51_vm1, %v1260_v56, %v1340_v10  ;;  %v1521_v4 = vsel %vm51_vm1, %v1261_v53, %v1341_v54  ;;  %v2010_v18 = vsel %vm2008_vm3, %v10132_v61, %v10136_v36  ;;  %42 = vst [vmem:[#allocation2 + $0x8] sm:$0xff] %v21182_v7  ;;  %43 = vst [vmem:[#allocation2 + $0x10] sm:$0xff] %v21182_v7 }
 0x1cc   :  { %v2012_v29 = vsel %vm2008_vm3, %v10137_v62, %v10141_v51  ;;  %v2009_v47 = vsel %vm2008_vm3, %v10131_v32, %v10132_v61  ;;  %v2028_v58 = vsel %vm2008_vm3, %v10181_v45, %v10182_v9  ;;  %v2031_v6 = vsel %vm2008_vm3, %v10187_v19, %v10191_v41  ;;  %44 = vst [vmem:[#allocation2 + $0x18] sm:$0xff] %v21182_v7 }
 0x1cd   :  { %10504 = vrot.lane.b32.xlu1 %v10503_v63, %s12343_s5  ;;  %10499 = vrot.lane.b32.xlu0 %v10498_v24, %s12343_s5  ;;  %v15004_v50 = vpop.permute.xlu0 %10219  ;;  %v2029_v30 = vsel %vm2008_vm3, %v10182_v9, %v10186_v3  ;;  %v2030_v55 = vsel %vm2008_vm3, %v10186_v3, %v10187_v19  ;;  %v15009_v21 = vpop.permute.xlu1 %10194  ;;  %v8975_v11 = vpack.c.bf16 %v2031_v6, %v2012_v29  ;;  %vm52_vm11 = vcmask 146436  }
 0x1ce   :  { %v8959_v17 = vpack.c.bf16 %v2029_v30, %v2010_v18  ;;  %v2011_v8 = vsel %vm2008_vm3, %v10136_v36, %v10137_v62  ;;  %45 = vst [vmem:[#allocation2 + $0x20] sm:$0xff] %v21182_v7  ;;  %46 = vst [vmem:[#allocation2 + $0x28] sm:$0xff] %v21182_v7  ;;  %2460 = vmatprep.mubr.f32.mxu1 %v21182_v7  ;;  %v8961_v51 = vpack.c.bf16 %v2028_v58, %v2009_v47  ;;  %vm5616_vm13 = vcmask 588800  }
 0x1cf   :  { %47 = vst [vmem:[#allocation2 + $0x30] sm:$0xff] %v21182_v7  ;;  %48 = vst [vmem:[#allocation2 + $0x38] sm:$0xff] %v21182_v7  ;;  %v8977_v41 = vpack.c.bf16 %v2030_v55, %v2011_v8  ;;  %8976 = vmatprep.subr.bf16.mxu1 %v8975_v11  ;;  %v10523_v37 = vpack.i.bf16 %v1521_v4, %v1520_v14  ;;  %v10518_v39 = vpack.i.bf16 %v1519_v40, %v1518_v49  ;;  %vm6468_vm14 = vcmask 146432  }
 0x1d0   :  { %49 = vst [vmem:[#allocation2 + $0x40] sm:$0xff] %v21182_v7  ;;  %50 = vst [vmem:[#allocation2 + $0x48] sm:$0xff] %v21182_v7  ;;  %8960 = vmatprep.subr.bf16.mxu0 %v8959_v17 }
 0x1d1   :  { %55 = vst [vmem:[#allocation3] sm:$0xff] %v21182_v7  ;;  %56 = vst [vmem:[#allocation3 + $0x8] sm:$0xff] %v21182_v7  ;;  %10514 = vrot.lane.b32.xlu1 %v10513_v13, %s12343_s5  ;;  %10509 = vrot.lane.b32.xlu0 %v10508_v26, %s12343_s5  ;;  %v10230_v42 = vpop.permute.xlu0 %10229  ;;  %v15036_v48 = vpop.permute.xlu1 %10204 }
 0x1d2   :  { %57 = vst [vmem:[#allocation3 + $0x10] sm:$0xff] %v21182_v7  ;;  %58 = vst [vmem:[#allocation3 + $0x18] sm:$0xff] %v21182_v7  ;;  %8962 = vmatpush1.bf16.msra.mxu0 %v8961_v51  ;;  %8978 = vmatpush1.bf16.msra.mxu1 %v8977_v41  ;;  %v10232_v14 = vunpack.i.h.bf16 %v10230_v42  ;;  %v10231_v4 = vunpack.i.l.bf16 %v10230_v42 }
 0x1d3   :  { %59 = vst [vmem:[#allocation3 + $0x20] sm:$0xff] %v21182_v7  ;;  %60 = vst [vmem:[#allocation3 + $0x28] sm:$0xff] %v21182_v7 }
 0x1d4   :  { %61 = vst [vmem:[#allocation3 + $0x30] sm:$0xff] %v21182_v7  ;;  %62 = vst [vmem:[#allocation3 + $0x38] sm:$0xff] %v21182_v7 }
 0x1d5   :  { %63 = vst [vmem:[#allocation3 + $0x40] sm:$0xff] %v21182_v7  ;;  %64 = vst [vmem:[#allocation3 + $0x48] sm:$0xff] %v21182_v7  ;;  %10524 = vrot.lane.b32.xlu1 %v10523_v37, %s12343_s5  ;;  %10519 = vrot.lane.b32.xlu0 %v10518_v39, %s12343_s5  ;;  %v15040_v52 = vpop.permute.xlu0 %10239  ;;  %v15042_v1 = vpop.permute.xlu1 %10214  ;;  %v2047_v37 = vsel %vm2008_vm3, %v10231_v4, %v10232_v14 }
 0x1d6   :  { %v21184_v32 = vunpack.i.h.bf16 %v15040_v52  ;;  %v10241_v62 = vunpack.i.l.bf16 %v15040_v52  ;;  %vm15840_vm12 = vmor %vm52_vm11, %vm51_vm1 }
 0x1d8   :  { %v15067_v53 = vsel %vm2008_vm3, %v10241_v62, %v21184_v32 }
 0x1d9   :  { %v15044_v12 = vpop.permute.xlu0 %10249  ;;  %v15046_v28 = vpop.permute.xlu1 %10224 }
 0x1da   :  { %21935 = vst [vmem:[#allocation21_spill] sm:$0xff] %v15046_v28 }
 0x1dd   :  { %v15048_v2 = vpop.permute.xlu0 %10259  ;;  %v10235_v15 = vpop.permute.xlu1 %10234 }
 0x1de   :  { %v10236_v26 = vunpack.i.l.bf16 %v10235_v15  ;;  %v10237_v19 = vunpack.i.h.bf16 %v10235_v15 }
 0x1e0   :  { %v2048_v58 = vsel %vm2008_vm3, %v10232_v14, %v10236_v26  ;;  %v2050_v17 = vsel %vm2008_vm3, %v10237_v19, %v10241_v62  ;;  %v2049_v39 = vsel %vm2008_vm3, %v10236_v26, %v10237_v19 }
 0x1e1   :  { %v15050_v31 = vpop.permute.xlu0 %10269  ;;  %v15052_v10 = vpop.permute.xlu1 %10244 }
 0x1e2   :  { %21936 = vst [vmem:[#allocation11_spill] sm:$0xff] %v15050_v31  ;;  %v10166_v31 = vunpack.i.l.bf16 %v14927_v27 }
 0x1e5   :  { %v10280_v54 = vpop.permute.xlu0 %10279  ;;  %v15054_v61 = vpop.permute.xlu1 %10254 }
 0x1e6   :  { %v10282_v49 = vunpack.i.h.bf16 %v10280_v54  ;;  %v10281_v40 = vunpack.i.l.bf16 %v10280_v54 }
 0x1e8   :  { %v2066_v30 = vsel %vm2008_vm3, %v10281_v40, %v10282_v49 }
 0x1e9   :  { %v15058_v36 = vpop.permute.xlu0 %10289  ;;  %v15062_v56 = vpop.permute.xlu1 %10264  ;;  %v8965_v15 = vpack.c.bf16 %v2066_v30, %v2047_v37  ;;  %v3229_v30 = vld [vmem:[%s21017_s1] sm:$0xff] }
 0x1ea   :  { %v21185_v9 = vunpack.i.h.bf16 %v15058_v36  ;;  %v10291_v45 = vunpack.i.l.bf16 %v15058_v36  ;;  %21937 = vst [vmem:[#allocation22_spill] sm:$0xff] %v15062_v56 }
 0x1ec   :  { %v15072_v63 = vsel %vm2008_vm3, %v10291_v45, %v21185_v9 }
 0x1ed   :  { %v15074_v24 = vpop.permute.xlu0 %10299  ;;  %v15078_v13 = vpop.permute.xlu1 %10274 }
 0x1ee   :  { %21938 = vst [vmem:[#allocation20_spill] sm:$0xff] %v15078_v13 }
 0x1f1   :  { %v15080_v3 = vpop.permute.xlu0 %10309  ;;  %v10285_v18 = vpop.permute.xlu1 %10284 }
 0x1f2   :  { %v10287_v29 = vunpack.i.h.bf16 %v10285_v18  ;;  %v10286_v47 = vunpack.i.l.bf16 %v10285_v18 }
 0x1f4   :  { %v2067_v55 = vsel %vm2008_vm3, %v10282_v49, %v10286_v47  ;;  %v2069_v11 = vsel %vm2008_vm3, %v10287_v29, %v10291_v45  ;;  %v2068_v8 = vsel %vm2008_vm3, %v10286_v47, %v10287_v29 }
 0x1f5   :  { %v15084_v6 = vpop.permute.xlu0 %10319  ;;  %v15090_v51 = vpop.permute.xlu1 %10294  ;;  %v8963_v41 = vpack.c.bf16 %v2067_v55, %v2048_v58  ;;  %v8979_v42 = vpack.c.bf16 %v2069_v11, %v2050_v17  ;;  %v8981_v54 = vpack.c.bf16 %v2068_v8, %v2049_v39  ;;  %v3230_v58 = vld [vmem:[%s21017_s1 + $0x8] sm:$0xff]  ;;  %v15120_v11 = vcombine.low %v3229_v30, %v3229_v30 }
 0x1f6   :  { %21939 = vst [vmem:[#allocation4_spill] sm:$0xff] %v15084_v6  ;;  %v15118_v17 = vcombine.low %v3230_v58, %v3230_v58 }
 0x1f7   :  { %8964 = vmatprep.subr.bf16.mxu0 %v8963_v41  ;;  %8980 = vmatprep.subr.bf16.mxu1 %v8979_v42  ;;  %21945 = vst [vmem:[#allocation19_spill] sm:$0xff] %v15120_v11  ;;  %v10528_v41 = vpack.i.bf16 %v3229_v30, %v15120_v11 }
 0x1f8   :  { %8966 = vmatpush1.bf16.msra.mxu0 %v8965_v15  ;;  %8982 = vmatpush1.bf16.msra.mxu1 %v8981_v54  ;;  %21944 = vst [vmem:[#allocation7_spill] sm:$0xff] %v15118_v17  ;;  %v10533_v8 = vpack.i.bf16 %v3230_v58, %v15118_v17 }
 0x1f9   :  { %v10330_v40 = vpop.permute.xlu0 %10329  ;;  %v15094_v62 = vpop.permute.xlu1 %10304  ;;  %10529 = vrot.lane.b32.xlu0 %v10528_v41, %s12327_s29 }
 0x1fa   :  { %10534 = vrot.lane.b32.xlu1 %v10533_v8, %s12327_s29  ;;  %v10332_v58 = vunpack.i.h.bf16 %v10330_v40  ;;  %v10331_v30 = vunpack.i.l.bf16 %v10330_v40 }
 0x1fd   :  { %v15096_v45 = vpop.permute.xlu0 %10339  ;;  %v15098_v49 = vpop.permute.xlu1 %10314 }
 0x1fe   :  { %21940 = vst [vmem:[#allocation6_spill] sm:$0xff] %v15098_v49  ;;  %v21199_v16 = vunpack.i.l.bf16 %v15096_v45 }
 0x201   :  { %v15100_v18 = vpop.permute.xlu0 %10349  ;;  %v15102_v29 = vpop.permute.xlu1 %10324 }
 0x202   :  { %21941 = vst [vmem:[#allocation5_spill] sm:$0xff] %v15102_v29 }
 0x205   :  { %v15104_v14 = vpop.permute.xlu0 %10359  ;;  %v10335_v26 = vpop.permute.xlu1 %10334 }
 0x206   :  { %21942 = vst [vmem:[#allocation16_spill] sm:$0xff] %v15104_v14  ;;  %v10336_v54 = vunpack.i.l.bf16 %v10335_v26  ;;  %v10337_v60 = vunpack.i.h.bf16 %v10335_v26 }
 0x208   :  { %v2086_v41 = vsel %vm2008_vm3, %v10332_v58, %v10336_v54  ;;  %v2088_v26 = vsel %vm2008_vm3, %v10337_v60, %v21199_v16  ;;  %v2087_v28 = vsel %vm2008_vm3, %v10336_v54, %v10337_v60 }
 0x209   :  { %v15106_v19 = vpop.permute.xlu0 %10369  ;;  %v15108_v4 = vpop.permute.xlu1 %10344 }
 0x20a   :  { %21943 = vst [vmem:[#allocation17_spill] sm:$0xff] %v15106_v19 }
 0x20d   :  { %v10380_v47 = vpop.permute.xlu0 %10379  ;;  %v15116_v55 = vpop.permute.xlu1 %10354 }
 0x20e   :  { %v10382_v22 = vunpack.i.h.bf16 %v10380_v47  ;;  %v10381_v7 = vunpack.i.l.bf16 %v10380_v47 }
 0x210   :  { %v2104_v17 = vsel %vm2008_vm3, %v10381_v7, %v10382_v22  ;;  %v2085_v7 = vsel %vm2008_vm3, %v10331_v30, %v10332_v58  ;;  %v10147_v30 = vunpack.i.h.bf16 %v14868_v0 }
 0x211   :  { %v15126_v37 = vpop.permute.xlu1 %10364  ;;  %v8969_v19 = vpack.c.bf16 %v2104_v17, %v2085_v7  ;;  %v10162_v17 = vunpack.i.h.bf16 %v14825_v25  ;;  %v10201_v7 = vunpack.i.l.bf16 %v14947_v59 }
 0x212   :  { %v15124_v42 = vpop.permute.xlu0 %10389  ;;  %21946 = vst [vmem:[#allocation8_spill] sm:$0xff] %v15126_v37 }
 0x213   :  { %v21200_v35 = vunpack.i.l.bf16 %v15124_v42 }
 0x215   :  { %v15132_v15 = vpop.permute.xlu1 %10374 }
 0x216   :  { %v15130_v39 = vpop.permute.xlu0 %10399  ;;  %21947 = vst [vmem:[#allocation10_spill] sm:$0xff] %v15132_v15 }
 0x219   :  { %v10385_v9 = vpop.permute.xlu1 %10384 }
 0x21a   :  { %v15134_v32 = vpop.permute.xlu0 %10409  ;;  %v10387_v8 = vunpack.i.h.bf16 %v10385_v9  ;;  %v10386_v11 = vunpack.i.l.bf16 %v10385_v9 }
 0x21b   :  { %21948 = vst [vmem:[#allocation23_spill] sm:$0xff] %v15134_v32 }
 0x21c   :  { %v2105_v47 = vsel %vm2008_vm3, %v10382_v22, %v10386_v11  ;;  %v2107_v40 = vsel %vm2008_vm3, %v10387_v8, %v21200_v35  ;;  %v2106_v15 = vsel %vm2008_vm3, %v10386_v11, %v10387_v8 }
 0x21d   :  { %v15150_v13 = vpop.permute.xlu1 %10394  ;;  %v8967_v9 = vpack.c.bf16 %v2105_v47, %v2086_v41  ;;  %v8983_v29 = vpack.c.bf16 %v2107_v40, %v2088_v26  ;;  %v8985_v22 = vpack.c.bf16 %v2106_v15, %v2087_v28  ;;  %v10161_v15 = vunpack.i.l.bf16 %v14825_v25 }
 0x21e   :  { %v15140_v43 = vpop.permute.xlu0 %10419  ;;  %v10146_v47 = vunpack.i.l.bf16 %v14868_v0  ;;  %v10157_v25 = vunpack.i.h.bf16 %v14897_v46  ;;  %v10196_v0 = vunpack.i.l.bf16 %v15009_v21 }
 0x21f   :  { %21949 = vst [vmem:[#allocation24_spill] sm:$0xff] %v15140_v43  ;;  %8968 = vmatprep.subr.bf16.mxu0 %v8967_v9  ;;  %8984 = vmatprep.subr.bf16.mxu1 %v8983_v29  ;;  %v10152_v29 = vunpack.i.h.bf16 %v14797_v38  ;;  %v15186_v9 = vsel %vm2008_vm3, %v10161_v15, %v10162_v17 }
 0x220   :  { %8970 = vmatpush1.bf16.msra.mxu0 %v8969_v19  ;;  %8986 = vmatpush1.bf16.msra.mxu1 %v8985_v22  ;;  %v10151_v19 = vunpack.i.l.bf16 %v14797_v38  ;;  %21956 = vst [vmem:[#allocation29_spill] sm:$0xff] %v15186_v9  ;;  %v10202_v38 = vunpack.i.h.bf16 %v14947_v59  ;;  %v10156_v22 = vunpack.i.l.bf16 %v14897_v46  ;;  %v15199_v6 = vsel %vm2008_vm3, %v10146_v47, %v10147_v30 }
 0x221   :  { %v15156_v16 = vpop.permute.xlu1 %10404  ;;  %v10207_v59 = vunpack.i.h.bf16 %v15036_v48  ;;  %v10206_v9 = vunpack.i.l.bf16 %v15036_v48 }
 0x222   :  { %v15183_v40 = vsel %vm2008_vm3, %v10151_v19, %v10152_v29  ;;  %v15211_v37 = vsel %vm2008_vm3, %v10201_v7, %v10202_v38  ;;  %v15219_v48 = vsel %vm2008_vm3, %v10156_v22, %v10157_v25 }
 0x223   :  { %v15154_v43 = vpop.permute.xlu0 %10429  ;;  %21955 = vst [vmem:[#allocation26_spill] sm:$0xff] %v15183_v40  ;;  %21959 = vst [vmem:[#allocation43_spill] sm:$0xff] %v15211_v37 }
 0x225   :  { %v15160_v11 = vpop.permute.xlu1 %10414 }
 0x226   :  { %21950 = vst [vmem:[#allocation25_spill] sm:$0xff] %v15160_v11  ;;  %v10167_v11 = vunpack.i.h.bf16 %v14927_v27 }
 0x227   :  { %v15158_v35 = vpop.permute.xlu0 %10439 }
 0x228   :  { %v15233_v27 = vsel %vm2008_vm3, %v10166_v31, %v10167_v11 }
 0x229   :  { %v15164_v41 = vpop.permute.xlu1 %10424  ;;  %21961 = vst [vmem:[#allocation42_spill] sm:$0xff] %v15233_v27 }
 0x22a   :  { %21951 = vst [vmem:[#allocation27_spill] sm:$0xff] %v15164_v41  ;;  %v10197_v41 = vunpack.i.h.bf16 %v15009_v21  ;;  %v21958_v21 = vunpack.i.h.bf16 %v14755_v34 }
 0x22b   :  { %v15162_v8 = vpop.permute.xlu0 %10449 }
 0x22d   :  { %v15168_v60 = vpop.permute.xlu1 %10434 }
 0x22f   :  { %v15166_v58 = vpop.permute.xlu0 %10459 }
 0x230   :  { %21952 = vst [vmem:[#allocation38_spill] sm:$0xff] %v15166_v58  ;;  %v10211_v58 = vunpack.i.l.bf16 %v14987_v23 }
 0x231   :  { %v15170_v28 = vpop.permute.xlu1 %10444 }
 0x233   :  { %v15176_v54 = vpop.permute.xlu0 %10469 }
 0x234   :  { %21953 = vst [vmem:[#allocation39_spill] sm:$0xff] %v15176_v54  ;;  %v15208_v54 = vsel %vm2008_vm3, %v21958_v21, %v10146_v47  ;;  %v15227_v47 = vsel %vm2008_vm3, %v10197_v41, %v10201_v7  ;;  %v15230_v21 = vsel %vm2008_vm3, %v10152_v29, %v10156_v22  ;;  %v15247_v7 = vsel %vm2008_vm3, %v10202_v38, %v10206_v9 }
 0x235   :  { %v15180_v26 = vpop.permute.xlu1 %10454  ;;  %v15250_v29 = vsel %vm2008_vm3, %v10207_v59, %v10211_v58  ;;  %v10436_v22 = vunpack.i.l.bf16 %v15168_v60 }
 0x236   :  { %21954 = vst [vmem:[#allocation36_spill] sm:$0xff] %v15180_v26  ;;  %v15216_v26 = vsel %vm2008_vm3, %v10147_v30, %v10151_v19  ;;  %v15236_v19 = vsel %vm2008_vm3, %v10196_v0, %v10197_v41  ;;  %v15239_v30 = vsel %vm2008_vm3, %v10157_v25, %v10161_v15  ;;  %v21965_v41 = vunpack.i.l.bf16 %v14860_v20 }
 0x237   :  { %v10480_v46 = vpop.permute.xlu0 %10479  ;;  %21962 = vst [vmem:[#allocation35_spill] sm:$0xff] %v15239_v30  ;;  %v21967_v15 = vunpack.i.h.bf16 %v14987_v23  ;;  %v9007_v25 = vpack.c.bf16 %v15227_v47, %v15216_v26  ;;  %v10432_v47 = vunpack.i.h.bf16 %v15154_v43  ;;  %v10252_v30 = vunpack.i.h.bf16 %v15044_v12 }
 0x238   :  { %v10481_v20 = vunpack.i.l.bf16 %v10480_v46 }
 0x239   :  { %v15203_v49 = vpop.permute.xlu1 %10464  ;;  %v2124_v26 = vsel %vm2008_vm3, %v10432_v47, %v10436_v22 }
 0x23a   :  { %21957 = vst [vmem:[#allocation45_spill] sm:$0xff] %v15203_v49  ;;  %v21960_v49 = vunpack.i.h.bf16 %v14921_v57  ;;  %v15242_v57 = vsel %vm2008_vm3, %v10162_v17, %v10166_v31  ;;  %v15262_v31 = vsel %vm2008_vm3, %v10211_v58, %v21967_v15  ;;  %v15275_v58 = vsel %vm2008_vm3, %v10206_v9, %v10207_v59 }
 0x23b   :  { %21963 = vst [vmem:[#allocation28_spill] sm:$0xff] %v15242_v57  ;;  %21968 = vst [vmem:[#allocation31_spill] sm:$0xff] %v15262_v31  ;;  %v15270_v27 = vpop.permute.xlu0 %10489  ;;  %v10431_v15 = vunpack.i.l.bf16 %v15154_v43  ;;  %v21219_v9 = vunpack.i.l.bf16 %v15158_v35 }
 0x23c   :  { %v15224_v34 = vsel %vm2008_vm3, %v21960_v49, %v10196_v0  ;;  %v15257_v0 = vsel %vm2008_vm3, %v10167_v11, %v21965_v41  ;;  %v10437_v41 = vunpack.i.h.bf16 %v15168_v60  ;;  %v21221_v60 = vunpack.i.l.bf16 %v15270_v27 }
 0x23d   :  { %v15244_v49 = vpop.permute.xlu1 %10474  ;;  %21966 = vst [vmem:[#allocation34_spill] sm:$0xff] %v15257_v0  ;;  %v8991_v38 = vpack.c.bf16 %v15224_v34, %v15208_v54  ;;  %v10247_v34 = vunpack.i.h.bf16 %v15052_v10  ;;  %v10297_v54 = vunpack.i.h.bf16 %v15090_v51  ;;  %v10296_v0 = vunpack.i.l.bf16 %v15090_v51 }
 0x23e   :  { %21964 = vst [vmem:[#allocation30_spill] sm:$0xff] %v15244_v49  ;;  %v10482_v49 = vunpack.i.h.bf16 %v10480_v46  ;;  %v10246_v46 = vunpack.i.l.bf16 %v15052_v10  ;;  %v2126_v43 = vsel %vm2008_vm3, %v10437_v41, %v21219_v9  ;;  %v2123_v51 = vsel %vm2008_vm3, %v10431_v15, %v10432_v47 }
 0x23f   :  { %v2125_v37 = vsel %vm2008_vm3, %v10436_v22, %v10437_v41  ;;  %v10216_v9 = vunpack.i.l.bf16 %v15042_v1  ;;  %v10396_v22 = vunpack.i.l.bf16 %v15150_v13  ;;  %v10392_v15 = vunpack.i.h.bf16 %v15124_v42 }
 0x240   :  { %v2142_v31 = vsel %vm2008_vm3, %v10481_v20, %v10482_v49  ;;  %v10217_v20 = vunpack.i.h.bf16 %v15042_v1 }
 0x241   :  { %v10485_v17 = vpop.permute.xlu1 %10484  ;;  %v8973_v14 = vpack.c.bf16 %v2142_v31, %v2123_v51  ;;  %v21969_v31 = vunpack.i.h.bf16 %v15058_v36  ;;  %v2072_v36 = vsel %vm2008_vm3, %v10296_v0, %v10297_v54 }
 0x242   :  { %v10487_v59 = vunpack.i.h.bf16 %v10485_v17  ;;  %v10486_v11 = vunpack.i.l.bf16 %v10485_v17 }
 0x243   :  { %v2071_v41 = vsel %vm2008_vm3, %v21969_v31, %v10296_v0  ;;  %v10257_v31 = vunpack.i.h.bf16 %v15054_v61 }
 0x244   :  { %v2143_v10 = vsel %vm2008_vm3, %v10482_v49, %v10486_v11  ;;  %v2145_v57 = vsel %vm2008_vm3, %v10487_v59, %v21221_v60  ;;  %v2144_v17 = vsel %vm2008_vm3, %v10486_v11, %v10487_v59  ;;  %v10301_v49 = vunpack.i.l.bf16 %v15074_v24 }
 0x245   :  { %v8971_v56 = vpack.c.bf16 %v2143_v10, %v2124_v26  ;;  %v8987_v40 = vpack.c.bf16 %v2145_v57, %v2126_v43  ;;  %v8989_v32 = vpack.c.bf16 %v2144_v17, %v2125_v37  ;;  %v10251_v60 = vunpack.i.l.bf16 %v15044_v12  ;;  %v15314_v37 = vld [vmem:[%s21018_s2] sm:$0xf] }
 0x246   :  { %v9041_v57 = vpack.c.bf16 %v15275_v58, %v15219_v48  ;;  %v10397_v11 = vunpack.i.h.bf16 %v15150_v13  ;;  %v10347_v26 = vunpack.i.h.bf16 %v15108_v4  ;;  %v10346_v13 = vunpack.i.l.bf16 %v15108_v4 }
 0x247   :  { %8972 = vmatprep.subr.bf16.mxu0 %v8971_v56  ;;  %8988 = vmatprep.subr.bf16.mxu1 %v8987_v40  ;;  %v2073_v56 = vsel %vm2008_vm3, %v10297_v54, %v10301_v49  ;;  %v2053_v40 = vsel %vm2008_vm3, %v10246_v46, %v10247_v34  ;;  %v10401_v59 = vunpack.i.l.bf16 %v15130_v39  ;;  %v2054_v10 = vsel %vm2008_vm3, %v10247_v34, %v10251_v60 }
 0x248   :  { %8974 = vmatpush1.bf16.msra.mxu0 %v8973_v14  ;;  %8990 = vmatpush1.bf16.msra.mxu1 %v8989_v32  ;;  %v10495_v32 = vpop.permute.xlu1 %10494  ;;  %v21970_v14 = vunpack.i.h.bf16 %v15040_v52  ;;  %v10342_v43 = vunpack.i.h.bf16 %v15096_v45  ;;  %v10351_v4 = vunpack.i.l.bf16 %v15100_v18  ;;  %v9011_v0 = vpack.c.bf16 %v2073_v56, %v2054_v10 }
 0x249   :  { %8992 = vmatprep.subr.bf16.mxu0 %v8991_v38  ;;  %9008 = vmatprep.subr.bf16.mxu1 %v9007_v25  ;;  %v15336_v38 = vpop.permute.xlu0 %10499  ;;  %v10497_v25 = vunpack.i.h.bf16 %v10495_v32  ;;  %v10496_v54 = vunpack.i.l.bf16 %v10495_v32  ;;  %v21972_v34 = vpack.c.bf16 %v15236_v19, %v15199_v6  ;;  %v2109_v17 = vsel %vm2008_vm3, %v10392_v15, %v10396_v22 }
 0x24a   :  { %v2052_v47 = vsel %vm2008_vm3, %v21970_v14, %v10246_v46  ;;  %v21971_v46 = vpack.c.bf16 %v14943_v5, %v14938_v44  ;;  %v2111_v51 = vsel %vm2008_vm3, %v10397_v11, %v10401_v59  ;;  %v2090_v56 = vsel %vm2008_vm3, %v10342_v43, %v10346_v13 }
 0x24b   :  { %8909 = vmatmul.mubr.msk.f32.vlgmr.msra.gmra.mrb[0].mxu0 %vm2321_vm7, %v15314_v37  ;;  %8910 = vmatmul.mubr.msk.f32.vlgmr.msra.gmra.mrb[0].mxu1 %vm2321_vm7, %v15314_v37  ;;  %v8995_v52 = vpack.c.bf16 %v2071_v41, %v2052_v47  ;;  %v9013_v41 = vpack.c.bf16 %v2072_v36, %v2053_v40  ;;  %v2092_v44 = vsel %vm2008_vm3, %v10347_v26, %v10351_v4  ;;  %v10447_v5 = vunpack.i.h.bf16 %v15170_v28 }
 0x24c   :  { %8994 = vmatpush1.bf16.msra.mxu0 %v21971_v46  ;;  %9010 = vmatpush1.bf16.msra.mxu1 %v21972_v34  ;;  %v10446_v6 = vunpack.i.l.bf16 %v15170_v28  ;;  %v10492_v19 = vunpack.i.h.bf16 %v15270_v27  ;;  %v10501_v32 = vunpack.i.l.bf16 %v15336_v38  ;;  %v21973_v14 = vmov 0.0  }
 0x24d   :  { %8996 = vmatprep.subr.bf16.mxu0 %v8995_v52  ;;  %9012 = vmatprep.subr.bf16.mxu1 %v9011_v0  ;;  %v21974_v40 = vunpack.i.l.bf16 %v15124_v42  ;;  %v2110_v36 = vsel %vm2008_vm3, %v10396_v22, %v10397_v11  ;;  %v8999_v10 = vpack.c.bf16 %v2109_v17, %v2090_v56  ;;  %v9015_v52 = vpack.c.bf16 %v2111_v51, %v2092_v44  ;;  %v15459_v12 = vpop.permute.xlu0 %10509 }
 0x24e   :  { %2531 = vmatprep.mubr.f32.mxu0 %v21973_v14  ;;  %2602 = vmatprep.mubr.f32.mxu1 %v21973_v14  ;;  %v10442_v0 = vunpack.i.h.bf16 %v15158_v35  ;;  %v10451_v28 = vunpack.i.l.bf16 %v15162_v8  ;;  %v21975_v46 = vpack.c.bf16 %v15072_v63, %v15067_v53  ;;  %v2147_v34 = vsel %vm2008_vm3, %v10492_v19, %v10496_v54 }
 0x24f   :  { %v2108_v47 = vsel %vm2008_vm3, %v21974_v40, %v10392_v15  ;;  %v2149_v42 = vsel %vm2008_vm3, %v10497_v25, %v10501_v32  ;;  %v10256_v15 = vunpack.i.l.bf16 %v15054_v61  ;;  %v10302_v11 = vunpack.i.h.bf16 %v15074_v24 }
 0x250   :  { %8998 = vmatpush1.bf16.msra.mxu0 %v21975_v46  ;;  %9014 = vmatpush1.bf16.msra.mxu1 %v9013_v41  ;;  %v21976_v22 = vunpack.i.l.bf16 %v15096_v45  ;;  %v2091_v51 = vsel %vm2008_vm3, %v10346_v13, %v10347_v26  ;;  %v2128_v41 = vsel %vm2008_vm3, %v10442_v0, %v10446_v6  ;;  %v2130_v56 = vsel %vm2008_vm3, %v10447_v5, %v10451_v28 }
 0x251   :  { %9000 = vmatprep.subr.bf16.mxu0 %v8999_v10  ;;  %9016 = vmatprep.subr.bf16.mxu1 %v9015_v52  ;;  %v9017_v63 = vpack.c.bf16 %v2110_v36, %v2091_v51  ;;  %v21977_v44 = vunpack.i.l.bf16 %v15270_v27  ;;  %v2148_v45 = vsel %vm2008_vm3, %v10496_v54, %v10497_v25  ;;  %v9003_v46 = vpack.c.bf16 %v2147_v34, %v2128_v41 }
 0x252   :  { %v2089_v17 = vsel %vm2008_vm3, %v21976_v22, %v10342_v43  ;;  %v9019_v43 = vpack.c.bf16 %v2149_v42, %v2130_v56  ;;  %v15395_v26 = vsel %vm2008_vm3, %v10216_v9, %v10217_v20  ;;  %v10307_v13 = vunpack.i.h.bf16 %v15094_v62 }
 0x253   :  { %v9001_v53 = vpack.c.bf16 %v2108_v47, %v2089_v17  ;;  %v2146_v40 = vsel %vm2008_vm3, %v21977_v44, %v10492_v19  ;;  %v10306_v47 = vunpack.i.l.bf16 %v15094_v62  ;;  %v21978_v27 = vunpack.i.h.bf16 %v14987_v23  ;;  %v21985_v44 = vld [vmem:[#allocation16_spill] sm:$0xff] }
 0x254   :  { %9018 = vmatpush1.bf16.msra.mxu1 %v9017_v63  ;;  %v10176_v54 = vunpack.i.l.bf16 %v14963_v33  ;;  %v21979_v19 = vunpack.i.l.bf16 %v15158_v35  ;;  %v2129_v10 = vsel %vm2008_vm3, %v10446_v6, %v10447_v5  ;;  %v21980_v62 = vunpack.i.l.bf16 %v15004_v50 }
 0x255   :  { %9002 = vmatpush1.bf16.msra.mxu0 %v9001_v53  ;;  %v15404_v25 = vsel %vm2008_vm3, %v21978_v27, %v10216_v9  ;;  %9020 = vmatprep.subr.bf16.mxu1 %v9019_v43  ;;  %v2055_v23 = vsel %vm2008_vm3, %v10251_v60, %v10252_v30  ;;  %v10311_v35 = vunpack.i.l.bf16 %v15080_v3  ;;  %v10262_v5 = vunpack.i.h.bf16 %v15048_v2  ;;  %v10505_v53 = vpop.permute.xlu1 %10504  ;;  %v21989_v27 = vld [vmem:[#allocation22_spill] sm:$0xff] }
 0x256   :  { %v2127_v36 = vsel %vm2008_vm3, %v21979_v19, %v10442_v0  ;;  %9004 = vmatprep.subr.bf16.mxu0 %v9003_v46  ;;  %v15416_v52 = vsel %vm2008_vm3, %v10217_v20, %v21980_v62  ;;  %v9021_v0 = vpack.c.bf16 %v2148_v45, %v2129_v10  ;;  %v10261_v6 = vunpack.i.l.bf16 %v15048_v2  ;;  %v21986_v45 = vld [vmem:[#allocation43_spill] sm:$0xff]  ;;  %v21987_v46 = vld [vmem:[#allocation26_spill] sm:$0xff]  ;;  %v15559_v2 = vpop.permute.xlu0 %10519 }
 0x257   :  { %v9005_v9 = vpack.c.bf16 %v2146_v40, %v2127_v36  ;;  %v2057_v1 = vsel %vm2008_vm3, %v10256_v15, %v10257_v31  ;;  %v2074_v20 = vsel %vm2008_vm3, %v10301_v49, %v10302_v11  ;;  %v10407_v34 = vunpack.i.h.bf16 %v15156_v16  ;;  %v21982_v49 = vld [vmem:[#allocation35_spill] sm:$0xff] }
 0x258   :  { %v10406_v60 = vunpack.i.l.bf16 %v15156_v16  ;;  %9022 = vmatpush1.bf16.msra.mxu1 %v9021_v0  ;;  %v2075_v42 = vsel %vm2008_vm3, %v10302_v11, %v10306_v47  ;;  %v2077_v22 = vsel %vm2008_vm3, %v10307_v13, %v10311_v35  ;;  %v10357_v17 = vunpack.i.h.bf16 %v15116_v55 }
 0x259   :  { %9006 = vmatpush1.bf16.msra.mxu0 %v9005_v9  ;;  %v10356_v51 = vunpack.i.l.bf16 %v15116_v55  ;;  %v21981_v24 = vpack.c.bf16 %v15247_v7, %v15230_v21  ;;  %v21983_v16 = vpack.c.bf16 %v15250_v29, %v21982_v49  ;;  %v2056_v11 = vsel %vm2008_vm3, %v10252_v30, %v10256_v15  ;;  %v21984_v21 = vld [vmem:[#allocation23_spill] sm:$0xff] }
 0x25a   :  { %v2058_v63 = vsel %vm2008_vm3, %v10257_v31, %v10261_v6  ;;  %v2076_v55 = vsel %vm2008_vm3, %v10306_v47, %v10307_v13  ;;  %v10402_v41 = vunpack.i.h.bf16 %v15130_v39  ;;  %v10411_v7 = vunpack.i.l.bf16 %v21984_v21 }
 0x25b   :  { %9024 = vmatprep.subr.bf16.mxu0 %v21981_v24  ;;  %9040 = vmatprep.subr.bf16.mxu1 %v21983_v16  ;;  %v9029_v56 = vpack.c.bf16 %v2074_v20, %v2055_v23  ;;  %v10352_v29 = vunpack.i.h.bf16 %v15100_v18  ;;  %v10361_v40 = vunpack.i.l.bf16 %v21985_v44  ;;  %v9027_v61 = vpack.c.bf16 %v2075_v42, %v2056_v11  ;;  %v21990_v23 = vld [vmem:[#allocation36_spill] sm:$0xff] }
 0x25c   :  { %8911 = vmatmul.mubr.msk.f32.vlgmr.msra.gmra.mrb[2].mxu0 %vm2321_vm7, %v15314_v37  ;;  %8912 = vmatmul.mubr.msk.f32.vlgmr.msra.gmra.mrb[2].mxu1 %vm2321_vm7, %v15314_v37  ;;  %v9043_v30 = vpack.c.bf16 %v2077_v22, %v2058_v63  ;;  %v10507_v31 = vunpack.i.h.bf16 %v10505_v53  ;;  %v10506_v15 = vunpack.i.l.bf16 %v10505_v53  ;;  %v21988_v43 = vpack.c.bf16 %v21986_v45, %v21987_v46  ;;  %v21991_v53 = vld [vmem:[#allocation38_spill] sm:$0xff]  ;;  %v21994_v46 = vld [vmem:[#allocation29_spill] sm:$0xff] }
 0x25d   :  { %9042 = vmatpush1.bf16.msra.mxu1 %v9041_v57  ;;  %v2113_v13 = vsel %vm2008_vm3, %v10402_v41, %v10406_v60  ;;  %v2115_v47 = vsel %vm2008_vm3, %v10407_v34, %v10411_v7  ;;  %v10267_v19 = vunpack.i.h.bf16 %v21989_v27  ;;  %v9045_v36 = vpack.c.bf16 %v2076_v55, %v2057_v1  ;;  %2673 = vmatprep.mubr.f32.mxu0 %v21973_v14 }
 0x25e   :  { %9026 = vmatpush1.bf16.msra.mxu0 %v21988_v43  ;;  %9044 = vmatprep.subr.bf16.mxu1 %v9043_v30  ;;  %v2094_v10 = vsel %vm2008_vm3, %v10352_v29, %v10356_v51  ;;  %v2096_v62 = vsel %vm2008_vm3, %v10357_v17, %v10361_v40  ;;  %v10457_v48 = vunpack.i.h.bf16 %v21990_v23  ;;  %v10456_v58 = vunpack.i.l.bf16 %v21990_v23  ;;  %v21993_v30 = vld [vmem:[#allocation28_spill] sm:$0xff]  ;;  %v21995_v43 = vld [vmem:[#allocation31_spill] sm:$0xff]  ;;  %v21998_v23 = vld [vmem:[#allocation42_spill] sm:$0xff] }
 0x25f   :  { %9028 = vmatprep.subr.bf16.mxu0 %v9027_v61  ;;  %v10502_v57 = vunpack.i.h.bf16 %v15336_v38  ;;  %v10511_v9 = vunpack.i.l.bf16 %v15459_v12  ;;  %2744 = vmatprep.mubr.f32.mxu1 %v21973_v14  ;;  %v2112_v0 = vsel %vm2008_vm3, %v10401_v59, %v10402_v41  ;;  %v2114_v1 = vsel %vm2008_vm3, %v10406_v60, %v10407_v34 }
 0x260   :  { %v9031_v20 = vpack.c.bf16 %v2113_v13, %v2094_v10  ;;  %v9047_v42 = vpack.c.bf16 %v2115_v47, %v2096_v62  ;;  %v10452_v22 = vunpack.i.h.bf16 %v15162_v8  ;;  %v10461_v24 = vunpack.i.l.bf16 %v21991_v53 }
 0x261   :  { %9046 = vmatpush1.bf16.msra.mxu1 %v9045_v36  ;;  %v2151_v49 = vsel %vm2008_vm3, %v10502_v57, %v10506_v15  ;;  %v2153_v16 = vsel %vm2008_vm3, %v10507_v31, %v10511_v9  ;;  %v10266_v39 = vunpack.i.l.bf16 %v21989_v27  ;;  %v10312_v59 = vunpack.i.h.bf16 %v15080_v3  ;;  %v21997_v36 = vld [vmem:[#allocation4_spill] sm:$0xff] }
 0x262   :  { %9030 = vmatpush1.bf16.msra.mxu0 %v9029_v56  ;;  %v2093_v34 = vsel %vm2008_vm3, %v10351_v4, %v10352_v29  ;;  %v2095_v60 = vsel %vm2008_vm3, %v10356_v51, %v10357_v17  ;;  %9048 = vmatprep.subr.bf16.mxu1 %v9047_v42  ;;  %v2132_v55 = vsel %vm2008_vm3, %v10452_v22, %v10456_v58  ;;  %v21992_v29 = vld [vmem:[#allocation6_spill] sm:$0xff]  ;;  %v10222_v38 = vunpack.i.h.bf16 %v15004_v50  ;;  %v22001_v42 = vld [vmem:[#allocation8_spill] sm:$0xff] }
 0x263   :  { %9032 = vmatprep.subr.bf16.mxu0 %v9031_v20  ;;  %v9033_v11 = vpack.c.bf16 %v2112_v0, %v2093_v34  ;;  %v9049_v63 = vpack.c.bf16 %v2114_v1, %v2095_v60  ;;  %v2134_v41 = vsel %vm2008_vm3, %v10457_v48, %v10461_v24  ;;  %v2150_v56 = vsel %vm2008_vm3, %v10501_v32, %v10502_v57  ;;  %v22000_v0 = vld [vmem:[#allocation25_spill] sm:$0xff]  ;;  %v22002_v60 = vld [vmem:[#allocation24_spill] sm:$0xff] }
 0x264   :  { %v2152_v18 = vsel %vm2008_vm3, %v10506_v15, %v10507_v31  ;;  %v9035_v61 = vpack.c.bf16 %v2151_v49, %v2132_v55  ;;  %v9051_v4 = vpack.c.bf16 %v2153_v16, %v2134_v41  ;;  %v10317_v17 = vunpack.i.h.bf16 %v21992_v29  ;;  %v21996_v15 = vld [vmem:[#allocation34_spill] sm:$0xff]  ;;  %v10515_v16 = vpop.permute.xlu1 %10514  ;;  %v22003_v41 = vld [vmem:[#allocation17_spill] sm:$0xff] }
 0x265   :  { %v10316_v51 = vunpack.i.l.bf16 %v21992_v29  ;;  %9050 = vmatpush1.bf16.msra.mxu1 %v9049_v63  ;;  %v9055_v45 = vpack.c.bf16 %v15404_v25, %v21993_v30  ;;  %v9057_v13 = vpack.c.bf16 %v21995_v43, %v21994_v46  ;;  %v2131_v32 = vsel %vm2008_vm3, %v10451_v28, %v10452_v22  ;;  %v21999_v28 = vld [vmem:[#allocation11_spill] sm:$0xff] }
 0x266   :  { %9034 = vmatpush1.bf16.msra.mxu0 %v9033_v11  ;;  %v2133_v31 = vsel %vm2008_vm3, %v10456_v58, %v10457_v48  ;;  %9052 = vmatprep.subr.bf16.mxu1 %v9051_v4  ;;  %v9071_v47 = vpack.c.bf16 %v15416_v52, %v21996_v15  ;;  %v10321_v10 = vunpack.i.l.bf16 %v21997_v36  ;;  %v9037_v62 = vpack.c.bf16 %v2150_v56, %v2131_v32  ;;  %v22004_v4 = vld [vmem:[#allocation21_spill] sm:$0xff] }
 0x267   :  { %9036 = vmatprep.subr.bf16.mxu0 %v9035_v61  ;;  %v9053_v25 = vpack.c.bf16 %v2152_v18, %v2133_v31  ;;  %v9073_v57 = vpack.c.bf16 %v15395_v26, %v21998_v23  ;;  %v2059_v8 = vsel %vm2008_vm3, %v10261_v6, %v10262_v5  ;;  %v10271_v48 = vunpack.i.l.bf16 %v21999_v28  ;;  %v22006_v23 = vld [vmem:[#allocation39_spill] sm:$0xff] }
 0x268   :  { %v2061_v58 = vsel %vm2008_vm3, %v10266_v39, %v10267_v19  ;;  %v2078_v52 = vsel %vm2008_vm3, %v10311_v35, %v10312_v59  ;;  %v10417_v1 = vunpack.i.h.bf16 %v22000_v0  ;;  %v10416_v26 = vunpack.i.l.bf16 %v22000_v0 }
 0x269   :  { %9054 = vmatpush1.bf16.msra.mxu1 %v9053_v25  ;;  %v2079_v20 = vsel %vm2008_vm3, %v10312_v59, %v10316_v51  ;;  %v2081_v6 = vsel %vm2008_vm3, %v10317_v17, %v10321_v10  ;;  %v10367_v22 = vunpack.i.h.bf16 %v22001_v42  ;;  %v10366_v49 = vunpack.i.l.bf16 %v22001_v42 }
 0x26a   :  { %9038 = vmatpush1.bf16.msra.mxu0 %v9037_v62  ;;  %9072 = vmatprep.subr.bf16.mxu1 %v9071_v47  ;;  %v2060_v3 = vsel %vm2008_vm3, %v10262_v5, %v10266_v39  ;;  %v2062_v35 = vsel %vm2008_vm3, %v10267_v19, %v10271_v48  ;;  %v2080_v59 = vsel %vm2008_vm3, %v10316_v51, %v10317_v17  ;;  %v10412_v34 = vunpack.i.h.bf16 %v21984_v21 }
 0x26b   :  { %9056 = vmatprep.subr.bf16.mxu0 %v9055_v45  ;;  %v10421_v11 = vunpack.i.l.bf16 %v22002_v60  ;;  %v9061_v63 = vpack.c.bf16 %v2078_v52, %v2059_v8  ;;  %v10362_v55 = vunpack.i.h.bf16 %v21985_v44  ;;  %v10371_v56 = vunpack.i.l.bf16 %v22003_v41  ;;  %v22005_v45 = vld [vmem:[#allocation45_spill] sm:$0xff] }
 0x26c   :  { %8914 = vmatmul.mubr.msk.f32.vlgmr.msra.gmra.mrb[4].mxu1 %vm2321_vm7, %v15314_v37  ;;  %v9059_v5 = vpack.c.bf16 %v2079_v20, %v2060_v3  ;;  %v9075_v27 = vpack.c.bf16 %v2081_v6, %v2062_v35  ;;  %v10517_v19 = vunpack.i.h.bf16 %v10515_v16  ;;  %v10516_v39 = vunpack.i.l.bf16 %v10515_v16  ;;  %v22008_v16 = vld [vmem:[#allocation5_spill] sm:$0xff]  ;;  %v22009_v35 = vld [vmem:[#allocation15_spill] sm:$0xff] }
 0x26d   :  { %8913 = vmatmul.mubr.msk.f32.vlgmr.msra.gmra.mrb[4].mxu0 %vm2321_vm7, %v15314_v37  ;;  %9074 = vmatpush1.bf16.msra.mxu1 %v9073_v57  ;;  %v2117_v18 = vsel %vm2008_vm3, %v10412_v34, %v10416_v26  ;;  %v2119_v61 = vsel %vm2008_vm3, %v10417_v1, %v10421_v11  ;;  %v10226_v29 = vunpack.i.l.bf16 %v22004_v4  ;;  %v9077_v17 = vpack.c.bf16 %v2080_v59, %v2061_v58 }
 0x26e   :  { %9058 = vmatpush1.bf16.msra.mxu0 %v9057_v13  ;;  %9076 = vmatprep.subr.bf16.mxu1 %v9075_v27  ;;  %v2098_v51 = vsel %vm2008_vm3, %v10362_v55, %v10366_v49  ;;  %v2100_v30 = vsel %vm2008_vm3, %v10367_v22, %v10371_v56  ;;  %v10467_v46 = vunpack.i.h.bf16 %v22005_v45  ;;  %v10466_v43 = vunpack.i.l.bf16 %v22005_v45 }
 0x26f   :  { %9060 = vmatprep.subr.bf16.mxu0 %v9059_v5  ;;  %v10512_v13 = vunpack.i.h.bf16 %v15459_v12  ;;  %v10521_v32 = vunpack.i.l.bf16 %v15559_v2  ;;  %2815 = vmatprep.mubr.f32.mxu0 %v21973_v14  ;;  %v2116_v31 = vsel %vm2008_vm3, %v10411_v7, %v10412_v34  ;;  %v2118_v15 = vsel %vm2008_vm3, %v10416_v26, %v10417_v1 }
 0x270   :  { %2886 = vmatprep.mubr.f32.mxu1 %v21973_v14  ;;  %v9063_v47 = vpack.c.bf16 %v2117_v18, %v2098_v51  ;;  %v9079_v62 = vpack.c.bf16 %v2119_v61, %v2100_v30  ;;  %v10462_v25 = vunpack.i.h.bf16 %v21991_v53  ;;  %v10471_v57 = vunpack.i.l.bf16 %v22006_v23  ;;  %v22014_v30 = vld [vmem:[#allocation27_spill] sm:$0xff] }
 0x271   :  { %9078 = vmatpush1.bf16.msra.mxu1 %v9077_v17  ;;  %v2155_v8 = vsel %vm2008_vm3, %v10512_v13, %v10516_v39  ;;  %v2157_v14 = vsel %vm2008_vm3, %v10517_v19, %v10521_v32  ;;  %v10177_v21 = vunpack.i.h.bf16 %v14963_v33  ;;  %v10227_v7 = vunpack.i.h.bf16 %v22004_v4 }
 0x272   :  { %9062 = vmatpush1.bf16.msra.mxu0 %v9061_v63  ;;  %v2097_v58 = vsel %vm2008_vm3, %v10361_v40, %v10362_v55  ;;  %v2099_v52 = vsel %vm2008_vm3, %v10366_v49, %v10367_v22  ;;  %9080 = vmatprep.subr.bf16.mxu1 %v9079_v62  ;;  %v2136_v26 = vsel %vm2008_vm3, %v10462_v25, %v10466_v43  ;;  %v22007_v22 = vunpack.i.l.bf16 %v15004_v50  ;;  %v22011_v63 = vld [vmem:[#allocation20_spill] sm:$0xff] }
 0x273   :  { %9064 = vmatprep.subr.bf16.mxu0 %v9063_v47  ;;  %v9065_v0 = vpack.c.bf16 %v2116_v31, %v2097_v58  ;;  %v9081_v1 = vpack.c.bf16 %v2118_v15, %v2099_v52  ;;  %v2138_v20 = vsel %vm2008_vm3, %v10467_v46, %v10471_v57  ;;  %v2154_v6 = vsel %vm2008_vm3, %v10511_v9, %v10512_v13  ;;  %v22015_v47 = vld [vmem:[#allocation10_spill] sm:$0xff] }
 0x274   :  { %v2156_v44 = vsel %vm2008_vm3, %v10516_v39, %v10517_v19  ;;  %v9067_v42 = vpack.c.bf16 %v2155_v8, %v2136_v26  ;;  %v9083_v40 = vpack.c.bf16 %v2157_v14, %v2138_v20  ;;  %v2044_v49 = vsel %vm2008_vm3, %v22007_v22, %v10222_v38  ;;  %v22016_v26 = vld [vmem:[#allocation30_spill] sm:$0xff] }
 0x275   :  { %v10326_v3 = vunpack.i.l.bf16 %v22008_v16  ;;  %9082 = vmatpush1.bf16.msra.mxu1 %v9081_v1  ;;  %v22010_v12 = vunpack.i.h.bf16 %v22009_v35  ;;  %v2045_v59 = vsel %vm2008_vm3, %v10222_v38, %v10226_v29  ;;  %v2046_v34 = vsel %vm2008_vm3, %v10226_v29, %v10227_v7 }
 0x276   :  { %9066 = vmatpush1.bf16.msra.mxu0 %v9065_v0  ;;  %v10276_v55 = vunpack.i.l.bf16 %v22011_v63  ;;  %v2135_v5 = vsel %vm2008_vm3, %v10461_v24, %v10462_v25  ;;  %v2137_v27 = vsel %vm2008_vm3, %v10466_v43, %v10467_v46  ;;  %9084 = vmatprep.subr.bf16.mxu1 %v9083_v40  ;;  %v10322_v19 = vunpack.i.h.bf16 %v21997_v36  ;;  %v10525_v43 = vpop.permute.xlu1 %10524 }
 0x277   :  { %v2026_v9 = vsel %vm2008_vm3, %v22010_v12, %v10176_v54  ;;  %9068 = vmatprep.subr.bf16.mxu0 %v9067_v42  ;;  %v10327_v39 = vunpack.i.h.bf16 %v22008_v16  ;;  %v9069_v18 = vpack.c.bf16 %v2154_v6, %v2135_v5  ;;  %v9085_v50 = vpack.c.bf16 %v2156_v44, %v2137_v27  ;;  %v15663_v42 = vld [vmem:[#allocation2] sm:$0xff] }
 0x278   :  { %v22012_v38 = vmov %v22010_v12  ;;  %v22013_v61 = vunpack.i.l.bf16 %v22009_v35  ;;  %v10272_v53 = vunpack.i.h.bf16 %v21999_v28  ;;  %v9087_v29 = vpack.c.bf16 %v2045_v59, %v2026_v9  ;;  %54 = vst.msk [vmem:[#allocation2 + $0x50] sm:$0xff] %vm15840_vm12, %v15663_v42  ;;  %65 = vst.msk [vmem:[#allocation3 + $0x50] sm:$0xff] %vm15840_vm12, %v15663_v42 }
 0x279   :  { %v9103_v24 = vpack.c.bf16 %v10227_v7, %v10177_v21  ;;  %v2027_v17 = vsel %vm2008_vm3, %v10176_v54, %v10177_v21  ;;  %v10277_v51 = vunpack.i.h.bf16 %v22011_v63  ;;  %v10426_v45 = vunpack.i.l.bf16 %v22014_v30  ;;  %9086 = vmatpush1.bf16.msra.mxu1 %v9085_v50  ;;  %v15720_v50 = vld [vmem:[%s21017_s1 + $0x20] sm:$0xff] }
 0x27a   :  { %v2025_v4 = vsel %vm2008_vm3, %v22013_v61, %v22012_v38  ;;  %9070 = vmatpush1.bf16.msra.mxu0 %v9069_v18  ;;  %v2083_v46 = vsel %vm2008_vm3, %v10322_v19, %v10326_v3  ;;  %v9105_v31 = vpack.c.bf16 %v2046_v34, %v2027_v17  ;;  %v2064_v15 = vsel %vm2008_vm3, %v10272_v53, %v10276_v55  ;;  %v15725_v38 = vld [vmem:[%s21017_s1 + $0x38] sm:$0xff] }
 0x27b   :  { %9088 = vmatprep.subr.bf16.mxu0 %v9087_v29  ;;  %9104 = vmatprep.subr.bf16.mxu1 %v9103_v24  ;;  %v9089_v13 = vpack.c.bf16 %v2044_v49, %v2025_v4  ;;  %v2082_v33 = vsel %vm2008_vm3, %v10321_v10, %v10322_v19  ;;  %v2084_v54 = vsel %vm2008_vm3, %v10326_v3, %v10327_v39  ;;  %v10376_v62 = vunpack.i.l.bf16 %v22015_v47  ;;  %v15734_v4 = vld [vmem:[%s21017_s1 + $0x30] sm:$0xff] }
 0x27c   :  { %v10422_v25 = vunpack.i.h.bf16 %v22002_v60  ;;  %v2063_v8 = vsel %vm2008_vm3, %v10271_v48, %v10272_v53  ;;  %v10427_v14 = vunpack.i.h.bf16 %v22014_v30  ;;  %8916 = vmatmul.mubr.msk.f32.vlgmr.msra.gmra.mrb[6].mxu1 %vm2321_vm7, %v15314_v37  ;;  %v9091_v36 = vpack.c.bf16 %v2083_v46, %v2064_v15  ;;  %v15772_v46 = vld [vmem:[%s21017_s1 + $0x40] sm:$0xff] }
 0x27d   :  { %8915 = vmatmul.mubr.msk.f32.vlgmr.msra.gmra.mrb[6].mxu0 %vm2321_vm7, %v15314_v37  ;;  %v9107_v10 = vpack.c.bf16 %v10327_v39, %v10277_v51  ;;  %v2065_v21 = vsel %vm2008_vm3, %v10276_v55, %v10277_v51  ;;  %v10372_v7 = vunpack.i.h.bf16 %v22003_v41  ;;  %v10526_v58 = vunpack.i.l.bf16 %v10525_v43  ;;  %9106 = vmatpush1.bf16.msra.mxu1 %v9105_v31 }
 0x27e   :  { %9090 = vmatpush1.bf16.msra.mxu0 %v9089_v13  ;;  %v2121_v28 = vsel %vm2008_vm3, %v10422_v25, %v10426_v45  ;;  %v10377_v48 = vunpack.i.h.bf16 %v22015_v47  ;;  %v9093_v52 = vpack.c.bf16 %v2082_v33, %v2063_v8  ;;  %v9109_v0 = vpack.c.bf16 %v2084_v54, %v2065_v21  ;;  %2957 = vmatprep.mubr.f32.mxu0 %v15663_v42 }
 0x27f   :  { %9092 = vmatprep.subr.bf16.mxu0 %v9091_v36  ;;  %9108 = vmatprep.subr.bf16.mxu1 %v9107_v10  ;;  %v2120_v1 = vsel %vm2008_vm3, %v10421_v11, %v10422_v25  ;;  %v10476_v20 = vunpack.i.l.bf16 %v22016_v26  ;;  %v10522_v6 = vunpack.i.h.bf16 %v15559_v2  ;;  %v2102_v44 = vsel %vm2008_vm3, %v10372_v7, %v10376_v62  ;;  %v15693_v2 = vld [vmem:[%s21017_s1 + $0x18] sm:$0xff]  ;;  %v40_v25 = vld [vmem:[%s21019_s10 + $0x10] sm:$0xf] }
 0x280   :  { %3028 = vmatprep.mubr.f32.mxu1 %v15663_v42  ;;  %v2122_v40 = vsel %vm2008_vm3, %v10426_v45, %v10427_v14  ;;  %v10527_v22 = vunpack.i.h.bf16 %v10525_v43  ;;  %v9095_v49 = vpack.c.bf16 %v2121_v28, %v2102_v44  ;;  %v9111_v16 = vpack.c.bf16 %v10427_v14, %v10377_v48  ;;  %v15767_v45 = vld [vmem:[%s21017_s1 + $0x48] sm:$0xff] }
 0x281   :  { %v10472_v60 = vunpack.i.h.bf16 %v22006_v23  ;;  %9110 = vmatpush1.bf16.msra.mxu1 %v9109_v0  ;;  %v2159_v11 = vsel %vm2008_vm3, %v10522_v6, %v10526_v58  ;;  %v2101_v3 = vsel %vm2008_vm3, %v10371_v56, %v10372_v7  ;;  %v2103_v35 = vsel %vm2008_vm3, %v10376_v62, %v10377_v48  ;;  %v15703_v23 = vld [vmem:[%s21017_s1 + $0x28] sm:$0xff] }
 0x282   :  { %9094 = vmatpush1.bf16.msra.mxu0 %v9093_v52  ;;  %v10477_v12 = vunpack.i.h.bf16 %v22016_v26  ;;  %9112 = vmatprep.subr.bf16.mxu1 %v9111_v16  ;;  %v9097_v9 = vpack.c.bf16 %v2120_v1, %v2101_v3  ;;  %v9113_v59 = vpack.c.bf16 %v2122_v40, %v2103_v35  ;;  %v2158_v63 = vsel %vm2008_vm3, %v10521_v32, %v10522_v6  ;;  %v15698_v32 = vld [vmem:[%s21017_s1 + $0x10] sm:$0xff]  ;;  %v38_v52 = vld [vmem:[%s21019_s10] sm:$0xff] }
 0x283   :  { %9096 = vmatprep.subr.bf16.mxu0 %v9095_v49  ;;  %v2140_v34 = vsel %vm2008_vm3, %v10472_v60, %v10476_v20  ;;  %v2160_v55 = vsel %vm2008_vm3, %v10526_v58, %v10527_v22  ;;  %v2139_v56 = vsel %vm2008_vm3, %v10471_v57, %v10472_v60  ;;  %v15711_v57 = vcombine.low %v15698_v32, %v15698_v32  ;;  %v22028_v40 = vld [vmem:[#allocation14_spill] sm:$0xff] }
 0x284   :  { %v9099_v5 = vpack.c.bf16 %v2159_v11, %v2140_v34  ;;  %v9115_v41 = vpack.c.bf16 %v10527_v22, %v10477_v12  ;;  %v2141_v27 = vsel %vm2008_vm3, %v10476_v20, %v10477_v12  ;;  %v9101_v19 = vpack.c.bf16 %v2158_v63, %v2139_v56  ;;  %v15872_v3 = vld [vmem:[%s21017_s1 + $0x4] sm:$0xff] }
 0x285   :  { %9114 = vmatpush1.bf16.msra.mxu1 %v9113_v59  ;;  %v9117_v39 = vpack.c.bf16 %v2160_v55, %v2141_v27  ;;  %v15715_v18 = vcombine.low %v15703_v23, %v15703_v23  ;;  %v15729_v61 = vcombine.low %v15720_v50, %v15720_v50  ;;  %v15742_v29 = vpack.i.bf16 %v15698_v32, %v15711_v57 }
 0x286   :  { %9098 = vmatpush1.bf16.msra.mxu0 %v9097_v9  ;;  %9116 = vmatprep.subr.bf16.mxu1 %v9115_v41  ;;  %v15746_v24 = vcombine.low %v15725_v38, %v15725_v38  ;;  %v15762_v30 = vcombine.low %v15734_v4, %v15734_v4  ;;  %v15776_v43 = vcombine.low %v15767_v45, %v15767_v45  ;;  %v3038_v47 = vlaneseq }
 0x287   :  { %9100 = vmatprep.subr.bf16.mxu0 %v9099_v5  ;;  %10539 = vrot.lane.b32.xlu0 %v15742_v29, %s12327_s29  ;;  %v15754_v17 = vpack.i.bf16 %v15703_v23, %v15715_v18  ;;  %v15758_v51 = vpack.i.bf16 %v15720_v50, %v15729_v61  ;;  %v15792_v15 = vcombine.low %v15772_v46, %v15772_v46  ;;  %v22021_v48 = vmov 0 }
 0x288   :  { %v15784_v13 = vpack.i.bf16 %v15725_v38, %v15746_v24  ;;  %v15788_v31 = vpack.i.bf16 %v15734_v4, %v15762_v30  ;;  %v15800_v33 = vpack.i.bf16 %v15767_v45, %v15776_v43  ;;  %v15810_v62 = vshrl.u32 %v3038_v47, 7  ;;  %22029 = vst [vmem:[#allocation48_spill] sm:$0xff] %v15872_v3 }
 0x289   :  { %9118 = vmatpush1.bf16.msra.mxu1 %v9117_v39  ;;  %v15804_v54 = vpack.i.bf16 %v15772_v46, %v15792_v15  ;;  %v22022_v48 = vsel %vm15840_vm12, 4294967295, %v22021_v48  ;;  %v15882_v34 = vcombine.low %v15872_v3, %v15872_v3 }
 0x28a   :  { %9102 = vmatpush1.bf16.msra.mxu0 %v9101_v19  ;;  %v15816_v8 = vsub.s32 0, %v15810_v62  ;;  %v15819_v14 = vsub.s32 2, %v15810_v62  ;;  %v15822_v36 = vsub.s32 1, %v15810_v62  ;;  %v15834_v58 = vsub.s32 3, %v15810_v62  ;;  %22023 = vst [vmem:[#allocation44_spill] sm:$0xff] %v22022_v48 }
 0x28b   :  { %10549 = vrot.lane.b32.xlu0 %v15758_v51, %s12327_s29  ;;  %22030 = vst [vmem:[#allocation62_spill] sm:$0xff] %v15882_v34  ;;  %v21223_v41 = vsub.s32 4, %v15810_v62  ;;  %v21222_v56 = vsub.s32 6, %v15810_v62  ;;  %v21226_v27 = vsub.s32 5, %v15810_v62  ;;  %v21229_v19 = vsub.s32 7, %v15810_v62 }
 0x28c   :  { %8918 = vmatmul.mubr.msk.f32.vlgmr.msra.gmra.mrb[8].mxu1 %vm2321_vm7, %v15314_v37  ;;  %v15825_v10 = vrot.slane %v40_v25, %v15816_v8  ;;  %v15828_v21 = vrot.slane %v40_v25, %v15819_v14  ;;  %v15831_v7 = vrot.slane %v40_v25, %v15822_v36  ;;  %v15837_v28 = vrot.slane %v40_v25, %v15834_v58 }
 0x28d   :  { %8917 = vmatmul.mubr.msk.f32.vlgmr.msra.gmra.mrb[8].mxu0 %vm2321_vm7, %v15314_v37  ;;  %5755 = vmatprep.mubr.f32.mxu1 %v15663_v42  ;;  %v15707_v37 = vcombine.low %v15693_v2, %v15693_v2  ;;  %v15854_v0 = vrot.slane %v38_v52, %v15816_v8  ;;  %v15857_v1 = vrot.slane %v38_v52, %v15819_v14 }
 0x28e   :  { %5684 = vmatprep.mubr.f32.mxu0 %v15663_v42  ;;  %22017 = vst [vmem:[#allocation32_spill] sm:$0xff] %v15825_v10  ;;  %22018 = vst [vmem:[#allocation37_spill] sm:$0xff] %v15828_v21  ;;  %v15860_v6 = vrot.slane %v38_v52, %v15822_v36  ;;  %v15863_v44 = vrot.slane %v38_v52, %v15834_v58  ;;  %v15902_v39 = vrot.slane %v38_v52, %v21223_v41 }
 0x28f   :  { %v15738_v53 = vpack.i.bf16 %v15693_v2, %v15707_v37  ;;  %10559 = vrot.lane.b32.xlu0 %v15788_v31, %s12327_s29  ;;  %22019 = vst [vmem:[#allocation33_spill] sm:$0xff] %v15831_v7  ;;  %22020 = vst [vmem:[#allocation41_spill] sm:$0xff] %v15837_v28  ;;  %v15906_v47 = vrot.slane %v38_v52, %v21222_v56 }
 0x290   :  { %22024 = vst [vmem:[#allocation40_spill] sm:$0xff] %v15854_v0  ;;  %22025 = vst [vmem:[#allocation63_spill] sm:$0xff] %v15857_v1 }
 0x291   :  { %10544 = vrot.lane.b32.xlu1 %v15738_v53, %s12327_s29  ;;  %22026 = vst [vmem:[#allocation47_spill] sm:$0xff] %v15860_v6  ;;  %22027 = vst [vmem:[#allocation46_spill] sm:$0xff] %v15863_v44 }
 0x292   :  { %22033 = vst [vmem:[#allocation64_spill] sm:$0xff] %v15902_v39  ;;  %22034 = vst [vmem:[#allocation51_spill] sm:$0xff] %v15906_v47 }
 0x293   :  { %10569 = vrot.lane.b32.xlu0 %v15804_v54, %s12327_s29 }
 0x295   :  { %10554 = vrot.lane.b32.xlu1 %v15754_v17, %s12327_s29 }
 0x299   :  { %10564 = vrot.lane.b32.xlu1 %v15784_v13, %s12327_s29 }
 0x29d   :  { %10574 = vrot.lane.b32.xlu1 %v15800_v33, %s12327_s29 }
 0x31e   :  { %v2391_v26 = vpop.f32.mrb[0].mxu0  ;;  %v2462_v20 = vpop.f32.mrb[0].mxu1 }
 0x31f   :  { %v2392_v42 = vadd.f32 %v2391_v26, %v22028_v40  ;;  %v2463_v22 = vadd.f32 %v2462_v20, %v22028_v40  ;;  %v2393_v49 = vpop.f32.mrb[1].mxu0  ;;  %v2464_v16 = vpop.f32.mrb[1].mxu1 }
 0x320   :  { %v2394_v60 = vadd.f32 %v2393_v49, %v22028_v40  ;;  %v2465_v11 = vadd.f32 %v2464_v16, %v22028_v40  ;;  %v15916_v49 = vrot.slane %v38_v52, %v21229_v19 }
 0x321   :  { %v3138_v35 = vmul.f32 %v15854_v0, %v2392_v42  ;;  %v3140_v12 = vmul.f32 %v15857_v1, %v2463_v22  ;;  %v15912_v22 = vrot.slane %v38_v52, %v21226_v27 }
 0x322   :  { %v15877_v9 = vmul.f32 %v15860_v6, %v2394_v60  ;;  %v3141_v59 = vmul.f32 %v15863_v44, %v2465_v11  ;;  %22037 = vst [vmem:[#allocation68_spill] sm:$0xff] %v15916_v49 }
 0x323   :  { %22036 = vst [vmem:[#allocation65_spill] sm:$0xff] %v15912_v22 }
 0x324   :  { %v15885_v63 = vcombine.low %v3138_v35, %v15877_v9  ;;  %v15887_v55 = vcombine.low %v3140_v12, %v3141_v59 }
 0x326   :  { %22031 = vst [vmem:[#allocation54_spill] sm:$0xff] %v15887_v55  ;;  %3198 = vst [vmem:[#allocation2 + $0x4] sm:$0xff] %v15885_v63  ;;  %v15894_v5 = vsel %vm51_vm1, %v15885_v63, %v15882_v34 }
 0x327   :  { %3199 = vst [vmem:[#allocation2 + $0xc] sm:$0xff] %v15887_v55  ;;  %22032 = vst [vmem:[#allocation49_spill] sm:$0xff] %v15894_v5 }
 0x32d   :  { %v15908_v26 = vld [vmem:[#allocation2] sm:$0xff] }
 0x32e   :  { %v3209_v25 = vld [vmem:[#allocation2 + $0x8] sm:$0xff]  ;;  %22035 = vst [vmem:[#allocation50_spill] sm:$0xff] %v15908_v26  ;;  %v3261_v60 = vcombine.high %v15908_v26, %v15908_v26 }
 0x32f   :  { %v2533_v20 = vpop.f32.mrb[2].mxu0  ;;  %v2604_v42 = vpop.f32.mrb[2].mxu1  ;;  %v3262_v16 = vcombine.high %v3209_v25, %v3209_v25 }
 0x330   :  { %v2534_v11 = vadd.f32 %v2533_v20, %v22028_v40  ;;  %v2605_v35 = vadd.f32 %v2604_v42, %v22028_v40  ;;  %v2535_v12 = vpop.f32.mrb[3].mxu0  ;;  %v2606_v56 = vpop.f32.mrb[3].mxu1  ;;  %v15927_v1 = vpack.i.bf16 %v3261_v60, %v15908_v26  ;;  %v15942_v42 = vld [vmem:[%s21017_s1] sm:$0xff] }
 0x331   :  { %v2536_v41 = vadd.f32 %v2535_v12, %v22028_v40  ;;  %v2607_v44 = vadd.f32 %v2606_v56, %v22028_v40  ;;  %v15924_v27 = vpack.i.bf16 %v3262_v16, %v3209_v25  ;;  %v15937_v56 = vcombine.low %v3141_v59, %v3141_v59 }
 0x332   :  { %v3142_v52 = vmul.f32 %v15902_v39, %v2534_v11  ;;  %v3144_v19 = vmul.f32 %v15906_v47, %v2605_v35  ;;  %10579 = vrot.lane.b32.xlu0 %v15927_v1, %s12327_s29  ;;  %v15946_v11 = vsel %vm51_vm1, %v3261_v60, %v15942_v42 }
 0x333   :  { %v3143_v6 = vmul.f32 %v15912_v22, %v2536_v41  ;;  %v3145_v20 = vmul.f32 %v15916_v49, %v2607_v44  ;;  %10584 = vrot.lane.b32.xlu1 %v15924_v27, %s12327_s29  ;;  %22038 = vst [vmem:[#allocation70_spill] sm:$0xff] %v15937_v56  ;;  %22039 = vst [vmem:[#allocation69_spill] sm:$0xff] %v15946_v11  ;;  %v22040_v41 = vld [vmem:[#allocation7_spill] sm:$0xff] }
 0x334   :  { %v15950_v44 = vsel %vm51_vm1, %v3209_v25, %v22040_v41  ;;  %v15961_v49 = vld [vmem:[%s21017_s1 + $0x8] sm:$0xff] }
 0x335   :  { %22041 = vst [vmem:[#allocation52_spill] sm:$0xff] %v15950_v44  ;;  %v15952_v35 = vcombine.low %v3142_v52, %v3143_v6  ;;  %v15954_v12 = vcombine.low %v3144_v19, %v3145_v20  ;;  %v10603_v60 = vpack.i.bf16 %v15961_v49, %v22040_v41  ;;  %v22044_v19 = vld [vmem:[#allocation19_spill] sm:$0xff]  ;;  %v15973_v52 = vcombine.low %v3143_v6, %v3143_v6 }
 0x336   :  { %10589 = vrot.lane.b32.xlu0 %v15927_v1, %s12328_s19  ;;  %v10598_v25 = vpack.i.bf16 %v15942_v42, %v22044_v19  ;;  %v39_v22 = vld [vmem:[%s21019_s10 + $0x8] sm:$0xff] }
 0x337   :  { %22042 = vst [vmem:[#allocation53_spill] sm:$0xff] %v15952_v35  ;;  %22043 = vst [vmem:[#allocation57_spill] sm:$0xff] %v15954_v12  ;;  %10594 = vrot.lane.b32.xlu1 %v15924_v27, %s12328_s19  ;;  %v15977_v59 = vpack.i.bf16 %v15952_v35, %v15937_v56  ;;  %v15981_v47 = vpack.i.bf16 %v15954_v12, %v15973_v52  ;;  %v15989_v39 = vrot.slane %v39_v22, %v15816_v8 }
 0x338   :  { %3200 = vst [vmem:[#allocation2 + $0x14] sm:$0xff] %v15952_v35  ;;  %3201 = vst [vmem:[#allocation2 + $0x1c] sm:$0xff] %v15954_v12  ;;  %v15992_v6 = vrot.slane %v39_v22, %v15819_v14 }
 0x339   :  { %22045 = vst [vmem:[#allocation56_spill] sm:$0xff] %v15973_v52  ;;  %22046 = vst [vmem:[#allocation74_spill] sm:$0xff] %v15977_v59 }
 0x33a   :  { %22047 = vst [vmem:[#allocation71_spill] sm:$0xff] %v15981_v47  ;;  %10599 = vrot.lane.b32.xlu0 %v10598_v25, %s12328_s19  ;;  %22048 = vst [vmem:[#allocation13_spill] sm:$0xff] %v15989_v39  ;;  %v15995_v47 = vrot.slane %v39_v22, %v15822_v36 }
 0x33b   :  { %10604 = vrot.lane.b32.xlu1 %v10603_v60, %s12328_s19  ;;  %22049 = vst [vmem:[#allocation75_spill] sm:$0xff] %v15992_v6  ;;  %v15998_v60 = vrot.slane %v39_v22, %v15834_v58 }
 0x33c   :  { %22050 = vst [vmem:[#allocation59_spill] sm:$0xff] %v15995_v47 }
 0x33d   :  { %22051 = vst [vmem:[#allocation55_spill] sm:$0xff] %v15998_v60 }
 0x33f   :  { %v3211_v0 = vld [vmem:[#allocation2 + $0x18] sm:$0xff]  ;;  %v3210_v26 = vld [vmem:[#allocation2 + $0x10] sm:$0xff]  ;;  %v2746_v44 = vpop.f32.mrb[4].mxu1 }
 0x340   :  { %v2675_v11 = vpop.f32.mrb[4].mxu0  ;;  %v3264_v25 = vcombine.high %v3211_v0, %v3211_v0  ;;  %v3263_v5 = vcombine.high %v3210_v26, %v3210_v26  ;;  %v2747_v8 = vadd.f32 %v2746_v44, %v22028_v40  ;;  %v2748_v34 = vpop.f32.mrb[5].mxu1  ;;  %v16004_v14 = vsel %vm51_vm1, %v3210_v26, %v15711_v57 }
 0x341   :  { %v2676_v59 = vadd.f32 %v2675_v11, %v22028_v40  ;;  %v2677_v3 = vpop.f32.mrb[5].mxu0  ;;  %22052 = vst [vmem:[#allocation12_spill] sm:$0xff] %v16004_v14  ;;  %v2749_v36 = vadd.f32 %v2748_v34, %v22028_v40  ;;  %v16016_v44 = vsel %vm51_vm1, %v3262_v16, %v15961_v49  ;;  %v16034_v16 = vsel %vm51_vm1, %v3211_v0, %v15707_v37 }
 0x342   :  { %v2678_v12 = vadd.f32 %v2677_v3, %v22028_v40  ;;  %v16008_v56 = vpack.i.bf16 %v3264_v25, %v3211_v0  ;;  %v16010_v58 = vpack.i.bf16 %v3263_v5, %v3210_v26  ;;  %v3148_v11 = vmul.f32 %v15992_v6, %v2747_v8  ;;  %22053 = vst [vmem:[#allocation60_spill] sm:$0xff] %v16016_v44 }
 0x343   :  { %v3146_v55 = vmul.f32 %v15989_v39, %v2676_v59  ;;  %v3149_v35 = vmul.f32 %v15998_v60, %v2749_v36  ;;  %v16024_v3 = vcombine.low %v3145_v20, %v3145_v20  ;;  %v16030_v26 = vsel %vm51_vm1, %v3263_v5, %v15698_v32  ;;  %22055 = vst [vmem:[#allocation67_spill] sm:$0xff] %v16034_v16 }
 0x344   :  { %v3147_v52 = vmul.f32 %v15995_v47, %v2678_v12  ;;  %10614 = vrot.lane.b32.xlu1 %v16008_v56, %s12327_s29  ;;  %10609 = vrot.lane.b32.xlu0 %v16010_v58, %s12327_s29  ;;  %22054 = vst [vmem:[#allocation58_spill] sm:$0xff] %v16030_v26  ;;  %v22058_v20 = vsub.s32 4, %v15810_v62  ;;  %v22062_v8 = vsub.s32 5, %v15810_v62  ;;  %v22064_v60 = vsub.s32 7, %v15810_v62 }
 0x345   :  { %v16038_v59 = vcombine.low %v3148_v11, %v3149_v35 }
 0x346   :  { %v16036_v12 = vcombine.low %v3146_v55, %v3147_v52  ;;  %v16048_v5 = vcombine.low %v3147_v52, %v3147_v52  ;;  %v16064_v36 = vrot.slane %v39_v22, %v22058_v20  ;;  %v22060_v52 = vsub.s32 6, %v15810_v62 }
 0x347   :  { %3203 = vst [vmem:[#allocation2 + $0x2c] sm:$0xff] %v16038_v59  ;;  %v16072_v34 = vrot.slane %v39_v22, %v22062_v8  ;;  %v16076_v6 = vrot.slane %v39_v22, %v22064_v60 }
 0x348   :  { %3202 = vst [vmem:[#allocation2 + $0x24] sm:$0xff] %v16036_v12  ;;  %10629 = vrot.lane.b32.xlu1 %v16008_v56, %s12328_s19  ;;  %10619 = vrot.lane.b32.xlu0 %v16010_v58, %s12328_s19  ;;  %v16052_v0 = vpack.i.bf16 %v16036_v12, %v16024_v3  ;;  %v16056_v55 = vpack.i.bf16 %v16038_v59, %v16048_v5  ;;  %22059 = vst [vmem:[#allocation66_spill] sm:$0xff] %v16064_v36 }
 0x349   :  { %v16068_v11 = vrot.slane %v39_v22, %v22060_v52  ;;  %22063 = vst [vmem:[#allocation72_spill] sm:$0xff] %v16072_v34  ;;  %22065 = vst [vmem:[#allocation9_spill] sm:$0xff] %v16076_v6 }
 0x34a   :  { %22056 = vst [vmem:[#allocation61_spill] sm:$0xff] %v16052_v0  ;;  %22057 = vst [vmem:[#allocation73_spill] sm:$0xff] %v16056_v55 }
 0x34b   :  { %22061 = vst [vmem:[#allocation18_spill] sm:$0xff] %v16068_v11 }
 0x34c   :  { %10634 = vrot.lane.b32.xlu1 %v15738_v53, %s12328_s19  ;;  %10624 = vrot.lane.b32.xlu0 %v15742_v29, %s12328_s19  ;;  %v16080_v29 = vsel %vm51_vm1, %v3264_v25, %v15693_v2 }
 0x34d   :  { %22066 = vst [vmem:[#allocation77_spill] sm:$0xff] %v16080_v29 }
 0x34f   :  { %v3213_v53 = vld [vmem:[#allocation2 + $0x28] sm:$0xff]  ;;  %v3212_v47 = vld [vmem:[#allocation2 + $0x20] sm:$0xff]  ;;  %v2888_v39 = vpop.f32.mrb[6].mxu1 }
 0x350   :  { %v2817_v20 = vpop.f32.mrb[6].mxu0  ;;  %10644 = vrot.lane.b32.xlu1 %v15754_v17, %s12328_s19  ;;  %10639 = vrot.lane.b32.xlu0 %v15758_v51, %s12328_s19  ;;  %v3266_v8 = vcombine.high %v3213_v53, %v3213_v53  ;;  %v3265_v52 = vcombine.high %v3212_v47, %v3212_v47  ;;  %v16088_v62 = vsel %vm51_vm1, %v3212_v47, %v15729_v61  ;;  %v2890_v26 = vpop.f32.mrb[7].mxu1 }
 0x351   :  { %22067 = vst [vmem:[#allocation76_spill] sm:$0xff] %v16088_v62  ;;  %v2818_v22 = vadd.f32 %v2817_v20, %v22028_v40  ;;  %v2889_v60 = vadd.f32 %v2888_v39, %v22028_v40  ;;  %v2819_v25 = vpop.f32.mrb[7].mxu0  ;;  %v2891_v44 = vadd.f32 %v2890_v26, %v22028_v40  ;;  %v16116_v26 = vsel %vm51_vm1, %v3213_v53, %v15715_v18 }
 0x352   :  { %v2820_v17 = vadd.f32 %v2819_v25, %v22028_v40  ;;  %v16096_v51 = vpack.i.bf16 %v3266_v8, %v3213_v53  ;;  %v16098_v14 = vpack.i.bf16 %v3265_v52, %v3212_v47  ;;  %v16108_v25 = vcombine.low %v3149_v35, %v3149_v35  ;;  %22069 = vst [vmem:[#allocation23_spill] sm:$0xff] %v16116_v26 }
 0x353   :  { %v3150_v55 = vmul.f32 %v16064_v36, %v2818_v22  ;;  %v3152_v0 = vmul.f32 %v16068_v11, %v2889_v60  ;;  %v3153_v39 = vmul.f32 %v16076_v6, %v2891_v44  ;;  %v16112_v47 = vsel %vm51_vm1, %v3265_v52, %v15720_v50 }
 0x354   :  { %v3151_v20 = vmul.f32 %v16072_v34, %v2820_v17  ;;  %10654 = vrot.lane.b32.xlu1 %v16096_v51, %s12327_s29  ;;  %10649 = vrot.lane.b32.xlu0 %v16098_v14, %s12327_s29  ;;  %22068 = vst [vmem:[#allocation35_spill] sm:$0xff] %v16112_v47  ;;  %v16164_v62 = vsel %vm51_vm1, %v3266_v8, %v15703_v23 }
 0x355   :  { %v16120_v60 = vcombine.low %v3152_v0, %v3153_v39  ;;  %22073 = vst [vmem:[#allocation22_spill] sm:$0xff] %v16164_v62  ;;  %v16430_v62 = vld [vmem:[%s21017_s1 + $0x2c] sm:$0xff] }
 0x356   :  { %v16118_v22 = vcombine.low %v3150_v55, %v3151_v20  ;;  %v16130_v35 = vcombine.low %v3151_v20, %v3151_v20 }
 0x357   :  { %3205 = vst [vmem:[#allocation2 + $0x3c] sm:$0xff] %v16120_v60 }
 0x358   :  { %3204 = vst [vmem:[#allocation2 + $0x34] sm:$0xff] %v16118_v22  ;;  %10669 = vrot.lane.b32.xlu1 %v16096_v51, %s12328_s19  ;;  %10659 = vrot.lane.b32.xlu0 %v16098_v14, %s12328_s19  ;;  %22070 = vst [vmem:[#allocation16_spill] sm:$0xff] %v16130_v35  ;;  %v16134_v55 = vpack.i.bf16 %v16118_v22, %v16108_v25  ;;  %v16138_v0 = vpack.i.bf16 %v16120_v60, %v16130_v35 }
 0x35a   :  { %22071 = vst [vmem:[#allocation43_spill] sm:$0xff] %v16138_v0 }
 0x35c   :  { %10674 = vrot.lane.b32.xlu1 %v15784_v13, %s12328_s19  ;;  %10664 = vrot.lane.b32.xlu0 %v15788_v31, %s12328_s19 }
 0x35f   :  { %v3215_v53 = vld [vmem:[#allocation2 + $0x38] sm:$0xff]  ;;  %v3214_v52 = vld [vmem:[#allocation2 + $0x30] sm:$0xff]  ;;  %v3030_v44 = vpop.f32.mrb[8].mxu1 }
 0x360   :  { %v2959_v17 = vpop.f32.mrb[8].mxu0  ;;  %10684 = vrot.lane.b32.xlu1 %v15800_v33, %s12328_s19  ;;  %10679 = vrot.lane.b32.xlu0 %v15804_v54, %s12328_s19  ;;  %v3268_v20 = vcombine.high %v3215_v53, %v3215_v53  ;;  %v3267_v16 = vcombine.high %v3214_v52, %v3214_v52  ;;  %v3031_v11 = vadd.f32 %v3030_v44, %v22028_v40  ;;  %v3032_v34 = vpop.f32.mrb[9].mxu1 }
 0x361   :  { %v2960_v6 = vadd.f32 %v2959_v17, %v22028_v40  ;;  %v2961_v13 = vpop.f32.mrb[9].mxu0  ;;  %v16152_v31 = vsel %vm51_vm1, %v3214_v52, %v15762_v30  ;;  %v3033_v47 = vadd.f32 %v3032_v34, %v22028_v40 }
 0x362   :  { %22072 = vst [vmem:[#allocation26_spill] sm:$0xff] %v16152_v31  ;;  %v2962_v36 = vadd.f32 %v2961_v13, %v22028_v40  ;;  %v10693_v33 = vpack.i.bf16 %v3268_v20, %v3215_v53  ;;  %v10688_v26 = vpack.i.bf16 %v3267_v16, %v3214_v52  ;;  %v3156_v29 = vmul.f32 %v15828_v21, %v3031_v11  ;;  %v22099_v40 = vld [vmem:[#allocation48_spill] sm:$0xff] }
 0x363   :  { %v3154_v54 = vmul.f32 %v15825_v10, %v2960_v6  ;;  %v3157_v44 = vmul.f32 %v15837_v28, %v3033_v47  ;;  %v16166_v13 = vcombine.low %v3153_v39, %v3153_v39  ;;  %v16178_v11 = vsel %vm51_vm1, %v3215_v53, %v15746_v24  ;;  %v16400_v10 = vld [vmem:[%s21017_s1 + $0x1c] sm:$0xff] }
 0x364   :  { %v3155_v17 = vmul.f32 %v15831_v7, %v2962_v36  ;;  %10694 = vrot.lane.b32.xlu1 %v10693_v33, %s12327_s29  ;;  %10689 = vrot.lane.b32.xlu0 %v10688_v26, %s12327_s29  ;;  %v16174_v36 = vsel %vm51_vm1, %v3267_v16, %v15734_v4  ;;  %22076 = vst [vmem:[#allocation6_spill] sm:$0xff] %v16178_v11  ;;  %v16395_v7 = vld [vmem:[%s21017_s1 + $0x24] sm:$0xff]  ;;  %v16425_v11 = vld [vmem:[%s21017_s1 + $0x34] sm:$0xff] }
 0x365   :  { %22074 = vst [vmem:[#allocation36_spill] sm:$0xff] %v16166_v13  ;;  %v3187_v34 = vcombine.low %v3156_v29, %v3157_v44  ;;  %22075 = vst [vmem:[#allocation38_spill] sm:$0xff] %v16174_v36  ;;  %v16420_v36 = vcombine.low %v16400_v10, %v16400_v10 }
 0x366   :  { %v16170_v6 = vcombine.low %v3154_v54, %v3155_v17  ;;  %v16195_v47 = vcombine.low %v3155_v17, %v3155_v17  ;;  %22100 = vst [vmem:[#allocation20_spill] sm:$0xff] %v16425_v11 }
 0x367   :  { %3207 = vst.msk [vmem:[#allocation2 + $0x4c] sm:$0xff] %vm15840_vm12, %v3187_v34 }
 0x368   :  { %3206 = vst [vmem:[#allocation2 + $0x44] sm:$0xff] %v16170_v6  ;;  %10709 = vrot.lane.b32.xlu1 %v10693_v33, %s12328_s19  ;;  %10699 = vrot.lane.b32.xlu0 %v10688_v26, %s12328_s19  ;;  %v16189_v16 = vpack.i.bf16 %v16170_v6, %v16166_v13  ;;  %22078 = vst [vmem:[#allocation29_spill] sm:$0xff] %v16195_v47 }
 0x36a   :  { %22077 = vst [vmem:[#allocation28_spill] sm:$0xff] %v16189_v16  ;;  %v16453_v16 = vld [vmem:[%s21017_s1 + $0x44] sm:$0xff] }
 0x36b   :  { %22102 = vst [vmem:[#allocation10_spill] sm:$0xff] %v16453_v16 }
 0x36c   :  { %10714 = vrot.lane.b32.xlu1 %v15924_v27, %s12330_s21  ;;  %10704 = vrot.lane.b32.xlu0 %v15927_v1, %s12330_s21 }
 0x36e   :  { %v16203_v54 = vld [vmem:[#allocation2 + $0x4c] sm:$0xff] }
 0x36f   :  { %v3217_v29 = vld [vmem:[#allocation2 + $0x48] sm:$0xff]  ;;  %v3216_v39 = vld [vmem:[#allocation2 + $0x40] sm:$0xff]  ;;  %v16207_v27 = vpack.i.bf16 %v16203_v54, %v16195_v47 }
 0x370   :  { %10724 = vrot.lane.b32.xlu1 %v16008_v56, %s12330_s21  ;;  %10719 = vrot.lane.b32.xlu0 %v16010_v58, %s12330_s21  ;;  %v16201_v53 = vcombine.high %v3217_v29, %v3217_v29  ;;  %v3269_v52 = vcombine.high %v3216_v39, %v3216_v39  ;;  %v16214_v56 = vsel %vm51_vm1, %v3268_v20, %v15725_v38  ;;  %v3218_v20 = vld [vmem:[#allocation2 + $0x50] sm:$0xf] }
 0x371   :  { %22080 = vst [vmem:[#allocation34_spill] sm:$0xff] %v16207_v27  ;;  %22081 = vst [vmem:[#allocation4_spill] sm:$0xff] %v16214_v56  ;;  %v16218_v58 = vsel %vm51_vm1, %v3216_v39, %v15792_v15  ;;  %v16226_v34 = vsel %vm51_vm1, %v3217_v29, %v15776_v43  ;;  %v10898_v27 = vpack.i.bf16 %v16400_v10, %v16420_v36 }
 0x372   :  { %22079 = vst [vmem:[#allocation31_spill] sm:$0xff] %v16201_v53  ;;  %v10733_v1 = vpack.i.bf16 %v16201_v53, %v3217_v29  ;;  %v10728_v44 = vpack.i.bf16 %v3269_v52, %v3216_v39  ;;  %22082 = vst [vmem:[#allocation42_spill] sm:$0xff] %v16218_v58  ;;  %v16222_v17 = vsel %vm51_vm1, %v3269_v52, %v15772_v46 }
 0x373   :  { %22083 = vst [vmem:[#allocation11_spill] sm:$0xff] %v16222_v17  ;;  %22084 = vst [vmem:[#allocation25_spill] sm:$0xff] %v16226_v34  ;;  %v10783_v29 = vpack.i.bf16 %v22040_v41, %v15942_v42  ;;  %v10778_v39 = vpack.i.bf16 %v22044_v19, %v3218_v20  ;;  %v10803_v42 = vpack.i.bf16 %v15715_v18, %v15720_v50 }
 0x374   :  { %10734 = vrot.lane.b32.xlu1 %v10733_v1, %s12327_s29  ;;  %10729 = vrot.lane.b32.xlu0 %v10728_v44, %s12327_s29  ;;  %v10798_v41 = vpack.i.bf16 %v15729_v61, %v15693_v2  ;;  %v10823_v2 = vpack.i.bf16 %v15776_v43, %v15772_v46  ;;  %v10818_v18 = vpack.i.bf16 %v15792_v15, %v15725_v38  ;;  %v22090_v43 = vld [vmem:[#allocation53_spill] sm:$0xff]  ;;  %v22091_v15 = vld [vmem:[#allocation56_spill] sm:$0xff] }
 0x375   :  { %v16320_v20 = vpack.i.bf16 %v16048_v5, %v16036_v12  ;;  %v16416_v58 = vcombine.low %v16395_v7, %v16395_v7 }
 0x377   :  { %v10903_v31 = vpack.i.bf16 %v16395_v7, %v16416_v58 }
 0x378   :  { %10749 = vrot.lane.b32.xlu1 %v10733_v1, %s12328_s19  ;;  %10739 = vrot.lane.b32.xlu0 %v10728_v44, %s12328_s19 }
 0x37c   :  { %10754 = vrot.lane.b32.xlu1 %v16096_v51, %s12330_s21  ;;  %10744 = vrot.lane.b32.xlu0 %v16098_v14, %s12330_s21  ;;  %v10793_v14 = vpack.i.bf16 %v15707_v37, %v15698_v32  ;;  %v10788_v51 = vpack.i.bf16 %v15711_v57, %v15961_v49  ;;  %v10813_v37 = vpack.i.bf16 %v15746_v24, %v15734_v4  ;;  %v12244_v4 = vld [vmem:[%s21017_s1 + $0x50] ss:$0 sps:$4 sm:$0xff]   ;;  %v22092_v49 = vld [vmem:[#allocation54_spill] sm:$0xff] }
 0x37d   :  { %v10808_v57 = vpack.i.bf16 %v15762_v30, %v15703_v23  ;;  %v16286_v23 = vcombine.low %v15877_v9, %v15877_v9  ;;  %v10828_v24 = vpack.i.bf16 %v12244_v4, %v15767_v45  ;;  %v16304_v9 = vpack.i.bf16 %v22091_v15, %v22090_v43  ;;  %v16366_v4 = vld [vmem:[%s21017_s1 + $0xc] sm:$0xff] }
 0x37e   :  { %v16390_v21 = vcombine.low %v16366_v4, %v16366_v4 }
 0x37f   :  { %v16293_v38 = vpack.i.bf16 %v16286_v23, %v15885_v63 }
 0x380   :  { %10764 = vrot.lane.b32.xlu1 %v10693_v33, %s12330_s21  ;;  %10759 = vrot.lane.b32.xlu0 %v10688_v26, %s12330_s21  ;;  %v16251_v26 = vpop.permute.xlu1 %10534  ;;  %v16253_v33 = vpop.permute.xlu0 %10529  ;;  %v10888_v17 = vpack.i.bf16 %v16366_v4, %v16390_v21 }
 0x384   :  { %10774 = vrot.lane.b32.xlu1 %v10733_v1, %s12330_s21  ;;  %10769 = vrot.lane.b32.xlu0 %v10728_v44, %s12330_s21  ;;  %v16261_v52 = vpop.permute.xlu1 %10544  ;;  %v16263_v32 = vpop.permute.xlu0 %10539  ;;  %v22093_v1 = vld [vmem:[#allocation70_spill] sm:$0xff] }
 0x385   :  { %22085 = vst [vmem:[#allocation8_spill] sm:$0xff] %v16261_v52  ;;  %v16308_v45 = vpack.i.bf16 %v22093_v1, %v22092_v49 }
 0x388   :  { %10784 = vrot.lane.b32.xlu1 %v10783_v29, %s12330_s21  ;;  %10779 = vrot.lane.b32.xlu0 %v10778_v39, %s12330_s21  ;;  %v16277_v50 = vpop.permute.xlu1 %10554  ;;  %v16279_v61 = vpop.permute.xlu0 %10549  ;;  %v22096_v29 = vld [vmem:[#allocation57_spill] sm:$0xff] }
 0x389   :  { %22086 = vst [vmem:[#allocation24_spill] sm:$0xff] %v16277_v50  ;;  %22087 = vst [vmem:[#allocation17_spill] sm:$0xff] %v16279_v61  ;;  %v16324_v39 = vpack.i.bf16 %v16024_v3, %v22096_v29  ;;  %v16481_v61 = vld [vmem:[%s21017_s1 + $0x4c] sm:$0xff] }
 0x38a   :  { %22108 = vst [vmem:[#allocation56_spill] sm:$0xff] %v16481_v61  ;;  %v16499_v52 = vcombine.low %v16481_v61, %v16481_v61 }
 0x38c   :  { %10794 = vrot.lane.b32.xlu1 %v10793_v14, %s12330_s21  ;;  %10789 = vrot.lane.b32.xlu0 %v10788_v51, %s12330_s21  ;;  %v16295_v30 = vpop.permute.xlu1 %10564  ;;  %v16297_v46 = vpop.permute.xlu0 %10559 }
 0x38d   :  { %22088 = vst [vmem:[#allocation21_spill] sm:$0xff] %v16295_v30  ;;  %22089 = vst [vmem:[#allocation45_spill] sm:$0xff] %v16297_v46  ;;  %v16472_v30 = vcombine.low %v16453_v16, %v16453_v16 }
 0x38f   :  { %22106 = vst [vmem:[#allocation19_spill] sm:$0xff] %v16472_v30 }
 0x390   :  { %10804 = vrot.lane.b32.xlu1 %v10803_v42, %s12330_s21  ;;  %10799 = vrot.lane.b32.xlu0 %v10798_v41, %s12330_s21  ;;  %v16314_v63 = vpop.permute.xlu1 %10574  ;;  %v16316_v44 = vpop.permute.xlu0 %10569  ;;  %v16336_v42 = vpack.i.bf16 %v16130_v35, %v16118_v22  ;;  %v16340_v41 = vpack.i.bf16 %v16108_v25, %v16038_v59  ;;  %v16458_v35 = vld [vmem:[%s21017_s1 + $0x3c] sm:$0xff] }
 0x391   :  { %22094 = vst [vmem:[#allocation39_spill] sm:$0xff] %v16314_v63  ;;  %22095 = vst [vmem:[#allocation5_spill] sm:$0xff] %v16316_v44  ;;  %v16476_v0 = vcombine.low %v16458_v35, %v16458_v35 }
 0x392   :  { %22103 = vst [vmem:[#allocation30_spill] sm:$0xff] %v16458_v35 }
 0x393   :  { %22107 = vst [vmem:[#allocation53_spill] sm:$0xff] %v16476_v0 }
 0x394   :  { %10814 = vrot.lane.b32.xlu1 %v10813_v37, %s12330_s21  ;;  %10809 = vrot.lane.b32.xlu0 %v10808_v57, %s12330_s21  ;;  %v16348_v37 = vpack.i.bf16 %v16195_v47, %v16170_v6  ;;  %v16352_v57 = vpack.i.bf16 %v16166_v13, %v16120_v60  ;;  %v22098_v60 = vld [vmem:[#allocation62_spill] sm:$0xff]  ;;  %v16444_v47 = vcombine.low %v16425_v11, %v16425_v11 }
 0x395   :  { %v16378_v8 = vpack.i.bf16 %v22099_v40, %v22098_v60  ;;  %v16448_v13 = vcombine.low %v16430_v62, %v16430_v62 }
 0x397   :  { %v10908_v44 = vpack.i.bf16 %v16430_v62, %v16448_v13 }
 0x398   :  { %10824 = vrot.lane.b32.xlu1 %v10823_v2, %s12330_s21  ;;  %10819 = vrot.lane.b32.xlu0 %v10818_v18, %s12330_s21  ;;  %v16356_v2 = vcombine.high %v16203_v54, %v16203_v54  ;;  %v16361_v18 = vld [vmem:[%s21017_s1 + $0x14] sm:$0xff] }
 0x399   :  { %v16386_v28 = vcombine.low %v16361_v18, %v16361_v18 }
 0x39a   :  { %22097 = vst [vmem:[#allocation15_spill] sm:$0xff] %v16356_v2  ;;  %v16382_v48 = vpack.i.bf16 %v16356_v2, %v16203_v54 }
 0x39b   :  { %v10893_v54 = vpack.i.bf16 %v16361_v18, %v16386_v28 }
 0x39c   :  { %10834 = vrot.lane.b32.xlu1 %v16293_v38, %s12331_s16  ;;  %10829 = vrot.lane.b32.xlu0 %v10828_v24, %s12330_s21 }
 0x3a0   :  { %10844 = vrot.lane.b32.xlu1 %v16304_v9, %s12331_s16  ;;  %10839 = vrot.lane.b32.xlu0 %v16308_v45, %s12331_s16 }
 0x3a4   :  { %10854 = vrot.lane.b32.xlu1 %v16320_v20, %s12331_s16  ;;  %10849 = vrot.lane.b32.xlu0 %v16324_v39, %s12331_s16  ;;  %v16332_v51 = vpop.permute.xlu0 %10579 }
 0x3a5   :  { %v16330_v14 = vpop.permute.xlu1 %10584 }
 0x3a8   :  { %10864 = vrot.lane.b32.xlu1 %v16336_v42, %s12331_s16  ;;  %10859 = vrot.lane.b32.xlu0 %v16340_v41, %s12331_s16  ;;  %v16370_v24 = vpop.permute.xlu0 %10589 }
 0x3a9   :  { %v16368_v6 = vpop.permute.xlu1 %10594 }
 0x3ac   :  { %10874 = vrot.lane.b32.xlu1 %v16348_v37, %s12331_s16  ;;  %10869 = vrot.lane.b32.xlu0 %v16352_v57, %s12331_s16  ;;  %v16412_v56 = vpop.permute.xlu0 %10599 }
 0x3ad   :  { %v16410_v34 = vpop.permute.xlu1 %10604 }
 0x3b0   :  { %10884 = vrot.lane.b32.xlu1 %v16378_v8, %s12331_s16  ;;  %10879 = vrot.lane.b32.xlu0 %v16382_v48, %s12331_s16 }
 0x3b4   :  { %10894 = vrot.lane.b32.xlu1 %v10893_v54, %s12331_s16  ;;  %10889 = vrot.lane.b32.xlu0 %v10888_v17, %s12331_s16 }
 0x3b6   :  { %v16438_v53 = vpop.permute.xlu1 %10614  ;;  %v16440_v2 = vpop.permute.xlu0 %10609 }
 0x3b7   :  { %22101 = vst [vmem:[#allocation27_spill] sm:$0xff] %v16438_v53  ;;  %v10913_v53 = vpack.i.bf16 %v16425_v11, %v16444_v47  ;;  %v16491_v11 = vpack.i.bf16 %v16458_v35, %v16476_v0 }
 0x3b8   :  { %10904 = vrot.lane.b32.xlu1 %v10903_v31, %s12331_s16  ;;  %10899 = vrot.lane.b32.xlu0 %v10898_v27, %s12331_s16 }
 0x3ba   :  { %v16466_v63 = vpop.permute.xlu1 %10629  ;;  %v16468_v46 = vpop.permute.xlu0 %10619 }
 0x3bb   :  { %22104 = vst [vmem:[#allocation14_spill] sm:$0xff] %v16466_v63  ;;  %22105 = vst [vmem:[#allocation7_spill] sm:$0xff] %v16468_v46  ;;  %v16487_v63 = vpack.i.bf16 %v16453_v16, %v16472_v30  ;;  %v10928_v16 = vpack.i.bf16 %v16481_v61, %v16499_v52 }
 0x3bc   :  { %10914 = vrot.lane.b32.xlu1 %v10913_v53, %s12331_s16  ;;  %10909 = vrot.lane.b32.xlu0 %v10908_v44, %s12331_s16 }
 0x3be   :  { %v16493_v46 = vpop.permute.xlu1 %10634  ;;  %v16495_v50 = vpop.permute.xlu0 %10624 }
 0x3bf   :  { %22109 = vst [vmem:[#allocation54_spill] sm:$0xff] %v16493_v46 }
 0x3c0   :  { %10924 = vrot.lane.b32.xlu1 %v16487_v63, %s12331_s16  ;;  %10919 = vrot.lane.b32.xlu0 %v16491_v11, %s12331_s16 }
 0x3c2   :  { %v16507_v30 = vpop.permute.xlu1 %10644  ;;  %v16509_v35 = vpop.permute.xlu0 %10639 }
 0x3c3   :  { %22110 = vst [vmem:[#allocation70_spill] sm:$0xff] %v16507_v30  ;;  %22111 = vst [vmem:[#allocation57_spill] sm:$0xff] %v16509_v35 }
 0x3c4   :  { %10934 = vrot.lane.b32.xlu1 %v16293_v38, %s12332_s0  ;;  %10929 = vrot.lane.b32.xlu0 %v10928_v16, %s12331_s16 }
 0x3c6   :  { %v16514_v46 = vpop.permute.xlu1 %10654  ;;  %v16516_v0 = vpop.permute.xlu0 %10649 }
 0x3c8   :  { %10944 = vrot.lane.b32.xlu1 %v16304_v9, %s12332_s0  ;;  %10939 = vrot.lane.b32.xlu0 %v16308_v45, %s12332_s0 }
 0x3ca   :  { %v16522_v61 = vpop.permute.xlu1 %10669  ;;  %v16524_v30 = vpop.permute.xlu0 %10659 }
 0x3cc   :  { %10954 = vrot.lane.b32.xlu1 %v16320_v20, %s12332_s0  ;;  %10949 = vrot.lane.b32.xlu0 %v16324_v39, %s12332_s0 }
 0x3ce   :  { %v16530_v16 = vpop.permute.xlu1 %10674  ;;  %v16532_v35 = vpop.permute.xlu0 %10664 }
 0x3d0   :  { %10964 = vrot.lane.b32.xlu1 %v16336_v42, %s12332_s0  ;;  %10959 = vrot.lane.b32.xlu0 %v16340_v41, %s12332_s0 }
 0x3d2   :  { %v16538_v9 = vpop.permute.xlu1 %10684  ;;  %v16540_v45 = vpop.permute.xlu0 %10679 }
 0x3d4   :  { %10974 = vrot.lane.b32.xlu1 %v16348_v37, %s12332_s0  ;;  %10969 = vrot.lane.b32.xlu0 %v16352_v57, %s12332_s0 }
 0x3d6   :  { %v16546_v20 = vpop.permute.xlu1 %10694  ;;  %v16548_v39 = vpop.permute.xlu0 %10689 }
 0x3d7   :  { %22112 = vst [vmem:[#allocation62_spill] sm:$0xff] %v16546_v20 }
 0x3d8   :  { %10984 = vrot.lane.b32.xlu1 %v16378_v8, %s12332_s0  ;;  %10979 = vrot.lane.b32.xlu0 %v16382_v48, %s12332_s0 }
 0x3da   :  { %v16554_v42 = vpop.permute.xlu1 %10709  ;;  %v16556_v41 = vpop.permute.xlu0 %10699 }
 0x3dc   :  { %10994 = vrot.lane.b32.xlu1 %v10893_v54, %s12332_s0  ;;  %10989 = vrot.lane.b32.xlu0 %v10888_v17, %s12332_s0  ;;  %v11023_v17 = vpack.i.bf16 %v22098_v60, %v22092_v49 }
 0x3de   :  { %v16560_v37 = vpop.permute.xlu1 %10714  ;;  %v16562_v57 = vpop.permute.xlu0 %10704 }
 0x3e0   :  { %11004 = vrot.lane.b32.xlu1 %v10903_v31, %s12332_s0  ;;  %10999 = vrot.lane.b32.xlu0 %v10898_v27, %s12332_s0  ;;  %v11028_v31 = vpack.i.bf16 %v16390_v21, %v22099_v40 }
 0x3e2   :  { %v16566_v8 = vpop.permute.xlu1 %10724  ;;  %v16568_v20 = vpop.permute.xlu0 %10719 }
 0x3e4   :  { %11014 = vrot.lane.b32.xlu1 %v10913_v53, %s12332_s0  ;;  %11009 = vrot.lane.b32.xlu0 %v10908_v44, %s12332_s0 }
 0x3e6   :  { %v16572_v48 = vpop.permute.xlu1 %10734  ;;  %v16574_v54 = vpop.permute.xlu0 %10729 }
 0x3e7   :  { %22113 = vst [vmem:[#allocation48_spill] sm:$0xff] %v16572_v48  ;;  %22114 = vst [vmem:[#allocation78_spill] sm:$0xff] %v16574_v54  ;;  %v11053_v54 = vpack.i.bf16 %v16386_v28, %v16366_v4 }
 0x3e8   :  { %11024 = vrot.lane.b32.xlu1 %v11023_v17, %s12334_s12  ;;  %11019 = vrot.lane.b32.xlu0 %v16293_v38, %s12334_s12 }
 0x3ea   :  { %v16583_v27 = vpop.permute.xlu1 %10749  ;;  %v16585_v53 = vpop.permute.xlu0 %10739 }
 0x3eb   :  { %22115 = vst [vmem:[#allocation79_spill] sm:$0xff] %v16583_v27  ;;  %22116 = vst [vmem:[#allocation80_spill] sm:$0xff] %v16585_v53 }
 0x3ec   :  { %11034 = vrot.lane.b32.xlu1 %v16293_v38, %s12335_s13  ;;  %11029 = vrot.lane.b32.xlu0 %v11028_v31, %s12334_s12  ;;  %v22121_v38 = vld [vmem:[#allocation74_spill] sm:$0xff] }
 0x3ee   :  { %v16590_v44 = vpop.permute.xlu1 %10754  ;;  %v16592_v60 = vpop.permute.xlu0 %10744 }
 0x3ef   :  { %22117 = vst [vmem:[#allocation81_spill] sm:$0xff] %v16590_v44  ;;  %22118 = vst [vmem:[#allocation82_spill] sm:$0xff] %v16592_v60 }
 0x3f0   :  { %11044 = vrot.lane.b32.xlu1 %v11028_v31, %s12335_s13  ;;  %11039 = vrot.lane.b32.xlu0 %v11023_v17, %s12335_s13 }
 0x3f2   :  { %v16598_v48 = vpop.permute.xlu1 %10764  ;;  %v16600_v27 = vpop.permute.xlu0 %10759 }
 0x3f3   :  { %22119 = vst [vmem:[#allocation83_spill] sm:$0xff] %v16598_v48  ;;  %22120 = vst [vmem:[#allocation84_spill] sm:$0xff] %v16600_v27  ;;  %v4647_v27 = vsel %vm51_vm1, %v16286_v23, %v22099_v40  ;;  %v22125_v48 = vld [vmem:[#allocation49_spill] sm:$0xff] }
 0x3f4   :  { %11054 = vrot.lane.b32.xlu1 %v11053_v54, %s12334_s12  ;;  %11049 = vrot.lane.b32.xlu0 %v22121_v38, %s12334_s12 }
 0x3f6   :  { %v16605_v53 = vpop.permute.xlu1 %10774  ;;  %v16607_v44 = vpop.permute.xlu0 %10769 }
 0x3f7   :  { %22122 = vst [vmem:[#allocation74_spill] sm:$0xff] %v16605_v53  ;;  %22123 = vst [vmem:[#allocation85_spill] sm:$0xff] %v16607_v44 }
 0x3f8   :  { %11064 = vrot.lane.b32.xlu1 %v11053_v54, %s12335_s13  ;;  %11059 = vrot.lane.b32.xlu0 %v22121_v38, %s12335_s13  ;;  %v4649_v54 = vsel %vm51_vm1, %v22093_v1, %v16366_v4  ;;  %v4648_v38 = vsel %vm51_vm1, %v22092_v49, %v16390_v21  ;;  %v11073_v21 = vpack.i.bf16 %v16420_v36, %v16361_v18 }
 0x3fa   :  { %v16612_v17 = vpop.permute.xlu1 %10784  ;;  %v16614_v31 = vpop.permute.xlu0 %10779 }
 0x3fb   :  { %22124 = vst [vmem:[#allocation86_spill] sm:$0xff] %v16614_v31 }
 0x3fc   :  { %4688 = vrot.lane.b32.xlu1 %v4647_v27, %s12337_s14  ;;  %4686 = vrot.lane.b32.xlu0 %v22125_v48, %s12337_s14  ;;  %v4650_v48 = vsel %vm51_vm1, %v22090_v43, %v16386_v28  ;;  %v22127_v27 = vld [vmem:[#allocation71_spill] sm:$0xff]  ;;  %v22132_v43 = vld [vmem:[#allocation61_spill] sm:$0xff] }
 0x3fe   :  { %v16622_v53 = vpop.permute.xlu1 %10794  ;;  %v16624_v44 = vpop.permute.xlu0 %10789 }
 0x400   :  { %4692 = vrot.lane.b32.xlu1 %v4649_v54, %s12337_s14  ;;  %4690 = vrot.lane.b32.xlu0 %v4648_v38, %s12337_s14  ;;  %v11093_v54 = vpack.i.bf16 %v16416_v58, %v16400_v10 }
 0x402   :  { %v16634_v40 = vpop.permute.xlu1 %10804  ;;  %v16636_v23 = vpop.permute.xlu0 %10799 }
 0x403   :  { %22126 = vst [vmem:[#allocation49_spill] sm:$0xff] %v16634_v40 }
 0x404   :  { %11069 = vrot.lane.b32.xlu1 %v22127_v27, %s12334_s12  ;;  %4694 = vrot.lane.b32.xlu0 %v4650_v48, %s12337_s14 }
 0x406   :  { %v16646_v49 = vpop.permute.xlu1 %10814  ;;  %v16648_v1 = vpop.permute.xlu0 %10809 }
 0x407   :  { %22128 = vst [vmem:[#allocation71_spill] sm:$0xff] %v16646_v49  ;;  %22129 = vst [vmem:[#allocation87_spill] sm:$0xff] %v16648_v1  ;;  %v4652_v49 = vsel %vm51_vm1, %v22096_v29, %v16420_v36  ;;  %v10532_v1 = vunpack.i.h.bf16 %v16253_v33 }
 0x408   :  { %11079 = vrot.lane.b32.xlu1 %v22127_v27, %s12335_s13  ;;  %11074 = vrot.lane.b32.xlu0 %v11073_v21, %s12334_s12 }
 0x40a   :  { %v16653_v4 = vpop.permute.xlu1 %10824  ;;  %v16655_v28 = vpop.permute.xlu0 %10819 }
 0x40b   :  { %22130 = vst [vmem:[#allocation88_spill] sm:$0xff] %v16653_v4  ;;  %22131 = vst [vmem:[#allocation89_spill] sm:$0xff] %v16655_v28 }
 0x40c   :  { %11089 = vrot.lane.b32.xlu1 %v22132_v43, %s12334_s12  ;;  %11084 = vrot.lane.b32.xlu0 %v11073_v21, %s12335_s13  ;;  %v4651_v21 = vsel %vm51_vm1, %v22091_v15, %v16361_v18 }
 0x40e   :  { %v16662_v38 = vpop.permute.xlu1 %10834  ;;  %v16664_v48 = vpop.permute.xlu0 %10829 }
 0x40f   :  { %22133 = vst [vmem:[#allocation61_spill] sm:$0xff] %v16664_v48 }
 0x410   :  { %11099 = vrot.lane.b32.xlu1 %v22132_v43, %s12335_s13  ;;  %11094 = vrot.lane.b32.xlu0 %v11093_v54, %s12334_s12  ;;  %v4653_v43 = vsel %vm51_vm1, %v16024_v3, %v16400_v10  ;;  %v11113_v10 = vpack.i.bf16 %v16448_v13, %v16395_v7 }
 0x412   :  { %v16669_v27 = vpop.permute.xlu1 %10844  ;;  %v16671_v4 = vpop.permute.xlu0 %10839 }
 0x413   :  { %22134 = vst [vmem:[#allocation90_spill] sm:$0xff] %v16669_v27 }
 0x414   :  { %4696 = vrot.lane.b32.xlu1 %v4651_v21, %s12337_s14  ;;  %11104 = vrot.lane.b32.xlu0 %v11093_v54, %s12335_s13  ;;  %v4654_v54 = vsel %vm51_vm1, %v16036_v12, %v16416_v58  ;;  %v22139_v21 = vld [vmem:[#allocation73_spill] sm:$0xff]  ;;  %v11133_v58 = vpack.i.bf16 %v16444_v47, %v16430_v62 }
 0x416   :  { %v16678_v28 = vpop.permute.xlu1 %10854  ;;  %v16680_v48 = vpop.permute.xlu0 %10849 }
 0x417   :  { %22135 = vst [vmem:[#allocation91_spill] sm:$0xff] %v16678_v28  ;;  %22136 = vst [vmem:[#allocation92_spill] sm:$0xff] %v16680_v48 }
 0x418   :  { %4700 = vrot.lane.b32.xlu1 %v4653_v43, %s12337_s14  ;;  %4698 = vrot.lane.b32.xlu0 %v4652_v49, %s12337_s14 }
 0x41a   :  { %v16690_v15 = vpop.permute.xlu1 %10864  ;;  %v16692_v18 = vpop.permute.xlu0 %10859 }
 0x41b   :  { %22137 = vst [vmem:[#allocation93_spill] sm:$0xff] %v16690_v15  ;;  %22138 = vst [vmem:[#allocation94_spill] sm:$0xff] %v16692_v18  ;;  %v10537_v18 = vunpack.i.h.bf16 %v16251_v26  ;;  %v10536_v15 = vunpack.i.l.bf16 %v16251_v26  ;;  %v4656_v26 = vsel %vm51_vm1, %v16038_v59, %v16448_v13 }
 0x41c   :  { %11109 = vrot.lane.b32.xlu1 %v22139_v21, %s12334_s12  ;;  %4702 = vrot.lane.b32.xlu0 %v4654_v54, %s12337_s14  ;;  %v10587_v54 = vunpack.i.h.bf16 %v16330_v14 }
 0x41e   :  { %v16702_v3 = vpop.permute.xlu1 %10874  ;;  %v16704_v36 = vpop.permute.xlu0 %10869 }
 0x41f   :  { %22140 = vst [vmem:[#allocation73_spill] sm:$0xff] %v16702_v3  ;;  %22141 = vst [vmem:[#allocation95_spill] sm:$0xff] %v16704_v36 }
 0x420   :  { %11119 = vrot.lane.b32.xlu1 %v22139_v21, %s12335_s13  ;;  %11114 = vrot.lane.b32.xlu0 %v11113_v10, %s12334_s12  ;;  %v10586_v21 = vunpack.i.l.bf16 %v16330_v14  ;;  %v10531_v14 = vunpack.i.l.bf16 %v16253_v33  ;;  %v3431_v33 = vsel %vm168_vm0, %v10532_v1, %v10536_v15 }
 0x422   :  { %v16709_v29 = vpop.permute.xlu1 %10884  ;;  %v16711_v12 = vpop.permute.xlu0 %10879 }
 0x423   :  { %22142 = vst [vmem:[#allocation96_spill] sm:$0xff] %v16711_v12  ;;  %v10582_v12 = vunpack.i.h.bf16 %v16332_v51 }
 0x424   :  { %11129 = vrot.lane.b32.xlu1 %v16134_v55, %s12334_s12  ;;  %11124 = vrot.lane.b32.xlu0 %v11113_v10, %s12335_s13  ;;  %v10581_v10 = vunpack.i.l.bf16 %v16332_v51  ;;  %v3353_v51 = vsel %vm168_vm0, %v10586_v21, %v10587_v54 }
 0x425   :  { %v3352_v28 = vsel %vm168_vm0, %v10582_v12, %v10586_v21  ;;  %v10541_v21 = vunpack.i.l.bf16 %v16263_v32 }
 0x426   :  { %v16718_v49 = vpop.permute.xlu1 %10894  ;;  %v16720_v43 = vpop.permute.xlu0 %10889 }
 0x427   :  { %22143 = vst [vmem:[#allocation97_spill] sm:$0xff] %v16718_v49 }
 0x428   :  { %11139 = vrot.lane.b32.xlu1 %v16134_v55, %s12335_s13  ;;  %11134 = vrot.lane.b32.xlu0 %v11133_v58, %s12334_s12  ;;  %v4655_v55 = vsel %vm51_vm1, %v16048_v5, %v16395_v7  ;;  %v3432_v7 = vsel %vm168_vm0, %v10536_v15, %v10537_v18  ;;  %v4657_v5 = vsel %vm51_vm1, %v16108_v25, %v16430_v62 }
 0x429   :  { %v4658_v62 = vsel %vm51_vm1, %v16118_v22, %v16444_v47  ;;  %v4487_v25 = vsel %vm51_vm1, %v3352_v28, %v3431_v33  ;;  %v4488_v59 = vsel %vm51_vm1, %v3353_v51, %v3432_v7  ;;  %v10596_v22 = vunpack.i.l.bf16 %v16368_v6  ;;  %v22150_v51 = vld [vmem:[#allocation52_spill] sm:$0xff]  ;;  %v22151_v7 = vld [vmem:[#allocation69_spill] sm:$0xff] }
 0x42a   :  { %v16729_v36 = vpop.permute.xlu1 %10904  ;;  %v16731_v3 = vpop.permute.xlu0 %10899  ;;  %v10592_v47 = vunpack.i.h.bf16 %v16370_v24  ;;  %v3433_v33 = vsel %vm168_vm0, %v10537_v18, %v10541_v21  ;;  %v22154_v28 = vunpack.i.h.bf16 %v16410_v34 }
 0x42b   :  { %22144 = vst [vmem:[#allocation98_spill] sm:$0xff] %v16729_v36  ;;  %22145 = vst [vmem:[#allocation99_spill] sm:$0xff] %v16731_v3  ;;  %v3351_v36 = vsel %vm168_vm0, %v10581_v10, %v10582_v12  ;;  %v21364_v12 = vunpack.i.h.bf16 %v16263_v32  ;;  %v10606_v10 = vunpack.i.l.bf16 %v16410_v34 }
 0x42c   :  { %4704 = vrot.lane.b32.xlu1 %v4655_v55, %s12337_s14  ;;  %11144 = vrot.lane.b32.xlu0 %v11133_v58, %s12335_s13  ;;  %v3430_v58 = vsel %vm168_vm0, %v10531_v14, %v10532_v1  ;;  %v10602_v55 = vunpack.i.h.bf16 %v16412_v56  ;;  %v22153_v1 = vld [vmem:[#allocation50_spill] sm:$0xff] }
 0x42d   :  { %v4486_v13 = vsel %vm51_vm1, %v3351_v36, %v3430_v58  ;;  %v10611_v36 = vunpack.i.l.bf16 %v16440_v2  ;;  %v3434_v58 = vsel %vm168_vm0, %v10541_v21, %v21364_v12  ;;  %v4466_v15 = vsel %vm51_vm1, %v22153_v1, %v22044_v19 }
 0x42e   :  { %v16745_v48 = vpop.permute.xlu1 %10914  ;;  %v16747_v3 = vpop.permute.xlu0 %10909  ;;  %v11158_v18 = vpack.i.bf16 %v4486_v13, %v4466_v15  ;;  %v3510_v12 = vsel %vm248_vm2, %v10592_v47, %v10596_v22  ;;  %v22157_v1 = vunpack.i.h.bf16 %v16440_v2  ;;  %v10716_v15 = vunpack.i.l.bf16 %v16560_v37 }
 0x42f   :  { %22146 = vst [vmem:[#allocation100_spill] sm:$0xff] %v16745_v48  ;;  %22147 = vst [vmem:[#allocation101_spill] sm:$0xff] %v16747_v3  ;;  %v3354_v19 = vsel %vm168_vm0, %v10587_v54, %v10611_v36  ;;  %v10782_v3 = vunpack.i.h.bf16 %v16614_v31  ;;  %v22182_v48 = vunpack.i.l.bf16 %v16624_v44 }
 0x430   :  { %4708 = vrot.lane.b32.xlu1 %v4657_v5, %s12337_s14  ;;  %4706 = vrot.lane.b32.xlu0 %v4656_v26, %s12337_s14  ;;  %v22152_v26 = vpack.i.bf16 %v22150_v51, %v22151_v7  ;;  %v11153_v7 = vpack.i.bf16 %v4488_v59, %v4487_v25  ;;  %v10601_v25 = vunpack.i.l.bf16 %v16412_v56  ;;  %v21373_v59 = vunpack.i.h.bf16 %v16560_v37 }
 0x431   :  { %v4489_v56 = vsel %vm51_vm1, %v3354_v19, %v3433_v33 }
 0x432   :  { %v16772_v14 = vpop.permute.xlu1 %10924  ;;  %v16774_v5 = vpop.permute.xlu0 %10919  ;;  %v3588_v33 = vsel %vm248_vm2, %v10601_v25, %v10602_v55 }
 0x433   :  { %22148 = vst [vmem:[#allocation102_spill] sm:$0xff] %v16772_v14  ;;  %22149 = vst [vmem:[#allocation103_spill] sm:$0xff] %v16774_v5  ;;  %v3590_v14 = vsel %vm248_vm2, %v10606_v10, %v22154_v28  ;;  %v3355_v28 = vsel %vm168_vm0, %v10611_v36, %v22157_v1  ;;  %v10706_v36 = vunpack.i.l.bf16 %v16562_v57 }
 0x434   :  { %4710 = vrot.lane.b32.xlu0 %v4658_v62, %s12337_s14  ;;  %11149 = vrot.lane.b32.xlu1 %v22152_v26, %s12343_s5  ;;  %v3589_v62 = vsel %vm248_vm2, %v10602_v55, %v10606_v10  ;;  %v22156_v26 = vunpack.i.h.bf16 %v16368_v6  ;;  %v10786_v10 = vunpack.i.l.bf16 %v16612_v17 }
 0x435   :  { %v4507_v54 = vsel %vm51_vm1, %v3510_v12, %v3589_v62  ;;  %v10591_v12 = vunpack.i.l.bf16 %v16370_v24  ;;  %v3672_v24 = vsel %vm411_vm4, %v10716_v15, %v21373_v59  ;;  %v10837_v59 = vunpack.i.h.bf16 %v16662_v38 }
 0x436   :  { %v16796_v5 = vpop.permute.xlu1 %10934  ;;  %v16798_v51 = vpop.permute.xlu0 %10929  ;;  %v3511_v21 = vsel %vm248_vm2, %v10596_v22, %v22156_v26  ;;  %v10707_v22 = vunpack.i.h.bf16 %v16562_v57  ;;  %v10787_v26 = vunpack.i.h.bf16 %v16612_v17  ;;  %v22159_v57 = vld [vmem:[#allocation12_spill] sm:$0xff] }
 0x437   :  { %22155 = vst [vmem:[#allocation52_spill] sm:$0xff] %v16798_v51  ;;  %v21367_v51 = vunpack.i.l.bf16 %v16624_v44  ;;  %v4508_v13 = vsel %vm51_vm1, %v3511_v21, %v3590_v14  ;;  %v3754_v14 = vsel %vm411_vm4, %v10782_v3, %v10786_v10  ;;  %v22160_v17 = vld [vmem:[#allocation60_spill] sm:$0xff]  ;;  %v3509_v55 = vsel %vm248_vm2, %v10591_v12, %v10592_v47 }
 0x438   :  { %11154 = vrot.lane.b32.xlu0 %v11153_v7, %s12343_s5  ;;  %11159 = vrot.lane.b32.xlu1 %v11158_v18, %s12343_s5  ;;  %v4490_v18 = vsel %vm51_vm1, %v3355_v28, %v3434_v58  ;;  %v22161_v21 = vpack.i.bf16 %v22159_v57, %v22160_v17  ;;  %v11178_v19 = vpack.i.bf16 %v4508_v13, %v4507_v54  ;;  %v22164_v13 = vld [vmem:[#allocation8_spill] sm:$0xff]  ;;  %v21372_v17 = vunpack.i.h.bf16 %v16495_v50 }
 0x439   :  { %v3756_v62 = vsel %vm411_vm4, %v10787_v26, %v21367_v51  ;;  %v3670_v3 = vsel %vm411_vm4, %v10706_v36, %v10707_v22  ;;  %v3755_v58 = vsel %vm411_vm4, %v10786_v10, %v10787_v26  ;;  %v3671_v25 = vsel %vm411_vm4, %v10707_v22, %v10716_v15  ;;  %v22167_v12 = vld [vmem:[#allocation24_spill] sm:$0xff]  ;;  %v22168_v22 = vld [vmem:[#allocation7_spill] sm:$0xff] }
 0x43a   :  { %v16821_v1 = vpop.permute.xlu1 %10944  ;;  %v16823_v7 = vpop.permute.xlu0 %10939  ;;  %v4528_v31 = vsel %vm51_vm1, %v3672_v24, %v3756_v62  ;;  %v4526_v57 = vsel %vm51_vm1, %v3670_v3, %v3754_v14  ;;  %v4527_v54 = vsel %vm51_vm1, %v3671_v25, %v3755_v58  ;;  %v4506_v10 = vsel %vm51_vm1, %v3509_v55, %v3588_v33  ;;  %v22170_v58 = vld [vmem:[#allocation17_spill] sm:$0xff] }
 0x43b   :  { %22158 = vst [vmem:[#allocation69_spill] sm:$0xff] %v16821_v1  ;;  %v21370_v36 = vunpack.i.h.bf16 %v22164_v13  ;;  %v10546_v26 = vunpack.i.l.bf16 %v22164_v13  ;;  %v11183_v14 = vpack.i.bf16 %v4528_v31, %v4527_v54  ;;  %v11188_v47 = vpack.i.bf16 %v4526_v57, %v4506_v10 }
 0x43c   :  { %11164 = vrot.lane.b32.xlu0 %v16491_v11, %s12332_s0  ;;  %11169 = vrot.lane.b32.xlu1 %v22161_v21, %s12343_s5  ;;  %v11173_v11 = vpack.i.bf16 %v4490_v18, %v4489_v56  ;;  %v21371_v15 = vunpack.i.h.bf16 %v22167_v12  ;;  %v10621_v62 = vunpack.i.l.bf16 %v22168_v22  ;;  %v10626_v21 = vunpack.i.l.bf16 %v16495_v50 }
 0x43d   :  { %v10556_v33 = vunpack.i.l.bf16 %v22167_v12  ;;  %v16873_v31 = vsel %vm168_vm0, %v10546_v26, %v21370_v36  ;;  %v22169_v24 = vunpack.i.h.bf16 %v16263_v32  ;;  %v22173_v10 = vunpack.i.h.bf16 %v16368_v6  ;;  %v22175_v6 = vld [vmem:[#allocation43_spill] sm:$0xff] }
 0x43e   :  { %v16844_v28 = vpop.permute.xlu1 %10954  ;;  %v16846_v51 = vpop.permute.xlu0 %10949  ;;  %v10792_v36 = vunpack.i.h.bf16 %v16624_v44  ;;  %v10887_v57 = vunpack.i.h.bf16 %v16709_v29  ;;  %v22193_v60 = vunpack.i.h.bf16 %v22164_v13  ;;  %v22219_v40 = vunpack.i.l.bf16 %v16821_v1 }
 0x43f   :  { %22162 = vst [vmem:[#allocation50_spill] sm:$0xff] %v16844_v28  ;;  %22163 = vst [vmem:[#allocation12_spill] sm:$0xff] %v16846_v51  ;;  %v16878_v3 = vsel %vm168_vm0, %v22169_v24, %v10546_v26  ;;  %v16889_v54 = vsel %vm168_vm0, %v10556_v33, %v21371_v15  ;;  %v3512_v32 = vsel %vm248_vm2, %v22173_v10, %v10621_v62  ;;  %v22174_v26 = vunpack.i.h.bf16 %v16410_v34  ;;  %v22176_v10 = vld [vmem:[#allocation20_spill] sm:$0xff]  ;;  %v22177_v34 = vld [vmem:[#allocation53_spill] sm:$0xff] }
 0x440   :  { %11174 = vrot.lane.b32.xlu0 %v11173_v11, %s12343_s5  ;;  %11179 = vrot.lane.b32.xlu1 %v11178_v19, %s12343_s5  ;;  %v21377_v19 = vunpack.i.h.bf16 %v22168_v22  ;;  %v11203_v15 = vpack.i.bf16 %v22177_v34, %v22176_v10 }
 0x442   :  { %v16858_v56 = vpop.permute.xlu1 %10964  ;;  %v16860_v18 = vpop.permute.xlu0 %10959 }
 0x443   :  { %22165 = vst [vmem:[#allocation60_spill] sm:$0xff] %v16858_v56  ;;  %22166 = vst [vmem:[#allocation8_spill] sm:$0xff] %v16860_v18  ;;  %v22179_v18 = vunpack.i.h.bf16 %v22170_v58  ;;  %v22181_v56 = vunpack.i.l.bf16 %v16622_v53 }
 0x444   :  { %11184 = vrot.lane.b32.xlu0 %v11183_v14, %s12343_s5  ;;  %11189 = vrot.lane.b32.xlu1 %v11188_v47, %s12343_s5  ;;  %v3591_v14 = vsel %vm248_vm2, %v22174_v26, %v10626_v21  ;;  %v3592_v47 = vsel %vm248_vm2, %v10626_v21, %v21372_v17  ;;  %v3513_v26 = vsel %vm248_vm2, %v10621_v62, %v21377_v19  ;;  %v10721_v17 = vunpack.i.l.bf16 %v16568_v20  ;;  %v22180_v19 = vld [vmem:[#allocation21_spill] sm:$0xff] }
 0x445   :  { %v16924_v62 = vsel %vm168_vm0, %v22179_v18, %v10556_v33  ;;  %v22184_v18 = vunpack.i.h.bf16 %v16560_v37 }
 0x446   :  { %v16882_v55 = vpop.permute.xlu1 %10974  ;;  %v16884_v25 = vpop.permute.xlu0 %10969 }
 0x447   :  { %22171 = vst [vmem:[#allocation24_spill] sm:$0xff] %v16882_v55  ;;  %22172 = vst [vmem:[#allocation7_spill] sm:$0xff] %v16884_v25  ;;  %v4509_v25 = vsel %vm51_vm1, %v3512_v32, %v3591_v14  ;;  %v4510_v55 = vsel %vm51_vm1, %v3513_v26, %v3592_v47  ;;  %v10836_v32 = vunpack.i.l.bf16 %v16662_v38  ;;  %v22183_v14 = vunpack.i.l.bf16 %v16720_v43 }
 0x448   :  { %11194 = vrot.lane.b32.xlu0 %v16487_v63, %s12332_s0  ;;  %11199 = vrot.lane.b32.xlu1 %v22175_v6, %s12334_s12  ;;  %v10886_v63 = vunpack.i.l.bf16 %v16709_v29  ;;  %v3758_v29 = vsel %vm411_vm4, %v10792_v36, %v22181_v56  ;;  %v3673_v33 = vsel %vm411_vm4, %v22184_v18, %v10721_v17  ;;  %v22185_v56 = vunpack.i.h.bf16 %v16568_v20 }
 0x449   :  { %v3954_v47 = vsel %vm512_vm5, %v10887_v57, %v22183_v14 }
 0x44a   :  { %v10985_v24 = vpop.permute.xlu1 %10984  ;;  %v16917_v11 = vpop.permute.xlu0 %10979  ;;  %v3674_v44 = vsel %vm411_vm4, %v10721_v17, %v22185_v56  ;;  %v3953_v26 = vsel %vm512_vm5, %v10886_v63, %v10887_v57  ;;  %v3854_v57 = vsel %vm512_vm5, %v10836_v32, %v10837_v59 }
 0x44b   :  { %22178 = vst [vmem:[#allocation17_spill] sm:$0xff] %v16917_v11  ;;  %v3757_v11 = vsel %vm411_vm4, %v22182_v48, %v10792_v36  ;;  %v22186_v48 = vunpack.i.l.bf16 %v16671_v4  ;;  %v11218_v36 = vpack.i.bf16 %v4510_v55, %v4509_v25  ;;  %v10987_v21 = vunpack.i.h.bf16 %v10985_v24 }
 0x44c   :  { %11204 = vrot.lane.b32.xlu0 %v11203_v15, %s12334_s12  ;;  %11209 = vrot.lane.b32.xlu1 %v22175_v6, %s12335_s13  ;;  %v10986_v28 = vunpack.i.l.bf16 %v10985_v24  ;;  %v4529_v51 = vsel %vm51_vm1, %v3673_v33, %v3757_v11  ;;  %v4530_v17 = vsel %vm51_vm1, %v3674_v44, %v3758_v29  ;;  %v10566_v55 = vunpack.i.l.bf16 %v22180_v19 }
 0x44d   :  { %v3855_v38 = vsel %vm512_vm5, %v10837_v59, %v22186_v48  ;;  %v10937_v25 = vunpack.i.h.bf16 %v16796_v5  ;;  %v10936_v24 = vunpack.i.l.bf16 %v16796_v5  ;;  %v22188_v48 = vld [vmem:[#allocation45_spill] sm:$0xff]  ;;  %v22189_v59 = vunpack.i.l.bf16 %v16823_v7 }
 0x44e   :  { %v16952_v6 = vpop.permute.xlu1 %10994  ;;  %v16954_v37 = vpop.permute.xlu0 %10989  ;;  %v4548_v56 = vsel %vm51_vm1, %v3855_v38, %v3954_v47  ;;  %v10562_v14 = vunpack.i.h.bf16 %v22188_v48  ;;  %v10561_v11 = vunpack.i.l.bf16 %v22188_v48  ;;  %v4547_v47 = vsel %vm51_vm1, %v3854_v57, %v3953_v26 }
 0x44f   :  { %22187 = vst [vmem:[#allocation43_spill] sm:$0xff] %v16952_v6  ;;  %v21384_v18 = vunpack.i.l.bf16 %v16954_v37  ;;  %v4033_v33 = vsel %vm602_vm6, %v10937_v25, %v22189_v59  ;;  %v4111_v5 = vsel %vm602_vm6, %v10986_v28, %v10987_v21  ;;  %v11223_v38 = vpack.i.bf16 %v4530_v17, %v4529_v51  ;;  %v22196_v51 = vld [vmem:[#allocation39_spill] sm:$0xff] }
 0x450   :  { %11214 = vrot.lane.b32.xlu0 %v11203_v15, %s12335_s13  ;;  %11219 = vrot.lane.b32.xlu1 %v11218_v36, %s12343_s5  ;;  %v11228_v36 = vpack.i.bf16 %v4548_v56, %v4547_v47  ;;  %v22192_v48 = vunpack.i.l.bf16 %v22170_v58  ;;  %v22194_v26 = vunpack.i.h.bf16 %v22170_v58  ;;  %v21386_v17 = vunpack.i.h.bf16 %v22196_v51  ;;  %v22197_v47 = vld [vmem:[#allocation5_spill] sm:$0xff] }
 0x451   :  { %v4112_v29 = vsel %vm602_vm6, %v10987_v21, %v21384_v18  ;;  %v4566_v21 = vsel %vm51_vm1, %v10936_v24, %v10986_v28  ;;  %v10576_v56 = vunpack.i.l.bf16 %v22196_v51  ;;  %v10572_v13 = vunpack.i.h.bf16 %v22197_v47 }
 0x452   :  { %v16976_v44 = vpop.permute.xlu1 %11004  ;;  %v16978_v15 = vpop.permute.xlu0 %10999  ;;  %v16985_v18 = vsel %vm168_vm0, %v22193_v60, %v22192_v48  ;;  %v22195_v57 = vmov %v22192_v48  ;;  %v4032_v60 = vsel %vm602_vm6, %v10936_v24, %v10937_v25  ;;  %v22198_v58 = vunpack.i.h.bf16 %v22180_v19 }
 0x453   :  { %22190 = vst [vmem:[#allocation20_spill] sm:$0xff] %v16976_v44  ;;  %22191 = vst [vmem:[#allocation53_spill] sm:$0xff] %v16978_v15  ;;  %v16992_v59 = vsel %vm168_vm0, %v22195_v57, %v22194_v26  ;;  %v4568_v44 = vsel %vm51_vm1, %v4033_v33, %v4112_v29  ;;  %v10571_v28 = vunpack.i.l.bf16 %v22197_v47  ;;  %v4546_v29 = vsel %vm51_vm1, %v10836_v32, %v10886_v63  ;;  %v12286_v63 = vld [vmem:[#allocation2 + $0x3c] sm:$0xff] }
 0x454   :  { %11224 = vrot.lane.b32.xlu0 %v11223_v38, %s12343_s5  ;;  %11229 = vrot.lane.b32.xlu1 %v11228_v36, %s12343_s5  ;;  %v17005_v48 = vsel %vm168_vm0, %v10566_v55, %v22198_v58  ;;  %v4567_v33 = vsel %vm51_vm1, %v4032_v60, %v4111_v5  ;;  %v17011_v26 = vsel %vm168_vm0, %v10562_v14, %v10566_v55  ;;  %v22199_v25 = vunpack.i.h.bf16 %v22167_v12 }
 0x455   :  { %v11233_v57 = vpack.i.bf16 %v4568_v44, %v4567_v33  ;;  %v11238_v58 = vpack.i.bf16 %v4566_v21, %v4546_v29  ;;  %v17023_v47 = vsel %vm168_vm0, %v10561_v11, %v10562_v14  ;;  %v10892_v32 = vunpack.i.h.bf16 %v16720_v43  ;;  %v22204_v14 = vld [vmem:[#allocation30_spill] sm:$0xff] }
 0x456   :  { %v17016_v24 = vsel %vm168_vm0, %v22199_v25, %v10561_v11  ;;  %v17018_v38 = vpop.permute.xlu1 %11014  ;;  %v17020_v36 = vpop.permute.xlu0 %11009  ;;  %v10992_v55 = vunpack.i.h.bf16 %v16954_v37  ;;  %v17031_v12 = vsel %vm168_vm0, %v10576_v56, %v21386_v17  ;;  %v17034_v5 = vsel %vm168_vm0, %v10572_v13, %v10576_v56  ;;  %v22205_v11 = vld [vmem:[#allocation19_spill] sm:$0xff] }
 0x457   :  { %22200 = vst [vmem:[#allocation21_spill] sm:$0xff] %v17018_v38  ;;  %22201 = vst [vmem:[#allocation45_spill] sm:$0xff] %v17020_v36  ;;  %v11248_v21 = vpack.i.bf16 %v22205_v11, %v22204_v14  ;;  %v22206_v60 = vunpack.i.h.bf16 %v22180_v19  ;;  %v10842_v25 = vunpack.i.h.bf16 %v16671_v4  ;;  %v10942_v56 = vunpack.i.h.bf16 %v16823_v7  ;;  %v22209_v19 = vld [vmem:[#allocation16_spill] sm:$0xff] }
 0x458   :  { %22202 = vst [vmem:[#allocation39_spill] sm:$0xff] %v17031_v12  ;;  %22203 = vst [vmem:[#allocation5_spill] sm:$0xff] %v17034_v5  ;;  %11234 = vrot.lane.b32.xlu0 %v11233_v57, %s12343_s5  ;;  %11239 = vrot.lane.b32.xlu1 %v11238_v58, %s12343_s5  ;;  %v17050_v17 = vsel %vm168_vm0, %v10571_v28, %v10572_v13  ;;  %v17064_v33 = vsel %vm51_vm1, %v12286_v63, %v22177_v34  ;;  %v22210_v38 = vunpack.i.l.bf16 %v16718_v49 }
 0x459   :  { %v17044_v29 = vsel %vm168_vm0, %v22206_v60, %v10571_v28  ;;  %22208 = vst [vmem:[#allocation19_spill] sm:$0xff] %v17050_v17  ;;  %v17060_v60 = vsel %vm51_vm1, %v22209_v19, %v22176_v10  ;;  %v22211_v28 = vunpack.i.l.bf16 %v16720_v43  ;;  %v22212_v36 = vunpack.i.l.bf16 %v16954_v37  ;;  %v22222_v17 = vld [vmem:[#allocation27_spill] sm:$0xff] }
 0x45a   :  { %22207 = vst [vmem:[#allocation30_spill] sm:$0xff] %v17044_v29  ;;  %v17053_v58 = vpop.permute.xlu1 %11024  ;;  %v17055_v44 = vpop.permute.xlu0 %11019  ;;  %v3956_v13 = vsel %vm512_vm5, %v10892_v32, %v22210_v38  ;;  %v22213_v10 = vunpack.i.l.bf16 %v16952_v6  ;;  %v22214_v38 = vld [vmem:[#allocation28_spill] sm:$0xff]  ;;  %v22215_v43 = vunpack.i.l.bf16 %v16669_v27  ;;  %v4035_v6 = vsel %vm602_vm6, %v10942_v56, %v22219_v40 }
 0x45b   :  { %v3955_v57 = vsel %vm512_vm5, %v22211_v28, %v10892_v32  ;;  %v4113_v15 = vsel %vm602_vm6, %v22212_v36, %v10992_v55  ;;  %v11022_v34 = vunpack.i.h.bf16 %v17055_v44  ;;  %v22216_v36 = vunpack.i.l.bf16 %v16671_v4 }
 0x45c   :  { %v4114_v19 = vsel %vm602_vm6, %v10992_v55, %v22213_v10  ;;  %11244 = vrot.lane.b32.xlu0 %v22214_v38, %s12334_s12  ;;  %11249 = vrot.lane.b32.xlu1 %v11248_v21, %s12334_s12  ;;  %v3857_v37 = vsel %vm512_vm5, %v10842_v25, %v22215_v43  ;;  %v22217_v55 = vunpack.i.l.bf16 %v16823_v7  ;;  %v22218_v10 = vld [vmem:[#allocation36_spill] sm:$0xff]  ;;  %v22221_v40 = vunpack.i.l.bf16 %v17055_v44 }
 0x45d   :  { %v3856_v32 = vsel %vm512_vm5, %v22216_v36, %v10842_v25  ;;  %v17096_v63 = vsel %vm51_vm1, %v22218_v10, %v22204_v14  ;;  %v4550_v25 = vsel %vm51_vm1, %v3857_v37, %v3956_v13  ;;  %v21399_v36 = vunpack.i.h.bf16 %v17053_v58 }
 0x45e   :  { %v4034_v28 = vsel %vm602_vm6, %v22217_v55, %v10942_v56  ;;  %v17101_v27 = vpop.permute.xlu1 %11034  ;;  %v11030_v43 = vpop.permute.xlu0 %11029  ;;  %v4549_v4 = vsel %vm51_vm1, %v3856_v32, %v3955_v57  ;;  %v4570_v14 = vsel %vm51_vm1, %v4035_v6, %v4114_v19  ;;  %v22220_v10 = vunpack.i.l.bf16 %v17053_v58 }
 0x45f   :  { %v4569_v7 = vsel %vm51_vm1, %v4034_v28, %v4113_v15  ;;  %v11032_v55 = vunpack.i.h.bf16 %v11030_v43  ;;  %v11031_v49 = vunpack.i.l.bf16 %v11030_v43  ;;  %v4190_v56 = vsel %vm762_vm8, %v22221_v40, %v11022_v34  ;;  %v12287_v15 = vld [vmem:[#allocation2 + $0x44] sm:$0xff] }
 0x460   :  { %v4191_v1 = vsel %vm762_vm8, %v11022_v34, %v22220_v10  ;;  %11254 = vrot.lane.b32.xlu0 %v22214_v38, %s12335_s13  ;;  %11259 = vrot.lane.b32.xlu1 %v11248_v21, %s12335_s13  ;;  %v17119_v57 = vsel %vm51_vm1, %v12287_v15, %v22205_v11  ;;  %v11037_v6 = vunpack.i.h.bf16 %v17101_v27  ;;  %v11036_v13 = vunpack.i.l.bf16 %v17101_v27 }
 0x461   :  { %v4269_v19 = vsel %vm762_vm8, %v21399_v36, %v11031_v49  ;;  %v4270_v34 = vsel %vm762_vm8, %v11031_v49, %v11032_v55  ;;  %v11263_v38 = vpack.i.bf16 %v4550_v25, %v4549_v4  ;;  %v11268_v28 = vpack.i.bf16 %v4570_v14, %v4569_v7  ;;  %v22223_v49 = vld [vmem:[#allocation10_spill] sm:$0xff]  ;;  %v22224_v36 = vld [vmem:[#allocation29_spill] sm:$0xff]  ;;  %v12288_v25 = vld [vmem:[#allocation2 + $0x4c] sm:$0xff] }
 0x462   :  { %v11045_v37 = vpop.permute.xlu1 %11044  ;;  %v11040_v32 = vpop.permute.xlu0 %11039  ;;  %v4587_v21 = vsel %vm51_vm1, %v4190_v56, %v4269_v19  ;;  %v4588_v43 = vsel %vm51_vm1, %v4191_v1, %v4270_v34  ;;  %v10616_v29 = vunpack.i.l.bf16 %v22222_v17  ;;  %v17136_v4 = vsel %vm51_vm1, %v22224_v36, %v22223_v49  ;;  %v22230_v49 = vld [vmem:[#allocation56_spill] sm:$0xff] }
 0x463   :  { %v11047_v11 = vunpack.i.h.bf16 %v11045_v37  ;;  %v11046_v10 = vunpack.i.l.bf16 %v11045_v37  ;;  %v11042_v40 = vunpack.i.h.bf16 %v11040_v32  ;;  %v11041_v15 = vunpack.i.l.bf16 %v11040_v32  ;;  %22225 = vst [vmem:[#allocation16_spill] sm:$0xff] %v17136_v4 }
 0x464   :  { %11264 = vrot.lane.b32.xlu0 %v11263_v38, %s12343_s5  ;;  %11269 = vrot.lane.b32.xlu1 %v11268_v28, %s12343_s5  ;;  %v17140_v1 = vsel %vm51_vm1, %v12288_v25, %v16499_v52  ;;  %v4348_v7 = vsel %vm842_vm9, %v11036_v13, %v11037_v6  ;;  %v11273_v32 = vpack.i.bf16 %v4588_v43, %v4587_v21  ;;  %v22229_v28 = vld [vmem:[#allocation15_spill] sm:$0xff]  ;;  %v22232_v4 = vunpack.i.h.bf16 %v22222_v17 }
 0x465   :  { %22226 = vst [vmem:[#allocation28_spill] sm:$0xff] %v17140_v1  ;;  %v4428_v14 = vsel %vm842_vm9, %v11046_v10, %v11047_v11  ;;  %v4427_v56 = vsel %vm842_vm9, %v11042_v40, %v11046_v10  ;;  %v4349_v19 = vsel %vm842_vm9, %v11037_v6, %v11041_v15  ;;  %v17154_v25 = vpack.i.bf16 %v22230_v49, %v22229_v28 }
 0x466   :  { %v17146_v34 = vpop.permute.xlu1 %11054  ;;  %v17148_v37 = vpop.permute.xlu0 %11049  ;;  %v4607_v36 = vsel %vm51_vm1, %v4348_v7, %v4427_v56  ;;  %v4608_v38 = vsel %vm51_vm1, %v4349_v19, %v4428_v14  ;;  %v3357_v21 = vsel %vm168_vm0, %v10616_v29, %v22232_v4  ;;  %v22233_v43 = vunpack.i.h.bf16 %v16440_v2  ;;  %v22236_v2 = vld [vmem:[#allocation14_spill] sm:$0xff] }
 0x467   :  { %22227 = vst [vmem:[#allocation36_spill] sm:$0xff] %v17146_v34  ;;  %22228 = vst [vmem:[#allocation27_spill] sm:$0xff] %v17148_v37  ;;  %v21401_v27 = vunpack.i.h.bf16 %v17146_v34  ;;  %v11056_v1 = vunpack.i.l.bf16 %v17146_v34  ;;  %v11051_v6 = vunpack.i.l.bf16 %v17148_v37  ;;  %v11278_v14 = vpack.i.bf16 %v4608_v38, %v4607_v36 }
 0x468   :  { %22231 = vst [vmem:[#allocation10_spill] sm:$0xff] %v17154_v25  ;;  %v3356_v7 = vsel %vm168_vm0, %v22233_v43, %v10616_v29  ;;  %11274 = vrot.lane.b32.xlu0 %v11273_v32, %s12343_s5  ;;  %v22234_v10 = vunpack.i.l.bf16 %v17053_v58  ;;  %v22235_v12 = vunpack.i.h.bf16 %v17148_v37  ;;  %v10632_v5 = vunpack.i.h.bf16 %v22236_v2  ;;  %v22237_v32 = vld [vmem:[#allocation54_spill] sm:$0xff] }
 0x469   :  { %v4271_v56 = vsel %vm762_vm8, %v11032_v55, %v11056_v1  ;;  %v4272_v19 = vsel %vm762_vm8, %v11056_v1, %v21401_v27  ;;  %v10631_v29 = vunpack.i.l.bf16 %v22236_v2  ;;  %v10637_v36 = vunpack.i.h.bf16 %v22237_v32  ;;  %11279 = vrot.lane.b32.xlu1 %v11278_v14, %s12343_s5 }
 0x46a   :  { %v4192_v25 = vsel %vm762_vm8, %v22234_v10, %v11051_v6  ;;  %v4193_v4 = vsel %vm762_vm8, %v11051_v6, %v22235_v12  ;;  %v4606_v55 = vsel %vm51_vm1, %v11036_v13, %v11042_v40  ;;  %v17182_v38 = vpop.permute.xlu1 %11064  ;;  %v17184_v1 = vpop.permute.xlu0 %11059  ;;  %v10636_v2 = vunpack.i.l.bf16 %v22237_v32 }
 0x46b   :  { %22238 = vst [vmem:[#allocation29_spill] sm:$0xff] %v17184_v1  ;;  %v11066_v43 = vunpack.i.l.bf16 %v17182_v38  ;;  %v11061_v6 = vunpack.i.l.bf16 %v17184_v1  ;;  %v22239_v27 = vunpack.i.h.bf16 %v17053_v58  ;;  %v22240_v13 = vunpack.i.l.bf16 %v17055_v44 }
 0x46c   :  { %4712 = vrot.lane.b32.xlu0 %v17060_v60, %s12337_s14  ;;  %v4589_v14 = vsel %vm51_vm1, %v4192_v25, %v4271_v56  ;;  %v4590_v10 = vsel %vm51_vm1, %v4193_v4, %v4272_v19  ;;  %v22241_v12 = vunpack.i.h.bf16 %v17182_v38  ;;  %v22242_v58 = vunpack.i.h.bf16 %v17184_v1 }
 0x46d   :  { %v4586_v40 = vsel %vm51_vm1, %v22240_v13, %v22239_v27  ;;  %v4429_v37 = vsel %vm842_vm9, %v11047_v11, %v11066_v43  ;;  %v4350_v32 = vsel %vm842_vm9, %v11041_v15, %v11061_v6  ;;  %v10656_v27 = vunpack.i.l.bf16 %v16514_v46  ;;  %4714 = vrot.lane.b32.xlu1 %v17064_v33, %s12337_s14 }
 0x46e   :  { %v4430_v34 = vsel %vm842_vm9, %v11066_v43, %v22241_v12  ;;  %v4351_v44 = vsel %vm842_vm9, %v11061_v6, %v22242_v58  ;;  %v10652_v60 = vunpack.i.h.bf16 %v16516_v0  ;;  %v17212_v25 = vpop.permute.xlu1 %4688  ;;  %v17214_v11 = vpop.permute.xlu0 %4686  ;;  %v11283_v56 = vpack.i.bf16 %v4606_v55, %v4586_v40 }
 0x46f   :  { %v17218_v19 = vsel %vm51_vm1, %v3356_v7, %v16878_v3  ;;  %v10651_v15 = vunpack.i.l.bf16 %v16516_v0  ;;  %v4609_v4 = vsel %vm51_vm1, %v4350_v32, %v4429_v37  ;;  %v4610_v43 = vsel %vm51_vm1, %v4351_v44, %v4430_v34  ;;  %v22244_v34 = vld [vmem:[#allocation57_spill] sm:$0xff] }
 0x470   :  { %v17225_v12 = vsel %vm51_vm1, %v3357_v21, %v16873_v31  ;;  %v3515_v33 = vsel %vm248_vm2, %v10631_v29, %v10632_v5  ;;  %v10657_v6 = vunpack.i.h.bf16 %v16514_v46  ;;  %v10661_v55 = vunpack.i.l.bf16 %v16524_v30  ;;  %11284 = vrot.lane.b32.xlu0 %v11283_v56, %s12343_s5 }
 0x471   :  { %v11288_v3 = vpack.i.bf16 %v4590_v10, %v4589_v14  ;;  %v3594_v7 = vsel %vm248_vm2, %v10636_v2, %v10637_v36  ;;  %v22243_v0 = vunpack.i.h.bf16 %v16495_v50  ;;  %v10641_v13 = vunpack.i.l.bf16 %v22244_v34 }
 0x472   :  { %v10662_v31 = vunpack.i.h.bf16 %v16524_v30  ;;  %v22245_v21 = vunpack.i.h.bf16 %v22168_v22  ;;  %v10642_v32 = vunpack.i.h.bf16 %v22244_v34  ;;  %v3360_v58 = vsel %vm168_vm0, %v10652_v60, %v10656_v27  ;;  %v17243_v10 = vpop.permute.xlu1 %4692  ;;  %v17245_v14 = vpop.permute.xlu0 %4690 }
 0x473   :  { %v3593_v37 = vsel %vm248_vm2, %v22243_v0, %v10636_v2  ;;  %11289 = vrot.lane.b32.xlu1 %v11288_v3, %s12343_s5  ;;  %v11293_v50 = vpack.i.bf16 %v4610_v43, %v4609_v4  ;;  %v22246_v2 = vunpack.i.h.bf16 %v22222_v17  ;;  %v3359_v30 = vsel %vm168_vm0, %v10651_v15, %v10652_v60  ;;  %v22247_v43 = vld [vmem:[#allocation70_spill] sm:$0xff] }
 0x474   :  { %v3514_v40 = vsel %vm248_vm2, %v22245_v21, %v10631_v29  ;;  %v10672_v22 = vunpack.i.h.bf16 %v16522_v61  ;;  %v10671_v29 = vunpack.i.l.bf16 %v16522_v61  ;;  %v3361_v56 = vsel %vm168_vm0, %v10656_v27, %v10657_v6 }
 0x475   :  { %v3358_v44 = vsel %vm168_vm0, %v22246_v2, %v10651_v15  ;;  %v3516_v3 = vsel %vm248_vm2, %v10632_v5, %v10661_v55  ;;  %11294 = vrot.lane.b32.xlu0 %v11293_v50, %s12343_s5  ;;  %v17259_v4 = vsel %vm51_vm1, %v3514_v40, %v3593_v37  ;;  %v17262_v17 = vsel %vm51_vm1, %v3515_v33, %v3594_v7  ;;  %v12289_v50 = vld [vmem:[%s21017_s1 + $0x48] sm:$0xff] }
 0x476   :  { %v10647_v60 = vunpack.i.h.bf16 %v22247_v43  ;;  %v10646_v15 = vunpack.i.l.bf16 %v22247_v43  ;;  %v3595_v0 = vsel %vm248_vm2, %v10637_v36, %v10641_v13  ;;  %v3517_v34 = vsel %vm248_vm2, %v10661_v55, %v10662_v31  ;;  %v17271_v5 = vpop.permute.xlu1 %11069  ;;  %v17273_v37 = vpop.permute.xlu0 %4694  ;;  %v22251_v2 = vld [vmem:[#allocation31_spill] sm:$0xff] }
 0x477   :  { %v3596_v27 = vsel %vm248_vm2, %v10641_v13, %v10642_v32  ;;  %4716 = vrot.lane.b32.xlu1 %v17096_v63, %s12337_s14  ;;  %v17277_v33 = vsel %vm51_vm1, %v3358_v44, %v16985_v18  ;;  %v17281_v7 = vsel %vm51_vm1, %v3359_v30, %v16992_v59  ;;  %v17285_v36 = vsel %vm51_vm1, %v3360_v58, %v16924_v62  ;;  %v22253_v30 = vld [vmem:[#allocation67_spill] sm:$0xff] }
 0x478   :  { %22248 = vst [vmem:[#allocation15_spill] sm:$0xff] %v17285_v36  ;;  %v3519_v63 = vsel %vm248_vm2, %v10671_v29, %v10672_v22  ;;  %v3518_v55 = vsel %vm248_vm2, %v10662_v31, %v10671_v29  ;;  %v17292_v13 = vsel %vm51_vm1, %v3516_v3, %v3595_v0  ;;  %v17296_v18 = vsel %vm51_vm1, %v3361_v56, %v16889_v54  ;;  %v22254_v29 = vld [vmem:[#allocation58_spill] sm:$0xff] }
 0x479   :  { %22249 = vst [vmem:[#allocation56_spill] sm:$0xff] %v17296_v18  ;;  %v21404_v59 = vunpack.i.h.bf16 %v16530_v16  ;;  %v10676_v21 = vunpack.i.l.bf16 %v16530_v16  ;;  %v10667_v62 = vunpack.i.h.bf16 %v16532_v35  ;;  %4718 = vrot.lane.b32.xlu0 %v17119_v57, %s12337_s14  ;;  %v17304_v40 = vsel %vm51_vm1, %v3517_v34, %v3596_v27  ;;  %v22261_v36 = vld [vmem:[#allocation78_spill] sm:$0xff] }
 0x47a   :  { %v11303_v31 = vpack.i.bf16 %v17225_v12, %v17218_v19  ;;  %v17313_v54 = vsel %vm51_vm1, %v22229_v28, %v22230_v49  ;;  %v17320_v57 = vsel %vm51_vm1, %v22251_v2, %v12289_v50  ;;  %v3598_v44 = vsel %vm248_vm2, %v10646_v15, %v10647_v60  ;;  %v17329_v28 = vpop.permute.xlu1 %11079  ;;  %v17331_v49 = vpop.permute.xlu0 %11074 }
 0x47b   :  { %22250 = vst [vmem:[#allocation14_spill] sm:$0xff] %v17313_v54  ;;  %22252 = vst [vmem:[#allocation54_spill] sm:$0xff] %v17320_v57  ;;  %v3597_v19 = vsel %vm248_vm2, %v10642_v32, %v10646_v15  ;;  %v10666_v12 = vunpack.i.l.bf16 %v16532_v35  ;;  %v22255_v56 = vpack.i.bf16 %v22253_v30, %v22254_v29  ;;  %v17343_v15 = vsel %vm51_vm1, %v3519_v63, %v3598_v44  ;;  %v22258_v30 = vld [vmem:[#allocation62_spill] sm:$0xff]  ;;  %v22308_v57 = vld [vmem:[#allocation12_spill] sm:$0xff] }
 0x47c   :  { %v17340_v35 = vsel %vm51_vm1, %v3518_v55, %v3597_v19  ;;  %22257 = vst [vmem:[#allocation70_spill] sm:$0xff] %v17343_v15  ;;  %v17348_v0 = vsel %vm248_vm2, %v10676_v21, %v21404_v59  ;;  %v17351_v34 = vsel %vm248_vm2, %v10667_v62, %v10676_v21  ;;  %v21405_v27 = vunpack.i.h.bf16 %v16538_v9 }
 0x47d   :  { %11299 = vrot.lane.b32.xlu1 %v22255_v56, %s12343_s5  ;;  %22256 = vst [vmem:[#allocation57_spill] sm:$0xff] %v17340_v35  ;;  %v10686_v50 = vunpack.i.l.bf16 %v16538_v9  ;;  %11304 = vrot.lane.b32.xlu0 %v11303_v31, %s12343_s5  ;;  %v21406_v55 = vunpack.i.h.bf16 %v16540_v45  ;;  %v10692_v2 = vunpack.i.h.bf16 %v16548_v39  ;;  %v10691_v63 = vunpack.i.l.bf16 %v16548_v39 }
 0x47e   :  { %v4726_v44 = vsel %vm922_vm10, %v17214_v11, %v17212_v25  ;;  %v3599_v19 = vsel %vm248_vm2, %v10647_v60, %v10666_v12  ;;  %v3600_v21 = vsel %vm248_vm2, %v10666_v12, %v10667_v62  ;;  %v10697_v29 = vunpack.i.h.bf16 %v22258_v30  ;;  %v17366_v56 = vpop.permute.xlu1 %11089  ;;  %v17368_v31 = vpop.permute.xlu0 %11084 }
 0x47f   :  { %v10696_v39 = vunpack.i.l.bf16 %v22258_v30  ;;  %v10702_v43 = vunpack.i.h.bf16 %v16556_v41  ;;  %v10701_v59 = vunpack.i.l.bf16 %v16556_v41  ;;  %v4727_v60 = vsel %vm922_vm10, %v17212_v25, %v17245_v14  ;;  %v12290_v30 = vld [vmem:[%s21017_s1 + $0x4c] sm:$0xff] }
 0x480   :  { %v17381_v62 = vsel %vm248_vm2, %v10686_v50, %v21405_v27  ;;  %v10681_v12 = vunpack.i.l.bf16 %v16540_v45  ;;  %v11308_v41 = vpack.i.bf16 %v12290_v30, %v16499_v52  ;;  %v17393_v25 = vsel %vm248_vm2, %v21406_v55, %v10686_v50 }
 0x481   :  { %5227 = vrot.lane.b32.xlu1 %v4726_v44, %s12343_s5  ;;  %5229 = vrot.lane.b32.xlu0 %v4727_v60, %s12343_s5  ;;  %v3362_v32 = vsel %vm168_vm0, %v10657_v6, %v10691_v63  ;;  %v3363_v27 = vsel %vm168_vm0, %v10691_v63, %v10692_v2  ;;  %v10711_v58 = vunpack.i.l.bf16 %v16554_v42  ;;  %v10726_v44 = vunpack.i.l.bf16 %v16566_v8  ;;  %v22260_v60 = vld [vmem:[#allocation48_spill] sm:$0xff] }
 0x482   :  { %v10797_v30 = vunpack.i.h.bf16 %v16622_v53  ;;  %v17406_v50 = vpop.permute.xlu1 %11099  ;;  %v17408_v46 = vpop.permute.xlu0 %11094  ;;  %v3365_v6 = vsel %vm168_vm0, %v10696_v39, %v10697_v29  ;;  %v3364_v63 = vsel %vm168_vm0, %v10692_v2, %v10696_v39  ;;  %v3520_v55 = vsel %vm248_vm2, %v10672_v22, %v10701_v59 }
 0x483   :  { %22259 = vst [vmem:[#allocation31_spill] sm:$0xff] %v17406_v50  ;;  %v3521_v3 = vsel %vm248_vm2, %v10701_v59, %v10702_v43  ;;  %v10737_v35 = vunpack.i.h.bf16 %v22260_v60  ;;  %v10736_v15 = vunpack.i.l.bf16 %v22260_v60  ;;  %v22262_v18 = vunpack.i.l.bf16 %v16636_v23  ;;  %v22266_v50 = vld [vmem:[#allocation76_spill] sm:$0xff] }
 0x484   :  { %v3522_v2 = vsel %vm248_vm2, %v10702_v43, %v10711_v58  ;;  %v10731_v61 = vunpack.i.l.bf16 %v22261_v36  ;;  %v17427_v22 = vsel %vm51_vm1, %v3362_v32, %v17016_v24  ;;  %v17431_v59 = vsel %vm51_vm1, %v3363_v27, %v17023_v47  ;;  %v22267_v24 = vld [vmem:[#allocation77_spill] sm:$0xff] }
 0x485   :  { %5225 = vrot.lane.b32.xlu1 %v17214_v11, %s12343_s5  ;;  %v10732_v11 = vunpack.i.h.bf16 %v22261_v36  ;;  %v3760_v54 = vsel %vm411_vm4, %v10797_v30, %v22262_v18  ;;  %11309 = vrot.lane.b32.xlu0 %v11308_v41, %s12332_s0  ;;  %v22263_v39 = vunpack.i.h.bf16 %v16554_v42  ;;  %v22264_v18 = vunpack.i.h.bf16 %v16566_v8 }
 0x486   :  { %v22265_v43 = vunpack.i.l.bf16 %v16622_v53  ;;  %v22268_v32 = vpack.i.bf16 %v22266_v50, %v22267_v24  ;;  %v17446_v1 = vpop.permute.xlu1 %4696  ;;  %v17448_v47 = vpop.permute.xlu0 %11104  ;;  %v17459_v53 = vsel %vm51_vm1, %v3521_v3, %v3600_v21  ;;  %v22271_v50 = vunpack.i.h.bf16 %v16568_v20 }
 0x487   :  { %v3523_v60 = vsel %vm248_vm2, %v10711_v58, %v22263_v39  ;;  %v3676_v41 = vsel %vm411_vm4, %v10726_v44, %v22264_v18  ;;  %v17452_v58 = vsel %vm51_vm1, %v3364_v63, %v17011_v26  ;;  %v17456_v39 = vsel %vm51_vm1, %v3520_v55, %v3599_v19 }
 0x488   :  { %v3759_v36 = vsel %vm411_vm4, %v22265_v43, %v10797_v30  ;;  %22269 = vst [vmem:[#allocation67_spill] sm:$0xff] %v17452_v58  ;;  %v4532_v27 = vsel %vm51_vm1, %v3676_v41, %v3760_v54  ;;  %v17463_v30 = vsel %vm51_vm1, %v3365_v6, %v17005_v48  ;;  %v3675_v18 = vsel %vm411_vm4, %v22271_v50, %v10726_v44  ;;  %v22279_v6 = vld [vmem:[#allocation80_spill] sm:$0xff]  ;;  %v22286_v50 = vld [vmem:[#allocation30_spill] sm:$0xff] }
 0x489   :  { %11314 = vrot.lane.b32.xlu1 %v22268_v32, %s12343_s5  ;;  %22270 = vst [vmem:[#allocation58_spill] sm:$0xff] %v17463_v30  ;;  %v3369_v43 = vsel %vm168_vm0, %v10736_v15, %v10737_v35  ;;  %v3368_v26 = vsel %vm168_vm0, %v10732_v11, %v10736_v15  ;;  %v22272_v54 = vpack.i.bf16 %v17281_v7, %v17277_v33  ;;  %v22274_v48 = vunpack.i.h.bf16 %v22196_v51  ;;  %v22277_v7 = vld [vmem:[#allocation79_spill] sm:$0xff] }
 0x48a   :  { %v17476_v3 = vsel %vm51_vm1, %v3522_v2, %v17351_v34  ;;  %v3366_v20 = vsel %vm168_vm0, %v10697_v29, %v10731_v61  ;;  %v4531_v19 = vsel %vm51_vm1, %v3675_v18, %v3759_v36  ;;  %v17487_v15 = vsel %vm51_vm1, %v3523_v60, %v17348_v0  ;;  %v17498_v29 = vpop.permute.xlu0 %4698  ;;  %v22280_v2 = vld [vmem:[#allocation5_spill] sm:$0xff]  ;;  %v22314_v30 = vld [vmem:[#allocation91_spill] sm:$0xff] }
 0x48b   :  { %11319 = vrot.lane.b32.xlu0 %v22272_v54, %s12343_s5  ;;  %22273 = vst [vmem:[#allocation62_spill] sm:$0xff] %v17476_v3  ;;  %v17481_v55 = vsel %vm51_vm1, %v10737_v35, %v22274_v48  ;;  %22276 = vst [vmem:[#allocation78_spill] sm:$0xff] %v17487_v15  ;;  %v3367_v33 = vsel %vm168_vm0, %v10731_v61, %v10732_v11  ;;  %v10752_v21 = vunpack.i.h.bf16 %v22277_v7  ;;  %v10751_v34 = vunpack.i.l.bf16 %v22277_v7  ;;  %v17496_v35 = vpop.permute.xlu1 %4700  ;;  %v22282_v61 = vld [vmem:[#allocation39_spill] sm:$0xff]  ;;  %v22312_v3 = vld [vmem:[#allocation98_spill] sm:$0xff] }
 0x48c   :  { %22275 = vst [vmem:[#allocation48_spill] sm:$0xff] %v17481_v55  ;;  %v22278_v51 = vpack.i.bf16 %v17262_v17, %v17259_v4  ;;  %v11328_v44 = vpack.i.bf16 %v4532_v27, %v4531_v19  ;;  %v10742_v63 = vunpack.i.h.bf16 %v22279_v6  ;;  %v10741_v0 = vunpack.i.l.bf16 %v22279_v6  ;;  %v22288_v54 = vld [vmem:[#allocation19_spill] sm:$0xff] }
 0x48d   :  { %v17504_v11 = vsel %vm51_vm1, %v3368_v26, %v22280_v2  ;;  %v17508_v60 = vsel %vm51_vm1, %v3369_v43, %v22282_v61  ;;  %v22284_v4 = vunpack.i.h.bf16 %v16530_v16  ;;  %v22285_v41 = vunpack.i.h.bf16 %v16540_v45  ;;  %v22293_v61 = vld [vmem:[#allocation49_spill] sm:$0xff] }
 0x48e   :  { %11324 = vrot.lane.b32.xlu1 %v22278_v51, %s12343_s5  ;;  %22281 = vst [vmem:[#allocation76_spill] sm:$0xff] %v17504_v11  ;;  %22283 = vst [vmem:[#allocation77_spill] sm:$0xff] %v17508_v60  ;;  %v4728_v27 = vsel %vm922_vm10, %v17245_v14, %v17243_v10  ;;  %v17528_v45 = vsel %vm51_vm1, %v3366_v20, %v22286_v50  ;;  %v3527_v18 = vsel %vm248_vm2, %v10751_v34, %v10752_v21  ;;  %v17536_v26 = vpop.permute.xlu0 %4702  ;;  %v22295_v50 = vld [vmem:[#allocation82_spill] sm:$0xff] }
 0x48f   :  { %v3603_v17 = vsel %vm248_vm2, %v22284_v4, %v10681_v12  ;;  %v3604_v36 = vsel %vm248_vm2, %v10681_v12, %v22285_v41  ;;  %11329 = vrot.lane.b32.xlu0 %v11328_v44, %s12343_s5  ;;  %22287 = vst [vmem:[#allocation79_spill] sm:$0xff] %v17528_v45  ;;  %v17534_v43 = vpop.permute.xlu1 %11109  ;;  %v17540_v14 = vsel %vm51_vm1, %v3367_v33, %v22288_v54  ;;  %v22290_v19 = vunpack.i.h.bf16 %v16538_v9  ;;  %v12291_v9 = vld [vmem:[%s21017_s1 + $0x44] sm:$0xff]  ;;  %v22301_v12 = vld [vmem:[#allocation97_spill] sm:$0xff] }
 0x490   :  { %22289 = vst [vmem:[#allocation80_spill] sm:$0xff] %v17540_v14  ;;  %v3526_v51 = vsel %vm248_vm2, %v10742_v63, %v10751_v34  ;;  %v22292_v44 = vunpack.i.h.bf16 %v16554_v42  ;;  %v4729_v33 = vsel %vm922_vm10, %v17243_v10, %v17273_v37  ;;  %v3525_v2 = vsel %vm248_vm2, %v10741_v0, %v10742_v63  ;;  %v22313_v14 = vld [vmem:[#allocation69_spill] sm:$0xff] }
 0x491   :  { %v17549_v7 = vsel %vm51_vm1, %v10752_v21, %v22290_v19  ;;  %v21413_v4 = vunpack.i.l.bf16 %v22293_v61  ;;  %v10802_v41 = vunpack.i.h.bf16 %v16636_v23  ;;  %v11338_v42 = vpack.i.bf16 %v16499_v52, %v12291_v9  ;;  %v22294_v21 = vld [vmem:[#allocation81_spill] sm:$0xff]  ;;  %v22297_v19 = vld [vmem:[#allocation34_spill] sm:$0xff] }
 0x492   :  { %5231 = vrot.lane.b32.xlu1 %v4728_v27, %s12343_s5  ;;  %22291 = vst [vmem:[#allocation5_spill] sm:$0xff] %v17549_v7  ;;  %v3524_v6 = vsel %vm248_vm2, %v22292_v44, %v10741_v0  ;;  %v21418_v34 = vunpack.i.h.bf16 %v22294_v21  ;;  %v10756_v27 = vunpack.i.l.bf16 %v22294_v21  ;;  %v10747_v10 = vunpack.i.h.bf16 %v22295_v50  ;;  %v22296_v0 = vld [vmem:[#allocation99_spill] sm:$0xff] }
 0x493   :  { %5233 = vrot.lane.b32.xlu0 %v4729_v33, %s12343_s5  ;;  %v10746_v63 = vunpack.i.l.bf16 %v22295_v50  ;;  %v10901_v54 = vunpack.i.l.bf16 %v22296_v0  ;;  %v17573_v44 = vpop.permute.xlu1 %11119  ;;  %v17575_v33 = vpop.permute.xlu0 %11114  ;;  %v17580_v9 = vsel %vm51_vm1, %v3524_v6, %v3603_v17  ;;  %v17584_v20 = vsel %vm51_vm1, %v3526_v51, %v17393_v25  ;;  %v22300_v50 = vld [vmem:[#allocation92_spill] sm:$0xff]  ;;  %v22305_v51 = vld [vmem:[#allocation53_spill] sm:$0xff]  ;;  %v22309_v7 = vld [vmem:[#allocation43_spill] sm:$0xff] }
 0x494   :  { %22298 = vst [vmem:[#allocation39_spill] sm:$0xff] %v17580_v9  ;;  %22299 = vst [vmem:[#allocation30_spill] sm:$0xff] %v17584_v20  ;;  %v10851_v48 = vunpack.i.l.bf16 %v22300_v50  ;;  %v10897_v32 = vunpack.i.h.bf16 %v22301_v12  ;;  %v17589_v16 = vsel %vm51_vm1, %v3525_v2, %v3604_v36  ;;  %v17593_v24 = vsel %vm51_vm1, %v3527_v18, %v17381_v62 }
 0x495   :  { %22302 = vst [vmem:[#allocation19_spill] sm:$0xff] %v17589_v16  ;;  %22303 = vst [vmem:[#allocation49_spill] sm:$0xff] %v17593_v24  ;;  %v3762_v17 = vsel %vm411_vm4, %v10802_v41, %v21413_v4  ;;  %v22304_v6 = vunpack.i.l.bf16 %v16636_v23  ;;  %v11001_v52 = vunpack.i.l.bf16 %v22305_v51  ;;  %v17606_v36 = vsel %vm411_vm4, %v10756_v27, %v21418_v34  ;;  %v22307_v4 = vld [vmem:[#allocation90_spill] sm:$0xff]  ;;  %v22352_v16 = vld [vmem:[#allocation93_spill] sm:$0xff] }
 0x496   :  { %11334 = vrot.lane.b32.xlu1 %v22297_v19, %s12334_s12  ;;  %v17609_v62 = vsel %vm411_vm4, %v10747_v10, %v10756_v27  ;;  %v22306_v18 = vunpack.i.h.bf16 %v16566_v8  ;;  %v10847_v23 = vunpack.i.h.bf16 %v22307_v4  ;;  %v10951_v55 = vunpack.i.l.bf16 %v22308_v57 }
 0x497   :  { %v3761_v25 = vsel %vm411_vm4, %v22304_v6, %v10802_v41  ;;  %11339 = vrot.lane.b32.xlu0 %v11338_v42, %s12334_s12  ;;  %v3678_v41 = vsel %vm411_vm4, %v10746_v63, %v10747_v10  ;;  %v3958_v6 = vsel %vm512_vm5, %v10897_v32, %v10901_v54  ;;  %v10997_v11 = vunpack.i.h.bf16 %v22309_v7  ;;  %v17621_v34 = vpop.permute.xlu1 %11129  ;;  %v17623_v27 = vpop.permute.xlu0 %11124 }
 0x498   :  { %v3677_v2 = vsel %vm411_vm4, %v22306_v18, %v10746_v63  ;;  %22310 = vst [vmem:[#allocation81_spill] sm:$0xff] %v17621_v34  ;;  %v3859_v8 = vsel %vm512_vm5, %v10847_v23, %v10851_v48  ;;  %v22311_v18 = vunpack.i.l.bf16 %v22301_v12  ;;  %v4534_v63 = vsel %vm51_vm1, %v3678_v41, %v3762_v17 }
 0x499   :  { %v4533_v10 = vsel %vm51_vm1, %v3677_v2, %v3761_v25  ;;  %v21430_v15 = vunpack.i.l.bf16 %v22312_v3  ;;  %v10902_v45 = vunpack.i.h.bf16 %v22296_v0  ;;  %v4116_v58 = vsel %vm602_vm6, %v10997_v11, %v11001_v52  ;;  %v22318_v25 = vld [vmem:[#allocation20_spill] sm:$0xff] }
 0x49a   :  { %11344 = vrot.lane.b32.xlu1 %v22297_v19, %s12335_s13  ;;  %v3957_v60 = vsel %vm512_vm5, %v22311_v18, %v10897_v32  ;;  %v10947_v19 = vunpack.i.h.bf16 %v22313_v14  ;;  %v21429_v34 = vunpack.i.l.bf16 %v22314_v30  ;;  %v10852_v12 = vunpack.i.h.bf16 %v22300_v50 }
 0x49b   :  { %11349 = vrot.lane.b32.xlu0 %v11338_v42, %s12335_s13  ;;  %v4552_v32 = vsel %vm51_vm1, %v3859_v8, %v3958_v6  ;;  %v22315_v17 = vunpack.i.l.bf16 %v22307_v4  ;;  %v22316_v41 = vunpack.i.l.bf16 %v22309_v7  ;;  %v22317_v42 = vpack.i.bf16 %v17304_v40, %v17292_v13  ;;  %v17652_v50 = vpop.permute.xlu1 %11139  ;;  %v17654_v6 = vpop.permute.xlu0 %11134 }
 0x49c   :  { %v4037_v0 = vsel %vm602_vm6, %v10947_v19, %v10951_v55  ;;  %v11358_v8 = vpack.i.bf16 %v4534_v63, %v4533_v10  ;;  %v21428_v4 = vunpack.i.l.bf16 %v22318_v25  ;;  %v3959_v13 = vsel %vm512_vm5, %v10901_v54, %v10902_v45 }
 0x49d   :  { %v3858_v2 = vsel %vm512_vm5, %v22315_v17, %v10847_v23  ;;  %v4115_v18 = vsel %vm602_vm6, %v22316_v41, %v10997_v11  ;;  %v11002_v23 = vunpack.i.h.bf16 %v22305_v51  ;;  %v4572_v7 = vsel %vm51_vm1, %v4037_v0, %v4116_v58 }
 0x49e   :  { %11354 = vrot.lane.b32.xlu1 %v22317_v42, %s12343_s5  ;;  %v4551_v17 = vsel %vm51_vm1, %v3858_v2, %v3957_v60  ;;  %v3960_v11 = vsel %vm512_vm5, %v10902_v45, %v21430_v15  ;;  %v22319_v40 = vunpack.i.l.bf16 %v22313_v14  ;;  %v3861_v51 = vsel %vm512_vm5, %v10852_v12, %v21429_v34  ;;  %v22320_v60 = vld [vmem:[#allocation50_spill] sm:$0xff] }
 0x49f   :  { %11359 = vrot.lane.b32.xlu0 %v11358_v8, %s12343_s5  ;;  %v11363_v10 = vpack.i.bf16 %v4552_v32, %v4551_v17  ;;  %v21427_v63 = vunpack.i.l.bf16 %v22320_v60  ;;  %v10952_v58 = vunpack.i.h.bf16 %v22308_v57  ;;  %v3860_v0 = vsel %vm512_vm5, %v10851_v48, %v10852_v12  ;;  %v17678_v54 = vpop.permute.xlu1 %4704 }
 0x4a0   :  { %v4036_v41 = vsel %vm602_vm6, %v22319_v40, %v10947_v19  ;;  %v11077_v45 = vunpack.i.h.bf16 %v17331_v49  ;;  %v11076_v14 = vunpack.i.l.bf16 %v17331_v49  ;;  %v17680_v19 = vpop.permute.xlu0 %11144  ;;  %v4118_v42 = vsel %vm602_vm6, %v11002_v23, %v21428_v4 }
 0x4a1   :  { %v4571_v2 = vsel %vm51_vm1, %v4036_v41, %v4115_v18  ;;  %v11071_v57 = vunpack.i.l.bf16 %v17271_v5  ;;  %v4553_v18 = vsel %vm51_vm1, %v3860_v0, %v3959_v13  ;;  %v4554_v48 = vsel %vm51_vm1, %v3861_v51, %v3960_v11 }
 0x4a2   :  { %11364 = vrot.lane.b32.xlu1 %v11363_v10, %s12343_s5  ;;  %v11368_v32 = vpack.i.bf16 %v4572_v7, %v4571_v2  ;;  %v4117_v12 = vsel %vm602_vm6, %v11001_v52, %v11002_v23  ;;  %v11072_v49 = vunpack.i.h.bf16 %v17271_v5  ;;  %v11087_v8 = vunpack.i.h.bf16 %v17368_v31  ;;  %v22321_v7 = vld [vmem:[#allocation83_spill] sm:$0xff]  ;;  %v22322_v23 = vld [vmem:[#allocation36_spill] sm:$0xff]  ;;  %v22324_v2 = vld [vmem:[#allocation10_spill] sm:$0xff] }
 0x4a3   :  { %v11086_v17 = vunpack.i.l.bf16 %v17368_v31  ;;  %v4039_v13 = vsel %vm602_vm6, %v10952_v58, %v21427_v63  ;;  %v4038_v11 = vsel %vm602_vm6, %v10951_v55, %v10952_v58  ;;  %v11082_v52 = vunpack.i.h.bf16 %v17329_v28  ;;  %v17707_v0 = vpop.permute.xlu1 %4708  ;;  %v22326_v63 = vld [vmem:[#allocation27_spill] sm:$0xff] }
 0x4a4   :  { %11369 = vrot.lane.b32.xlu0 %v11368_v32, %s12343_s5  ;;  %v11081_v5 = vunpack.i.l.bf16 %v17329_v28  ;;  %v22323_v10 = vunpack.i.h.bf16 %v22322_v23  ;;  %v4274_v51 = vsel %vm762_vm8, %v11076_v14, %v11077_v45  ;;  %22325 = vst [vmem:[#allocation82_spill] sm:$0xff] %v17707_v0  ;;  %v17709_v32 = vpop.permute.xlu0 %4706  ;;  %v22327_v4 = vunpack.i.h.bf16 %v22326_v63 }
 0x4a5   :  { %v11383_v58 = vpack.i.bf16 %v4554_v48, %v4553_v18  ;;  %v4573_v28 = vsel %vm51_vm1, %v4038_v11, %v4117_v12  ;;  %v4574_v23 = vsel %vm51_vm1, %v4039_v13, %v4118_v42  ;;  %v22328_v34 = vunpack.i.h.bf16 %v17182_v38 }
 0x4a6   :  { %v4273_v31 = vsel %vm762_vm8, %v22323_v10, %v11076_v14  ;;  %11374 = vrot.lane.b32.xlu1 %v22324_v2, %s12334_s12  ;;  %v4194_v55 = vsel %vm762_vm8, %v22327_v4, %v11071_v57  ;;  %v4195_v10 = vsel %vm762_vm8, %v11071_v57, %v11072_v49  ;;  %v11091_v14 = vunpack.i.l.bf16 %v17366_v56  ;;  %v22329_v57 = vld [vmem:[#allocation29_spill] sm:$0xff] }
 0x4a7   :  { %v4431_v15 = vsel %vm842_vm9, %v22328_v34, %v11086_v17  ;;  %v4432_v41 = vsel %vm842_vm9, %v11086_v17, %v11087_v8  ;;  %v21431_v4 = vunpack.i.h.bf16 %v17408_v46  ;;  %v11096_v63 = vunpack.i.l.bf16 %v17408_v46  ;;  %v17736_v13 = vpop.permute.xlu1 %11149 }
 0x4a8   :  { %11379 = vrot.lane.b32.xlu0 %v22324_v2, %s12335_s13  ;;  %v4591_v18 = vsel %vm51_vm1, %v4194_v55, %v4273_v31  ;;  %v4592_v42 = vsel %vm51_vm1, %v4195_v10, %v4274_v51  ;;  %v22330_v48 = vunpack.i.h.bf16 %v22329_v57  ;;  %v4353_v38 = vsel %vm842_vm9, %v11081_v5, %v11082_v52  ;;  %v17734_v17 = vpop.permute.xlu0 %4710  ;;  %v22332_v2 = vld [vmem:[#allocation84_spill] sm:$0xff] }
 0x4a9   :  { %v21433_v34 = vunpack.i.h.bf16 %v17366_v56  ;;  %22331 = vst [vmem:[#allocation99_spill] sm:$0xff] %v17734_v17  ;;  %v11388_v11 = vpack.i.bf16 %v4574_v23, %v4573_v28  ;;  %v10762_v40 = vunpack.i.h.bf16 %v22332_v2  ;;  %v10761_v31 = vunpack.i.l.bf16 %v22332_v2  ;;  %v22356_v17 = vld [vmem:[#allocation35_spill] sm:$0xff] }
 0x4aa   :  { %v4352_v12 = vsel %vm842_vm9, %v22330_v48, %v11081_v5  ;;  %11384 = vrot.lane.b32.xlu1 %v11383_v58, %s12343_s5  ;;  %v4612_v55 = vsel %vm51_vm1, %v4353_v38, %v4432_v41  ;;  %v4196_v10 = vsel %vm762_vm8, %v11072_v49, %v11091_v14  ;;  %v11106_v57 = vunpack.i.l.bf16 %v17448_v47  ;;  %v22333_v41 = vld [vmem:[#allocation31_spill] sm:$0xff] }
 0x4ab   :  { %v4611_v51 = vsel %vm51_vm1, %v4352_v12, %v4431_v15  ;;  %v11393_v58 = vpack.i.bf16 %v4592_v42, %v4591_v18  ;;  %v4275_v48 = vsel %vm762_vm8, %v11077_v45, %v11096_v63  ;;  %v4276_v28 = vsel %vm762_vm8, %v11096_v63, %v21431_v4  ;;  %v11160_v45 = vpop.permute.xlu1 %11159 }
 0x4ac   :  { %11389 = vrot.lane.b32.xlu0 %v11388_v11, %s12343_s5  ;;  %v11152_v23 = vunpack.i.h.bf16 %v17736_v13  ;;  %v11151_v15 = vunpack.i.l.bf16 %v17736_v13  ;;  %v4197_v49 = vsel %vm762_vm8, %v11091_v14, %v21433_v34  ;;  %v21434_v12 = vunpack.i.h.bf16 %v22333_v41  ;;  %v11155_v18 = vpop.permute.xlu0 %11154 }
 0x4ad   :  { %v11101_v38 = vunpack.i.l.bf16 %v22333_v41  ;;  %v11398_v42 = vpack.i.bf16 %v4612_v55, %v4611_v51  ;;  %v11157_v11 = vunpack.i.h.bf16 %v11155_v18  ;;  %v11156_v2 = vunpack.i.l.bf16 %v11155_v18 }
 0x4ae   :  { %11394 = vrot.lane.b32.xlu1 %v11393_v58, %s12343_s5  ;;  %v11162_v63 = vunpack.i.h.bf16 %v11160_v45  ;;  %v11161_v4 = vunpack.i.l.bf16 %v11160_v45  ;;  %v4433_v5 = vsel %vm842_vm9, %v11087_v8, %v11106_v57  ;;  %v22334_v13 = vunpack.i.h.bf16 %v17448_v47  ;;  %v22335_v45 = vld [vmem:[#allocation16_spill] sm:$0xff] }
 0x4af   :  { %v4593_v14 = vsel %vm51_vm1, %v4196_v10, %v4275_v48  ;;  %v4594_v34 = vsel %vm51_vm1, %v4197_v49, %v4276_v28  ;;  %v5266_v55 = vsel %vm2008_vm3, %v11151_v15, %v11152_v23  ;;  %v5285_v18 = vsel %vm2008_vm3, %v11156_v2, %v11157_v11  ;;  %v17777_v48 = vpop.permute.xlu1 %11169 }
 0x4b0   :  { %v4434_v9 = vsel %vm842_vm9, %v11106_v57, %v22334_v13  ;;  %11399 = vrot.lane.b32.xlu0 %v11398_v42, %s12343_s5  ;;  %v5284_v58 = vsel %vm2008_vm3, %v11162_v63, %v11156_v2  ;;  %v5265_v51 = vsel %vm2008_vm3, %v11161_v4, %v11151_v15  ;;  %v4354_v8 = vsel %vm842_vm9, %v11082_v52, %v11101_v38  ;;  %v17775_v10 = vpop.permute.xlu0 %11164  ;;  %v22337_v4 = vld [vmem:[#allocation74_spill] sm:$0xff] }
 0x4b1   :  { %v4355_v57 = vsel %vm842_vm9, %v11101_v38, %v21434_v12  ;;  %22336 = vst [vmem:[#allocation34_spill] sm:$0xff] %v17777_v48  ;;  %v9119_v28 = vpack.c.bf16 %v5285_v18, %v5266_v55  ;;  %v9121_v49 = vpack.c.bf16 %v5284_v58, %v5265_v51  ;;  %v21435_v42 = vunpack.i.h.bf16 %v22337_v4 }
 0x4b2   :  { %4720 = vrot.lane.b32.xlu1 %v22335_v45, %s12337_s14  ;;  %v21436_v15 = vunpack.i.l.bf16 %v22337_v4  ;;  %v4613_v2 = vsel %vm51_vm1, %v4354_v8, %v4433_v5  ;;  %v4614_v52 = vsel %vm51_vm1, %v4355_v57, %v4434_v9  ;;  %v10807_v63 = vunpack.i.h.bf16 %v22293_v61  ;;  %v22338_v45 = vld [vmem:[#allocation28_spill] sm:$0xff] }
 0x4b3   :  { %v11171_v13 = vunpack.i.l.bf16 %v17777_v48  ;;  %9120 = vmatprep.subr.bf16.mxu0 %v9119_v28  ;;  %v11403_v55 = vpack.i.bf16 %v4594_v34, %v4593_v14  ;;  %v22339_v58 = vunpack.i.h.bf16 %v22321_v7  ;;  %v22340_v51 = vunpack.i.l.bf16 %v22321_v7  ;;  %v22343_v28 = vld [vmem:[#allocation85_spill] sm:$0xff]  ;;  %v17815_v12 = vpop.permute.xlu1 %11179 }
 0x4b4   :  { %4722 = vrot.lane.b32.xlu0 %v22338_v45, %s12337_s14  ;;  %v22342_v8 = vunpack.i.h.bf16 %v22294_v21  ;;  %9122 = vmatpush1.bf16.msra.mxu0 %v9121_v49  ;;  %v17808_v14 = vsel %vm411_vm4, %v10761_v31, %v10762_v40  ;;  %v11408_v21 = vpack.i.bf16 %v4614_v52, %v4613_v2  ;;  %v17822_v49 = vsel %vm411_vm4, %v21436_v15, %v21435_v42  ;;  %v22348_v45 = vld [vmem:[#allocation71_spill] sm:$0xff] }
 0x4b5   :  { %v17793_v18 = vsel %vm411_vm4, %v22340_v51, %v22339_v58  ;;  %v22341_v9 = vmov %v22340_v51  ;;  %v22344_v58 = vld [vmem:[#allocation87_spill] sm:$0xff]  ;;  %22346 = vst [vmem:[#allocation97_spill] sm:$0xff] %v17822_v49  ;;  %v5267_v2 = vsel %vm2008_vm3, %v11152_v23, %v11171_v13  ;;  %v22349_v52 = vunpack.i.h.bf16 %v17777_v48 }
 0x4b6   :  { %v17798_v5 = vsel %vm411_vm4, %v10762_v40, %v22341_v9  ;;  %v17803_v57 = vsel %vm411_vm4, %v22342_v8, %v10761_v31  ;;  %v10811_v51 = vunpack.i.l.bf16 %v22344_v58  ;;  %11404 = vrot.lane.b32.xlu1 %v11403_v55, %s12343_s5  ;;  %v17813_v9 = vpop.permute.xlu0 %11174  ;;  %v22347_v55 = vunpack.i.l.bf16 %v22293_v61 }
 0x4b7   :  { %22345 = vst [vmem:[#allocation92_spill] sm:$0xff] %v17813_v9  ;;  %v11176_v8 = vunpack.i.l.bf16 %v17813_v9  ;;  %v5268_v42 = vsel %vm2008_vm3, %v11171_v13, %v22349_v52  ;;  %v11181_v31 = vunpack.i.l.bf16 %v17815_v12  ;;  %v22350_v61 = vunpack.i.h.bf16 %v17813_v9  ;;  %v11190_v13 = vpop.permute.xlu1 %11189  ;;  %v22354_v9 = vld [vmem:[#allocation101_spill] sm:$0xff] }
 0x4b8   :  { %v3763_v34 = vsel %vm411_vm4, %v22347_v55, %v10807_v63  ;;  %11409 = vrot.lane.b32.xlu0 %v11408_v21, %s12343_s5  ;;  %v10812_v38 = vunpack.i.h.bf16 %v22344_v58  ;;  %v3764_v23 = vsel %vm411_vm4, %v10807_v63, %v10811_v51  ;;  %v22351_v21 = vld [vmem:[#allocation14_spill] sm:$0xff]  ;;  %v11192_v49 = vunpack.i.h.bf16 %v11190_v13 }
 0x4b9   :  { %v5286_v15 = vsel %vm2008_vm3, %v11157_v11, %v11176_v8  ;;  %v5287_v55 = vsel %vm2008_vm3, %v11176_v8, %v22350_v61  ;;  %v11191_v4 = vunpack.i.l.bf16 %v11190_v13  ;;  %v22353_v61 = vld [vmem:[#allocation100_spill] sm:$0xff]  ;;  %v10912_v63 = vunpack.i.h.bf16 %v22354_v9 }
 0x4ba   :  { %4724 = vrot.lane.b32.xlu1 %v22351_v21, %s12337_s14  ;;  %v17846_v20 = vpop.permute.xlu0 %11184  ;;  %v9135_v52 = vpack.c.bf16 %v5287_v55, %v5268_v42  ;;  %v9137_v11 = vpack.c.bf16 %v5286_v15, %v5267_v2  ;;  %v10911_v48 = vunpack.i.l.bf16 %v22354_v9  ;;  %v22355_v21 = vld [vmem:[#allocation23_spill] sm:$0xff]  ;;  %v22358_v2 = vunpack.i.h.bf16 %v17815_v12  ;;  %v22359_v9 = vld [vmem:[#allocation94_spill] sm:$0xff] }
 0x4bb   :  { %v21445_v40 = vunpack.i.h.bf16 %v17846_v20  ;;  %v11186_v24 = vunpack.i.l.bf16 %v17846_v20  ;;  %v22357_v0 = vpack.i.bf16 %v22355_v21, %v22356_v17  ;;  %v5303_v15 = vsel %vm2008_vm3, %v11191_v4, %v11181_v31  ;;  %v22361_v17 = vld [vmem:[#allocation15_spill] sm:$0xff]  ;;  %v17874_v4 = vpop.permute.xlu1 %11199 }
 0x4bc   :  { %9136 = vmatprep.subr.bf16.mxu1 %v9135_v52  ;;  %v5304_v55 = vsel %vm2008_vm3, %v11181_v31, %v22358_v2  ;;  %v10862_v8 = vunpack.i.h.bf16 %v22359_v9  ;;  %v10861_v58 = vunpack.i.l.bf16 %v22359_v9  ;;  %v22363_v31 = vunpack.i.l.bf16 %v22348_v45 }
 0x4bd   :  { %11414 = vrot.lane.b32.xlu0 %v22357_v0, %s12343_s5  ;;  %v5322_v42 = vsel %vm2008_vm3, %v11192_v49, %v11186_v24  ;;  %9138 = vmatpush1.bf16.msra.mxu1 %v9137_v11  ;;  %v5323_v13 = vsel %vm2008_vm3, %v11186_v24, %v21445_v40  ;;  %v22360_v0 = vld [vmem:[#allocation56_spill] sm:$0xff]  ;;  %v3765_v24 = vsel %vm411_vm4, %v10811_v51, %v10812_v38  ;;  %v10907_v40 = vunpack.i.h.bf16 %v22312_v3 }
 0x4be   :  { %v22362_v52 = vpack.i.bf16 %v22360_v0, %v22361_v17  ;;  %v17872_v49 = vpop.permute.xlu0 %11194  ;;  %v9123_v11 = vpack.c.bf16 %v5323_v13, %v5304_v55  ;;  %v9125_v21 = vpack.c.bf16 %v5322_v42, %v5303_v15  ;;  %v3766_v2 = vsel %vm411_vm4, %v10812_v38, %v22363_v31  ;;  %v22372_v0 = vld [vmem:[#allocation8_spill] sm:$0xff] }
 0x4bf   :  { %v4730_v9 = vsel %vm922_vm10, %v17273_v37, %v17446_v1  ;;  %v10857_v17 = vunpack.i.h.bf16 %v22314_v30  ;;  %v4535_v42 = vsel %vm51_vm1, %v17609_v62, %v3763_v34  ;;  %v4536_v15 = vsel %vm51_vm1, %v17606_v36, %v3764_v23  ;;  %v17906_v23 = vpop.permute.xlu1 %11209 }
 0x4c0   :  { %11419 = vrot.lane.b32.xlu1 %v22362_v52, %s12343_s5  ;;  %9124 = vmatprep.subr.bf16.mxu0 %v9123_v11  ;;  %v22364_v38 = vunpack.i.l.bf16 %v22353_v61  ;;  %v3962_v55 = vsel %vm512_vm5, %v10907_v40, %v10911_v48  ;;  %v3963_v37 = vsel %vm512_vm5, %v10911_v48, %v10912_v63  ;;  %v4731_v13 = vsel %vm922_vm10, %v17446_v1, %v17498_v29 }
 0x4c1   :  { %5235 = vrot.lane.b32.xlu0 %v4730_v9, %s12343_s5  ;;  %9126 = vmatpush1.bf16.msra.mxu0 %v9125_v21  ;;  %v22365_v52 = vunpack.i.l.bf16 %v22352_v16  ;;  %v3863_v34 = vsel %vm512_vm5, %v10857_v17, %v10861_v58  ;;  %v17910_v48 = vsel %vm51_vm1, %v17803_v57, %v3765_v24  ;;  %v17914_v1 = vsel %vm51_vm1, %v17808_v14, %v3766_v2  ;;  %v22366_v21 = vld [vmem:[#allocation45_spill] sm:$0xff]  ;;  %v22369_v57 = vld [vmem:[#allocation22_spill] sm:$0xff] }
 0x4c2   :  { %v3964_v51 = vsel %vm512_vm5, %v10912_v63, %v22364_v38  ;;  %v17904_v36 = vpop.permute.xlu0 %11204  ;;  %v3864_v63 = vsel %vm512_vm5, %v10861_v58, %v10862_v8  ;;  %v11007_v11 = vunpack.i.h.bf16 %v22318_v25  ;;  %v11012_v31 = vunpack.i.h.bf16 %v22366_v21 }
 0x4c3   :  { %v3865_v62 = vsel %vm512_vm5, %v10862_v8, %v22365_v52  ;;  %v11011_v9 = vunpack.i.l.bf16 %v22366_v21  ;;  %v22367_v38 = vunpack.i.l.bf16 %v22312_v3  ;;  %v22368_v52 = vld [vmem:[#allocation26_spill] sm:$0xff]  ;;  %v17928_v14 = vsel %vm51_vm1, %v3863_v34, %v3962_v55  ;;  %v22371_v21 = vld [vmem:[#allocation60_spill] sm:$0xff]  ;;  %v22374_v55 = vld [vmem:[#allocation21_spill] sm:$0xff] }
 0x4c4   :  { %5237 = vrot.lane.b32.xlu1 %v4731_v13, %s12343_s5  ;;  %v22370_v24 = vpack.i.bf16 %v22368_v52, %v22369_v57  ;;  %v17931_v8 = vsel %vm51_vm1, %v3864_v63, %v3963_v37  ;;  %v17934_v58 = vsel %vm51_vm1, %v3865_v62, %v3964_v51  ;;  %v10957_v2 = vunpack.i.h.bf16 %v22320_v60  ;;  %v17950_v62 = vpop.permute.xlu1 %11219 }
 0x4c5   :  { %v3961_v13 = vsel %vm512_vm5, %v22367_v38, %v10907_v40  ;;  %v21447_v3 = vunpack.i.l.bf16 %v22371_v21  ;;  %v10962_v40 = vunpack.i.h.bf16 %v22372_v0  ;;  %v10961_v38 = vunpack.i.l.bf16 %v22372_v0 }
 0x4c6   :  { %11424 = vrot.lane.b32.xlu0 %v22370_v24, %s12343_s5  ;;  %v22373_v52 = vunpack.i.l.bf16 %v22314_v30  ;;  %v22375_v37 = vpack.i.bf16 %v17431_v59, %v17427_v22  ;;  %v17948_v51 = vpop.permute.xlu0 %11214  ;;  %v11438_v63 = vpack.i.bf16 %v4536_v15, %v4535_v42  ;;  %v11448_v24 = vpack.i.bf16 %v17914_v1, %v17910_v48  ;;  %v22377_v42 = vld [vmem:[#allocation70_spill] sm:$0xff]  ;;  %v22378_v15 = vld [vmem:[#allocation57_spill] sm:$0xff] }
 0x4c7   :  { %v22376_v0 = vunpack.i.l.bf16 %v22318_v25  ;;  %v21446_v22 = vunpack.i.h.bf16 %v17950_v62  ;;  %v11221_v59 = vunpack.i.l.bf16 %v17950_v62  ;;  %v22380_v1 = vunpack.i.l.bf16 %v22320_v60 }
 0x4c8   :  { %v3862_v57 = vsel %vm512_vm5, %v22373_v52, %v10857_v17  ;;  %11429 = vrot.lane.b32.xlu1 %v22375_v37, %s12343_s5  ;;  %v4120_v17 = vsel %vm602_vm6, %v11007_v11, %v11011_v9  ;;  %v4121_v52 = vsel %vm602_vm6, %v11011_v9, %v11012_v31  ;;  %v22379_v37 = vpack.i.bf16 %v22377_v42, %v22378_v15 }
 0x4c9   :  { %v4119_v30 = vsel %vm602_vm6, %v22376_v0, %v11007_v11  ;;  %v17960_v34 = vsel %vm51_vm1, %v3862_v57, %v3961_v13  ;;  %v4040_v11 = vsel %vm602_vm6, %v22380_v1, %v10957_v2  ;;  %v4043_v9 = vsel %vm602_vm6, %v10962_v40, %v21447_v3 }
 0x4ca   :  { %11434 = vrot.lane.b32.xlu0 %v22379_v37, %s12343_s5  ;;  %v11453_v25 = vpack.i.bf16 %v17928_v14, %v17960_v34  ;;  %v4041_v13 = vsel %vm602_vm6, %v10957_v2, %v10961_v38  ;;  %v4042_v57 = vsel %vm602_vm6, %v10961_v38, %v10962_v40  ;;  %v22381_v0 = vunpack.i.l.bf16 %v22374_v55  ;;  %v17984_v14 = vpop.permute.xlu0 %11224  ;;  %v17986_v34 = vpop.permute.xlu1 %11229 }
 0x4cb   :  { %v17989_v60 = vsel %vm51_vm1, %v4040_v11, %v4119_v30  ;;  %v17992_v15 = vsel %vm51_vm1, %v4041_v13, %v4120_v17  ;;  %v17995_v2 = vsel %vm51_vm1, %v4042_v57, %v4121_v52  ;;  %v21448_v40 = vunpack.i.h.bf16 %v17984_v14 }
 0x4cc   :  { %v4122_v42 = vsel %vm602_vm6, %v11012_v31, %v22381_v0  ;;  %11439 = vrot.lane.b32.xlu1 %v11438_v63, %s12343_s5  ;;  %v11226_v38 = vunpack.i.l.bf16 %v17984_v14  ;;  %v4732_v31 = vsel %vm922_vm10, %v17498_v29, %v17496_v35  ;;  %v4733_v63 = vsel %vm922_vm10, %v17496_v35, %v17536_v26 }
 0x4cd   :  { %v11117_v30 = vunpack.i.h.bf16 %v17575_v33  ;;  %v11116_v17 = vunpack.i.l.bf16 %v17575_v33  ;;  %v22382_v37 = vunpack.i.h.bf16 %v17815_v12  ;;  %v5306_v1 = vsel %vm2008_vm3, %v11221_v59, %v21446_v22 }
 0x4ce   :  { %5239 = vrot.lane.b32.xlu0 %v4732_v31, %s12343_s5  ;;  %v22383_v29 = vunpack.i.h.bf16 %v17846_v20  ;;  %v11232_v35 = vunpack.i.h.bf16 %v17986_v34  ;;  %v11231_v13 = vunpack.i.l.bf16 %v17986_v34  ;;  %v5325_v33 = vsel %vm2008_vm3, %v11226_v38, %v21448_v40  ;;  %v18024_v57 = vpop.permute.xlu0 %11234  ;;  %v11240_v0 = vpop.permute.xlu1 %11239 }
 0x4cf   :  { %v5305_v52 = vsel %vm2008_vm3, %v22382_v37, %v11221_v59  ;;  %v11111_v12 = vunpack.i.l.bf16 %v17534_v43  ;;  %v9139_v59 = vpack.c.bf16 %v5325_v33, %v5306_v1  ;;  %v4578_v20 = vsel %vm51_vm1, %v4043_v9, %v4122_v42 }
 0x4d0   :  { %v5324_v11 = vsel %vm2008_vm3, %v22383_v29, %v11226_v38  ;;  %5241 = vrot.lane.b32.xlu1 %v4733_v63, %s12343_s5  ;;  %v11237_v37 = vunpack.i.h.bf16 %v18024_v57  ;;  %v11236_v29 = vunpack.i.l.bf16 %v18024_v57  ;;  %v11242_v22 = vunpack.i.h.bf16 %v11240_v0 }
 0x4d1   :  { %v9141_v31 = vpack.c.bf16 %v5324_v11, %v5305_v52  ;;  %v11241_v3 = vunpack.i.l.bf16 %v11240_v0  ;;  %v11112_v48 = vunpack.i.h.bf16 %v17534_v43  ;;  %v22384_v38 = vunpack.i.h.bf16 %v17408_v46  ;;  %9140 = vmatprep.subr.bf16.mxu1 %v9139_v59  ;;  %v22387_v59 = vld [vmem:[#allocation81_spill] sm:$0xff] }
 0x4d2   :  { %v4278_v63 = vsel %vm762_vm8, %v11116_v17, %v11117_v30  ;;  %v22385_v52 = vpack.i.bf16 %v17459_v53, %v17456_v39  ;;  %v11458_v9 = vpack.i.bf16 %v17992_v15, %v17989_v60  ;;  %v5360_v42 = vsel %vm2008_vm3, %v11242_v22, %v11236_v29  ;;  %v18051_v60 = vpop.permute.xlu0 %11244  ;;  %v18053_v22 = vpop.permute.xlu1 %11249 }
 0x4d3   :  { %v4277_v40 = vsel %vm762_vm8, %v22384_v38, %v11116_v17  ;;  %v5341_v1 = vsel %vm2008_vm3, %v11241_v3, %v11231_v13  ;;  %9142 = vmatpush1.bf16.msra.mxu1 %v9141_v31  ;;  %v5342_v46 = vsel %vm2008_vm3, %v11231_v13, %v11232_v35  ;;  %v5361_v43 = vsel %vm2008_vm3, %v11236_v29, %v11237_v37 }
 0x4d4   :  { %11444 = vrot.lane.b32.xlu0 %v22385_v52, %s12343_s5  ;;  %v11127_v39 = vunpack.i.h.bf16 %v17623_v27  ;;  %v11126_v53 = vunpack.i.l.bf16 %v17623_v27  ;;  %11449 = vrot.lane.b32.xlu1 %v11448_v24, %s12343_s5  ;;  %v9127_v3 = vpack.c.bf16 %v5361_v43, %v5342_v46  ;;  %v9129_v15 = vpack.c.bf16 %v5360_v42, %v5341_v1 }
 0x4d5   :  { %v22386_v17 = vunpack.i.h.bf16 %v17366_v56  ;;  %v11121_v13 = vunpack.i.l.bf16 %v17573_v44  ;;  %v21454_v33 = vunpack.i.h.bf16 %v17654_v6  ;;  %v11136_v0 = vunpack.i.l.bf16 %v17654_v6 }
 0x4d6   :  { %v4199_v27 = vsel %vm762_vm8, %v11111_v12, %v11112_v48  ;;  %v11122_v24 = vunpack.i.h.bf16 %v17573_v44  ;;  %v21455_v31 = vunpack.i.h.bf16 %v22387_v59  ;;  %v11131_v29 = vunpack.i.l.bf16 %v22387_v59  ;;  %9128 = vmatprep.subr.bf16.mxu0 %v9127_v3  ;;  %v18077_v43 = vpop.permute.xlu0 %11254  ;;  %v18079_v3 = vpop.permute.xlu1 %11259 }
 0x4d7   :  { %v4198_v11 = vsel %vm762_vm8, %v22386_v17, %v11111_v12  ;;  %v21452_v56 = vunpack.i.h.bf16 %v17680_v19  ;;  %v11146_v38 = vunpack.i.l.bf16 %v17680_v19  ;;  %9130 = vmatpush1.bf16.msra.mxu0 %v9129_v15  ;;  %v4596_v42 = vsel %vm51_vm1, %v4199_v27, %v4278_v63 }
 0x4d8   :  { %11454 = vrot.lane.b32.xlu0 %v11453_v25, %s12343_s5  ;;  %v4595_v52 = vsel %vm51_vm1, %v4198_v11, %v4277_v40  ;;  %v22388_v12 = vunpack.i.h.bf16 %v17448_v47  ;;  %v4436_v1 = vsel %vm842_vm9, %v11126_v53, %v11127_v39  ;;  %v21451_v46 = vunpack.i.h.bf16 %v17652_v50  ;;  %11459 = vrot.lane.b32.xlu1 %v11458_v9, %s12343_s5 }
 0x4d9   :  { %v11141_v25 = vunpack.i.l.bf16 %v17652_v50  ;;  %v22389_v40 = vunpack.i.h.bf16 %v22333_v41  ;;  %v4279_v47 = vsel %vm762_vm8, %v11117_v30, %v11136_v0  ;;  %v11468_v15 = vpack.i.bf16 %v4578_v20, %v17995_v2 }
 0x4da   :  { %v4435_v44 = vsel %vm842_vm9, %v22388_v12, %v11126_v53  ;;  %v4280_v53 = vsel %vm762_vm8, %v11136_v0, %v21454_v33  ;;  %v4357_v17 = vsel %vm842_vm9, %v11121_v13, %v11122_v24  ;;  %v4200_v9 = vsel %vm762_vm8, %v11112_v48, %v11131_v29  ;;  %v22391_v12 = vld [vmem:[#allocation89_spill] sm:$0xff] }
 0x4db   :  { %v4356_v63 = vsel %vm842_vm9, %v22389_v40, %v11121_v13  ;;  %v4201_v11 = vsel %vm762_vm8, %v11131_v29, %v21455_v31  ;;  %v22390_v41 = vpack.i.bf16 %v17934_v58, %v17931_v8  ;;  %v11473_v30 = vpack.i.bf16 %v4596_v42, %v4595_v52  ;;  %v18109_v8 = vpop.permute.xlu0 %11264  ;;  %v18111_v58 = vpop.permute.xlu1 %11269  ;;  %v22433_v31 = vld [vmem:[#allocation92_spill] sm:$0xff] }
 0x4dc   :  { %v4437_v27 = vsel %vm842_vm9, %v11127_v39, %v11146_v38  ;;  %v4438_v2 = vsel %vm842_vm9, %v11146_v38, %v21452_v56  ;;  %v4615_v20 = vsel %vm51_vm1, %v4356_v63, %v4435_v44  ;;  %v4616_v48 = vsel %vm51_vm1, %v4357_v17, %v4436_v1  ;;  %11469 = vrot.lane.b32.xlu1 %v11468_v15, %s12343_s5 }
 0x4dd   :  { %11464 = vrot.lane.b32.xlu0 %v22390_v41, %s12343_s5  ;;  %v4358_v13 = vsel %vm842_vm9, %v11122_v24, %v11141_v25  ;;  %v4359_v0 = vsel %vm842_vm9, %v11141_v25, %v21451_v46  ;;  %v4597_v39 = vsel %vm51_vm1, %v4200_v9, %v4279_v47  ;;  %v4598_v29 = vsel %vm51_vm1, %v4201_v11, %v4280_v53  ;;  %v22406_v46 = vld [vmem:[#allocation38_spill] sm:$0xff] }
 0x4de   :  { %v21450_v38 = vunpack.i.h.bf16 %v18109_v8  ;;  %v11266_v52 = vunpack.i.l.bf16 %v18109_v8  ;;  %v21449_v24 = vunpack.i.h.bf16 %v18111_v58  ;;  %v11271_v42 = vunpack.i.l.bf16 %v18111_v58 }
 0x4df   :  { %v10821_v44 = vunpack.i.l.bf16 %v22391_v12  ;;  %v11478_v1 = vpack.i.bf16 %v4616_v48, %v4615_v20  ;;  %v4617_v25 = vsel %vm51_vm1, %v4358_v13, %v4437_v27  ;;  %v4618_v40 = vsel %vm51_vm1, %v4359_v0, %v4438_v2  ;;  %v18137_v9 = vpop.permute.xlu0 %11274 }
 0x4e0   :  { %v5343_v63 = vsel %vm2008_vm3, %v11232_v35, %v11266_v52  ;;  %v5362_v47 = vsel %vm2008_vm3, %v11237_v37, %v11271_v42  ;;  %v5344_v53 = vsel %vm2008_vm3, %v11266_v52, %v21450_v38  ;;  %v5363_v15 = vsel %vm2008_vm3, %v11271_v42, %v21449_v24  ;;  %v18157_v52 = vpop.permute.xlu1 %11279 }
 0x4e1   :  { %11474 = vrot.lane.b32.xlu0 %v11473_v30, %s12343_s5  ;;  %v10822_v17 = vunpack.i.h.bf16 %v22391_v12  ;;  %11479 = vrot.lane.b32.xlu1 %v11478_v1, %s12343_s5  ;;  %v11483_v34 = vpack.i.bf16 %v4598_v29, %v4597_v39  ;;  %v9143_v35 = vpack.c.bf16 %v5363_v15, %v5344_v53  ;;  %v9145_v11 = vpack.c.bf16 %v5362_v47, %v5343_v63  ;;  %v22394_v30 = vld [vmem:[#allocation88_spill] sm:$0xff] }
 0x4e2   :  { %v22392_v57 = vunpack.i.l.bf16 %v22343_v28  ;;  %v22393_v37 = vunpack.i.h.bf16 %v22321_v7  ;;  %v21453_v27 = vunpack.i.l.bf16 %v22394_v30  ;;  %v11277_v2 = vunpack.i.h.bf16 %v18137_v9 }
 0x4e3   :  { %v11276_v20 = vunpack.i.l.bf16 %v18137_v9  ;;  %v22395_v48 = vunpack.i.h.bf16 %v22343_v28  ;;  %v22397_v39 = vunpack.i.h.bf16 %v22348_v45  ;;  %v22398_v29 = vunpack.i.l.bf16 %v22348_v45  ;;  %9144 = vmatprep.subr.bf16.mxu1 %v9143_v35  ;;  %v18173_v45 = vpop.permute.xlu0 %4712  ;;  %v22420_v9 = vld [vmem:[#allocation80_spill] sm:$0xff] }
 0x4e4   :  { %v3685_v41 = vsel %vm411_vm4, %v22393_v37, %v22392_v57  ;;  %v22396_v13 = vmov %v22392_v57  ;;  %v11488_v42 = vpack.i.bf16 %v4618_v40, %v4617_v25  ;;  %v21456_v63 = vunpack.i.h.bf16 %v18157_v52  ;;  %9146 = vmatpush1.bf16.msra.mxu1 %v9145_v11  ;;  %v22401_v25 = vld [vmem:[#allocation95_spill] sm:$0xff]  ;;  %v22402_v37 = vld [vmem:[#allocation86_spill] sm:$0xff]  ;;  %v18186_v38 = vpop.permute.xlu1 %4714 }
 0x4e5   :  { %v3686_v0 = vsel %vm411_vm4, %v22396_v13, %v22395_v48  ;;  %v3767_v7 = vsel %vm411_vm4, %v22398_v29, %v22397_v39  ;;  %11484 = vrot.lane.b32.xlu0 %v11483_v34, %s12343_s5  ;;  %v22399_v12 = vmov %v22397_v39  ;;  %v11281_v47 = vunpack.i.l.bf16 %v18157_v52  ;;  %v22400_v34 = vld [vmem:[#allocation73_spill] sm:$0xff]  ;;  %v22403_v13 = vld [vmem:[#allocation103_spill] sm:$0xff]  ;;  %v22405_v48 = vld [vmem:[#allocation6_spill] sm:$0xff] }
 0x4e6   :  { %v3768_v1 = vsel %vm411_vm4, %v22399_v12, %v10821_v44  ;;  %v5380_v53 = vsel %vm2008_vm3, %v11276_v20, %v11277_v2  ;;  %v3769_v15 = vsel %vm411_vm4, %v10821_v44, %v10822_v17  ;;  %v10867_v57 = vunpack.i.h.bf16 %v22352_v16  ;;  %11489 = vrot.lane.b32.xlu1 %v11488_v42, %s12343_s5  ;;  %v22404_v12 = vld [vmem:[#allocation102_spill] sm:$0xff] }
 0x4e7   :  { %v21457_v35 = vunpack.i.l.bf16 %v22400_v34  ;;  %v10872_v40 = vunpack.i.h.bf16 %v22401_v25  ;;  %v3770_v11 = vsel %vm411_vm4, %v10822_v17, %v21453_v27  ;;  %v10921_v39 = vunpack.i.l.bf16 %v22403_v13 }
 0x4e8   :  { %v5399_v44 = vsel %vm2008_vm3, %v11281_v47, %v21456_v63  ;;  %v10871_v29 = vunpack.i.l.bf16 %v22401_v25  ;;  %v21458_v24 = vunpack.i.l.bf16 %v22404_v12  ;;  %v10922_v42 = vunpack.i.h.bf16 %v22403_v13 }
 0x4e9   :  { %v22407_v56 = vpack.i.bf16 %v22405_v48, %v22406_v46  ;;  %v9131_v17 = vpack.c.bf16 %v5399_v44, %v5380_v53  ;;  %v10917_v27 = vunpack.i.h.bf16 %v22353_v61  ;;  %v18195_v33 = vsel %vm51_vm1, %v17798_v5, %v3767_v7  ;;  %v22409_v5 = vld [vmem:[#allocation58_spill] sm:$0xff]  ;;  %v22410_v7 = vld [vmem:[#allocation67_spill] sm:$0xff] }
 0x4ea   :  { %v18199_v25 = vsel %vm51_vm1, %v17793_v18, %v3768_v1  ;;  %v18202_v13 = vsel %vm51_vm1, %v3685_v41, %v3769_v15  ;;  %v22408_v63 = vunpack.i.l.bf16 %v22352_v16  ;;  %v3869_v46 = vsel %vm512_vm5, %v10872_v40, %v21457_v35  ;;  %v11285_v18 = vpop.permute.xlu0 %11284  ;;  %v22419_v35 = vld [vmem:[#allocation7_spill] sm:$0xff] }
 0x4eb   :  { %11494 = vrot.lane.b32.xlu0 %v22407_v56, %s12343_s5  ;;  %v22411_v53 = vpack.i.bf16 %v22409_v5, %v22410_v7  ;;  %9132 = vmatprep.subr.bf16.mxu0 %v9131_v17  ;;  %v18216_v41 = vsel %vm51_vm1, %v3686_v0, %v3770_v11  ;;  %v3966_v1 = vsel %vm512_vm5, %v10917_v27, %v10921_v39  ;;  %v11287_v15 = vunpack.i.h.bf16 %v11285_v18  ;;  %v18227_v5 = vpop.permute.xlu1 %11289 }
 0x4ec   :  { %v3866_v56 = vsel %vm512_vm5, %v22408_v63, %v10867_v57  ;;  %v11286_v16 = vunpack.i.l.bf16 %v11285_v18  ;;  %v4734_v63 = vsel %vm922_vm10, %v17536_v26, %v17678_v54  ;;  %v3867_v48 = vsel %vm512_vm5, %v10867_v57, %v10871_v29 }
 0x4ed   :  { %11499 = vrot.lane.b32.xlu1 %v22411_v53, %s12343_s5  ;;  %v3968_v44 = vsel %vm512_vm5, %v10922_v42, %v21458_v24  ;;  %v3967_v17 = vsel %vm512_vm5, %v10921_v39, %v10922_v42  ;;  %v4735_v0 = vsel %vm922_vm10, %v17678_v54, %v17709_v32  ;;  %v5398_v26 = vsel %vm2008_vm3, %v11287_v15, %v11281_v47  ;;  %v22423_v24 = vld [vmem:[#allocation61_spill] sm:$0xff] }
 0x4ee   :  { %v5379_v11 = vsel %vm2008_vm3, %v11286_v16, %v11276_v20  ;;  %v21460_v57 = vunpack.i.h.bf16 %v18227_v5  ;;  %v11291_v7 = vunpack.i.l.bf16 %v18227_v5  ;;  %v3868_v53 = vsel %vm512_vm5, %v10871_v29, %v10872_v40  ;;  %v18242_v18 = vpop.permute.xlu0 %11294 }
 0x4ef   :  { %5243 = vrot.lane.b32.xlu0 %v4734_v63, %s12343_s5  ;;  %v22412_v39 = vunpack.i.l.bf16 %v22353_v61  ;;  %22413 = vst [vmem:[#allocation53_spill] sm:$0xff] %v18242_v18  ;;  %v9133_v63 = vpack.c.bf16 %v5398_v26, %v5379_v11  ;;  %v18245_v54 = vsel %vm51_vm1, %v3867_v48, %v3966_v1  ;;  %v21459_v20 = vunpack.i.h.bf16 %v18242_v18  ;;  %v18259_v1 = vpop.permute.xlu1 %4716  ;;  %v22415_v48 = vld [vmem:[#allocation42_spill] sm:$0xff]  ;;  %v22416_v11 = vld [vmem:[#allocation4_spill] sm:$0xff] }
 0x4f0   :  { %v11296_v47 = vunpack.i.l.bf16 %v18242_v18  ;;  %v18250_v15 = vsel %vm51_vm1, %v3868_v53, %v3967_v17  ;;  %v18253_v40 = vsel %vm51_vm1, %v3869_v46, %v3968_v44  ;;  %v10967_v61 = vunpack.i.h.bf16 %v22371_v21 }
 0x4f1   :  { %v3965_v42 = vsel %vm512_vm5, %v22412_v39, %v10917_v27  ;;  %5245 = vrot.lane.b32.xlu1 %v4735_v0, %s12343_s5  ;;  %v22414_v27 = vld [vmem:[#allocation24_spill] sm:$0xff]  ;;  %v11017_v16 = vunpack.i.h.bf16 %v22374_v55  ;;  %v11166_v0 = vunpack.i.l.bf16 %v17775_v10  ;;  %v22417_v26 = vpack.i.bf16 %v22415_v48, %v22416_v11  ;;  %9134 = vmatpush1.bf16.msra.mxu0 %v9133_v63  ;;  %v22421_v11 = vld [vmem:[#allocation79_spill] sm:$0xff] }
 0x4f2   :  { %v21461_v29 = vunpack.i.l.bf16 %v22414_v27  ;;  %v5381_v46 = vsel %vm2008_vm3, %v11277_v2, %v11291_v7  ;;  %v22418_v44 = vunpack.i.h.bf16 %v18157_v52  ;;  %v5382_v53 = vsel %vm2008_vm3, %v11291_v7, %v21460_v57  ;;  %v18283_v52 = vpop.permute.xlu0 %4718 }
 0x4f3   :  { %11504 = vrot.lane.b32.xlu0 %v22417_v26, %s12343_s5  ;;  %v5401_v39 = vsel %vm2008_vm3, %v11296_v47, %v21459_v20  ;;  %v10972_v48 = vunpack.i.h.bf16 %v22419_v35  ;;  %v10971_v63 = vunpack.i.l.bf16 %v22419_v35  ;;  %v22422_v2 = vpack.i.bf16 %v22420_v9, %v22421_v11  ;;  %v18296_v11 = vpop.permute.xlu1 %11299 }
 0x4f4   :  { %v5400_v17 = vsel %vm2008_vm3, %v22418_v44, %v11296_v47  ;;  %v9147_v26 = vpack.c.bf16 %v5401_v39, %v5382_v53  ;;  %v11518_v47 = vpack.i.bf16 %v18199_v25, %v18195_v33  ;;  %v18290_v20 = vsel %vm51_vm1, %v3866_v56, %v3965_v42 }
 0x4f5   :  { %11509 = vrot.lane.b32.xlu1 %v22422_v2, %s12343_s5  ;;  %v9149_v44 = vpack.c.bf16 %v5400_v17, %v5381_v46  ;;  %v22424_v35 = vunpack.i.l.bf16 %v22374_v55  ;;  %v11167_v9 = vunpack.i.h.bf16 %v17775_v10  ;;  %v22425_v46 = vld [vmem:[#allocation78_spill] sm:$0xff]  ;;  %v11528_v33 = vpack.i.bf16 %v18216_v41, %v18202_v13 }
 0x4f6   :  { %v22426_v17 = vld [vmem:[#allocation62_spill] sm:$0xff]  ;;  %9148 = vmatprep.subr.bf16.mxu1 %v9147_v26  ;;  %v4124_v55 = vsel %vm602_vm6, %v11017_v16, %v11166_v0  ;;  %v21462_v56 = vunpack.i.l.bf16 %v17872_v49  ;;  %v11301_v10 = vunpack.i.l.bf16 %v18296_v11  ;;  %v22428_v39 = vunpack.i.l.bf16 %v22371_v21  ;;  %v18320_v26 = vpop.permute.xlu0 %11304 }
 0x4f7   :  { %v4123_v57 = vsel %vm602_vm6, %v22424_v35, %v11017_v16  ;;  %v22427_v53 = vpack.i.bf16 %v22425_v46, %v22426_v17  ;;  %9150 = vmatpush1.bf16.msra.mxu1 %v9149_v44  ;;  %v4047_v13 = vsel %vm602_vm6, %v10972_v48, %v21461_v29  ;;  %v4045_v41 = vsel %vm602_vm6, %v10967_v61, %v10971_v63  ;;  %v22429_v46 = vld [vmem:[#allocation82_spill] sm:$0xff] }
 0x4f8   :  { %v4044_v2 = vsel %vm602_vm6, %v22428_v39, %v10967_v61  ;;  %v4046_v16 = vsel %vm602_vm6, %v10971_v63, %v10972_v48  ;;  %v21463_v44 = vunpack.i.h.bf16 %v18320_v26  ;;  %v11306_v35 = vunpack.i.l.bf16 %v18320_v26  ;;  %v5228_v48 = vpop.permute.xlu1 %5227  ;;  %v22430_v63 = vld [vmem:[#allocation99_spill] sm:$0xff] }
 0x4f9   :  { %11514 = vrot.lane.b32.xlu0 %v22427_v53, %s12343_s5  ;;  %11519 = vrot.lane.b32.xlu1 %v11518_v47, %s12343_s5  ;;  %v4736_v21 = vsel %vm922_vm10, %v17709_v32, %v22429_v46  ;;  %v18328_v17 = vsel %vm51_vm1, %v4044_v2, %v4123_v57  ;;  %v4125_v53 = vsel %vm602_vm6, %v11166_v0, %v11167_v9  ;;  %v21464_v61 = vunpack.i.h.bf16 %v18296_v11  ;;  %v22431_v2 = vld [vmem:[#allocation34_spill] sm:$0xff] }
 0x4fa   :  { %v4737_v47 = vsel %vm922_vm10, %v22429_v46, %v22430_v63  ;;  %v4580_v39 = vsel %vm51_vm1, %v4045_v41, %v4124_v55  ;;  %v4126_v32 = vsel %vm602_vm6, %v11167_v9, %v21462_v56  ;;  %v11201_v57 = vunpack.i.l.bf16 %v17874_v4  ;;  %v18350_v55 = vpop.permute.xlu0 %5229  ;;  %v22436_v56 = vld [vmem:[#allocation39_spill] sm:$0xff] }
 0x4fb   :  { %v22432_v29 = vunpack.i.h.bf16 %v22431_v2  ;;  %v22434_v7 = vunpack.i.h.bf16 %v22433_v31  ;;  %v11207_v42 = vunpack.i.h.bf16 %v17904_v36  ;;  %v11206_v46 = vunpack.i.l.bf16 %v17904_v36 }
 0x4fc   :  { %v5289_v9 = vsel %vm2008_vm3, %v11306_v35, %v21463_v44  ;;  %v11217_v2 = vunpack.i.h.bf16 %v17948_v51  ;;  %v5418_v31 = vsel %vm2008_vm3, %v5228_v48, %v18350_v55  ;;  %v5226_v36 = vpop.permute.xlu1 %5225  ;;  %v11212_v18 = vunpack.i.h.bf16 %v17906_v23 }
 0x4fd   :  { %5247 = vrot.lane.b32.xlu0 %v4736_v21, %s12343_s5  ;;  %v5269_v0 = vsel %vm2008_vm3, %v22432_v29, %v11301_v10  ;;  %v5288_v21 = vsel %vm2008_vm3, %v22434_v7, %v11306_v35  ;;  %5249 = vrot.lane.b32.xlu1 %v4737_v47, %s12343_s5  ;;  %v11216_v29 = vunpack.i.l.bf16 %v17948_v51  ;;  %v11202_v7 = vunpack.i.h.bf16 %v17874_v4  ;;  %v22435_v47 = vld [vmem:[#allocation19_spill] sm:$0xff]  ;;  %v18370_v51 = vld [vmem:[%s21020_s3] sm:$0xf] }
 0x4fe   :  { %v9153_v41 = vpack.c.bf16 %v5288_v21, %v5269_v0  ;;  %v22437_v25 = vpack.i.bf16 %v22435_v47, %v22436_v56  ;;  %5636 = vmatprep.subr.mxu0 %v5418_v31  ;;  %v5270_v35 = vsel %vm2008_vm3, %v11301_v10, %v21464_v61  ;;  %v11538_v0 = vpack.i.bf16 %v4580_v39, %v18328_v17 }
 0x4ff   :  { %v4581_v4 = vsel %vm51_vm1, %v4046_v16, %v4125_v53  ;;  %v22438_v21 = vunpack.i.h.bf16 %v22387_v59  ;;  %v9151_v56 = vpack.c.bf16 %v5289_v9, %v5270_v35  ;;  %v4582_v31 = vsel %vm51_vm1, %v4047_v13, %v4126_v32  ;;  %v18386_v59 = vpop.permute.xlu0 %11309 }
 0x500   :  { %v22439_v10 = vunpack.i.h.bf16 %v17654_v6  ;;  %v4282_v61 = vsel %vm762_vm8, %v11206_v46, %v11207_v42  ;;  %v11211_v17 = vunpack.i.l.bf16 %v17906_v23  ;;  %v22440_v16 = vunpack.i.h.bf16 %v17680_v19  ;;  %v18400_v32 = vpop.permute.xlu1 %11314 }
 0x501   :  { %11524 = vrot.lane.b32.xlu0 %v22437_v25, %s12343_s5  ;;  %v4202_v44 = vsel %vm762_vm8, %v22438_v21, %v11201_v57  ;;  %v5417_v25 = vsel %vm2008_vm3, %v5226_v36, %v5228_v48  ;;  %11529 = vrot.lane.b32.xlu1 %v11528_v33, %s12343_s5  ;;  %v4440_v13 = vsel %vm842_vm9, %v11216_v29, %v11217_v2  ;;  %v11247_v6 = vunpack.i.h.bf16 %v18051_v60  ;;  %v18409_v21 = vld [vmem:[#allocation3] sm:$0xff] }
 0x502   :  { %v4281_v47 = vsel %vm762_vm8, %v22439_v10, %v11206_v46  ;;  %5637 = vmatpush1.msra.mxu0 %v5417_v25  ;;  %v4439_v53 = vsel %vm842_vm9, %v22440_v16, %v11216_v29  ;;  %v11246_v48 = vunpack.i.l.bf16 %v18051_v60  ;;  %v11252_v23 = vunpack.i.h.bf16 %v18053_v22 }
 0x503   :  { %9152 = vmatprep.subr.bf16.mxu0 %v9151_v56  ;;  %8919 = vmatmul.mubr.msk.f32.vlgmr.msra.gmra.mrb[10].mxu0 %vm5616_vm13, %v18370_v51  ;;  %v11251_v33 = vunpack.i.l.bf16 %v18053_v22  ;;  %v11257_v39 = vunpack.i.h.bf16 %v18077_v43  ;;  %v11256_v19 = vunpack.i.l.bf16 %v18077_v43  ;;  %v22441_v46 = vpack.i.bf16 %v18245_v54, %v18290_v20  ;;  %v18417_v54 = vpop.permute.xlu0 %11319 }
 0x504   :  { %9154 = vmatpush1.bf16.msra.mxu0 %v9153_v41  ;;  %v4203_v9 = vsel %vm762_vm8, %v11201_v57, %v11202_v7  ;;  %v11262_v29 = vunpack.i.h.bf16 %v18079_v3  ;;  %v11261_v36 = vunpack.i.l.bf16 %v18079_v3  ;;  %v11548_v35 = vpack.i.bf16 %v4582_v31, %v4581_v4  ;;  %5826 = vmatprep.mubr.f32.mxu0 %v18409_v21 }
 0x505   :  { %11534 = vrot.lane.b32.xlu0 %v22441_v46, %s12343_s5  ;;  %v22442_v25 = vunpack.i.h.bf16 %v17652_v50  ;;  %v4361_v56 = vsel %vm842_vm9, %v11211_v17, %v11212_v18  ;;  %11539 = vrot.lane.b32.xlu1 %v11538_v0, %s12343_s5  ;;  %v4599_v20 = vsel %vm51_vm1, %v4202_v44, %v4281_v47  ;;  %v4600_v57 = vsel %vm51_vm1, %v4203_v9, %v4282_v61 }
 0x506   :  { %v4204_v4 = vsel %vm762_vm8, %v11202_v7, %v11246_v48  ;;  %v4205_v31 = vsel %vm762_vm8, %v11246_v48, %v11247_v6  ;;  %v4620_v10 = vsel %vm51_vm1, %v4361_v56, %v4440_v13  ;;  %v4284_v0 = vsel %vm762_vm8, %v11251_v33, %v11252_v23  ;;  %v18435_v7 = vpop.permute.xlu1 %11324 }
 0x507   :  { %v4360_v41 = vsel %vm842_vm9, %v22442_v25, %v11211_v17  ;;  %v4283_v17 = vsel %vm762_vm8, %v11207_v42, %v11251_v33  ;;  %v4362_v44 = vsel %vm842_vm9, %v11212_v18, %v11256_v19  ;;  %v4363_v61 = vsel %vm842_vm9, %v11256_v19, %v11257_v39  ;;  %v18450_v33 = vpop.permute.xlu0 %11329 }
 0x508   :  { %v4619_v50 = vsel %vm51_vm1, %v4360_v41, %v4439_v53  ;;  %v22443_v47 = vpack.i.bf16 %v18253_v40, %v18250_v15  ;;  %v4441_v16 = vsel %vm842_vm9, %v11217_v2, %v11261_v36  ;;  %v4442_v42 = vsel %vm842_vm9, %v11261_v36, %v11262_v29 }
 0x509   :  { %v11327_v53 = vunpack.i.h.bf16 %v18435_v7  ;;  %v11326_v18 = vunpack.i.l.bf16 %v18435_v7  ;;  %v11322_v13 = vunpack.i.h.bf16 %v18417_v54  ;;  %v11321_v48 = vunpack.i.l.bf16 %v18417_v54  ;;  %11549 = vrot.lane.b32.xlu1 %v11548_v35, %s12343_s5 }
 0x50a   :  { %11544 = vrot.lane.b32.xlu0 %v22443_v47, %s12343_s5  ;;  %v11553_v15 = vpack.i.bf16 %v4600_v57, %v4599_v20  ;;  %v11558_v40 = vpack.i.bf16 %v4620_v10, %v4619_v50  ;;  %v11332_v2 = vunpack.i.h.bf16 %v18450_v33  ;;  %v11331_v19 = vunpack.i.l.bf16 %v18450_v33  ;;  %v5232_v41 = vpop.permute.xlu1 %5231 }
 0x50b   :  { %v4601_v46 = vsel %vm51_vm1, %v4204_v4, %v4283_v17  ;;  %v4602_v9 = vsel %vm51_vm1, %v4205_v31, %v4284_v0  ;;  %v11317_v36 = vunpack.i.h.bf16 %v18400_v32  ;;  %v11316_v25 = vunpack.i.l.bf16 %v18400_v32  ;;  %v18474_v17 = vpop.permute.xlu0 %5233 }
 0x50c   :  { %v4621_v35 = vsel %vm51_vm1, %v4362_v44, %v4441_v16  ;;  %v4622_v56 = vsel %vm51_vm1, %v4363_v61, %v4442_v42  ;;  %v22444_v20 = vunpack.i.h.bf16 %v17950_v62  ;;  %v22445_v50 = vunpack.i.h.bf16 %v17984_v14 }
 0x50d   :  { %v5308_v31 = vsel %vm2008_vm3, %v11326_v18, %v11327_v53  ;;  %v5327_v10 = vsel %vm2008_vm3, %v11331_v19, %v11332_v2  ;;  %11559 = vrot.lane.b32.xlu1 %v11558_v40, %s12343_s5  ;;  %v11563_v0 = vpack.i.bf16 %v4602_v9, %v4601_v46  ;;  %v5291_v14 = vsel %vm2008_vm3, %v11321_v48, %v11322_v13  ;;  %v22451_v9 = vld [vmem:[#allocation52_spill] sm:$0xff] }
 0x50e   :  { %11554 = vrot.lane.b32.xlu0 %v11553_v15, %s12343_s5  ;;  %v5307_v57 = vsel %vm2008_vm3, %v22444_v20, %v11326_v18  ;;  %v5326_v4 = vsel %vm2008_vm3, %v22445_v50, %v11331_v19  ;;  %v9155_v62 = vpack.c.bf16 %v5327_v10, %v5308_v31  ;;  %v22446_v61 = vunpack.i.h.bf16 %v22394_v30 }
 0x50f   :  { %v9157_v44 = vpack.c.bf16 %v5326_v4, %v5307_v57  ;;  %v22447_v47 = vunpack.i.l.bf16 %v22394_v30  ;;  %v22448_v42 = vunpack.i.l.bf16 %v22423_v24  ;;  %v22450_v40 = vunpack.i.h.bf16 %v18320_v26  ;;  %v18495_v57 = vpop.permute.xlu1 %11334 }
 0x510   :  { %v22449_v18 = vmov %v22446_v61  ;;  %v5420_v46 = vsel %vm2008_vm3, %v5232_v41, %v18474_v17  ;;  %v10931_v20 = vunpack.i.l.bf16 %v22451_v9  ;;  %v11568_v50 = vpack.i.bf16 %v4622_v56, %v4621_v35  ;;  %9156 = vmatprep.subr.bf16.mxu0 %v9155_v62 }
 0x511   :  { %v3771_v16 = vsel %vm411_vm4, %v22447_v47, %v22446_v61  ;;  %v3772_v15 = vsel %vm411_vm4, %v22449_v18, %v22448_v42  ;;  %v5290_v19 = vsel %vm2008_vm3, %v22450_v40, %v11321_v48  ;;  %5707 = vmatprep.subr.mxu1 %v5420_v46  ;;  %v5419_v30 = vsel %vm2008_vm3, %v18350_v55, %v5232_v41  ;;  %v22455_v61 = vld [vmem:[#allocation96_spill] sm:$0xff]  ;;  %v22459_v46 = vld [vmem:[#allocation97_spill] sm:$0xff] }
 0x512   :  { %11564 = vrot.lane.b32.xlu0 %v11563_v0, %s12343_s5  ;;  %v5272_v26 = vsel %vm2008_vm3, %v11316_v25, %v11317_v36  ;;  %v10927_v48 = vunpack.i.h.bf16 %v22404_v12  ;;  %v10932_v4 = vunpack.i.h.bf16 %v22451_v9  ;;  %v22452_v31 = vunpack.i.h.bf16 %v18296_v11  ;;  %5708 = vmatpush1.msra.mxu1 %v5419_v30 }
 0x513   :  { %v9167_v0 = vpack.c.bf16 %v5291_v14, %v5272_v26  ;;  %v22453_v35 = vunpack.i.h.bf16 %v22423_v24  ;;  %v22454_v56 = vmov %v22448_v42  ;;  %v10877_v41 = vunpack.i.h.bf16 %v22400_v34  ;;  %11569 = vrot.lane.b32.xlu1 %v11568_v50, %s12343_s5  ;;  %9158 = vmatpush1.bf16.msra.mxu0 %v9157_v44  ;;  %v18516_v42 = vpop.permute.xlu0 %11339  ;;  %v18536_v26 = vpop.permute.xlu1 %11344 }
 0x514   :  { %v5271_v10 = vsel %vm2008_vm3, %v22452_v31, %v11316_v25  ;;  %v10881_v47 = vunpack.i.l.bf16 %v22455_v61  ;;  %v22456_v25 = vld [vmem:[#allocation74_spill] sm:$0xff]  ;;  %v22458_v14 = vunpack.i.h.bf16 %v22343_v28  ;;  %v10882_v24 = vunpack.i.h.bf16 %v22455_v61  ;;  %8920 = vmatmul.mubr.msk.f32.vlgmr.msra.gmra.mrb[10].mxu1 %vm5616_vm13, %v18370_v51  ;;  %v22462_v31 = vld [vmem:[#allocation25_spill] sm:$0xff] }
 0x515   :  { %v3773_v55 = vsel %vm411_vm4, %v22454_v56, %v22453_v35  ;;  %v9169_v11 = vpack.c.bf16 %v5290_v19, %v5271_v10  ;;  %v22457_v62 = vunpack.i.l.bf16 %v22456_v25  ;;  %v11197_v40 = vunpack.i.h.bf16 %v17872_v49  ;;  %9168 = vmatprep.subr.bf16.mxu1 %v9167_v0  ;;  %v22463_v10 = vld [vmem:[#allocation11_spill] sm:$0xff]  ;;  %5897 = vmatprep.mubr.f32.mxu1 %v18409_v21 }
 0x516   :  { %v4544_v44 = vsel %vm51_vm1, %v22459_v46, %v3772_v15  ;;  %v22460_v9 = vunpack.i.l.bf16 %v22402_v37  ;;  %v22461_v19 = vunpack.i.h.bf16 %v22456_v25  ;;  %v3970_v28 = vsel %vm512_vm5, %v10927_v48, %v10931_v20 }
 0x517   :  { %v3687_v18 = vsel %vm411_vm4, %v22458_v14, %v22457_v62  ;;  %v10977_v30 = vunpack.i.h.bf16 %v22414_v27  ;;  %9170 = vmatpush1.bf16.msra.mxu1 %v9169_v11  ;;  %v22464_v0 = vpack.i.bf16 %v22462_v31, %v22463_v10  ;;  %v22465_v37 = vunpack.i.l.bf16 %v22404_v12  ;;  %v22468_v12 = vld [vmem:[#allocation77_spill] sm:$0xff]  ;;  %v18576_v10 = vpop.permute.xlu1 %11354 }
 0x518   :  { %v3689_v50 = vsel %vm411_vm4, %v22461_v19, %v22460_v9  ;;  %v4543_v15 = vsel %vm51_vm1, %v3687_v18, %v3771_v16  ;;  %v3971_v56 = vsel %vm512_vm5, %v10931_v20, %v10932_v4  ;;  %v11311_v61 = vunpack.i.l.bf16 %v18386_v59  ;;  %v22467_v16 = vld [vmem:[#allocation17_spill] sm:$0xff]  ;;  %v18561_v20 = vpop.permute.xlu0 %11349 }
 0x519   :  { %11574 = vrot.lane.b32.xlu0 %v22464_v0, %s12343_s5  ;;  %v3969_v35 = vsel %vm512_vm5, %v22465_v37, %v10927_v48  ;;  %v18549_v25 = vsel %vm51_vm1, %v3689_v50, %v3773_v55  ;;  %v22466_v11 = vunpack.i.l.bf16 %v22400_v34  ;;  %v3871_v14 = vsel %vm512_vm5, %v10877_v41, %v10881_v47  ;;  %v22469_v48 = vld [vmem:[#allocation76_spill] sm:$0xff] }
 0x51a   :  { %v10981_v18 = vunpack.i.l.bf16 %v22467_v16  ;;  %v22470_v46 = vpack.i.bf16 %v22468_v12, %v22469_v48  ;;  %v11588_v4 = vpack.i.bf16 %v4544_v44, %v4543_v15  ;;  %v3872_v55 = vsel %vm512_vm5, %v10881_v47, %v10882_v24 }
 0x51b   :  { %v3870_v62 = vsel %vm512_vm5, %v22466_v11, %v10877_v41  ;;  %v22471_v9 = vunpack.i.l.bf16 %v17872_v49  ;;  %v4738_v41 = vsel %vm922_vm10, %v22430_v63, %v18173_v45  ;;  %v18571_v19 = vsel %vm51_vm1, %v3871_v14, %v3970_v28  ;;  %v22473_v49 = vld [vmem:[#allocation5_spill] sm:$0xff]  ;;  %v18619_v48 = vpop.permute.xlu1 %11364 }
 0x51c   :  { %11579 = vrot.lane.b32.xlu1 %v22470_v46, %s12343_s5  ;;  %v22472_v50 = vunpack.i.l.bf16 %v22414_v27  ;;  %v18580_v47 = vsel %vm51_vm1, %v3870_v62, %v3969_v35  ;;  %v11608_v24 = vpack.i.bf16 %v18549_v25, %v22473_v49  ;;  %v18585_v44 = vsel %vm51_vm1, %v3872_v55, %v3971_v56  ;;  %v18600_v35 = vpop.permute.xlu0 %11359  ;;  %v22474_v46 = vld [vmem:[#allocation49_spill] sm:$0xff]  ;;  %v22475_v55 = vld [vmem:[#allocation30_spill] sm:$0xff] }
 0x51d   :  { %v4127_v34 = vsel %vm602_vm6, %v22471_v9, %v11197_v40  ;;  %5251 = vrot.lane.b32.xlu0 %v4738_v41, %s12343_s5  ;;  %v4128_v63 = vsel %vm602_vm6, %v11197_v40, %v11311_v61  ;;  %v11357_v27 = vunpack.i.h.bf16 %v18576_v10  ;;  %v11356_v28 = vunpack.i.l.bf16 %v18576_v10 }
 0x51e   :  { %v4048_v31 = vsel %vm602_vm6, %v22472_v50, %v10977_v30  ;;  %v4739_v0 = vsel %vm922_vm10, %v18173_v45, %v18186_v38  ;;  %v10982_v15 = vunpack.i.h.bf16 %v22467_v16  ;;  %v4049_v37 = vsel %vm602_vm6, %v10977_v30, %v10981_v18 }
 0x51f   :  { %v11598_v40 = vpack.i.bf16 %v18571_v19, %v18580_v47  ;;  %v18605_v56 = vsel %vm51_vm1, %v4048_v31, %v4127_v34  ;;  %v11362_v11 = vunpack.i.h.bf16 %v18600_v35  ;;  %v11361_v45 = vunpack.i.l.bf16 %v18600_v35 }
 0x520   :  { %5253 = vrot.lane.b32.xlu1 %v4739_v0, %s12343_s5  ;;  %v4740_v62 = vsel %vm922_vm10, %v18186_v38, %v18259_v1  ;;  %v4741_v30 = vsel %vm922_vm10, %v18259_v1, %v18283_v52  ;;  %v11312_v14 = vunpack.i.h.bf16 %v18386_v59  ;;  %v5309_v12 = vsel %vm2008_vm3, %v11327_v53, %v11356_v28  ;;  %v11370_v31 = vpop.permute.xlu0 %11369 }
 0x521   :  { %v22476_v9 = vpack.i.bf16 %v22474_v46, %v22475_v55  ;;  %v5310_v38 = vsel %vm2008_vm3, %v11356_v28, %v11357_v27  ;;  %v18629_v34 = vsel %vm51_vm1, %v4049_v37, %v4128_v63  ;;  %v5328_v1 = vsel %vm2008_vm3, %v11332_v2, %v11361_v45  ;;  %v18648_v55 = vpop.permute.xlu1 %11374 }
 0x522   :  { %v11367_v7 = vunpack.i.h.bf16 %v18619_v48  ;;  %v11366_v53 = vunpack.i.l.bf16 %v18619_v48  ;;  %v5329_v41 = vsel %vm2008_vm3, %v11361_v45, %v11362_v11  ;;  %v11342_v19 = vunpack.i.h.bf16 %v18516_v42 }
 0x523   :  { %11584 = vrot.lane.b32.xlu0 %v22476_v9, %s12343_s5  ;;  %v11341_v50 = vunpack.i.l.bf16 %v18516_v42  ;;  %v9171_v47 = vpack.c.bf16 %v5329_v41, %v5310_v38  ;;  %v9173_v63 = vpack.c.bf16 %v5328_v1, %v5309_v12  ;;  %v11352_v33 = vunpack.i.h.bf16 %v18561_v20 }
 0x524   :  { %11589 = vrot.lane.b32.xlu1 %v11588_v4, %s12343_s5  ;;  %v11351_v2 = vunpack.i.l.bf16 %v18561_v20  ;;  %v11372_v28 = vunpack.i.h.bf16 %v11370_v31  ;;  %v11371_v0 = vunpack.i.l.bf16 %v11370_v31  ;;  %v11337_v37 = vunpack.i.h.bf16 %v18495_v57 }
 0x525   :  { %v11336_v48 = vunpack.i.l.bf16 %v18495_v57  ;;  %v11347_v45 = vunpack.i.h.bf16 %v18536_v26  ;;  %v11346_v46 = vunpack.i.l.bf16 %v18536_v26  ;;  %9172 = vmatprep.subr.bf16.mxu1 %v9171_v47  ;;  %v22477_v4 = vunpack.i.h.bf16 %v18109_v8 }
 0x526   :  { %v22478_v20 = vunpack.i.h.bf16 %v18111_v58  ;;  %9174 = vmatpush1.bf16.msra.mxu1 %v9173_v63  ;;  %v5346_v38 = vsel %vm2008_vm3, %v11366_v53, %v11367_v7  ;;  %v5365_v1 = vsel %vm2008_vm3, %v11371_v0, %v11372_v28  ;;  %v4129_v26 = vsel %vm602_vm6, %v11311_v61, %v11312_v14  ;;  %v18681_v14 = vpop.permute.xlu1 %11384 }
 0x527   :  { %5255 = vrot.lane.b32.xlu0 %v4740_v62, %s12343_s5  ;;  %v5345_v12 = vsel %vm2008_vm3, %v22477_v4, %v11366_v53  ;;  %v11380_v62 = vpop.permute.xlu0 %11379  ;;  %v9159_v41 = vpack.c.bf16 %v5365_v1, %v5346_v38  ;;  %v11603_v31 = vpack.i.bf16 %v18629_v34, %v18605_v56  ;;  %v4285_v58 = vsel %vm762_vm8, %v11252_v23, %v11341_v50  ;;  %v22479_v34 = vld [vmem:[#allocation48_spill] sm:$0xff] }
 0x528   :  { %v5364_v9 = vsel %vm2008_vm3, %v22478_v20, %v11371_v0  ;;  %5257 = vrot.lane.b32.xlu1 %v4741_v30, %s12343_s5  ;;  %v4286_v53 = vsel %vm762_vm8, %v11341_v50, %v11342_v19  ;;  %v4443_v59 = vsel %vm842_vm9, %v11262_v29, %v11351_v2  ;;  %v4444_v61 = vsel %vm842_vm9, %v11351_v2, %v11352_v33  ;;  %v22480_v50 = vld [vmem:[#allocation54_spill] sm:$0xff] }
 0x529   :  { %v9161_v8 = vpack.c.bf16 %v5364_v9, %v5345_v12  ;;  %v4206_v30 = vsel %vm762_vm8, %v11247_v6, %v11336_v48  ;;  %v4207_v22 = vsel %vm762_vm8, %v11336_v48, %v11337_v37  ;;  %v11382_v56 = vunpack.i.h.bf16 %v11380_v62  ;;  %9160 = vmatprep.subr.bf16.mxu0 %v9159_v41 }
 0x52a   :  { %v11381_v23 = vunpack.i.l.bf16 %v11380_v62  ;;  %v22481_v3 = vpack.i.bf16 %v22479_v34, %v22480_v50  ;;  %v4364_v60 = vsel %vm842_vm9, %v11257_v39, %v11346_v46  ;;  %v4365_v6 = vsel %vm842_vm9, %v11346_v46, %v11347_v45  ;;  %v11395_v38 = vpop.permute.xlu1 %11394 }
 0x52b   :  { %v11387_v29 = vunpack.i.h.bf16 %v18681_v14  ;;  %v11386_v47 = vunpack.i.l.bf16 %v18681_v14  ;;  %9162 = vmatpush1.bf16.msra.mxu0 %v9161_v8  ;;  %v18694_v63 = vpop.permute.xlu0 %11389  ;;  %v4603_v2 = vsel %vm51_vm1, %v4206_v30, %v4285_v58  ;;  %v4604_v0 = vsel %vm51_vm1, %v4207_v22, %v4286_v53  ;;  %v22483_v30 = vld [vmem:[#allocation53_spill] sm:$0xff] }
 0x52c   :  { %11594 = vrot.lane.b32.xlu0 %v22481_v3, %s12343_s5  ;;  %11599 = vrot.lane.b32.xlu1 %v11598_v40, %s12343_s5  ;;  %v4623_v48 = vsel %vm51_vm1, %v4364_v60, %v4443_v59  ;;  %v4624_v43 = vsel %vm51_vm1, %v4365_v6, %v4444_v61  ;;  %v11377_v39 = vunpack.i.h.bf16 %v18648_v55  ;;  %v11376_v46 = vunpack.i.l.bf16 %v18648_v55 }
 0x52d   :  { %v11392_v4 = vunpack.i.h.bf16 %v18694_v63  ;;  %v11391_v12 = vunpack.i.l.bf16 %v18694_v63  ;;  %v4366_v40 = vsel %vm842_vm9, %v11347_v45, %v11381_v23  ;;  %v4445_v20 = vsel %vm842_vm9, %v11352_v33, %v11382_v56 }
 0x52e   :  { %v5347_v9 = vsel %vm2008_vm3, %v11367_v7, %v11386_v47  ;;  %v5348_v1 = vsel %vm2008_vm3, %v11386_v47, %v11387_v29  ;;  %v11397_v55 = vunpack.i.h.bf16 %v11395_v38  ;;  %v11396_v41 = vunpack.i.l.bf16 %v11395_v38 }
 0x52f   :  { %v5366_v62 = vsel %vm2008_vm3, %v11372_v28, %v11391_v12  ;;  %v5367_v8 = vsel %vm2008_vm3, %v11391_v12, %v11392_v4  ;;  %v4050_v7 = vsel %vm602_vm6, %v10981_v18, %v10982_v15  ;;  %v11400_v33 = vpop.permute.xlu0 %11399  ;;  %v11613_v45 = vpack.i.bf16 %v4604_v0, %v4603_v2  ;;  %v4721_v15 = vpop.permute.xlu1 %4720 }
 0x530   :  { %11604 = vrot.lane.b32.xlu0 %v11603_v31, %s12343_s5  ;;  %11609 = vrot.lane.b32.xlu1 %v11608_v24, %s12343_s5  ;;  %v9175_v28 = vpack.c.bf16 %v5367_v8, %v5348_v1  ;;  %v9177_v31 = vpack.c.bf16 %v5366_v62, %v5347_v9  ;;  %v11402_v58 = vunpack.i.h.bf16 %v11400_v33  ;;  %v11401_v53 = vunpack.i.l.bf16 %v11400_v33 }
 0x531   :  { %v11618_v59 = vpack.i.bf16 %v4624_v43, %v4623_v48  ;;  %v4585_v61 = vsel %vm51_vm1, %v4050_v7, %v4129_v26  ;;  %v4287_v16 = vsel %vm762_vm8, %v11342_v19, %v11377_v39  ;;  %v4208_v18 = vsel %vm762_vm8, %v11337_v37, %v11376_v46 }
 0x532   :  { %9176 = vmatprep.subr.bf16.mxu1 %v9175_v28  ;;  %v4625_v25 = vsel %vm51_vm1, %v4366_v40, %v4445_v20  ;;  %v22482_v49 = vunpack.i.h.bf16 %v18227_v5  ;;  %v22484_v26 = vunpack.i.h.bf16 %v22483_v30  ;;  %v5384_v19 = vsel %vm2008_vm3, %v11396_v41, %v11397_v55 }
 0x533   :  { %9178 = vmatpush1.bf16.msra.mxu1 %v9177_v31  ;;  %v5403_v57 = vsel %vm2008_vm3, %v11401_v53, %v11402_v58  ;;  %v4723_v37 = vpop.permute.xlu0 %4722  ;;  %v11623_v22 = vpack.i.bf16 %v4585_v61, %v18585_v44  ;;  %v4605_v5 = vsel %vm51_vm1, %v4208_v18, %v4287_v16  ;;  %v18744_v34 = vpop.permute.xlu1 %11404  ;;  %v4742_v2 = vsel %vm922_vm10, %v18283_v52, %v4721_v15 }
 0x534   :  { %11614 = vrot.lane.b32.xlu0 %v11613_v45, %s12343_s5  ;;  %v5383_v24 = vsel %vm2008_vm3, %v22482_v49, %v11396_v41  ;;  %v5402_v42 = vsel %vm2008_vm3, %v22484_v26, %v11401_v53  ;;  %11619 = vrot.lane.b32.xlu1 %v11618_v59, %s12343_s5  ;;  %v9163_v56 = vpack.c.bf16 %v5403_v57, %v5384_v19  ;;  %v11407_v3 = vunpack.i.h.bf16 %v18744_v34 }
 0x535   :  { %v9165_v23 = vpack.c.bf16 %v5402_v42, %v5383_v24  ;;  %v11628_v50 = vpack.i.bf16 %v4625_v25, %v4605_v5  ;;  %v11406_v60 = vunpack.i.l.bf16 %v18744_v34  ;;  %v4743_v48 = vsel %vm922_vm10, %v4721_v15, %v4723_v37 }
 0x536   :  { %9164 = vmatprep.subr.bf16.mxu0 %v9163_v56 }
 0x537   :  { %9166 = vmatpush1.bf16.msra.mxu0 %v9165_v23  ;;  %v18750_v6 = vpop.permute.xlu0 %11409  ;;  %v4725_v0 = vpop.permute.xlu1 %4724  ;;  %v5385_v43 = vsel %vm2008_vm3, %v11397_v55, %v11406_v60  ;;  %v5386_v46 = vsel %vm2008_vm3, %v11406_v60, %v11407_v3 }
 0x538   :  { %11624 = vrot.lane.b32.xlu0 %v11623_v22, %s12343_s5  ;;  %11629 = vrot.lane.b32.xlu1 %v11628_v50, %s12343_s5  ;;  %v11412_v44 = vunpack.i.h.bf16 %v18750_v6  ;;  %v11411_v47 = vunpack.i.l.bf16 %v18750_v6  ;;  %v4744_v9 = vsel %vm922_vm10, %v4723_v37, %v4725_v0 }
 0x53a   :  { %v5404_v39 = vsel %vm2008_vm3, %v11402_v58, %v11411_v47  ;;  %v5405_v12 = vsel %vm2008_vm3, %v11411_v47, %v11412_v44 }
 0x53b   :  { %v11415_v52 = vpop.permute.xlu0 %11414  ;;  %v9179_v40 = vpack.c.bf16 %v5405_v12, %v5386_v46  ;;  %v9181_v20 = vpack.c.bf16 %v5404_v39, %v5385_v43  ;;  %v11420_v62 = vpop.permute.xlu1 %11419 }
 0x53c   :  { %5259 = vrot.lane.b32.xlu0 %v4742_v2, %s12343_s5  ;;  %5261 = vrot.lane.b32.xlu1 %v4743_v48, %s12343_s5  ;;  %v11417_v38 = vunpack.i.h.bf16 %v11415_v52  ;;  %v11416_v1 = vunpack.i.l.bf16 %v11415_v52  ;;  %v11422_v55 = vunpack.i.h.bf16 %v11420_v62  ;;  %v11421_v41 = vunpack.i.l.bf16 %v11420_v62 }
 0x53d   :  { %9180 = vmatprep.subr.bf16.mxu1 %v9179_v40 }
 0x53e   :  { %9182 = vmatpush1.bf16.msra.mxu1 %v9181_v20  ;;  %v5274_v7 = vsel %vm2008_vm3, %v11416_v1, %v11417_v38  ;;  %v5293_v33 = vsel %vm2008_vm3, %v11421_v41, %v11422_v55  ;;  %v5273_v45 = vsel %vm2008_vm3, %v11317_v36, %v11416_v1  ;;  %v5292_v28 = vsel %vm2008_vm3, %v11322_v13, %v11421_v41 }
 0x53f   :  { %v5236_v8 = vpop.permute.xlu0 %5235  ;;  %v5238_v31 = vpop.permute.xlu1 %5237  ;;  %v9183_v61 = vpack.c.bf16 %v5293_v33, %v5274_v7  ;;  %v9185_v16 = vpack.c.bf16 %v5292_v28, %v5273_v45 }
 0x540   :  { %5263 = vrot.lane.b32.xlu0 %v4744_v9, %s12343_s5  ;;  %v5422_v58 = vsel %vm2008_vm3, %v5236_v8, %v5238_v31  ;;  %v5421_v59 = vsel %vm2008_vm3, %v18474_v17, %v5236_v8 }
 0x541   :  { %5778 = vmatprep.subr.mxu0 %v5422_v58 }
 0x542   :  { %5779 = vmatpush1.msra.mxu0 %v5421_v59 }
 0x543   :  { %v18778_v53 = vpop.permute.xlu0 %11424  ;;  %v18782_v18 = vpop.permute.xlu1 %11429  ;;  %9184 = vmatprep.subr.bf16.mxu0 %v9183_v61  ;;  %8921 = vmatmul.mubr.msk.f32.vlgmr.msra.gmra.mrb[12].mxu0 %vm5616_vm13, %v18370_v51 }
 0x544   :  { %9186 = vmatpush1.bf16.msra.mxu0 %v9185_v16  ;;  %5968 = vmatprep.mubr.f32.mxu0 %v18409_v21  ;;  %v11427_v32 = vunpack.i.h.bf16 %v18778_v53  ;;  %v11426_v54 = vunpack.i.l.bf16 %v18778_v53  ;;  %v11432_v36 = vunpack.i.h.bf16 %v18782_v18  ;;  %v11431_v17 = vunpack.i.l.bf16 %v18782_v18 }
 0x546   :  { %v5276_v22 = vsel %vm2008_vm3, %v11426_v54, %v11427_v32  ;;  %v5295_v10 = vsel %vm2008_vm3, %v11431_v17, %v11432_v36  ;;  %v5294_v56 = vsel %vm2008_vm3, %v11422_v55, %v11431_v17 }
 0x547   :  { %v11435_v13 = vpop.permute.xlu0 %11434  ;;  %v11440_v49 = vpop.permute.xlu1 %11439  ;;  %v9199_v47 = vpack.c.bf16 %v5295_v10, %v5276_v22 }
 0x548   :  { %v11437_v15 = vunpack.i.h.bf16 %v11435_v13  ;;  %v11436_v25 = vunpack.i.l.bf16 %v11435_v13  ;;  %v11442_v30 = vunpack.i.h.bf16 %v11440_v49  ;;  %v11441_v26 = vunpack.i.l.bf16 %v11440_v49 }
 0x54a   :  { %v5311_v24 = vsel %vm2008_vm3, %v11357_v27, %v11436_v25  ;;  %v5312_v42 = vsel %vm2008_vm3, %v11436_v25, %v11437_v15  ;;  %v5330_v57 = vsel %vm2008_vm3, %v11362_v11, %v11441_v26  ;;  %v5331_v37 = vsel %vm2008_vm3, %v11441_v26, %v11442_v30 }
 0x54b   :  { %v5240_v19 = vpop.permute.xlu0 %5239  ;;  %v5275_v27 = vsel %vm2008_vm3, %v11417_v38, %v11426_v54  ;;  %v18807_v23 = vpop.permute.xlu1 %5241  ;;  %v9187_v5 = vpack.c.bf16 %v5331_v37, %v5312_v42  ;;  %v9189_v35 = vpack.c.bf16 %v5330_v57, %v5311_v24 }
 0x54c   :  { %v5424_v11 = vsel %vm2008_vm3, %v5240_v19, %v18807_v23  ;;  %v5423_v60 = vsel %vm2008_vm3, %v5238_v31, %v5240_v19  ;;  %v9201_v48 = vpack.c.bf16 %v5294_v56, %v5275_v27 }
 0x54d   :  { %5849 = vmatprep.subr.mxu1 %v5424_v11  ;;  %9188 = vmatprep.subr.bf16.mxu0 %v9187_v5 }
 0x54e   :  { %5850 = vmatpush1.msra.mxu1 %v5423_v60  ;;  %9190 = vmatpush1.bf16.msra.mxu0 %v9189_v35 }
 0x54f   :  { %v18811_v50 = vpop.permute.xlu0 %11444  ;;  %v18816_v43 = vpop.permute.xlu1 %11449  ;;  %9200 = vmatprep.subr.bf16.mxu1 %v9199_v47  ;;  %8922 = vmatmul.mubr.msk.f32.vlgmr.msra.gmra.mrb[12].mxu1 %vm5616_vm13, %v18370_v51 }
 0x550   :  { %v11447_v2 = vunpack.i.h.bf16 %v18811_v50  ;;  %v11446_v0 = vunpack.i.l.bf16 %v18811_v50  ;;  %v11452_v46 = vunpack.i.h.bf16 %v18816_v43  ;;  %v11451_v12 = vunpack.i.l.bf16 %v18816_v43  ;;  %9202 = vmatpush1.bf16.msra.mxu1 %v9201_v48  ;;  %6039 = vmatprep.mubr.f32.mxu1 %v18409_v21 }
 0x552   :  { %v5313_v39 = vsel %vm2008_vm3, %v11437_v15, %v11446_v0  ;;  %v5314_v52 = vsel %vm2008_vm3, %v11446_v0, %v11447_v2  ;;  %v5332_v20 = vsel %vm2008_vm3, %v11442_v30, %v11451_v12  ;;  %v5333_v1 = vsel %vm2008_vm3, %v11451_v12, %v11452_v46 }
 0x553   :  { %v11455_v40 = vpop.permute.xlu0 %11454  ;;  %v11460_v62 = vpop.permute.xlu1 %11459  ;;  %v9203_v55 = vpack.c.bf16 %v5333_v1, %v5314_v52  ;;  %v9205_v41 = vpack.c.bf16 %v5332_v20, %v5313_v39 }
 0x554   :  { %v11457_v9 = vunpack.i.h.bf16 %v11455_v40  ;;  %v11456_v38 = vunpack.i.l.bf16 %v11455_v40  ;;  %v11462_v7 = vunpack.i.h.bf16 %v11460_v62  ;;  %v11461_v33 = vunpack.i.l.bf16 %v11460_v62 }
 0x555   :  { %9204 = vmatprep.subr.bf16.mxu1 %v9203_v55 }
 0x556   :  { %v5349_v8 = vsel %vm2008_vm3, %v11387_v29, %v11456_v38  ;;  %v5350_v45 = vsel %vm2008_vm3, %v11456_v38, %v11457_v9  ;;  %v5368_v31 = vsel %vm2008_vm3, %v11392_v4, %v11461_v33  ;;  %9206 = vmatpush1.bf16.msra.mxu1 %v9205_v41  ;;  %v5369_v14 = vsel %vm2008_vm3, %v11461_v33, %v11462_v7 }
 0x557   :  { %v18835_v28 = vpop.permute.xlu0 %11464  ;;  %v18843_v61 = vpop.permute.xlu1 %11469  ;;  %v9191_v29 = vpack.c.bf16 %v5369_v14, %v5350_v45  ;;  %v9193_v16 = vpack.c.bf16 %v5368_v31, %v5349_v8 }
 0x558   :  { %v11467_v58 = vunpack.i.h.bf16 %v18835_v28  ;;  %v11466_v59 = vunpack.i.l.bf16 %v18835_v28  ;;  %v11472_v13 = vunpack.i.h.bf16 %v18843_v61  ;;  %v11471_v17 = vunpack.i.l.bf16 %v18843_v61 }
 0x559   :  { %9192 = vmatprep.subr.bf16.mxu0 %v9191_v29 }
 0x55a   :  { %v5351_v54 = vsel %vm2008_vm3, %v11457_v9, %v11466_v59  ;;  %v5352_v63 = vsel %vm2008_vm3, %v11466_v59, %v11467_v58  ;;  %v5370_v15 = vsel %vm2008_vm3, %v11462_v7, %v11471_v17  ;;  %9194 = vmatpush1.bf16.msra.mxu0 %v9193_v16  ;;  %v5371_v24 = vsel %vm2008_vm3, %v11471_v17, %v11472_v13 }
 0x55b   :  { %v11475_v4 = vpop.permute.xlu0 %11474  ;;  %v11480_v30 = vpop.permute.xlu1 %11479  ;;  %v9207_v26 = vpack.c.bf16 %v5371_v24, %v5352_v63  ;;  %v9209_v42 = vpack.c.bf16 %v5370_v15, %v5351_v54 }
 0x55c   :  { %v11477_v25 = vunpack.i.h.bf16 %v11475_v4  ;;  %v11476_v49 = vunpack.i.l.bf16 %v11475_v4  ;;  %v11482_v57 = vunpack.i.h.bf16 %v11480_v30  ;;  %v11481_v37 = vunpack.i.l.bf16 %v11480_v30 }
 0x55d   :  { %9208 = vmatprep.subr.bf16.mxu1 %v9207_v26 }
 0x55e   :  { %v5387_v19 = vsel %vm2008_vm3, %v11407_v3, %v11476_v49  ;;  %v5388_v22 = vsel %vm2008_vm3, %v11476_v49, %v11477_v25  ;;  %v5406_v27 = vsel %vm2008_vm3, %v11412_v44, %v11481_v37  ;;  %9210 = vmatpush1.bf16.msra.mxu1 %v9209_v42  ;;  %v5407_v34 = vsel %vm2008_vm3, %v11481_v37, %v11482_v57 }
 0x55f   :  { %v18859_v10 = vpop.permute.xlu0 %11484  ;;  %v18867_v35 = vpop.permute.xlu1 %11489  ;;  %v9195_v3 = vpack.c.bf16 %v5407_v34, %v5388_v22  ;;  %v9197_v11 = vpack.c.bf16 %v5406_v27, %v5387_v19 }
 0x560   :  { %v11487_v56 = vunpack.i.h.bf16 %v18859_v10  ;;  %v11486_v5 = vunpack.i.l.bf16 %v18859_v10  ;;  %v11492_v47 = vunpack.i.h.bf16 %v18867_v35  ;;  %v11491_v0 = vunpack.i.l.bf16 %v18867_v35 }
 0x561   :  { %9196 = vmatprep.subr.bf16.mxu0 %v9195_v3 }
 0x562   :  { %v5389_v60 = vsel %vm2008_vm3, %v11477_v25, %v11486_v5  ;;  %v5390_v6 = vsel %vm2008_vm3, %v11486_v5, %v11487_v56  ;;  %v5408_v48 = vsel %vm2008_vm3, %v11482_v57, %v11491_v0  ;;  %9198 = vmatpush1.bf16.msra.mxu0 %v9197_v11  ;;  %v5409_v52 = vsel %vm2008_vm3, %v11491_v0, %v11492_v47 }
 0x563   :  { %v11495_v44 = vpop.permute.xlu0 %11494  ;;  %v11500_v40 = vpop.permute.xlu1 %11499  ;;  %v9211_v20 = vpack.c.bf16 %v5409_v52, %v5390_v6  ;;  %v9213_v9 = vpack.c.bf16 %v5408_v48, %v5389_v60 }
 0x564   :  { %v11497_v39 = vunpack.i.h.bf16 %v11495_v44  ;;  %v11496_v12 = vunpack.i.l.bf16 %v11495_v44  ;;  %v11502_v38 = vunpack.i.h.bf16 %v11500_v40  ;;  %v11501_v1 = vunpack.i.l.bf16 %v11500_v40 }
 0x565   :  { %9212 = vmatprep.subr.bf16.mxu1 %v9211_v20 }
 0x566   :  { %9214 = vmatpush1.bf16.msra.mxu1 %v9213_v9  ;;  %v5278_v55 = vsel %vm2008_vm3, %v11496_v12, %v11497_v39  ;;  %v5297_v41 = vsel %vm2008_vm3, %v11501_v1, %v11502_v38  ;;  %v5277_v8 = vsel %vm2008_vm3, %v11427_v32, %v11496_v12  ;;  %v5296_v7 = vsel %vm2008_vm3, %v11432_v36, %v11501_v1 }
 0x567   :  { %v5244_v62 = vpop.permute.xlu0 %5243  ;;  %v5246_v33 = vpop.permute.xlu1 %5245  ;;  %v9215_v14 = vpack.c.bf16 %v5297_v41, %v5278_v55  ;;  %v9217_v29 = vpack.c.bf16 %v5296_v7, %v5277_v8 }
 0x568   :  { %v5426_v45 = vsel %vm2008_vm3, %v5244_v62, %v5246_v33  ;;  %v5425_v59 = vsel %vm2008_vm3, %v18807_v23, %v5244_v62 }
 0x569   :  { %5920 = vmatprep.subr.mxu0 %v5426_v45 }
 0x56a   :  { %5921 = vmatpush1.msra.mxu0 %v5425_v59 }
 0x56b   :  { %v18888_v31 = vpop.permute.xlu0 %11504  ;;  %v18892_v16 = vpop.permute.xlu1 %11509  ;;  %9216 = vmatprep.subr.bf16.mxu0 %v9215_v14  ;;  %8923 = vmatmul.mubr.msk.f32.vlgmr.msra.gmra.mrb[14].mxu0 %vm5616_vm13, %v18370_v51 }
 0x56c   :  { %9218 = vmatpush1.bf16.msra.mxu0 %v9217_v29  ;;  %6110 = vmatprep.mubr.f32.mxu0 %v18409_v21  ;;  %v11507_v53 = vunpack.i.h.bf16 %v18888_v31  ;;  %v11506_v18 = vunpack.i.l.bf16 %v18888_v31  ;;  %v11512_v36 = vunpack.i.h.bf16 %v18892_v16  ;;  %v11511_v23 = vunpack.i.l.bf16 %v18892_v16  ;;  %v19003_v16 = vld [vmem:[%s21020_s3] sm:$0xf] }
 0x56e   :  { %v5280_v42 = vsel %vm2008_vm3, %v11506_v18, %v11507_v53  ;;  %v5299_v50 = vsel %vm2008_vm3, %v11511_v23, %v11512_v36  ;;  %v5298_v19 = vsel %vm2008_vm3, %v11502_v38, %v11511_v23 }
 0x56f   :  { %v11515_v32 = vpop.permute.xlu0 %11514  ;;  %v11520_v63 = vpop.permute.xlu1 %11519  ;;  %v9231_v5 = vpack.c.bf16 %v5299_v50, %v5280_v42 }
 0x570   :  { %v11517_v54 = vunpack.i.h.bf16 %v11515_v32  ;;  %v11516_v17 = vunpack.i.l.bf16 %v11515_v32  ;;  %v11522_v15 = vunpack.i.h.bf16 %v11520_v63  ;;  %v11521_v25 = vunpack.i.l.bf16 %v11520_v63 }
 0x572   :  { %v5315_v4 = vsel %vm2008_vm3, %v11447_v2, %v11516_v17  ;;  %v5316_v49 = vsel %vm2008_vm3, %v11516_v17, %v11517_v54  ;;  %v5334_v30 = vsel %vm2008_vm3, %v11452_v46, %v11521_v25  ;;  %v5335_v26 = vsel %vm2008_vm3, %v11521_v25, %v11522_v15 }
 0x573   :  { %v5248_v24 = vpop.permute.xlu0 %5247  ;;  %v5279_v2 = vsel %vm2008_vm3, %v11497_v39, %v11506_v18  ;;  %v18917_v57 = vpop.permute.xlu1 %5249  ;;  %v9219_v37 = vpack.c.bf16 %v5335_v26, %v5316_v49  ;;  %v9221_v43 = vpack.c.bf16 %v5334_v30, %v5315_v4 }
 0x574   :  { %v5428_v46 = vsel %vm2008_vm3, %v5248_v24, %v18917_v57  ;;  %v5427_v27 = vsel %vm2008_vm3, %v5246_v33, %v5248_v24  ;;  %v9233_v11 = vpack.c.bf16 %v5298_v19, %v5279_v2 }
 0x575   :  { %5991 = vmatprep.subr.mxu1 %v5428_v46  ;;  %9220 = vmatprep.subr.bf16.mxu0 %v9219_v37 }
 0x576   :  { %5992 = vmatpush1.msra.mxu1 %v5427_v27  ;;  %9222 = vmatpush1.bf16.msra.mxu0 %v9221_v43 }
 0x577   :  { %v18921_v22 = vpop.permute.xlu0 %11524  ;;  %v18926_v60 = vpop.permute.xlu1 %11529  ;;  %9232 = vmatprep.subr.bf16.mxu1 %v9231_v5  ;;  %8924 = vmatmul.mubr.msk.f32.vlgmr.msra.gmra.mrb[14].mxu1 %vm5616_vm13, %v18370_v51 }
 0x578   :  { %v11527_v34 = vunpack.i.h.bf16 %v18921_v22  ;;  %v11526_v3 = vunpack.i.l.bf16 %v18921_v22  ;;  %v11532_v6 = vunpack.i.h.bf16 %v18926_v60  ;;  %v11531_v44 = vunpack.i.l.bf16 %v18926_v60  ;;  %9234 = vmatpush1.bf16.msra.mxu1 %v9233_v11  ;;  %6181 = vmatprep.mubr.f32.mxu1 %v18409_v21 }
 0x57a   :  { %v5317_v0 = vsel %vm2008_vm3, %v11517_v54, %v11526_v3  ;;  %v5318_v48 = vsel %vm2008_vm3, %v11526_v3, %v11527_v34  ;;  %v5336_v12 = vsel %vm2008_vm3, %v11522_v15, %v11531_v44  ;;  %v5337_v51 = vsel %vm2008_vm3, %v11531_v44, %v11532_v6 }
 0x57b   :  { %v11535_v39 = vpop.permute.xlu0 %11534  ;;  %v11540_v20 = vpop.permute.xlu1 %11539  ;;  %v9235_v9 = vpack.c.bf16 %v5337_v51, %v5318_v48  ;;  %v9237_v38 = vpack.c.bf16 %v5336_v12, %v5317_v0 }
 0x57c   :  { %v11537_v52 = vunpack.i.h.bf16 %v11535_v39  ;;  %v11536_v40 = vunpack.i.l.bf16 %v11535_v39  ;;  %v11542_v62 = vunpack.i.h.bf16 %v11540_v20  ;;  %v11541_v55 = vunpack.i.l.bf16 %v11540_v20 }
 0x57d   :  { %9236 = vmatprep.subr.bf16.mxu1 %v9235_v9 }
 0x57e   :  { %v5353_v1 = vsel %vm2008_vm3, %v11467_v58, %v11536_v40  ;;  %v5354_v21 = vsel %vm2008_vm3, %v11536_v40, %v11537_v52  ;;  %v5372_v8 = vsel %vm2008_vm3, %v11472_v13, %v11541_v55  ;;  %9238 = vmatpush1.bf16.msra.mxu1 %v9237_v38  ;;  %v5373_v28 = vsel %vm2008_vm3, %v11541_v55, %v11542_v62 }
 0x57f   :  { %v18945_v41 = vpop.permute.xlu0 %11544  ;;  %v18953_v45 = vpop.permute.xlu1 %11549  ;;  %v9223_v58 = vpack.c.bf16 %v5373_v28, %v5354_v21  ;;  %v9225_v59 = vpack.c.bf16 %v5372_v8, %v5353_v1 }
 0x580   :  { %v11547_v7 = vunpack.i.h.bf16 %v18945_v41  ;;  %v11546_v33 = vunpack.i.l.bf16 %v18945_v41  ;;  %v11552_v29 = vunpack.i.h.bf16 %v18953_v45  ;;  %v11551_v18 = vunpack.i.l.bf16 %v18953_v45 }
 0x581   :  { %9224 = vmatprep.subr.bf16.mxu0 %v9223_v58 }
 0x582   :  { %v5355_v14 = vsel %vm2008_vm3, %v11537_v52, %v11546_v33  ;;  %v5356_v61 = vsel %vm2008_vm3, %v11546_v33, %v11547_v7  ;;  %v5374_v32 = vsel %vm2008_vm3, %v11542_v62, %v11551_v18  ;;  %9226 = vmatpush1.bf16.msra.mxu0 %v9225_v59  ;;  %v5375_v17 = vsel %vm2008_vm3, %v11551_v18, %v11552_v29 }
 0x583   :  { %v11555_v13 = vpop.permute.xlu0 %11554  ;;  %v11560_v63 = vpop.permute.xlu1 %11559  ;;  %v9239_v4 = vpack.c.bf16 %v5375_v17, %v5356_v61  ;;  %v9241_v15 = vpack.c.bf16 %v5374_v32, %v5355_v14  ;;  %v19011_v14 = vld [vmem:[#allocation3] sm:$0xff] }
 0x584   :  { %v11557_v23 = vunpack.i.h.bf16 %v11555_v13  ;;  %v11556_v54 = vunpack.i.l.bf16 %v11555_v13  ;;  %v11562_v49 = vunpack.i.h.bf16 %v11560_v63  ;;  %v11561_v24 = vunpack.i.l.bf16 %v11560_v63  ;;  %22485 = vst [vmem:[#allocation90_spill] sm:$0xff] %v19011_v14 }
 0x585   :  { %9240 = vmatprep.subr.bf16.mxu1 %v9239_v4 }
 0x586   :  { %v5391_v25 = vsel %vm2008_vm3, %v11487_v56, %v11556_v54  ;;  %v5392_v30 = vsel %vm2008_vm3, %v11556_v54, %v11557_v23  ;;  %v5410_v42 = vsel %vm2008_vm3, %v11492_v47, %v11561_v24  ;;  %9242 = vmatpush1.bf16.msra.mxu1 %v9241_v15  ;;  %v5411_v10 = vsel %vm2008_vm3, %v11561_v24, %v11562_v49 }
 0x587   :  { %v18969_v26 = vpop.permute.xlu0 %11564  ;;  %v18977_v19 = vpop.permute.xlu1 %11569  ;;  %v9227_v56 = vpack.c.bf16 %v5411_v10, %v5392_v30  ;;  %v9229_v37 = vpack.c.bf16 %v5410_v42, %v5391_v25 }
 0x588   :  { %v11567_v50 = vunpack.i.h.bf16 %v18969_v26  ;;  %v11566_v2 = vunpack.i.l.bf16 %v18969_v26  ;;  %v11572_v46 = vunpack.i.h.bf16 %v18977_v19  ;;  %v11571_v27 = vunpack.i.l.bf16 %v18977_v19 }
 0x589   :  { %9228 = vmatprep.subr.bf16.mxu0 %v9227_v56 }
 0x58a   :  { %v5393_v43 = vsel %vm2008_vm3, %v11557_v23, %v11566_v2  ;;  %v5394_v35 = vsel %vm2008_vm3, %v11566_v2, %v11567_v50  ;;  %v5412_v5 = vsel %vm2008_vm3, %v11562_v49, %v11571_v27  ;;  %9230 = vmatpush1.bf16.msra.mxu0 %v9229_v37  ;;  %v5413_v0 = vsel %vm2008_vm3, %v11571_v27, %v11572_v46 }
 0x58b   :  { %v11575_v47 = vpop.permute.xlu0 %11574  ;;  %v9243_v48 = vpack.c.bf16 %v5413_v0, %v5394_v35  ;;  %v9245_v39 = vpack.c.bf16 %v5412_v5, %v5393_v43 }
 0x58c   :  { %v11577_v3 = vunpack.i.h.bf16 %v11575_v47  ;;  %v11576_v11 = vunpack.i.l.bf16 %v11575_v47 }
 0x58d   :  { %9244 = vmatprep.subr.bf16.mxu1 %v9243_v48 }
 0x58e   :  { %v11580_v44 = vpop.permute.xlu1 %11579  ;;  %9246 = vmatpush1.bf16.msra.mxu1 %v9245_v39  ;;  %v5282_v51 = vsel %vm2008_vm3, %v11576_v11, %v11577_v3  ;;  %v5281_v9 = vsel %vm2008_vm3, %v11507_v53, %v11576_v11 }
 0x58f   :  { %v11582_v12 = vunpack.i.h.bf16 %v11580_v44  ;;  %v11581_v52 = vunpack.i.l.bf16 %v11580_v44  ;;  %v5252_v40 = vpop.permute.xlu0 %5251 }
 0x590   :  { %v5429_v21 = vsel %vm2008_vm3, %v18917_v57, %v5252_v40 }
 0x591   :  { %v5301_v20 = vsel %vm2008_vm3, %v11581_v52, %v11582_v12  ;;  %v5300_v38 = vsel %vm2008_vm3, %v11512_v36, %v11581_v52 }
 0x592   :  { %v5254_v1 = vpop.permute.xlu1 %5253  ;;  %v9247_v8 = vpack.c.bf16 %v5301_v20, %v5282_v51  ;;  %v9249_v58 = vpack.c.bf16 %v5300_v38, %v5281_v9 }
 0x593   :  { %v5430_v62 = vsel %vm2008_vm3, %v5252_v40, %v5254_v1 }
 0x594   :  { %6062 = vmatprep.subr.mxu0 %v5430_v62 }
 0x595   :  { %v11585_v55 = vpop.permute.xlu0 %11584  ;;  %6063 = vmatpush1.msra.mxu0 %v5429_v21 }
 0x596   :  { %v11587_v33 = vunpack.i.h.bf16 %v11585_v55  ;;  %v11586_v28 = vunpack.i.l.bf16 %v11585_v55  ;;  %v11590_v31 = vpop.permute.xlu1 %11589  ;;  %8925 = vmatmul.mubr.msk.f32.vlgmr.msra.gmra.mrb[16].mxu0 %vm5616_vm13, %v19003_v16  ;;  %9248 = vmatprep.subr.bf16.mxu0 %v9247_v8 }
 0x597   :  { %v11592_v36 = vunpack.i.h.bf16 %v11590_v31  ;;  %v11591_v57 = vunpack.i.l.bf16 %v11590_v31  ;;  %9250 = vmatpush1.bf16.msra.mxu0 %v9249_v58  ;;  %6252 = vmatprep.mubr.f32.mxu0 %v19011_v14 }
 0x598   :  { %v5319_v53 = vsel %vm2008_vm3, %v11527_v34, %v11586_v28  ;;  %v5320_v59 = vsel %vm2008_vm3, %v11586_v28, %v11587_v33 }
 0x599   :  { %v5256_v18 = vpop.permute.xlu0 %5255  ;;  %v5338_v61 = vsel %vm2008_vm3, %v11532_v6, %v11591_v57  ;;  %v5339_v13 = vsel %vm2008_vm3, %v11591_v57, %v11592_v36 }
 0x59a   :  { %v19018_v32 = vpop.permute.xlu1 %5257  ;;  %v9251_v22 = vpack.c.bf16 %v5339_v13, %v5320_v59  ;;  %v9253_v34 = vpack.c.bf16 %v5338_v61, %v5319_v53  ;;  %v5431_v17 = vsel %vm2008_vm3, %v5254_v1, %v5256_v18 }
 0x59b   :  { %v5432_v23 = vsel %vm2008_vm3, %v5256_v18, %v19018_v32 }
 0x59c   :  { %6133 = vmatprep.subr.mxu1 %v5432_v23  ;;  %9252 = vmatprep.subr.bf16.mxu0 %v9251_v22 }
 0x59d   :  { %6134 = vmatpush1.msra.mxu1 %v5431_v17  ;;  %9254 = vmatpush1.bf16.msra.mxu0 %v9253_v34 }
 0x59e   :  { %v11595_v54 = vpop.permute.xlu0 %11594  ;;  %v11600_v60 = vpop.permute.xlu1 %11599  ;;  %8926 = vmatmul.mubr.msk.f32.vlgmr.msra.gmra.mrb[16].mxu1 %vm5616_vm13, %v19003_v16 }
 0x59f   :  { %v11597_v63 = vunpack.i.h.bf16 %v11595_v54  ;;  %v11596_v4 = vunpack.i.l.bf16 %v11595_v54  ;;  %v11602_v25 = vunpack.i.h.bf16 %v11600_v60  ;;  %v11601_v49 = vunpack.i.l.bf16 %v11600_v60  ;;  %6323 = vmatprep.mubr.f32.mxu1 %v19011_v14  ;;  %v22486_v60 = vld [vmem:[#allocation40_spill] sm:$0xff] }
 0x5a1   :  { %v5302_v6 = vsel %vm2008_vm3, %v11582_v12, %v11597_v63  ;;  %v5283_v15 = vsel %vm2008_vm3, %v11577_v3, %v11596_v4  ;;  %v9263_v30 = vpack.c.bf16 %v11597_v63, %v11596_v4  ;;  %v5357_v56 = vsel %vm2008_vm3, %v11547_v7, %v11601_v49 }
 0x5a2   :  { %v11605_v24 = vpop.permute.xlu0 %11604  ;;  %v9265_v42 = vpack.c.bf16 %v5302_v6, %v5283_v15  ;;  %v11610_v37 = vpop.permute.xlu1 %11609  ;;  %v5358_v43 = vsel %vm2008_vm3, %v11601_v49, %v11602_v25  ;;  %v22487_v15 = vld [vmem:[#allocation47_spill] sm:$0xff] }
 0x5a3   :  { %v11607_v2 = vunpack.i.h.bf16 %v11605_v24  ;;  %v11606_v10 = vunpack.i.l.bf16 %v11605_v24  ;;  %9264 = vmatprep.subr.bf16.mxu1 %v9263_v30  ;;  %v11612_v35 = vunpack.i.h.bf16 %v11610_v37  ;;  %v11611_v47 = vunpack.i.l.bf16 %v11610_v37 }
 0x5a4   :  { %9266 = vmatpush1.bf16.msra.mxu1 %v9265_v42 }
 0x5a5   :  { %v5376_v27 = vsel %vm2008_vm3, %v11552_v29, %v11606_v10  ;;  %v5377_v5 = vsel %vm2008_vm3, %v11606_v10, %v11607_v2  ;;  %v5321_v41 = vsel %vm2008_vm3, %v11587_v33, %v11611_v47  ;;  %v5340_v7 = vsel %vm2008_vm3, %v11592_v36, %v11612_v35 }
 0x5a6   :  { %v11615_v3 = vpop.permute.xlu0 %11614  ;;  %v9255_v11 = vpack.c.bf16 %v5377_v5, %v5358_v43  ;;  %v9257_v0 = vpack.c.bf16 %v5376_v27, %v5357_v56  ;;  %v11620_v39 = vpop.permute.xlu1 %11619  ;;  %v9267_v12 = vpack.c.bf16 %v11612_v35, %v11611_v47  ;;  %v9269_v45 = vpack.c.bf16 %v5340_v7, %v5321_v41  ;;  %v22488_v43 = vld [vmem:[#allocation63_spill] sm:$0xff]  ;;  %v22489_v47 = vld [vmem:[#allocation46_spill] sm:$0xff] }
 0x5a7   :  { %v11617_v44 = vunpack.i.h.bf16 %v11615_v3  ;;  %v11616_v48 = vunpack.i.l.bf16 %v11615_v3  ;;  %v11622_v52 = vunpack.i.h.bf16 %v11620_v39  ;;  %v11621_v40 = vunpack.i.l.bf16 %v11620_v39 }
 0x5a8   :  { %9256 = vmatprep.subr.bf16.mxu0 %v9255_v11  ;;  %9268 = vmatprep.subr.bf16.mxu1 %v9267_v12 }
 0x5a9   :  { %v5395_v29 = vsel %vm2008_vm3, %v11567_v50, %v11616_v48  ;;  %9258 = vmatpush1.bf16.msra.mxu0 %v9257_v0  ;;  %v5396_v51 = vsel %vm2008_vm3, %v11616_v48, %v11617_v44  ;;  %v5414_v9 = vsel %vm2008_vm3, %v11572_v46, %v11621_v40  ;;  %9270 = vmatpush1.bf16.msra.mxu1 %v9269_v45  ;;  %v22490_v45 = vld [vmem:[#allocation64_spill] sm:$0xff] }
 0x5aa   :  { %v11625_v20 = vpop.permute.xlu0 %11624  ;;  %v5415_v62 = vsel %vm2008_vm3, %v11621_v40, %v11622_v52  ;;  %v11630_v55 = vpop.permute.xlu1 %11629  ;;  %v9261_v21 = vpack.c.bf16 %v5414_v9, %v5395_v29  ;;  %v22491_v40 = vld [vmem:[#allocation65_spill] sm:$0xff] }
 0x5ab   :  { %v11627_v38 = vunpack.i.h.bf16 %v11625_v20  ;;  %v11626_v1 = vunpack.i.l.bf16 %v11625_v20  ;;  %v9259_v26 = vpack.c.bf16 %v5415_v62, %v5396_v51  ;;  %v11632_v33 = vunpack.i.h.bf16 %v11630_v55 }
 0x5ac   :  { %v11631_v28 = vunpack.i.l.bf16 %v11630_v55 }
 0x5ad   :  { %v5359_v50 = vsel %vm2008_vm3, %v11602_v25, %v11626_v1  ;;  %v5378_v8 = vsel %vm2008_vm3, %v11607_v2, %v11627_v38  ;;  %9260 = vmatprep.subr.bf16.mxu0 %v9259_v26  ;;  %v9271_v31 = vpack.c.bf16 %v11627_v38, %v11626_v1  ;;  %v5416_v36 = vsel %vm2008_vm3, %v11622_v52, %v11632_v33 }
 0x5ae   :  { %v5260_v58 = vpop.permute.xlu0 %5259  ;;  %v9273_v19 = vpack.c.bf16 %v5378_v8, %v5359_v50  ;;  %9262 = vmatpush1.bf16.msra.mxu0 %v9261_v21  ;;  %v9275_v46 = vpack.c.bf16 %v11632_v33, %v11631_v28  ;;  %v5397_v53 = vsel %vm2008_vm3, %v11617_v44, %v11631_v28  ;;  %v5262_v57 = vpop.permute.xlu1 %5261  ;;  %v22492_v8 = vld [vmem:[#allocation51_spill] sm:$0xff] }
 0x5af   :  { %9272 = vmatprep.subr.bf16.mxu1 %v9271_v31  ;;  %v5434_v59 = vsel %vm2008_vm3, %v5260_v58, %v5262_v57  ;;  %v5433_v18 = vsel %vm2008_vm3, %v19018_v32, %v5260_v58  ;;  %v9277_v61 = vpack.c.bf16 %v5416_v36, %v5397_v53  ;;  %v22493_v58 = vld [vmem:[#allocation68_spill] sm:$0xff] }
 0x5b0   :  { %9274 = vmatpush1.bf16.msra.mxu1 %v9273_v19  ;;  %6204 = vmatprep.subr.mxu0 %v5434_v59 }
 0x5b1   :  { %9276 = vmatprep.subr.bf16.mxu1 %v9275_v46 }
 0x5b2   :  { %6205 = vmatpush1.msra.mxu0 %v5433_v18  ;;  %v5264_v13 = vpop.permute.xlu0 %5263 }
 0x5b3   :  { %8927 = vmatmul.mubr.msk.f32.vlgmr.msra.gmra.mrb[18].mxu0 %vm5616_vm13, %v19003_v16  ;;  %v5435_v22 = vsel %vm2008_vm3, %v5262_v57, %v5264_v13 }
 0x5b4   :  { %9278 = vmatpush1.bf16.msra.mxu1 %v9277_v61  ;;  %7981 = vmatprep.mubr.f32.mxu0 %v19011_v14 }
 0x5b5   :  { %6275 = vmatprep.subr.mxu1 %v5264_v13 }
 0x5b8   :  { %6276 = vmatpush1.msra.mxu1 %v5435_v22  ;;  %v22494_v22 = vld [vmem:[#allocation13_spill] sm:$0xff] }
 0x5b9   :  { %8928 = vmatmul.mubr.msk.f32.vlgmr.msra.gmra.mrb[18].mxu1 %vm5616_vm13, %v19003_v16 }
 0x5ba   :  { %8052 = vmatprep.mubr.f32.mxu1 %v19011_v14 }
 0x5d6   :  { %v19060_v34 = vpop.f32.mrb[10].mxu0 }
 0x5d7   :  { %v6330_v32 = vmul.f32 %v19060_v34, %v19060_v34  ;;  %v19064_v23 = vpop.f32.mrb[11].mxu0 }
 0x5d8   :  { %v6331_v54 = vmul.f32 %v19064_v23, %v19064_v23 }
 0x5d9   :  { %v6370_v17 = vrot.slane %v6330_v32, 4 }
 0x5da   :  { %v6371_v63 = vrot.slane %v6331_v54, 4 }
 0x5db   :  { %v6410_v4 = vsel %vm51_vm1, %v19060_v34, %v6370_v17  ;;  %v22495_v17 = vld [vmem:[#allocation59_spill] sm:$0xff] }
 0x5dc   :  { %v6430_v6 = vmul.f32 %v6410_v4, %v22486_v60  ;;  %v6411_v16 = vsel %vm51_vm1, %v19064_v23, %v6371_v63 }
 0x5dd   :  { %v6431_v25 = vmul.f32 %v6411_v16, %v22487_v15 }
 0x5df   :  { %v6450_v49 = vadd.f32 %v6431_v25, %v6430_v6 }
 0x5e7   :  { %v19074_v24 = vpop.f32.mrb[10].mxu1 }
 0x5e8   :  { %v6332_v30 = vmul.f32 %v19074_v24, %v19074_v24  ;;  %v19078_v42 = vpop.f32.mrb[11].mxu1 }
 0x5e9   :  { %v6333_v2 = vmul.f32 %v19078_v42, %v19078_v42 }
 0x5ea   :  { %v6372_v10 = vrot.slane %v6332_v30, 4 }
 0x5eb   :  { %v6373_v56 = vrot.slane %v6333_v2, 4 }
 0x5ec   :  { %v6412_v37 = vsel %vm51_vm1, %v19074_v24, %v6372_v10 }
 0x5ed   :  { %v6432_v27 = vmul.f32 %v6412_v37, %v22488_v43  ;;  %v6413_v35 = vsel %vm51_vm1, %v19078_v42, %v6373_v56  ;;  %v22496_v37 = vld [vmem:[#allocation75_spill] sm:$0xff] }
 0x5ee   :  { %v6433_v5 = vmul.f32 %v6413_v35, %v22489_v47 }
 0x5ef   :  { %v6451_v3 = vadd.f32 %v6450_v49, %v6432_v27 }
 0x5f1   :  { %v6452_v11 = vadd.f32 %v6451_v3, %v6433_v5  ;;  %v22497_v5 = vld [vmem:[#allocation55_spill] sm:$0xff] }
 0x616   :  { %v19088_v0 = vpop.f32.mrb[12].mxu0 }
 0x617   :  { %v6334_v41 = vmul.f32 %v19088_v0, %v19088_v0  ;;  %v19092_v7 = vpop.f32.mrb[13].mxu0 }
 0x618   :  { %v6335_v44 = vmul.f32 %v19092_v7, %v19092_v7 }
 0x619   :  { %v6374_v48 = vrot.slane %v6334_v41, 4 }
 0x61a   :  { %v6375_v39 = vrot.slane %v6335_v44, 4 }
 0x61b   :  { %v6414_v12 = vsel %vm51_vm1, %v19088_v0, %v6374_v48 }
 0x61c   :  { %v6434_v29 = vmul.f32 %v6414_v12, %v22490_v45  ;;  %v6415_v52 = vsel %vm51_vm1, %v19092_v7, %v6375_v39 }
 0x61d   :  { %v6435_v51 = vmul.f32 %v6415_v52, %v22491_v40 }
 0x61e   :  { %v6453_v20 = vadd.f32 %v6452_v11, %v6434_v29 }
 0x620   :  { %v6454_v9 = vadd.f32 %v6453_v20, %v6435_v51  ;;  %v22498_v20 = vld [vmem:[#allocation66_spill] sm:$0xff] }
 0x622   :  { %v19102_v38 = vpop.f32.mrb[12].mxu1 }
 0x623   :  { %v6336_v1 = vmul.f32 %v19102_v38, %v19102_v38  ;;  %v19106_v62 = vpop.f32.mrb[13].mxu1 }
 0x624   :  { %v6337_v55 = vmul.f32 %v19106_v62, %v19106_v62 }
 0x625   :  { %v6376_v26 = vrot.slane %v6336_v1, 4 }
 0x626   :  { %v6377_v21 = vrot.slane %v6337_v55, 4  ;;  %v22499_v55 = vld [vmem:[#allocation72_spill] sm:$0xff] }
 0x627   :  { %v6416_v50 = vsel %vm51_vm1, %v19102_v38, %v6376_v26 }
 0x628   :  { %v6436_v33 = vmul.f32 %v6416_v50, %v22492_v8  ;;  %v6417_v28 = vsel %vm51_vm1, %v19106_v62, %v6377_v21 }
 0x629   :  { %v6437_v31 = vmul.f32 %v6417_v28, %v22493_v58 }
 0x62a   :  { %v6455_v19 = vadd.f32 %v6454_v9, %v6436_v33 }
 0x62c   :  { %v6456_v46 = vadd.f32 %v6455_v19, %v6437_v31 }
 0x63e   :  { %v19116_v53 = vpop.f32.mrb[14].mxu0 }
 0x63f   :  { %v6338_v36 = vmul.f32 %v19116_v53, %v19116_v53  ;;  %v19120_v57 = vpop.f32.mrb[15].mxu0 }
 0x640   :  { %v6339_v59 = vmul.f32 %v19120_v57, %v19120_v57 }
 0x641   :  { %v6378_v18 = vrot.slane %v6338_v36, 4 }
 0x642   :  { %v6379_v61 = vrot.slane %v6339_v59, 4 }
 0x643   :  { %v6418_v13 = vsel %vm51_vm1, %v19116_v53, %v6378_v18  ;;  %v22500_v18 = vld [vmem:[#allocation18_spill] sm:$0xff] }
 0x644   :  { %v6438_v32 = vmul.f32 %v6418_v13, %v22494_v22  ;;  %v6419_v54 = vsel %vm51_vm1, %v19120_v57, %v6379_v61 }
 0x645   :  { %v6439_v63 = vmul.f32 %v6419_v54, %v22495_v17 }
 0x646   :  { %v6457_v4 = vadd.f32 %v6456_v46, %v6438_v32  ;;  %v22501_v32 = vld [vmem:[#allocation9_spill] sm:$0xff] }
 0x648   :  { %v6458_v6 = vadd.f32 %v6457_v4, %v6439_v63 }
 0x64a   :  { %v19130_v16 = vpop.f32.mrb[14].mxu1 }
 0x64b   :  { %v6340_v25 = vmul.f32 %v19130_v16, %v19130_v16  ;;  %v19134_v49 = vpop.f32.mrb[15].mxu1 }
 0x64c   :  { %v6341_v30 = vmul.f32 %v19134_v49, %v19134_v49 }
 0x64d   :  { %v6380_v2 = vrot.slane %v6340_v25, 4 }
 0x64e   :  { %v6381_v10 = vrot.slane %v6341_v30, 4 }
 0x64f   :  { %v6420_v56 = vsel %vm51_vm1, %v19130_v16, %v6380_v2 }
 0x650   :  { %v6440_v27 = vmul.f32 %v6420_v56, %v22496_v37  ;;  %v6421_v35 = vsel %vm51_vm1, %v19134_v49, %v6381_v10 }
 0x651   :  { %v6441_v3 = vmul.f32 %v6421_v35, %v22497_v5  ;;  %v22502_v35 = vld [vmem:[#allocation32_spill] sm:$0xff] }
 0x652   :  { %v6459_v11 = vadd.f32 %v6458_v6, %v6440_v27 }
 0x654   :  { %v6460_v41 = vadd.f32 %v6459_v11, %v6441_v3 }
 0x669   :  { %v19144_v44 = vpop.f32.mrb[16].mxu0 }
 0x66a   :  { %v6342_v48 = vmul.f32 %v19144_v44, %v19144_v44  ;;  %v19148_v39 = vpop.f32.mrb[17].mxu0 }
 0x66b   :  { %v6343_v12 = vmul.f32 %v19148_v39, %v19148_v39 }
 0x66c   :  { %v6382_v29 = vrot.slane %v6342_v48, 4  ;;  %v22503_v48 = vld [vmem:[#allocation33_spill] sm:$0xff] }
 0x66d   :  { %v6383_v52 = vrot.slane %v6343_v12, 4 }
 0x66e   :  { %v6422_v51 = vsel %vm51_vm1, %v19144_v44, %v6382_v29 }
 0x66f   :  { %v6442_v9 = vmul.f32 %v6422_v51, %v22498_v20  ;;  %v6423_v1 = vsel %vm51_vm1, %v19148_v39, %v6383_v52 }
 0x670   :  { %v6443_v26 = vmul.f32 %v6423_v1, %v22499_v55 }
 0x671   :  { %v6461_v21 = vadd.f32 %v6460_v41, %v6442_v9  ;;  %v19158_v50 = vpop.f32.mrb[16].mxu1 }
 0x672   :  { %v6344_v33 = vmul.f32 %v19158_v50, %v19158_v50  ;;  %v19162_v28 = vpop.f32.mrb[17].mxu1 }
 0x673   :  { %v6462_v31 = vadd.f32 %v6461_v21, %v6443_v26  ;;  %v6345_v19 = vmul.f32 %v19162_v28, %v19162_v28 }
 0x674   :  { %v6384_v46 = vrot.slane %v6344_v33, 4 }
 0x675   :  { %v6385_v36 = vrot.slane %v6345_v19, 4 }
 0x676   :  { %v6424_v59 = vsel %vm51_vm1, %v19158_v50, %v6384_v46 }
 0x677   :  { %v6444_v61 = vmul.f32 %v6424_v59, %v22500_v18  ;;  %v6425_v13 = vsel %vm51_vm1, %v19162_v28, %v6385_v36  ;;  %v22505_v36 = vld [vmem:[#allocation41_spill] sm:$0xff] }
 0x678   :  { %v6445_v54 = vmul.f32 %v6425_v13, %v22501_v32 }
 0x679   :  { %v6463_v63 = vadd.f32 %v6462_v31, %v6444_v61  ;;  %v22504_v31 = vld [vmem:[#allocation37_spill] sm:$0xff] }
 0x67b   :  { %v6464_v4 = vadd.f32 %v6463_v63, %v6445_v54 }
 0x686   :  { %v6254_v6 = vpop.f32.mrb[18].mxu0 }
 0x687   :  { %v6346_v25 = vmul.f32 %v6254_v6, %v6254_v6  ;;  %v6256_v30 = vpop.f32.mrb[19].mxu0 }
 0x688   :  { %v6347_v2 = vmul.f32 %v6256_v30, %v6256_v30 }
 0x689   :  { %v6386_v10 = vrot.slane %v6346_v25, 4 }
 0x68a   :  { %v6387_v56 = vrot.slane %v6347_v2, 4 }
 0x68b   :  { %v6426_v27 = vsel %vm51_vm1, %v6254_v6, %v6386_v10 }
 0x68c   :  { %v6446_v3 = vmul.f32 %v6426_v27, %v22502_v35  ;;  %v6427_v11 = vsel %vm51_vm1, %v6256_v30, %v6387_v56  ;;  %v19175_v41 = vpop.f32.mrb[18].mxu1 }
 0x68d   :  { %v6447_v12 = vmul.f32 %v6427_v11, %v22503_v48  ;;  %v6348_v29 = vmul.f32 %v19175_v41, %v19175_v41  ;;  %v19180_v52 = vpop.f32.mrb[19].mxu1 }
 0x68e   :  { %v6465_v51 = vadd.f32 %v6464_v4, %v6446_v3  ;;  %v6349_v9 = vmul.f32 %v19180_v52, %v19180_v52  ;;  %v6480_v3 = vld [vmem:[%s21021_s6] sm:$0xf] }
 0x68f   :  { %v6388_v1 = vrot.slane %v6348_v29, 4  ;;  %v6487_v29 = vld [vmem:[%s21022_s7] sm:$0xf] }
 0x690   :  { %v6466_v26 = vadd.f32 %v6465_v51, %v6447_v12  ;;  %v6389_v21 = vrot.slane %v6349_v9, 4 }
 0x691   :  { %v6428_v33 = vsel %vm51_vm1, %v19175_v41, %v6388_v1 }
 0x692   :  { %v6448_v19 = vmul.f32 %v6428_v33, %v22504_v31  ;;  %v6429_v46 = vsel %vm51_vm1, %v19180_v52, %v6389_v21 }
 0x693   :  { %v6449_v59 = vmul.f32 %v6429_v46, %v22505_v36 }
 0x694   :  { %v6467_v61 = vadd.f32 %v6466_v26, %v6448_v19 }
 0x695   :  { %v6469_v13 = vsel %vm6468_vm14, %v6449_v59, 0.0 }
 0x696   :  { %v6470_v54 = vadd.f32 %v6469_v13, %v6467_v61 }
 0x698   :  { %6471 = vadd.xlane.f32.xlu1 %v6470_v54 }
 0x725   :  { %v6472_v63 = vpop.xlane.xlu1 %6471 }
 0x726   :  { %v6474_v4 = vmul.f32 0.00048828125, %v6472_v63 }
 0x728   :  { %v6475_v25 = vmul.f32 %v6474_v4, %v6474_v4 }
 0x72a   :  { %v6477_v2 = vrot.slane %v6475_v25, 4 }
 0x72c   :  { %v6479_v10 = vsub.f32 %v6474_v4, %v6477_v2 }
 0x72e   :  { %v6481_v56 = vadd.f32 1e-05, %v6479_v10 }
 0x730   :  { %12279 = vrsqrt.f32 %v6481_v56 }
 0x73a   :  { %v12280_v27 = vpop.eup %12279 }
 0x73b   :  { %v6484_v11 = vrot.slane %v12280_v27, 4 }
 0x73d   :  { %v6486_v12 = vmul.f32 %v6484_v11, %v6480_v3 }
 0x73f   :  { %v6488_v51 = vmul.f32 %v6486_v12, %v6474_v4  ;;  %6492 = vperm.xlu0 %11633, %v6486_v12  }
 0x741   :  { %v6489_v9 = vsub.f32 %v6487_v29, %v6488_v51 }
 0x743   :  { %6517 = vperm.xlu0 %11633, %v6489_v9  }
 0x7be   :  { %v19197_v1 = vpop.permute.xlu0 %6492 }
 0x7bf   :  { %v6499_v26 = vmul.f32 %v19197_v1, %v19088_v0  ;;  %v6500_v21 = vmul.f32 %v19197_v1, %v19092_v7  ;;  %v6495_v33 = vmul.f32 %v19197_v1, %v19060_v34  ;;  %v6496_v19 = vmul.f32 %v19197_v1, %v19064_v23 }
 0x7c0   :  { %v6503_v46 = vmul.f32 %v19197_v1, %v19116_v53  ;;  %v6504_v59 = vmul.f32 %v19197_v1, %v19120_v57  ;;  %v6497_v61 = vmul.f32 %v19197_v1, %v19074_v24  ;;  %v6498_v0 = vmul.f32 %v19197_v1, %v19078_v42 }
 0x7c1   :  { %v6507_v7 = vmul.f32 %v19197_v1, %v19144_v44  ;;  %v6508_v34 = vmul.f32 %v19197_v1, %v19148_v39  ;;  %v6501_v23 = vmul.f32 %v19197_v1, %v19102_v38  ;;  %v6502_v53 = vmul.f32 %v19197_v1, %v19106_v62 }
 0x7c2   :  { %v19223_v13 = vpop.permute.xlu0 %6517  ;;  %v6511_v57 = vmul.f32 %v19197_v1, %v6254_v6  ;;  %v6512_v24 = vmul.f32 %v19197_v1, %v6256_v30  ;;  %v6505_v42 = vmul.f32 %v19197_v1, %v19130_v16  ;;  %v6506_v44 = vmul.f32 %v19197_v1, %v19134_v49 }
 0x7c3   :  { %v6524_v39 = vadd.f32 %v19223_v13, %v6499_v26  ;;  %v6525_v54 = vadd.f32 %v19223_v13, %v6500_v21  ;;  %v6520_v38 = vadd.f32 %v19223_v13, %v6495_v33  ;;  %v6521_v62 = vadd.f32 %v19223_v13, %v6496_v19 }
 0x7c4   :  { %v6528_v63 = vadd.f32 %v19223_v13, %v6503_v46  ;;  %v6529_v6 = vadd.f32 %v19223_v13, %v6504_v59  ;;  %v6522_v30 = vadd.f32 %v19223_v13, %v6497_v61  ;;  %v6523_v4 = vadd.f32 %v19223_v13, %v6498_v0 }
 0x7c5   :  { %v6544_v16 = vmax.f32 %v6524_v39, 0.0  ;;  %v6545_v25 = vmax.f32 %v6525_v54, 0.0  ;;  %v6540_v2 = vmax.f32 %v6520_v38, 0.0  ;;  %v6541_v49 = vmax.f32 %v6521_v62, 0.0 }
 0x7c6   :  { %v6548_v10 = vmax.f32 %v6528_v63, 0.0  ;;  %v6549_v56 = vmax.f32 %v6529_v6, 0.0  ;;  %v6542_v27 = vmax.f32 %v6522_v30, 0.0  ;;  %v6543_v3 = vmax.f32 %v6523_v4, 0.0 }
 0x7c7   :  { %v19240_v11 = vmul.f32 %v6544_v16, %v22490_v45  ;;  %v19243_v12 = vmul.f32 %v6545_v25, %v22491_v40  ;;  %v19246_v29 = vmul.f32 %v6540_v2, %v22486_v60  ;;  %v19249_v51 = vmul.f32 %v6541_v49, %v22487_v15 }
 0x7c8   :  { %v19252_v9 = vmul.f32 %v6548_v10, %v22494_v22  ;;  %v19255_v26 = vmul.f32 %v6549_v56, %v22495_v17  ;;  %v19258_v21 = vmul.f32 %v6542_v27, %v22488_v43  ;;  %v19261_v33 = vmul.f32 %v6543_v3, %v22489_v47 }
 0x7c9   :  { %v19265_v19 = vcombine.low %v19240_v11, %v19243_v12  ;;  %v19269_v46 = vcombine.low %v19246_v29, %v19249_v51  ;;  %v6532_v59 = vadd.f32 %v19223_v13, %v6507_v7  ;;  %v6533_v61 = vadd.f32 %v19223_v13, %v6508_v34 }
 0x7ca   :  { %v19275_v0 = vcombine.low %v19252_v9, %v19255_v26  ;;  %v19279_v39 = vcombine.low %v19258_v21, %v19261_v33  ;;  %v6526_v54 = vadd.f32 %v19223_v13, %v6501_v23  ;;  %v6527_v38 = vadd.f32 %v19223_v13, %v6502_v53 }
 0x7cb   :  { %6622 = vst [vmem:[#allocation3 + $0x14] sm:$0xff] %v19265_v19  ;;  %7288 = vrot.lane.b32.xlu1 %v19265_v19, %s12337_s14  ;;  %6620 = vst [vmem:[#allocation3 + $0x4] sm:$0xff] %v19269_v46  ;;  %7280 = vrot.lane.b32.xlu0 %v19269_v46, %s12337_s14  ;;  %v6552_v7 = vmax.f32 %v6532_v59, 0.0  ;;  %v6553_v34 = vmax.f32 %v6533_v61, 0.0  ;;  %v6536_v62 = vadd.f32 %v19223_v13, %v6511_v57 }
 0x7cc   :  { %v6537_v63 = vadd.f32 %v19223_v13, %v6512_v24  ;;  %6624 = vst [vmem:[#allocation3 + $0x24] sm:$0xff] %v19275_v0  ;;  %6621 = vst [vmem:[#allocation3 + $0xc] sm:$0xff] %v19279_v39  ;;  %v6546_v23 = vmax.f32 %v6526_v54, 0.0  ;;  %v6547_v53 = vmax.f32 %v6527_v38, 0.0  ;;  %v6530_v6 = vadd.f32 %v19223_v13, %v6505_v42 }
 0x7cd   :  { %v6531_v30 = vadd.f32 %v19223_v13, %v6506_v44  ;;  %v19296_v4 = vmul.f32 %v6552_v7, %v22498_v20  ;;  %v19299_v16 = vmul.f32 %v6553_v34, %v22499_v55  ;;  %v6556_v25 = vmax.f32 %v6536_v62, 0.0 }
 0x7ce   :  { %v6557_v57 = vmax.f32 %v6537_v63, 0.0  ;;  %v19302_v24 = vmul.f32 %v6546_v23, %v22492_v8  ;;  %v19305_v2 = vmul.f32 %v6547_v53, %v22493_v58  ;;  %v6550_v49 = vmax.f32 %v6530_v6, 0.0 }
 0x7cf   :  { %v6551_v10 = vmax.f32 %v6531_v30, 0.0  ;;  %7296 = vrot.lane.b32.xlu1 %v19275_v0, %s12337_s14  ;;  %7284 = vrot.lane.b32.xlu0 %v19279_v39, %s12337_s14  ;;  %v19313_v42 = vcombine.low %v19296_v4, %v19299_v16  ;;  %v19316_v44 = vmul.f32 %v6556_v25, %v22502_v35  ;;  %v6513_v61 = vmul.f32 %v19197_v1, %v19175_v41 }
 0x7d0   :  { %v19319_v56 = vmul.f32 %v6557_v57, %v22503_v48  ;;  %v19323_v27 = vcombine.low %v19302_v24, %v19305_v2  ;;  %v19326_v3 = vmul.f32 %v6550_v49, %v22496_v37  ;;  %v6514_v38 = vmul.f32 %v19197_v1, %v19180_v52 }
 0x7d1   :  { %v19329_v59 = vmul.f32 %v6551_v10, %v22497_v5  ;;  %6626 = vst [vmem:[#allocation3 + $0x34] sm:$0xff] %v19313_v42  ;;  %v6509_v7 = vmul.f32 %v19197_v1, %v19158_v50  ;;  %v6510_v34 = vmul.f32 %v19197_v1, %v19162_v28  ;;  %v6538_v62 = vadd.f32 %v19223_v13, %v6513_v61 }
 0x7d2   :  { %v19336_v54 = vcombine.low %v19316_v44, %v19319_v56  ;;  %6623 = vst [vmem:[#allocation3 + $0x1c] sm:$0xff] %v19323_v27  ;;  %v6539_v50 = vadd.f32 %v19223_v13, %v6514_v38  ;;  %v19379_v38 = vld [vmem:[#allocation3] sm:$0xff] }
 0x7d3   :  { %v19347_v41 = vcombine.low %v19326_v3, %v19329_v59  ;;  %7304 = vrot.lane.b32.xlu1 %v19313_v42, %s12337_s14  ;;  %7292 = vrot.lane.b32.xlu0 %v19323_v27, %s12337_s14  ;;  %v6534_v28 = vadd.f32 %v19223_v13, %v6509_v7  ;;  %v6535_v52 = vadd.f32 %v19223_v13, %v6510_v34  ;;  %v6558_v1 = vmax.f32 %v6538_v62, 0.0  ;;  %v19360_v30 = vld [vmem:[#allocation3 + $0x8] sm:$0xff] }
 0x7d4   :  { %6628 = vst [vmem:[#allocation3 + $0x44] sm:$0xff] %v19336_v54  ;;  %v6559_v63 = vmax.f32 %v6539_v50, 0.0  ;;  %v6683_v61 = vcombine.low %v19360_v30, %v19360_v30  ;;  %v6682_v62 = vcombine.low %v19379_v38, %v19379_v38  ;;  %v19389_v50 = vld [vmem:[#allocation3 + $0x10] sm:$0xff] }
 0x7d5   :  { %6625 = vst [vmem:[#allocation3 + $0x2c] sm:$0xff] %v19347_v41  ;;  %v6554_v23 = vmax.f32 %v6534_v28, 0.0  ;;  %v6555_v53 = vmax.f32 %v6535_v52, 0.0  ;;  %v6578_v6 = vmul.f32 %v6558_v1, %v22504_v31  ;;  %v6684_v28 = vcombine.low %v19389_v50, %v19389_v50 }
 0x7d6   :  { %v6579_v25 = vmul.f32 %v6559_v63, %v22505_v36  ;;  %v11634_v34 = vpack.i.bf16 %v6683_v61, %v19379_v38  ;;  %v11639_v52 = vpack.i.bf16 %v6682_v62, %v19360_v30  ;;  %v19397_v1 = vcombine.high %v19379_v38, %v19379_v38 }
 0x7d7   :  { %7312 = vrot.lane.b32.xlu1 %v19336_v54, %s12337_s14  ;;  %7300 = vrot.lane.b32.xlu0 %v19347_v41, %s12337_s14  ;;  %v19368_v13 = vmul.f32 %v6554_v23, %v22500_v18  ;;  %v19371_v57 = vmul.f32 %v6555_v53, %v22501_v32  ;;  %v11664_v23 = vpack.i.bf16 %v19389_v50, %v6684_v28 }
 0x7d8   :  { %v6609_v49 = vcombine.low %v6578_v6, %v6579_v25  ;;  %v12309_v53 = vcombine.low %v19246_v29, %v19246_v29  ;;  %v11644_v6 = vpack.i.bf16 %v19360_v30, %v19397_v1  ;;  %v19411_v25 = vcombine.high %v19360_v30, %v19360_v30 }
 0x7d9   :  { %v19375_v10 = vcombine.low %v19368_v13, %v19371_v57  ;;  %v12310_v61 = vcombine.low %v19249_v51, %v19249_v51  ;;  %v12311_v28 = vcombine.low %v19243_v12, %v19243_v12  ;;  %v6634_v7 = vld [vmem:[#allocation3 + $0x20] sm:$0xff] }
 0x7da   :  { %6629 = vst.msk [vmem:[#allocation3 + $0x4c] sm:$0xff] %vm15840_vm12, %v6609_v49  ;;  %v11689_v49 = vpack.i.bf16 %v19269_v46, %v12309_v53  ;;  %v11649_v62 = vpack.i.bf16 %v19379_v38, %v19411_v25  ;;  %v19429_v53 = vcombine.high %v19389_v50, %v19389_v50 }
 0x7db   :  { %6627 = vst [vmem:[#allocation3 + $0x3c] sm:$0xff] %v19375_v10  ;;  %7308 = vrot.lane.b32.xlu0 %v19375_v10, %s12337_s14  ;;  %v11699_v29 = vpack.i.bf16 %v12310_v61, %v19269_v46  ;;  %v11719_v51 = vpack.i.bf16 %v12311_v28, %v19265_v19 }
 0x7dc   :  { %22507 = vst [vmem:[#allocation12_spill] sm:$0xff] %v19429_v53  ;;  %v11669_v46 = vpack.i.bf16 %v19429_v53, %v19389_v50 }
 0x7df   :  { %11635 = vrot.lane.b32.xlu0 %v11634_v34, %s12327_s29 }
 0x7e1   :  { %v19399_v63 = vld [vmem:[#allocation3 + $0x4c] sm:$0xff] }
 0x7e2   :  { %7316 = vrot.lane.b32.xlu1 %v19399_v63, %s12337_s14  ;;  %v12276_v37 = vld [vmem:[#allocation3 + $0x50] ss:$0 sps:$4 sm:$0xff]  }
 0x7e3   :  { %11640 = vrot.lane.b32.xlu0 %v11639_v52, %s12327_s29 }
 0x7e6   :  { %11665 = vrot.lane.b32.xlu1 %v11664_v23, %s12327_s29 }
 0x7e7   :  { %11645 = vrot.lane.b32.xlu0 %v11644_v6, %s12328_s19  ;;  %v6633_v6 = vld [vmem:[#allocation3 + $0x18] sm:$0xff] }
 0x7ea   :  { %11690 = vrot.lane.b32.xlu1 %v11689_v49, %s12332_s0 }
 0x7eb   :  { %11650 = vrot.lane.b32.xlu0 %v11649_v62, %s12328_s19  ;;  %v12313_v62 = vcombine.low %v19258_v21, %v19258_v21  ;;  %v12314_v21 = vcombine.low %v19302_v24, %v19302_v24 }
 0x7ee   :  { %11700 = vrot.lane.b32.xlu1 %v11699_v29, %s12334_s12 }
 0x7ef   :  { %11655 = vrot.lane.b32.xlu0 %v11634_v34, %s12330_s21  ;;  %v6685_v34 = vcombine.low %v6633_v6, %v6633_v6 }
 0x7f1   :  { %v11739_v12 = vpack.i.bf16 %v6633_v6, %v6685_v34  ;;  %v19466_v34 = vcombine.high %v6633_v6, %v6633_v6 }
 0x7f2   :  { %11710 = vrot.lane.b32.xlu1 %v11689_v49, %s12335_s13  ;;  %v12312_v49 = vcombine.low %v19261_v33, %v19261_v33 }
 0x7f3   :  { %11660 = vrot.lane.b32.xlu0 %v11639_v52, %s12330_s21  ;;  %22508 = vst [vmem:[#allocation43_spill] sm:$0xff] %v19466_v34  ;;  %v11744_v24 = vpack.i.bf16 %v19466_v34, %v6633_v6 }
 0x7f4   :  { %v11684_v52 = vpack.i.bf16 %v12312_v49, %v19279_v39 }
 0x7f6   :  { %11720 = vrot.lane.b32.xlu1 %v11719_v51, %s12331_s16 }
 0x7f7   :  { %11670 = vrot.lane.b32.xlu0 %v11669_v46, %s12328_s19  ;;  %v12316_v46 = vcombine.low %v19252_v9, %v19252_v9 }
 0x7fa   :  { %11730 = vrot.lane.b32.xlu1 %v11719_v51, %s12334_s12  ;;  %v6686_v51 = vcombine.low %v6634_v7, %v6634_v7 }
 0x7fb   :  { %11675 = vrot.lane.b32.xlu0 %v11664_v23, %s12330_s21  ;;  %v11694_v23 = vpack.i.bf16 %v19279_v39, %v12313_v62  ;;  %v11774_v39 = vpack.i.bf16 %v19323_v27, %v12314_v21  ;;  %v12317_v62 = vcombine.low %v19305_v2, %v19305_v2  ;;  %v12318_v2 = vcombine.low %v19255_v26, %v19255_v26 }
 0x7fc   :  { %v11754_v33 = vpack.i.bf16 %v6634_v7, %v6686_v51  ;;  %v12320_v26 = vcombine.low %v19296_v4, %v19296_v4 }
 0x7fd   :  { %v11769_v51 = vpack.i.bf16 %v12317_v62, %v19323_v27  ;;  %v12319_v27 = vcombine.low %v19326_v3, %v19326_v3  ;;  %v11789_v21 = vpack.i.bf16 %v12318_v2, %v19275_v0 }
 0x7fe   :  { %11740 = vrot.lane.b32.xlu1 %v11739_v12, %s12327_s29 }
 0x7ff   :  { %11680 = vrot.lane.b32.xlu0 %v11699_v29, %s12331_s16  ;;  %v12315_v29 = vcombine.low %v19240_v11, %v19240_v11  ;;  %v11794_v11 = vpack.i.bf16 %v19275_v0, %v12316_v46  ;;  %v11864_v0 = vpack.i.bf16 %v19313_v42, %v12320_v26 }
 0x802   :  { %11750 = vrot.lane.b32.xlu1 %v11739_v12, %s12330_s21  ;;  %v19472_v12 = vcombine.high %v6634_v7, %v6634_v7 }
 0x803   :  { %11685 = vrot.lane.b32.xlu0 %v11684_v52, %s12331_s16 }
 0x804   :  { %22509 = vst [vmem:[#allocation98_spill] sm:$0xff] %v19472_v12  ;;  %v11759_v9 = vpack.i.bf16 %v19472_v12, %v6634_v7 }
 0x806   :  { %7282 = vrot.lane.b32.xlu1 %v12310_v61, %s12337_s14  ;;  %v11724_v61 = vpack.i.bf16 %v19265_v19, %v12315_v29  ;;  %v6635_v19 = vld [vmem:[#allocation3 + $0x28] sm:$0xff] }
 0x807   :  { %11695 = vrot.lane.b32.xlu0 %v11694_v23, %s12332_s0  ;;  %v6687_v29 = vcombine.low %v6635_v19, %v6635_v19 }
 0x80a   :  { %11755 = vrot.lane.b32.xlu1 %v11754_v33, %s12327_s29 }
 0x80b   :  { %11705 = vrot.lane.b32.xlu0 %v11684_v52, %s12334_s12  ;;  %v19476_v52 = vcombine.high %v6635_v19, %v6635_v19 }
 0x80d   :  { %22510 = vst [vmem:[#allocation69_spill] sm:$0xff] %v19476_v52  ;;  %v11814_v6 = vpack.i.bf16 %v19476_v52, %v6635_v19 }
 0x80e   :  { %11765 = vrot.lane.b32.xlu1 %v11754_v33, %s12330_s21 }
 0x80f   :  { %11715 = vrot.lane.b32.xlu0 %v11694_v23, %s12335_s13  ;;  %v6636_v23 = vld [vmem:[#allocation3 + $0x30] sm:$0xff] }
 0x810   :  { %v6688_v33 = vcombine.low %v6636_v23, %v6636_v23  ;;  %v19506_v3 = vcombine.high %v6636_v23, %v6636_v23 }
 0x812   :  { %11775 = vrot.lane.b32.xlu1 %v11774_v39, %s12332_s0  ;;  %v11824_v7 = vpack.i.bf16 %v6636_v23, %v6688_v33  ;;  %22511 = vst [vmem:[#allocation91_spill] sm:$0xff] %v19506_v3  ;;  %v11829_v4 = vpack.i.bf16 %v19506_v3, %v6636_v23 }
 0x813   :  { %11725 = vrot.lane.b32.xlu0 %v11724_v61, %s12332_s0 }
 0x816   :  { %11785 = vrot.lane.b32.xlu1 %v11774_v39, %s12335_s13  ;;  %v6637_v39 = vld [vmem:[#allocation3 + $0x38] sm:$0xff] }
 0x817   :  { %11735 = vrot.lane.b32.xlu0 %v11724_v61, %s12335_s13  ;;  %v19510_v61 = vcombine.high %v6637_v39, %v6637_v39 }
 0x81a   :  { %11795 = vrot.lane.b32.xlu1 %v11794_v11, %s12332_s0 }
 0x81b   :  { %11745 = vrot.lane.b32.xlu0 %v11744_v24, %s12328_s19  ;;  %v19519_v24 = vcombine.low %v19329_v59, %v19329_v59 }
 0x81e   :  { %11805 = vrot.lane.b32.xlu1 %v11794_v11, %s12335_s13 }
 0x81f   :  { %11760 = vrot.lane.b32.xlu0 %v11759_v9, %s12328_s19 }
 0x822   :  { %11815 = vrot.lane.b32.xlu1 %v11814_v6, %s12328_s19  ;;  %v11839_v6 = vpack.i.bf16 %v19519_v24, %v19347_v41 }
 0x823   :  { %11770 = vrot.lane.b32.xlu0 %v11769_v51, %s12331_s16 }
 0x826   :  { %7290 = vrot.lane.b32.xlu1 %v12311_v28, %s12337_s14  ;;  %v11844_v28 = vpack.i.bf16 %v19347_v41, %v12319_v27 }
 0x827   :  { %11780 = vrot.lane.b32.xlu0 %v11769_v51, %s12334_s12  ;;  %v19528_v51 = vld [vmem:[#allocation3 + $0x40] sm:$0xff] }
 0x828   :  { %v6690_v59 = vcombine.low %v19528_v51, %v19528_v51 }
 0x82a   :  { %11825 = vrot.lane.b32.xlu1 %v11824_v7, %s12327_s29 }
 0x82b   :  { %7286 = vrot.lane.b32.xlu0 %v12312_v49, %s12337_s14  ;;  %v11809_v49 = vpack.i.bf16 %v6635_v19, %v6687_v29  ;;  %v11884_v19 = vpack.i.bf16 %v19510_v61, %v6637_v39 }
 0x82e   :  { %11835 = vrot.lane.b32.xlu1 %v11824_v7, %s12330_s21  ;;  %v11894_v7 = vpack.i.bf16 %v19528_v51, %v6690_v59 }
 0x82f   :  { %11790 = vrot.lane.b32.xlu0 %v11789_v21, %s12331_s16 }
 0x832   :  { %11845 = vrot.lane.b32.xlu1 %v11844_v28, %s12332_s0 }
 0x833   :  { %11800 = vrot.lane.b32.xlu0 %v11789_v21, %s12334_s12  ;;  %v12322_v21 = vcombine.low %v19299_v16, %v19299_v16 }
 0x836   :  { %11855 = vrot.lane.b32.xlu1 %v11844_v28, %s12335_s13  ;;  %v12323_v28 = vcombine.low %v19368_v13, %v19368_v13 }
 0x837   :  { %11810 = vrot.lane.b32.xlu0 %v11809_v49, %s12327_s29 }
 0x83a   :  { %11865 = vrot.lane.b32.xlu1 %v11864_v0, %s12332_s0 }
 0x83b   :  { %11820 = vrot.lane.b32.xlu0 %v11809_v49, %s12330_s21  ;;  %v11914_v49 = vpack.i.bf16 %v19375_v10, %v12323_v28  ;;  %v19580_v28 = vld [vmem:[#allocation3 + $0x48] sm:$0xff] }
 0x83d   :  { %v19512_v46 = vpop.permute.xlu1 %7288  ;;  %v19514_v11 = vpop.permute.xlu0 %7280 }
 0x83e   :  { %11875 = vrot.lane.b32.xlu1 %v11864_v0, %s12335_s13  ;;  %v6689_v0 = vcombine.low %v6637_v39, %v6637_v39 }
 0x83f   :  { %11830 = vrot.lane.b32.xlu0 %v11829_v4, %s12328_s19 }
 0x840   :  { %v11879_v4 = vpack.i.bf16 %v6637_v39, %v6689_v0  ;;  %v19588_v39 = vcombine.high %v19580_v28, %v19580_v28  ;;  %v19596_v0 = vcombine.low %v19371_v57, %v19371_v57 }
 0x841   :  { %v19524_v9 = vpop.permute.xlu0 %7284  ;;  %v19531_v23 = vpop.permute.xlu1 %7296 }
 0x842   :  { %11885 = vrot.lane.b32.xlu1 %v11884_v19, %s12328_s19  ;;  %v11909_v31 = vpack.i.bf16 %v19596_v0, %v19375_v10 }
 0x843   :  { %11840 = vrot.lane.b32.xlu0 %v11839_v6, %s12331_s16 }
 0x845   :  { %v19536_v33 = vpop.permute.xlu0 %7292  ;;  %v19541_v41 = vpop.permute.xlu1 %7304 }
 0x846   :  { %7298 = vrot.lane.b32.xlu1 %v12318_v2, %s12337_s14  ;;  %v11859_v2 = vpack.i.bf16 %v12322_v21, %v19313_v42  ;;  %v12324_v42 = vcombine.low %v19316_v44, %v19316_v44 }
 0x847   :  { %11850 = vrot.lane.b32.xlu0 %v11839_v6, %s12334_s12 }
 0x848   :  { %v11934_v6 = vpack.i.bf16 %v19336_v54, %v12324_v42 }
 0x849   :  { %v19543_v27 = vpop.permute.xlu0 %7300  ;;  %v19555_v26 = vpop.permute.xlu1 %7312 }
 0x84a   :  { %11895 = vrot.lane.b32.xlu1 %v11894_v7, %s12327_s29 }
 0x84b   :  { %7294 = vrot.lane.b32.xlu0 %v12317_v62, %s12337_s14 }
 0x84d   :  { %v19551_v29 = vpop.permute.xlu0 %7308 }
 0x84e   :  { %11905 = vrot.lane.b32.xlu1 %v11894_v7, %s12330_s21  ;;  %v19578_v7 = vcombine.high %v19528_v51, %v19528_v51 }
 0x84f   :  { %11860 = vrot.lane.b32.xlu0 %v11859_v2, %s12331_s16 }
 0x851   :  { %v19559_v16 = vpop.permute.xlu0 %11635 }
 0x852   :  { %11915 = vrot.lane.b32.xlu1 %v11914_v49, %s12332_s0 }
 0x853   :  { %11870 = vrot.lane.b32.xlu0 %v11859_v2, %s12334_s12 }
 0x854   :  { %v19563_v13 = vpop.permute.xlu1 %7316 }
 0x855   :  { %22512 = vst [vmem:[#allocation20_spill] sm:$0xff] %v19563_v13  ;;  %v19567_v62 = vpop.permute.xlu0 %11640 }
 0x856   :  { %11925 = vrot.lane.b32.xlu1 %v11914_v49, %s12335_s13  ;;  %v11899_v49 = vpack.i.bf16 %v19578_v7, %v19528_v51 }
 0x857   :  { %11880 = vrot.lane.b32.xlu0 %v11879_v4, %s12327_s29 }
 0x858   :  { %v19571_v19 = vpop.permute.xlu1 %11665 }
 0x859   :  { %v19574_v59 = vpop.permute.xlu0 %11645 }
 0x85a   :  { %11935 = vrot.lane.b32.xlu1 %v11934_v6, %s12332_s0 }
 0x85b   :  { %11890 = vrot.lane.b32.xlu0 %v11879_v4, %s12330_s21  ;;  %v11954_v4 = vpack.i.bf16 %v19588_v39, %v19580_v28 }
 0x85c   :  { %v19584_v44 = vpop.permute.xlu1 %11690 }
 0x85d   :  { %v19590_v2 = vpop.permute.xlu0 %11650 }
 0x85e   :  { %11945 = vrot.lane.b32.xlu1 %v11934_v6, %s12335_s13 }
 0x85f   :  { %11900 = vrot.lane.b32.xlu0 %v11899_v49, %s12328_s19  ;;  %v6953_v49 = vcombine.high %v19399_v63, %v19399_v63 }
 0x860   :  { %v19600_v42 = vpop.permute.xlu1 %11700 }
 0x861   :  { %22513 = vst [vmem:[#allocation50_spill] sm:$0xff] %v19600_v42  ;;  %v19604_v36 = vpop.permute.xlu0 %11655  ;;  %v21475_v57 = vunpack.i.h.bf16 %v19600_v42  ;;  %v21477_v6 = vunpack.i.l.bf16 %v19600_v42  ;;  %v11964_v20 = vpack.i.bf16 %v6953_v49, %v19399_v63 }
 0x862   :  { %11955 = vrot.lane.b32.xlu1 %v11954_v4, %s12328_s19 }
 0x863   :  { %11910 = vrot.lane.b32.xlu0 %v11909_v31, %s12331_s16  ;;  %v7162_v10 = vsel %vm762_vm8, %v21477_v6, %v21475_v57 }
 0x864   :  { %v19612_v48 = vpop.permute.xlu1 %11710 }
 0x865   :  { %22514 = vst [vmem:[#allocation83_spill] sm:$0xff] %v19612_v48  ;;  %v19616_v35 = vpop.permute.xlu0 %11660  ;;  %v21476_v32 = vunpack.i.h.bf16 %v19612_v48  ;;  %v11712_v18 = vunpack.i.l.bf16 %v19612_v48 }
 0x866   :  { %7306 = vrot.lane.b32.xlu1 %v12322_v21, %s12337_s14  ;;  %v12326_v21 = vcombine.low %v19319_v56, %v19319_v56  ;;  %v21487_v56 = vunpack.i.h.bf16 %v19584_v44 }
 0x867   :  { %11920 = vrot.lane.b32.xlu0 %v11909_v31, %s12334_s12  ;;  %v7241_v4 = vsel %vm842_vm9, %v11712_v18, %v21476_v32 }
 0x868   :  { %v19630_v55 = vpop.permute.xlu1 %11720  ;;  %v19638_v31 = vsel %vm51_vm1, %v7162_v10, %v7241_v4  ;;  %v11929_v6 = vpack.i.bf16 %v12326_v21, %v19336_v54  ;;  %v11692_v10 = vunpack.i.l.bf16 %v19584_v44 }
 0x869   :  { %v19633_v5 = vpop.permute.xlu0 %11670  ;;  %22515 = vst [vmem:[#allocation36_spill] sm:$0xff] %v19638_v31 }
 0x86a   :  { %11965 = vrot.lane.b32.xlu1 %v11964_v20, %s12331_s16 }
 0x86b   :  { %7302 = vrot.lane.b32.xlu0 %v19519_v24, %s12337_s14  ;;  %v6691_v24 = vcombine.low %v19580_v28, %v19580_v28 }
 0x86c   :  { %v19643_v57 = vpop.permute.xlu1 %11730 }
 0x86d   :  { %v19645_v32 = vpop.permute.xlu0 %11675  ;;  %v11949_v45 = vpack.i.bf16 %v19580_v28, %v6691_v24 }
 0x86e   :  { %11975 = vrot.lane.b32.xlu1 %v11964_v20, %s12334_s12  ;;  %v7083_v20 = vsel %vm602_vm6, %v11692_v10, %v21487_v56 }
 0x86f   :  { %11930 = vrot.lane.b32.xlu0 %v11929_v6, %s12331_s16 }
 0x870   :  { %v19652_v4 = vpop.permute.xlu1 %11740 }
 0x871   :  { %v19654_v17 = vpop.permute.xlu0 %11680 }
 0x872   :  { %22516 = vst [vmem:[#allocation10_spill] sm:$0xff] %v19654_v17  ;;  %v21486_v22 = vunpack.i.h.bf16 %v19654_v17  ;;  %v11682_v54 = vunpack.i.l.bf16 %v19654_v17  ;;  %6892 = vrot.lane.b32.xlu1 %v12276_v37, %s12330_s21 }
 0x873   :  { %11940 = vrot.lane.b32.xlu0 %v11929_v6, %s12334_s12 }
 0x874   :  { %v6994_v58 = vsel %vm512_vm5, %v11682_v54, %v21486_v22  ;;  %v19668_v8 = vpop.permute.xlu1 %11750  ;;  %v7042_v22 = vcombine.low %v19399_v63, %v19399_v63  ;;  %v7379_v14 = vsel %vm51_vm1, %v11682_v54, %v11692_v10 }
 0x875   :  { %v19670_v40 = vpop.permute.xlu0 %11685  ;;  %v19674_v47 = vsel %vm51_vm1, %v6994_v58, %v7083_v20 }
 0x876   :  { %22517 = vst [vmem:[#allocation27_spill] sm:$0xff] %v19674_v47  ;;  %7659 = vrot.lane.b32.xlu1 %v19514_v11, %s12343_s5  ;;  %v11969_v20 = vpack.i.bf16 %v19399_v63, %v7042_v22 }
 0x877   :  { %11950 = vrot.lane.b32.xlu0 %v11949_v45, %s12327_s29 }
 0x878   :  { %v7283_v37 = vpop.permute.xlu1 %7282 }
 0x879   :  { %v19679_v6 = vpop.permute.xlu0 %11695  ;;  %v7320_v56 = vsel %vm922_vm10, %v19514_v11, %v7283_v37  ;;  %v7321_v10 = vsel %vm922_vm10, %v7283_v37, %v19524_v9 }
 0x87a   :  { %7661 = vrot.lane.b32.xlu1 %v7320_v56, %s12343_s5 }
 0x87b   :  { %11960 = vrot.lane.b32.xlu0 %v11949_v45, %s12330_s21 }
 0x87c   :  { %v19687_v58 = vpop.permute.xlu1 %11755 }
 0x87d   :  { %22518 = vst [vmem:[#allocation29_spill] sm:$0xff] %v19687_v58  ;;  %v19689_v24 = vpop.permute.xlu0 %11705 }
 0x87e   :  { %22519 = vst [vmem:[#allocation84_spill] sm:$0xff] %v19689_v24 }
 0x87f   :  { %11970 = vrot.lane.b32.xlu0 %v11969_v20, %s12332_s0 }
 0x880   :  { %v19693_v43 = vpop.permute.xlu1 %11765 }
 0x881   :  { %22520 = vst [vmem:[#allocation31_spill] sm:$0xff] %v19693_v43  ;;  %v19695_v15 = vpop.permute.xlu0 %11715 }
 0x883   :  { %11980 = vrot.lane.b32.xlu0 %v11969_v20, %s12335_s13  ;;  %v22526_v20 = vunpack.i.l.bf16 %v19600_v42 }
 0x884   :  { %v19698_v60 = vpop.permute.xlu1 %11775 }
 0x885   :  { %22521 = vst [vmem:[#allocation16_spill] sm:$0xff] %v19698_v60  ;;  %v19700_v11 = vpop.permute.xlu0 %11725  ;;  %v7399_v13 = vsel %vm51_vm1, %v22526_v20, %v11712_v18 }
 0x886   :  { %22522 = vst [vmem:[#allocation28_spill] sm:$0xff] %v19700_v11  ;;  %v11984_v52 = vpack.i.bf16 %v7399_v13, %v7379_v14 }
 0x887   :  { %7310 = vrot.lane.b32.xlu0 %v19596_v0, %s12337_s14 }
 0x888   :  { %v19704_v45 = vpop.permute.xlu1 %11785 }
 0x889   :  { %22523 = vst [vmem:[#allocation85_spill] sm:$0xff] %v19704_v45  ;;  %v19706_v56 = vpop.permute.xlu0 %11735 }
 0x88b   :  { %7314 = vrot.lane.b32.xlu0 %v12326_v21, %s12337_s14 }
 0x88c   :  { %v19709_v22 = vpop.permute.xlu1 %11795 }
 0x88d   :  { %22524 = vst [vmem:[#allocation87_spill] sm:$0xff] %v19709_v22  ;;  %v19711_v63 = vpop.permute.xlu0 %11745 }
 0x88e   :  { %22525 = vst [vmem:[#allocation71_spill] sm:$0xff] %v19711_v63 }
 0x88f   :  { %7318 = vrot.lane.b32.xlu0 %v6953_v49, %s12337_s14 }
 0x890   :  { %v19718_v3 = vpop.permute.xlu1 %11805 }
 0x891   :  { %22527 = vst [vmem:[#allocation14_spill] sm:$0xff] %v19718_v3  ;;  %v19720_v0 = vpop.permute.xlu0 %11760 }
 0x892   :  { %22528 = vst [vmem:[#allocation93_spill] sm:$0xff] %v19720_v0 }
 0x893   :  { %11985 = vrot.lane.b32.xlu0 %v11984_v52, %s12343_s5 }
 0x894   :  { %v19723_v21 = vpop.permute.xlu1 %11815 }
 0x895   :  { %22529 = vst [vmem:[#allocation100_spill] sm:$0xff] %v19723_v21  ;;  %v19725_v12 = vpop.permute.xlu0 %11770 }
 0x896   :  { %22530 = vst [vmem:[#allocation101_spill] sm:$0xff] %v19725_v12 }
 0x897   :  { %7663 = vrot.lane.b32.xlu0 %v7321_v10, %s12343_s5 }
 0x898   :  { %v7291_v49 = vpop.permute.xlu1 %7290 }
 0x899   :  { %v19730_v54 = vpop.permute.xlu0 %11780  ;;  %v7325_v10 = vsel %vm922_vm10, %v7291_v49, %v19536_v33 }
 0x89a   :  { %22531 = vst [vmem:[#allocation23_spill] sm:$0xff] %v19730_v54 }
 0x89c   :  { %v19732_v18 = vpop.permute.xlu1 %11825 }
 0x89d   :  { %22532 = vst [vmem:[#allocation35_spill] sm:$0xff] %v19732_v18  ;;  %v7287_v20 = vpop.permute.xlu0 %7286  ;;  %v7324_v18 = vsel %vm922_vm10, %v19512_v46, %v7291_v49 }
 0x89e   :  { %v7323_v14 = vsel %vm922_vm10, %v7287_v20, %v19512_v46  ;;  %v7322_v52 = vsel %vm922_vm10, %v19524_v9, %v7287_v20 }
 0x89f   :  { %7667 = vrot.lane.b32.xlu1 %v7323_v14, %s12343_s5  ;;  %7665 = vrot.lane.b32.xlu0 %v7322_v52, %s12343_s5 }
 0x8a0   :  { %v19740_v13 = vpop.permute.xlu1 %11835 }
 0x8a1   :  { %22533 = vst [vmem:[#allocation94_spill] sm:$0xff] %v19740_v13  ;;  %v19742_v37 = vpop.permute.xlu0 %11790 }
 0x8a2   :  { %22534 = vst [vmem:[#allocation56_spill] sm:$0xff] %v19742_v37 }
 0x8a3   :  { %7671 = vrot.lane.b32.xlu1 %v7325_v10, %s12343_s5  ;;  %7669 = vrot.lane.b32.xlu0 %v7324_v18, %s12343_s5 }
 0x8a4   :  { %v19750_v21 = vpop.permute.xlu1 %11845 }
 0x8a5   :  { %22535 = vst [vmem:[#allocation15_spill] sm:$0xff] %v19750_v21  ;;  %v19752_v9 = vpop.permute.xlu0 %11800  ;;  %v11848_v22 = vunpack.i.h.bf16 %v19750_v21  ;;  %v21521_v42 = vunpack.i.l.bf16 %v19750_v21 }
 0x8a6   :  { %22536 = vst [vmem:[#allocation45_spill] sm:$0xff] %v19752_v9 }
 0x8a8   :  { %v19754_v20 = vpop.permute.xlu1 %11855 }
 0x8a9   :  { %22537 = vst [vmem:[#allocation26_spill] sm:$0xff] %v19754_v20  ;;  %v19756_v14 = vpop.permute.xlu0 %11810  ;;  %v11858_v18 = vunpack.i.h.bf16 %v19754_v20 }
 0x8aa   :  { %22538 = vst [vmem:[#allocation22_spill] sm:$0xff] %v19756_v14 }
 0x8ac   :  { %v11866_v52 = vpop.permute.xlu1 %11865 }
 0x8ad   :  { %v19758_v3 = vpop.permute.xlu0 %11820  ;;  %v11867_v45 = vunpack.i.l.bf16 %v11866_v52  ;;  %v11868_v58 = vunpack.i.h.bf16 %v11866_v52 }
 0x8ae   :  { %22539 = vst [vmem:[#allocation60_spill] sm:$0xff] %v19758_v3 }
 0x8af   :  { %v7094_v46 = vsel %vm602_vm6, %v11848_v22, %v11867_v45 }
 0x8b0   :  { %v19762_v49 = vpop.permute.xlu1 %11875 }
 0x8b1   :  { %v19764_v10 = vpop.permute.xlu0 %11830  ;;  %v11877_v9 = vunpack.i.l.bf16 %v19762_v49 }
 0x8b2   :  { %22540 = vst [vmem:[#allocation8_spill] sm:$0xff] %v19764_v10 }
 0x8b3   :  { %v7252_v37 = vsel %vm842_vm9, %v11858_v18, %v11877_v9 }
 0x8b4   :  { %v19769_v54 = vpop.permute.xlu1 %11885 }
 0x8b5   :  { %v19771_v14 = vpop.permute.xlu0 %11840 }
 0x8b6   :  { %22541 = vst [vmem:[#allocation21_spill] sm:$0xff] %v19771_v14  ;;  %v11843_v12 = vunpack.i.h.bf16 %v19771_v14  ;;  %v21518_v0 = vunpack.i.l.bf16 %v19771_v14 }
 0x8b8   :  { %v7299_v3 = vpop.permute.xlu1 %7298  ;;  %v7004_v63 = vsel %vm512_vm5, %v21518_v0, %v11843_v12 }
 0x8b9   :  { %v19773_v60 = vpop.permute.xlu0 %11850  ;;  %v7328_v24 = vsel %vm922_vm10, %v19531_v23, %v7299_v3 }
 0x8ba   :  { %22542 = vst [vmem:[#allocation70_spill] sm:$0xff] %v19773_v60  ;;  %v11853_v0 = vunpack.i.h.bf16 %v19773_v60  ;;  %v21523_v14 = vunpack.i.l.bf16 %v19773_v60 }
 0x8bc   :  { %v19775_v34 = vpop.permute.xlu1 %11895 }
 0x8bd   :  { %v7295_v31 = vpop.permute.xlu0 %7294 }
 0x8be   :  { %v7327_v43 = vsel %vm922_vm10, %v7295_v31, %v19531_v23  ;;  %v7326_v47 = vsel %vm922_vm10, %v19536_v33, %v7295_v31  ;;  %v7329_v33 = vsel %vm922_vm10, %v7299_v3, %v19543_v27  ;;  %v7095_v3 = vsel %vm602_vm6, %v11867_v45, %v11868_v58 }
 0x8bf   :  { %7675 = vrot.lane.b32.xlu1 %v7327_v43, %s12343_s5  ;;  %7673 = vrot.lane.b32.xlu0 %v7326_v47, %s12343_s5  ;;  %v7093_v47 = vsel %vm602_vm6, %v21521_v42, %v11848_v22  ;;  %v11878_v23 = vunpack.i.h.bf16 %v19762_v49  ;;  %v7172_v42 = vsel %vm762_vm8, %v21523_v14, %v11853_v0 }
 0x8c0   :  { %v19789_v11 = vpop.permute.xlu1 %11905 }
 0x8c1   :  { %v19791_v48 = vpop.permute.xlu0 %11860 }
 0x8c2   :  { %v11862_v43 = vunpack.i.l.bf16 %v19791_v48  ;;  %v22543_v21 = vunpack.i.h.bf16 %v19791_v48 }
 0x8c3   :  { %7679 = vrot.lane.b32.xlu1 %v7329_v33, %s12343_s5  ;;  %7677 = vrot.lane.b32.xlu0 %v7328_v24, %s12343_s5  ;;  %v19819_v33 = vsel %vm51_vm1, %v7004_v63, %v7093_v47 }
 0x8c4   :  { %v7005_v31 = vsel %vm512_vm5, %v11843_v12, %v11862_v43  ;;  %v7006_v22 = vsel %vm512_vm5, %v11862_v43, %v22543_v21  ;;  %v19814_v52 = vpop.permute.xlu1 %11915  ;;  %22544 = vst [vmem:[#allocation57_spill] sm:$0xff] %v19819_v33  ;;  %v11897_v12 = vunpack.i.l.bf16 %v19775_v34 }
 0x8c5   :  { %v19816_v17 = vpop.permute.xlu0 %11870  ;;  %v19822_v24 = vsel %vm51_vm1, %v7005_v31, %v7094_v46  ;;  %v19825_v45 = vsel %vm51_vm1, %v7006_v22, %v7095_v3  ;;  %v21525_v49 = vunpack.i.l.bf16 %v19814_v52  ;;  %v7253_v46 = vsel %vm842_vm9, %v11877_v9, %v11878_v23 }
 0x8c6   :  { %22545 = vst [vmem:[#allocation81_spill] sm:$0xff] %v19822_v24  ;;  %v21526_v21 = vunpack.i.h.bf16 %v19816_v17  ;;  %v11872_v43 = vunpack.i.l.bf16 %v19816_v17  ;;  %v22546_v22 = vunpack.i.l.bf16 %v19754_v20 }
 0x8c7   :  { %v19840_v31 = vsel %vm602_vm6, %v11868_v58, %v21525_v49 }
 0x8c8   :  { %v7173_v47 = vsel %vm762_vm8, %v11853_v0, %v11872_v43  ;;  %v7174_v3 = vsel %vm762_vm8, %v11872_v43, %v21526_v21  ;;  %v7251_v14 = vsel %vm842_vm9, %v22546_v22, %v11858_v18  ;;  %v19849_v60 = vpop.permute.xlu1 %11925  ;;  %v22550_v0 = vunpack.i.h.bf16 %v19775_v34 }
 0x8c9   :  { %v19851_v63 = vpop.permute.xlu0 %11880  ;;  %v19854_v9 = vsel %vm51_vm1, %v7173_v47, %v7252_v37  ;;  %v19857_v58 = vsel %vm51_vm1, %v7174_v3, %v7253_v46  ;;  %v21528_v43 = vunpack.i.l.bf16 %v19849_v60  ;;  %v19865_v18 = vsel %vm51_vm1, %v7172_v42, %v7251_v14 }
 0x8ca   :  { %22547 = vst [vmem:[#allocation89_spill] sm:$0xff] %v19851_v63  ;;  %22548 = vst [vmem:[#allocation88_spill] sm:$0xff] %v19854_v9  ;;  %v6748_v49 = vsel %vm168_vm0, %v11897_v12, %v22550_v0  ;;  %v21529_v21 = vunpack.i.h.bf16 %v19851_v63  ;;  %v11888_v46 = vunpack.i.h.bf16 %v19769_v54  ;;  %v11887_v42 = vunpack.i.l.bf16 %v19769_v54 }
 0x8cb   :  { %22549 = vst [vmem:[#allocation73_spill] sm:$0xff] %v19857_v58  ;;  %22551 = vst [vmem:[#allocation95_spill] sm:$0xff] %v19865_v18  ;;  %v7254_v3 = vsel %vm842_vm9, %v11878_v23, %v21528_v43  ;;  %v11907_v14 = vunpack.i.l.bf16 %v19789_v11  ;;  %v19888_v47 = vsel %vm51_vm1, %v19528_v51, %v6748_v49  ;;  %v11918_v23 = vunpack.i.h.bf16 %v19814_v52 }
 0x8cc   :  { %v6747_v0 = vsel %vm168_vm0, %v21529_v21, %v11897_v12  ;;  %v19880_v22 = vpop.permute.xlu1 %11935  ;;  %22553 = vst [vmem:[#allocation103_spill] sm:$0xff] %v19888_v47  ;;  %v22554_v54 = vunpack.i.h.bf16 %v19764_v10  ;;  %v6825_v24 = vsel %vm248_vm2, %v11887_v42, %v11888_v46 }
 0x8cd   :  { %v11891_v33 = vpop.permute.xlu0 %11890  ;;  %v19884_v37 = vsel %vm51_vm1, %v19510_v61, %v6747_v0  ;;  %v21535_v43 = vunpack.i.l.bf16 %v19880_v22  ;;  %v22555_v0 = vunpack.i.h.bf16 %v19740_v13 }
 0x8ce   :  { %22552 = vst [vmem:[#allocation86_spill] sm:$0xff] %v19884_v37  ;;  %v11893_v12 = vunpack.i.h.bf16 %v11891_v33  ;;  %v11892_v21 = vunpack.i.l.bf16 %v11891_v33  ;;  %v6824_v18 = vsel %vm248_vm2, %v22554_v54, %v11887_v42  ;;  %v11928_v37 = vunpack.i.h.bf16 %v19849_v60 }
 0x8cf   :  { %v19901_v51 = vsel %vm602_vm6, %v11918_v23, %v21535_v43 }
 0x8d0   :  { %v6909_v49 = vsel %vm411_vm4, %v11893_v12, %v11907_v14  ;;  %v6907_v33 = vsel %vm411_vm4, %v22555_v0, %v11892_v21  ;;  %v19908_v20 = vpop.permute.xlu1 %11945  ;;  %v6908_v54 = vsel %vm411_vm4, %v11892_v21, %v11893_v12  ;;  %v22556_v0 = vunpack.i.h.bf16 %v19789_v11 }
 0x8d1   :  { %v11901_v9 = vpop.permute.xlu0 %11900  ;;  %v19912_v61 = vsel %vm51_vm1, %v6824_v18, %v6907_v33  ;;  %v21543_v43 = vunpack.i.l.bf16 %v19908_v20  ;;  %v19917_v13 = vsel %vm51_vm1, %v6825_v24, %v6908_v54 }
 0x8d2   :  { %v11903_v47 = vunpack.i.h.bf16 %v11901_v9  ;;  %v11902_v63 = vunpack.i.l.bf16 %v11901_v9  ;;  %v6910_v42 = vsel %vm411_vm4, %v11907_v14, %v22556_v0 }
 0x8d3   :  { %v19925_v21 = vsel %vm842_vm9, %v11928_v37, %v21543_v43 }
 0x8d4   :  { %v6826_v18 = vsel %vm248_vm2, %v11888_v46, %v11902_v63  ;;  %v6827_v12 = vsel %vm248_vm2, %v11902_v63, %v11903_v47  ;;  %v19929_v33 = vpop.permute.xlu1 %11955  ;;  %v22559_v63 = vunpack.i.l.bf16 %v19814_v52 }
 0x8d5   :  { %v11911_v10 = vpop.permute.xlu0 %11910  ;;  %v19934_v9 = vsel %vm51_vm1, %v6826_v18, %v6909_v49  ;;  %v19937_v14 = vsel %vm51_vm1, %v6827_v12, %v6910_v42  ;;  %v21545_v54 = vunpack.i.l.bf16 %v19929_v33  ;;  %v22560_v49 = vunpack.i.h.bf16 %v19791_v48 }
 0x8d6   :  { %22557 = vst [vmem:[#allocation102_spill] sm:$0xff] %v19934_v9  ;;  %22558 = vst [vmem:[#allocation6_spill] sm:$0xff] %v19937_v14  ;;  %v11913_v0 = vunpack.i.h.bf16 %v11911_v10  ;;  %v11912_v43 = vunpack.i.l.bf16 %v11911_v10  ;;  %v7097_v53 = vsel %vm602_vm6, %v22559_v63, %v11918_v23  ;;  %v11642_v23 = vunpack.i.l.bf16 %v19567_v62 }
 0x8d7   :  { %v19948_v24 = vsel %vm248_vm2, %v11903_v47, %v21545_v54  ;;  %v11638_v47 = vunpack.i.h.bf16 %v19559_v16  ;;  %v11637_v48 = vunpack.i.l.bf16 %v19559_v16  ;;  %v22561_v54 = vunpack.i.l.bf16 %v19849_v60 }
 0x8d8   :  { %v7007_v42 = vsel %vm512_vm5, %v22560_v49, %v11912_v43  ;;  %v7008_v18 = vsel %vm512_vm5, %v11912_v43, %v11913_v0  ;;  %v11643_v43 = vunpack.i.h.bf16 %v19567_v62 }
 0x8d9   :  { %v11921_v12 = vpop.permute.xlu0 %11920  ;;  %v19956_v10 = vsel %vm51_vm1, %v7007_v42, %v19840_v31  ;;  %v19959_v52 = vsel %vm51_vm1, %v7008_v18, %v7097_v53  ;;  %v7255_v31 = vsel %vm842_vm9, %v22561_v54, %v11928_v37  ;;  %v22562_v53 = vunpack.i.h.bf16 %v19816_v17 }
 0x8da   :  { %v11923_v63 = vunpack.i.h.bf16 %v11921_v12  ;;  %v11922_v46 = vunpack.i.l.bf16 %v11921_v12  ;;  %v7307_v12 = vpop.permute.xlu1 %7306  ;;  %v6734_v62 = vsel %vm168_vm0, %v11638_v47, %v11642_v23  ;;  %v6732_v54 = vsel %vm168_vm0, %v11643_v43, %v11637_v48 }
 0x8dc   :  { %v7175_v42 = vsel %vm762_vm8, %v22562_v53, %v11922_v46  ;;  %v7176_v18 = vsel %vm762_vm8, %v11922_v46, %v11923_v63  ;;  %v21549_v46 = vunpack.i.h.bf16 %v19880_v22 }
 0x8dd   :  { %v7303_v9 = vpop.permute.xlu0 %7302  ;;  %v19975_v14 = vsel %vm51_vm1, %v7175_v42, %v7254_v3  ;;  %v19978_v16 = vsel %vm51_vm1, %v7176_v18, %v7255_v31  ;;  %v6733_v3 = vsel %vm168_vm0, %v11637_v48, %v11638_v47  ;;  %v21548_v31 = vunpack.i.h.bf16 %v19571_v19 }
 0x8de   :  { %22563 = vst [vmem:[#allocation38_spill] sm:$0xff] %v19975_v14  ;;  %22564 = vst [vmem:[#allocation58_spill] sm:$0xff] %v19978_v16  ;;  %v7330_v60 = vsel %vm922_vm10, %v19543_v27, %v7303_v9  ;;  %v7331_v17 = vsel %vm922_vm10, %v7303_v9, %v19541_v41  ;;  %v11667_v27 = vunpack.i.l.bf16 %v19571_v19  ;;  %v19998_v9 = vsel %vm51_vm1, %v19360_v30, %v6734_v62 }
 0x8df   :  { %7683 = vrot.lane.b32.xlu1 %v7331_v17, %s12343_s5  ;;  %7681 = vrot.lane.b32.xlu0 %v7330_v60, %s12343_s5  ;;  %v7332_v42 = vsel %vm922_vm10, %v19541_v41, %v7307_v12  ;;  %v7333_v47 = vsel %vm922_vm10, %v7307_v12, %v19551_v29  ;;  %v11648_v18 = vunpack.i.h.bf16 %v19574_v59  ;;  %v20007_v60 = vpop.permute.xlu1 %11965  ;;  %v20013_v30 = vsel %vm51_vm1, %v19397_v1, %v6733_v3 }
 0x8e0   :  { %v20017_v41 = vsel %vm51_vm1, %v19379_v38, %v6732_v54  ;;  %v22565_v12 = vunpack.i.l.bf16 %v19880_v22  ;;  %v21552_v17 = vunpack.i.h.bf16 %v19908_v20  ;;  %v11647_v1 = vunpack.i.l.bf16 %v19574_v59 }
 0x8e1   :  { %v19994_v53 = vpop.permute.xlu0 %11930  ;;  %v6735_v49 = vsel %vm168_vm0, %v11642_v23, %v11667_v27  ;;  %v11658_v38 = vunpack.i.h.bf16 %v19604_v36 }
 0x8e2   :  { %v21550_v48 = vunpack.i.h.bf16 %v19994_v53  ;;  %v11932_v43 = vunpack.i.l.bf16 %v19994_v53  ;;  %v7099_v62 = vsel %vm602_vm6, %v22565_v12, %v21549_v46  ;;  %v20080_v14 = vsel %vm51_vm1, %v19411_v25, %v6735_v49 }
 0x8e3   :  { %7687 = vrot.lane.b32.xlu1 %v7333_v47, %s12343_s5  ;;  %7685 = vrot.lane.b32.xlu0 %v7332_v42, %s12343_s5  ;;  %v20064_v37 = vpop.permute.xlu1 %11975 }
 0x8e4   :  { %v7009_v47 = vsel %vm512_vm5, %v11913_v0, %v11932_v43  ;;  %v7010_v42 = vsel %vm512_vm5, %v11932_v43, %v21550_v48  ;;  %v6736_v0 = vsel %vm168_vm0, %v11667_v27, %v21548_v31  ;;  %v11653_v27 = vunpack.i.h.bf16 %v19590_v2 }
 0x8e5   :  { %v20030_v3 = vpop.permute.xlu0 %11940  ;;  %v20036_v54 = vsel %vm51_vm1, %v7009_v47, %v19901_v51  ;;  %v20039_v12 = vsel %vm51_vm1, %v7010_v42, %v7099_v62  ;;  %v11657_v51 = vunpack.i.l.bf16 %v19604_v36  ;;  %v11663_v62 = vunpack.i.h.bf16 %v19616_v35 }
 0x8e6   :  { %v21553_v43 = vunpack.i.h.bf16 %v20030_v3  ;;  %v11942_v59 = vunpack.i.l.bf16 %v20030_v3  ;;  %v22566_v42 = vunpack.i.l.bf16 %v19908_v20  ;;  %v11652_v36 = vunpack.i.l.bf16 %v19590_v2 }
 0x8e7   :  { %v11958_v2 = vunpack.i.h.bf16 %v19929_v33 }
 0x8e8   :  { %v7257_v31 = vsel %vm842_vm9, %v22566_v42, %v21552_v17  ;;  %v7177_v46 = vsel %vm762_vm8, %v11923_v63, %v11942_v59  ;;  %v7178_v23 = vsel %vm762_vm8, %v11942_v59, %v21553_v43  ;;  %v6812_v63 = vsel %vm248_vm2, %v11647_v1, %v11648_v18 }
 0x8e9   :  { %v11951_v48 = vpop.permute.xlu0 %11950  ;;  %v20068_v47 = vsel %vm51_vm1, %v7177_v46, %v19925_v21  ;;  %v20071_v58 = vsel %vm51_vm1, %v7178_v23, %v7257_v31  ;;  %v6895_v43 = vsel %vm411_vm4, %v11657_v51, %v11658_v38  ;;  %v20084_v21 = vsel %vm51_vm1, %v19389_v50, %v6736_v0 }
 0x8ea   :  { %22567 = vst [vmem:[#allocation67_spill] sm:$0xff] %v20068_v47  ;;  %v11953_v42 = vunpack.i.h.bf16 %v11951_v48  ;;  %v11952_v17 = vunpack.i.l.bf16 %v11951_v48  ;;  %v6894_v46 = vsel %vm411_vm4, %v11663_v62, %v11657_v51  ;;  %v22568_v31 = vunpack.i.l.bf16 %v19616_v35 }
 0x8eb   :  { %v22569_v23 = vunpack.i.h.bf16 %v19775_v34  ;;  %v6811_v47 = vsel %vm248_vm2, %v11653_v27, %v11647_v1  ;;  %v6813_v25 = vsel %vm248_vm2, %v11648_v18, %v11652_v36  ;;  %v20105_v34 = vsel %vm51_vm1, %v6812_v63, %v6895_v43 }
 0x8ec   :  { %v6896_v48 = vsel %vm411_vm4, %v11658_v38, %v22568_v31  ;;  %v6750_v16 = vsel %vm168_vm0, %v11952_v17, %v11953_v42  ;;  %v11672_v1 = vunpack.i.l.bf16 %v19633_v5  ;;  %v22570_v18 = vunpack.i.l.bf16 %v19929_v33 }
 0x8ed   :  { %v6749_v59 = vsel %vm168_vm0, %v22569_v23, %v11952_v17  ;;  %v11961_v49 = vpop.permute.xlu0 %11960  ;;  %v20102_v0 = vsel %vm51_vm1, %v19580_v28, %v6750_v16  ;;  %v20114_v27 = vsel %vm51_vm1, %v6813_v25, %v6896_v48  ;;  %v20117_v28 = vsel %vm51_vm1, %v6811_v47, %v6894_v46 }
 0x8ee   :  { %v20098_v50 = vsel %vm51_vm1, %v19578_v7, %v6749_v59  ;;  %v11963_v38 = vunpack.i.h.bf16 %v11961_v49  ;;  %v11962_v51 = vunpack.i.l.bf16 %v11961_v49  ;;  %v6829_v62 = vsel %vm248_vm2, %v22570_v18, %v11958_v2  ;;  %v6893_v7 = vpop.permute.xlu1 %6892 }
 0x8ef   :  { %v11967_v16 = vunpack.i.l.bf16 %v20007_v60  ;;  %v22571_v63 = vunpack.i.h.bf16 %v19789_v11  ;;  %v20127_v33 = vsel %vm51_vm1, %v19588_v39, %v11953_v42  ;;  %v11978_v18 = vunpack.i.h.bf16 %v20064_v37 }
 0x8f0   :  { %v6913_v43 = vsel %vm411_vm4, %v11963_v38, %v6893_v7  ;;  %v6912_v31 = vsel %vm411_vm4, %v11962_v51, %v11963_v38  ;;  %v11678_v38 = vunpack.i.h.bf16 %v19645_v32 }
 0x8f1   :  { %v6911_v59 = vsel %vm411_vm4, %v22571_v63, %v11962_v51  ;;  %v11971_v23 = vpop.permute.xlu0 %11970  ;;  %v20134_v47 = vsel %vm51_vm1, %v6829_v62, %v6912_v31  ;;  %v20137_v46 = vsel %vm51_vm1, %v11958_v2, %v6913_v43  ;;  %v11968_v51 = vunpack.i.h.bf16 %v20007_v60 }
 0x8f2   :  { %v20131_v48 = vsel %vm51_vm1, %v19948_v24, %v6911_v59  ;;  %v11973_v11 = vunpack.i.h.bf16 %v11971_v23  ;;  %v11972_v25 = vunpack.i.l.bf16 %v11971_v23  ;;  %v11677_v24 = vunpack.i.l.bf16 %v19645_v32 }
 0x8f3   :  { %v11977_v2 = vunpack.i.l.bf16 %v20064_v37  ;;  %v22572_v62 = vunpack.i.h.bf16 %v19994_v53  ;;  %v22573_v43 = vunpack.i.h.bf16 %v19880_v22  ;;  %v11673_v31 = vunpack.i.h.bf16 %v19633_v5 }
 0x8f4   :  { %v6814_v23 = vsel %vm248_vm2, %v11652_v36, %v11672_v1  ;;  %v7101_v37 = vsel %vm602_vm6, %v11972_v25, %v11973_v11  ;;  %v21560_v22 = vunpack.i.h.bf16 %v19652_v4  ;;  %v6898_v36 = vsel %vm411_vm4, %v11677_v24, %v11678_v38 }
 0x8f5   :  { %v7011_v7 = vsel %vm512_vm5, %v22572_v62, %v11967_v16  ;;  %v7100_v63 = vsel %vm602_vm6, %v22573_v43, %v11972_v25  ;;  %v11981_v39 = vpop.permute.xlu0 %11980  ;;  %v22574_v43 = vunpack.i.l.bf16 %v19616_v35  ;;  %v22575_v11 = vunpack.i.h.bf16 %v20030_v3 }
 0x8f6   :  { %v20159_v60 = vsel %vm51_vm1, %v7011_v7, %v7100_v63  ;;  %v11983_v49 = vunpack.i.h.bf16 %v11981_v39  ;;  %v11982_v53 = vunpack.i.l.bf16 %v11981_v39  ;;  %v7012_v7 = vsel %vm512_vm5, %v11967_v16, %v11968_v51  ;;  %v22589_v51 = vld [vmem:[#allocation71_spill] sm:$0xff] }
 0x8f7   :  { %v6897_v17 = vsel %vm411_vm4, %v22574_v43, %v11677_v24  ;;  %v7180_v63 = vsel %vm762_vm8, %v11977_v2, %v11978_v18  ;;  %v7179_v25 = vsel %vm762_vm8, %v22575_v11, %v11977_v2  ;;  %v22576_v39 = vunpack.i.h.bf16 %v19908_v20 }
 0x8f8   :  { %v7259_v35 = vsel %vm842_vm9, %v11982_v53, %v11983_v49  ;;  %v11742_v43 = vunpack.i.l.bf16 %v19652_v4  ;;  %v20185_v16 = vsel %vm51_vm1, %v7012_v7, %v7101_v37  ;;  %v21557_v18 = vunpack.i.h.bf16 %v19643_v57  ;;  %v22592_v49 = vld [vmem:[#allocation50_spill] sm:$0xff] }
 0x8f9   :  { %v7258_v62 = vsel %vm842_vm9, %v22576_v39, %v11982_v53  ;;  %v7311_v59 = vpop.permute.xlu0 %7310  ;;  %v20188_v24 = vsel %vm51_vm1, %v7180_v63, %v7259_v35  ;;  %v11732_v2 = vunpack.i.l.bf16 %v19643_v57  ;;  %v6815_v37 = vsel %vm248_vm2, %v11672_v1, %v11673_v31 }
 0x8fa   :  { %v20182_v42 = vsel %vm51_vm1, %v7179_v25, %v7258_v62  ;;  %v7334_v3 = vsel %vm922_vm10, %v19551_v29, %v7311_v59  ;;  %v7335_v20 = vsel %vm922_vm10, %v7311_v59, %v19555_v26  ;;  %v11697_v53 = vunpack.i.l.bf16 %v19679_v6 }
 0x8fb   :  { %7691 = vrot.lane.b32.xlu1 %v7335_v20, %s12343_s5  ;;  %7689 = vrot.lane.b32.xlu0 %v7334_v3, %s12343_s5  ;;  %v21559_v29 = vunpack.i.h.bf16 %v19668_v8  ;;  %v11752_v59 = vunpack.i.l.bf16 %v19668_v8  ;;  %v7362_v62 = vsel %vm51_vm1, %v6814_v23, %v6897_v17  ;;  %v7363_v7 = vsel %vm51_vm1, %v6815_v37, %v6898_v36  ;;  %v22582_v37 = vld [vmem:[#allocation12_spill] sm:$0xff] }
 0x8fc   :  { %v22577_v63 = vunpack.i.h.bf16 %v19571_v19  ;;  %v6738_v1 = vsel %vm168_vm0, %v11742_v43, %v21560_v22  ;;  %v11687_v25 = vunpack.i.l.bf16 %v19670_v40  ;;  %v11994_v39 = vpack.i.bf16 %v20114_v27, %v20105_v34 }
 0x8fd   :  { %v22578_v35 = vunpack.i.h.bf16 %v19630_v55  ;;  %v22579_v3 = vunpack.i.l.bf16 %v19630_v55  ;;  %v11717_v19 = vunpack.i.l.bf16 %v19695_v15  ;;  %v12004_v23 = vpack.i.bf16 %v20084_v21, %v20080_v14 }
 0x8fe   :  { %v6737_v11 = vsel %vm168_vm0, %v22577_v63, %v11742_v43  ;;  %v11999_v36 = vpack.i.bf16 %v20117_v28, %v20017_v41  ;;  %v20234_v43 = vsel %vm762_vm8, %v11732_v2, %v21557_v18  ;;  %v22580_v34 = vunpack.i.h.bf16 %v19584_v44  ;;  %v12295_v63 = vld [vmem:[#allocation3 + $0x18] sm:$0xff] }
 0x8ff   :  { %v20224_v17 = vsel %vm512_vm5, %v22579_v3, %v22578_v35  ;;  %v21558_v20 = vunpack.i.l.bf16 %v19706_v56  ;;  %11995 = vrot.lane.b32.xlu0 %v11994_v39, %s12343_s5  ;;  %v22581_v14 = vpack.i.bf16 %v19998_v9, %v20013_v30  ;;  %v12009_v21 = vpack.i.bf16 %v7363_v7, %v7362_v62  ;;  %v22583_v39 = vld [vmem:[#allocation10_spill] sm:$0xff]  ;;  %v22585_v30 = vld [vmem:[#allocation84_spill] sm:$0xff] }
 0x900   :  { %v7084_v27 = vsel %vm602_vm6, %v22580_v34, %v11697_v53  ;;  %v6900_v41 = vsel %vm411_vm4, %v11752_v59, %v21559_v29  ;;  %v11688_v28 = vunpack.i.h.bf16 %v19670_v40  ;;  %v20251_v44 = vsel %vm51_vm1, %v22582_v37, %v6737_v11 }
 0x901   :  { %11990 = vrot.lane.b32.xlu1 %v22581_v14, %s12343_s5  ;;  %v20254_v35 = vsel %vm51_vm1, %v12295_v63, %v6738_v1  ;;  %v22584_v3 = vunpack.i.h.bf16 %v22583_v39  ;;  %v11708_v62 = vunpack.i.h.bf16 %v22585_v30  ;;  %v11707_v7 = vunpack.i.l.bf16 %v22585_v30  ;;  %v22586_v14 = vld [vmem:[#allocation83_spill] sm:$0xff]  ;;  %v22588_v39 = vld [vmem:[#allocation28_spill] sm:$0xff] }
 0x902   :  { %v11718_v34 = vunpack.i.h.bf16 %v19695_v15  ;;  %v6899_v40 = vsel %vm411_vm4, %v11678_v38, %v11752_v59  ;;  %v11698_v11 = vunpack.i.h.bf16 %v19679_v6  ;;  %v22587_v37 = vunpack.i.h.bf16 %v22586_v14  ;;  %v22590_v6 = vld [vmem:[#allocation29_spill] sm:$0xff] }
 0x903   :  { %v6995_v9 = vsel %vm512_vm5, %v22584_v3, %v11687_v25  ;;  %v11727_v3 = vunpack.i.l.bf16 %v22588_v39  ;;  %v11748_v15 = vunpack.i.h.bf16 %v22589_v51  ;;  %v11747_v32 = vunpack.i.l.bf16 %v22589_v51  ;;  %12005 = vrot.lane.b32.xlu0 %v12004_v23, %s12343_s5 }
 0x904   :  { %v7242_v1 = vsel %vm842_vm9, %v22587_v37, %v11717_v19  ;;  %v7381_v63 = vsel %vm51_vm1, %v6995_v9, %v7084_v27  ;;  %v7244_v30 = vsel %vm842_vm9, %v11718_v34, %v21558_v20  ;;  %v11757_v59 = vunpack.i.l.bf16 %v22590_v6  ;;  %v22594_v20 = vld [vmem:[#allocation27_spill] sm:$0xff] }
 0x905   :  { %12000 = vrot.lane.b32.xlu1 %v11999_v36, %s12343_s5  ;;  %v22591_v27 = vunpack.i.l.bf16 %v19630_v55  ;;  %v6996_v14 = vsel %vm512_vm5, %v11687_v25, %v11688_v28  ;;  %v7165_v37 = vsel %vm762_vm8, %v11708_v62, %v11732_v2  ;;  %v22593_v18 = vunpack.i.h.bf16 %v22592_v49 }
 0x906   :  { %v7243_v23 = vsel %vm842_vm9, %v11717_v19, %v11718_v34  ;;  %v12014_v36 = vpack.i.bf16 %v7381_v63, %v22594_v20  ;;  %v7085_v29 = vsel %vm602_vm6, %v11697_v53, %v11698_v11  ;;  %v7164_v38 = vsel %vm762_vm8, %v11707_v7, %v11708_v62 }
 0x907   :  { %v6997_v9 = vsel %vm512_vm5, %v11688_v28, %v22591_v27  ;;  %v7163_v51 = vsel %vm762_vm8, %v22593_v18, %v11707_v7  ;;  %v7403_v22 = vsel %vm51_vm1, %v7165_v37, %v7244_v30  ;;  %v7086_v25 = vsel %vm602_vm6, %v11698_v11, %v11727_v3  ;;  %v22597_v28 = vld [vmem:[#allocation31_spill] sm:$0xff]  ;;  %v22598_v11 = vld [vmem:[#allocation36_spill] sm:$0xff]  ;;  %v22600_v37 = vld [vmem:[#allocation101_spill] sm:$0xff] }
 0x908   :  { %v7401_v27 = vsel %vm51_vm1, %v7163_v51, %v7242_v1  ;;  %v6816_v49 = vsel %vm248_vm2, %v11673_v31, %v11747_v32  ;;  %v6817_v18 = vsel %vm248_vm2, %v11747_v32, %v11748_v15  ;;  %12015 = vrot.lane.b32.xlu0 %v12014_v36, %s12343_s5  ;;  %v22595_v2 = vunpack.i.h.bf16 %v19652_v4  ;;  %v22602_v36 = vld [vmem:[#allocation16_spill] sm:$0xff] }
 0x909   :  { %12010 = vrot.lane.b32.xlu1 %v12009_v21, %s12343_s5  ;;  %v22596_v19 = vunpack.i.h.bf16 %v22590_v6  ;;  %v11768_v62 = vunpack.i.h.bf16 %v22597_v28  ;;  %v7402_v5 = vsel %vm51_vm1, %v7164_v38, %v7243_v23  ;;  %v11767_v31 = vunpack.i.l.bf16 %v22597_v28  ;;  %v22599_v21 = vld [vmem:[#allocation93_spill] sm:$0xff] }
 0x90a   :  { %v6739_v53 = vsel %vm168_vm0, %v22595_v2, %v11757_v59  ;;  %v11728_v7 = vunpack.i.h.bf16 %v22588_v39  ;;  %v12029_v34 = vpack.i.bf16 %v7403_v22, %v7402_v5  ;;  %v12019_v1 = vpack.i.bf16 %v7401_v27, %v22598_v11  ;;  %v22601_v39 = vld [vmem:[#allocation43_spill] sm:$0xff]  ;;  %v12296_v38 = vld [vmem:[#allocation3 + $0x20] sm:$0xff] }
 0x90b   :  { %v6740_v20 = vsel %vm168_vm0, %v11757_v59, %v22596_v19  ;;  %v11762_v63 = vunpack.i.l.bf16 %v22599_v21  ;;  %v7364_v4 = vsel %vm51_vm1, %v6816_v49, %v6899_v40  ;;  %v7365_v30 = vsel %vm51_vm1, %v6817_v18, %v6900_v41 }
 0x90c   :  { %v7383_v32 = vsel %vm51_vm1, %v6997_v9, %v7086_v25  ;;  %v11763_v59 = vunpack.i.h.bf16 %v22599_v21  ;;  %v11772_v51 = vunpack.i.l.bf16 %v22600_v37  ;;  %12030 = vrot.lane.b32.xlu0 %v12029_v34, %s12343_s5  ;;  %v7346_v22 = vsel %vm51_vm1, %v22601_v39, %v6739_v53 }
 0x90d   :  { %12020 = vrot.lane.b32.xlu1 %v12019_v1, %s12343_s5  ;;  %v7347_v23 = vsel %vm51_vm1, %v12296_v38, %v6740_v20  ;;  %v11778_v40 = vunpack.i.h.bf16 %v22602_v36  ;;  %v11777_v41 = vunpack.i.l.bf16 %v22602_v36  ;;  %v7382_v9 = vsel %vm51_vm1, %v6996_v14, %v7085_v29  ;;  %v22605_v14 = vld [vmem:[#allocation23_spill] sm:$0xff]  ;;  %v20358_v36 = vpop.permute.xlu0 %7314 }
 0x90e   :  { %v12034_v27 = vpack.i.bf16 %v20254_v35, %v20251_v44  ;;  %v7087_v25 = vsel %vm602_vm6, %v11727_v3, %v11728_v7  ;;  %v11738_v49 = vunpack.i.h.bf16 %v19706_v56  ;;  %v12039_v18 = vpack.i.bf16 %v7365_v30, %v7364_v4 }
 0x90f   :  { %v12024_v2 = vpack.i.bf16 %v7383_v32, %v7382_v9  ;;  %v22603_v53 = vunpack.i.h.bf16 %v19668_v8  ;;  %v6902_v20 = vsel %vm411_vm4, %v11767_v31, %v11768_v62  ;;  %v6818_v5 = vsel %vm248_vm2, %v11748_v15, %v11762_v63  ;;  %v22606_v8 = vld [vmem:[#allocation56_spill] sm:$0xff]  ;;  %v22607_v15 = vld [vmem:[#allocation85_spill] sm:$0xff]  ;;  %v22609_v32 = vld [vmem:[#allocation14_spill] sm:$0xff] }
 0x910   :  { %v12044_v29 = vpack.i.bf16 %v7347_v23, %v7346_v22  ;;  %v6819_v44 = vsel %vm248_vm2, %v11762_v63, %v11763_v59  ;;  %v22604_v35 = vunpack.i.h.bf16 %v19630_v55  ;;  %v11782_v34 = vunpack.i.l.bf16 %v22605_v14  ;;  %12040 = vrot.lane.b32.xlu0 %v12039_v18, %s12343_s5  ;;  %v22608_v55 = vld [vmem:[#allocation87_spill] sm:$0xff]  ;;  %v22611_v9 = vld [vmem:[#allocation45_spill] sm:$0xff] }
 0x911   :  { %v6901_v19 = vsel %vm411_vm4, %v22603_v53, %v11767_v31  ;;  %v11792_v11 = vunpack.i.l.bf16 %v22606_v8  ;;  %12025 = vrot.lane.b32.xlu1 %v12024_v2, %s12343_s5  ;;  %v7089_v31 = vsel %vm602_vm6, %v11777_v41, %v11778_v40  ;;  %v11787_v1 = vunpack.i.l.bf16 %v22607_v15  ;;  %v22613_v53 = vld [vmem:[#allocation22_spill] sm:$0xff] }
 0x912   :  { %v6999_v3 = vsel %vm512_vm5, %v22604_v35, %v11772_v51  ;;  %v7088_v4 = vsel %vm602_vm6, %v11728_v7, %v11777_v41  ;;  %v7384_v63 = vsel %vm51_vm1, %v20224_v17, %v7087_v25  ;;  %v11797_v30 = vunpack.i.l.bf16 %v22608_v55 }
 0x913   :  { %v11807_v39 = vunpack.i.l.bf16 %v22609_v32  ;;  %v22610_v22 = vunpack.i.l.bf16 %v19706_v56  ;;  %v11773_v23 = vunpack.i.h.bf16 %v22600_v37  ;;  %v11802_v18 = vunpack.i.l.bf16 %v22611_v9 }
 0x914   :  { %v7385_v2 = vsel %vm51_vm1, %v6999_v3, %v7088_v4  ;;  %v7366_v7 = vsel %vm51_vm1, %v6818_v5, %v6901_v19  ;;  %v7367_v17 = vsel %vm51_vm1, %v6819_v44, %v6902_v20  ;;  %v22612_v41 = vunpack.i.h.bf16 %v19643_v57  ;;  %12045 = vrot.lane.b32.xlu0 %v12044_v29, %s12343_s5 }
 0x915   :  { %v7245_v38 = vsel %vm842_vm9, %v22610_v22, %v11738_v49  ;;  %v7001_v56 = vsel %vm512_vm5, %v11773_v23, %v11792_v11  ;;  %v11813_v37 = vunpack.i.h.bf16 %v22613_v53  ;;  %v11812_v35 = vunpack.i.l.bf16 %v22613_v53  ;;  %12035 = vrot.lane.b32.xlu1 %v12034_v27, %s12343_s5 }
 0x916   :  { %v7167_v25 = vsel %vm762_vm8, %v22612_v41, %v11782_v34  ;;  %v11788_v19 = vunpack.i.h.bf16 %v22607_v15  ;;  %v7246_v20 = vsel %vm842_vm9, %v11738_v49, %v11787_v1  ;;  %v11783_v57 = vunpack.i.h.bf16 %v22605_v14  ;;  %v22615_v15 = vld [vmem:[#allocation60_spill] sm:$0xff] }
 0x917   :  { %v7404_v5 = vsel %vm51_vm1, %v20234_v43, %v7245_v38  ;;  %v7090_v44 = vsel %vm602_vm6, %v11778_v40, %v11797_v30  ;;  %v7000_v3 = vsel %vm512_vm5, %v11772_v51, %v11773_v23  ;;  %v12054_v4 = vpack.i.bf16 %v7385_v2, %v7384_v63  ;;  %v20397_v23 = vpop.permute.xlu0 %7318  ;;  %v22616_v2 = vld [vmem:[#allocation100_spill] sm:$0xff] }
 0x918   :  { %v12049_v22 = vpack.i.bf16 %v7367_v17, %v7366_v7  ;;  %v7248_v27 = vsel %vm842_vm9, %v11788_v19, %v11807_v39  ;;  %v7169_v49 = vsel %vm762_vm8, %v11783_v57, %v11802_v18  ;;  %v7387_v29 = vsel %vm51_vm1, %v7001_v56, %v7090_v44 }
 0x919   :  { %v7405_v43 = vsel %vm51_vm1, %v7167_v25, %v7246_v20  ;;  %v22614_v14 = vunpack.i.h.bf16 %v22590_v6  ;;  %v6742_v51 = vsel %vm168_vm0, %v11812_v35, %v11813_v37  ;;  %v11823_v63 = vunpack.i.h.bf16 %v22615_v15  ;;  %12055 = vrot.lane.b32.xlu0 %v12054_v4, %s12343_s5  ;;  %v22617_v25 = vld [vmem:[#allocation35_spill] sm:$0xff] }
 0x91a   :  { %v11822_v38 = vunpack.i.l.bf16 %v22615_v15  ;;  %12050 = vrot.lane.b32.xlu1 %v12049_v22, %s12343_s5  ;;  %v11818_v7 = vunpack.i.h.bf16 %v22616_v2  ;;  %v11817_v17 = vunpack.i.l.bf16 %v22616_v2  ;;  %v7168_v6 = vsel %vm762_vm8, %v11782_v34, %v11783_v57  ;;  %v12297_v22 = vld [vmem:[#allocation3 + $0x28] sm:$0xff] }
 0x91b   :  { %v6741_v40 = vsel %vm168_vm0, %v22614_v14, %v11812_v35  ;;  %v7386_v41 = vsel %vm51_vm1, %v7000_v3, %v7089_v31  ;;  %v11828_v56 = vunpack.i.h.bf16 %v22617_v25  ;;  %v11827_v53 = vunpack.i.l.bf16 %v22617_v25  ;;  %v22618_v14 = vld [vmem:[#allocation98_spill] sm:$0xff]  ;;  %v22619_v3 = vld [vmem:[#allocation8_spill] sm:$0xff] }
 0x91c   :  { %v12064_v35 = vpack.i.bf16 %v7387_v29, %v7386_v41  ;;  %v12059_v20 = vpack.i.bf16 %v7405_v43, %v7404_v5  ;;  %v7247_v44 = vsel %vm842_vm9, %v11787_v1, %v11788_v19  ;;  %v7348_v4 = vsel %vm51_vm1, %v22618_v14, %v6741_v40  ;;  %v22620_v19 = vld [vmem:[#allocation94_spill] sm:$0xff]  ;;  %v20430_v43 = vpop.permute.xlu0 %11985 }
 0x91d   :  { %v7349_v15 = vsel %vm51_vm1, %v12297_v22, %v6742_v51  ;;  %v7407_v2 = vsel %vm51_vm1, %v7169_v49, %v7248_v27  ;;  %v6743_v34 = vsel %vm168_vm0, %v11813_v37, %v11827_v53  ;;  %v6903_v31 = vsel %vm411_vm4, %v11768_v62, %v11822_v38  ;;  %v20428_v49 = vpop.permute.xlu1 %7659 }
 0x91e   :  { %v6904_v57 = vsel %vm411_vm4, %v11822_v38, %v11823_v63  ;;  %v11832_v5 = vunpack.i.l.bf16 %v22619_v3  ;;  %12065 = vrot.lane.b32.xlu0 %v12064_v35, %s12343_s5  ;;  %12060 = vrot.lane.b32.xlu1 %v12059_v20, %s12343_s5  ;;  %v6821_v1 = vsel %vm248_vm2, %v11817_v17, %v11818_v7  ;;  %v11837_v29 = vunpack.i.l.bf16 %v22620_v19  ;;  %v22621_v38 = vld [vmem:[#allocation69_spill] sm:$0xff] }
 0x91f   :  { %v11793_v27 = vunpack.i.h.bf16 %v22606_v8  ;;  %v7406_v37 = vsel %vm51_vm1, %v7168_v6, %v7247_v44  ;;  %v6820_v28 = vsel %vm248_vm2, %v11763_v59, %v11817_v17  ;;  %v6744_v62 = vsel %vm168_vm0, %v11827_v53, %v11828_v56  ;;  %v22623_v53 = vld [vmem:[#allocation21_spill] sm:$0xff] }
 0x920   :  { %v12074_v40 = vpack.i.bf16 %v7349_v15, %v7348_v4  ;;  %v12069_v51 = vpack.i.bf16 %v7407_v2, %v7406_v37  ;;  %v7350_v41 = vsel %vm51_vm1, %v22621_v38, %v6743_v34  ;;  %v7368_v25 = vsel %vm51_vm1, %v6820_v28, %v6903_v31  ;;  %v12298_v15 = vld [vmem:[#allocation3 + $0x30] sm:$0xff]  ;;  %v22628_v28 = vld [vmem:[#allocation70_spill] sm:$0xff]  ;;  %v20471_v38 = vpop.permute.xlu0 %7663 }
 0x921   :  { %v7369_v35 = vsel %vm51_vm1, %v6821_v1, %v6904_v57  ;;  %v11798_v6 = vunpack.i.h.bf16 %v22608_v55  ;;  %v6822_v21 = vsel %vm248_vm2, %v11818_v7, %v11832_v5  ;;  %v22622_v59 = vunpack.i.h.bf16 %v22619_v3  ;;  %v22626_v34 = vld [vmem:[#allocation15_spill] sm:$0xff] }
 0x922   :  { %v22624_v20 = vunpack.i.l.bf16 %v22623_v53  ;;  %12075 = vrot.lane.b32.xlu0 %v12074_v40, %s12343_s5  ;;  %12070 = vrot.lane.b32.xlu1 %v12069_v51, %s12343_s5  ;;  %v22625_v14 = vunpack.i.h.bf16 %v22620_v19  ;;  %v7002_v7 = vsel %vm512_vm5, %v11792_v11, %v11793_v27  ;;  %v11803_v22 = vunpack.i.h.bf16 %v22611_v9  ;;  %v22630_v51 = vld [vmem:[#allocation89_spill] sm:$0xff] }
 0x923   :  { %v6823_v17 = vsel %vm248_vm2, %v11832_v5, %v22622_v59  ;;  %v7351_v2 = vsel %vm51_vm1, %v12298_v15, %v6744_v62  ;;  %v22627_v31 = vunpack.i.l.bf16 %v22626_v34  ;;  %v6905_v3 = vsel %vm411_vm4, %v11823_v63, %v11837_v29  ;;  %v22636_v15 = vld [vmem:[#allocation57_spill] sm:$0xff] }
 0x924   :  { %v7003_v44 = vsel %vm512_vm5, %v11793_v27, %v22624_v20  ;;  %v6906_v4 = vsel %vm411_vm4, %v11837_v29, %v22625_v14  ;;  %v12084_v5 = vpack.i.bf16 %v7351_v2, %v7350_v41  ;;  %v12079_v1 = vpack.i.bf16 %v7369_v35, %v7368_v25  ;;  %v20469_v29 = vpop.permute.xlu1 %7661  ;;  %v22631_v41 = vld [vmem:[#allocation26_spill] sm:$0xff] }
 0x925   :  { %v7092_v57 = vsel %vm602_vm6, %v11798_v6, %v22627_v31  ;;  %v7370_v37 = vsel %vm51_vm1, %v6822_v21, %v6905_v3  ;;  %v7371_v8 = vsel %vm51_vm1, %v6823_v17, %v6906_v4  ;;  %v7091_v11 = vsel %vm602_vm6, %v11797_v30, %v11798_v6  ;;  %v20492_v4 = vpop.permute.xlu0 %7665  ;;  %v22638_v3 = vld [vmem:[#allocation88_spill] sm:$0xff] }
 0x926   :  { %v7389_v19 = vsel %vm51_vm1, %v7003_v44, %v7092_v57  ;;  %v11808_v27 = vunpack.i.h.bf16 %v22609_v32  ;;  %v22629_v62 = vunpack.i.l.bf16 %v22628_v28  ;;  %v11882_v63 = vunpack.i.l.bf16 %v22630_v51  ;;  %12085 = vrot.lane.b32.xlu0 %v12084_v5, %s12343_s5  ;;  %12080 = vrot.lane.b32.xlu1 %v12079_v1, %s12343_s5  ;;  %v22634_v32 = vld [vmem:[#allocation91_spill] sm:$0xff] }
 0x927   :  { %v7388_v55 = vsel %vm51_vm1, %v7002_v7, %v7091_v11  ;;  %v22632_v30 = vunpack.i.l.bf16 %v22631_v41  ;;  %v7170_v35 = vsel %vm762_vm8, %v11802_v18, %v11803_v22  ;;  %v12089_v21 = vpack.i.bf16 %v7371_v8, %v7370_v37  ;;  %v12299_v7 = vld [vmem:[#allocation3 + $0x38] sm:$0xff]  ;;  %v22639_v5 = vld [vmem:[#allocation95_spill] sm:$0xff]  ;;  %v22642_v11 = vld [vmem:[#allocation86_spill] sm:$0xff] }
 0x928   :  { %v7171_v40 = vsel %vm762_vm8, %v11803_v22, %v22629_v62  ;;  %v12094_v6 = vpack.i.bf16 %v7389_v19, %v7388_v55  ;;  %v7249_v17 = vsel %vm842_vm9, %v11807_v39, %v11808_v27  ;;  %v6745_v53 = vsel %vm168_vm0, %v11828_v56, %v11882_v63  ;;  %v20490_v14 = vpop.permute.xlu1 %7667  ;;  %v22635_v22 = vld [vmem:[#allocation81_spill] sm:$0xff]  ;;  %v22641_v8 = vld [vmem:[#allocation103_spill] sm:$0xff]  ;;  %v22646_v41 = vld [vmem:[#allocation6_spill] sm:$0xff] }
 0x929   :  { %v7250_v25 = vsel %vm842_vm9, %v11808_v27, %v22632_v30  ;;  %v22633_v20 = vunpack.i.h.bf16 %v22630_v51  ;;  %v7408_v9 = vsel %vm51_vm1, %v7170_v35, %v7249_v17  ;;  %v7352_v39 = vsel %vm51_vm1, %v22634_v32, %v6745_v53  ;;  %v20507_v31 = vpop.permute.xlu0 %7669  ;;  %v22647_v30 = vld [vmem:[#allocation102_spill] sm:$0xff]  ;;  %v22651_v35 = vld [vmem:[#allocation73_spill] sm:$0xff] }
 0x92a   :  { %v7409_v59 = vsel %vm51_vm1, %v7171_v40, %v7250_v25  ;;  %12095 = vrot.lane.b32.xlu0 %v12094_v6, %s12343_s5  ;;  %12090 = vrot.lane.b32.xlu1 %v12089_v21, %s12343_s5  ;;  %v22637_v2 = vpack.i.bf16 %v22635_v22, %v22636_v15  ;;  %v22640_v1 = vpack.i.bf16 %v22638_v3, %v22639_v5  ;;  %v22655_v21 = vld [vmem:[#allocation58_spill] sm:$0xff] }
 0x92b   :  { %v6746_v44 = vsel %vm168_vm0, %v11882_v63, %v22633_v20  ;;  %v12099_v18 = vpack.i.bf16 %v7409_v59, %v7408_v9  ;;  %v22643_v27 = vpack.i.bf16 %v22641_v8, %v22642_v11  ;;  %v22644_v28 = vpack.i.bf16 %v19917_v13, %v19912_v61  ;;  %v22650_v61 = vld [vmem:[#allocation38_spill] sm:$0xff] }
 0x92c   :  { %v7353_v56 = vsel %vm51_vm1, %v12299_v7, %v6746_v44  ;;  %v20505_v34 = vpop.permute.xlu1 %7671  ;;  %v22645_v55 = vpack.i.bf16 %v19956_v10, %v19825_v45  ;;  %v22648_v25 = vpack.i.bf16 %v22646_v41, %v22647_v30  ;;  %v22649_v13 = vpack.i.bf16 %v20036_v54, %v19959_v52  ;;  %v22654_v10 = vld [vmem:[#allocation67_spill] sm:$0xff] }
 0x92d   :  { %v12114_v57 = vpack.i.bf16 %v7353_v56, %v7352_v39  ;;  %v22652_v6 = vpack.i.bf16 %v22650_v61, %v22651_v35  ;;  %v22653_v45 = vpack.i.bf16 %v20102_v0, %v20098_v50  ;;  %v22656_v59 = vpack.i.bf16 %v22654_v10, %v22655_v21 }
 0x92e   :  { %12105 = vrot.lane.b32.xlu0 %v22637_v2, %s12343_s5  ;;  %12100 = vrot.lane.b32.xlu1 %v12099_v18, %s12343_s5  ;;  %v22657_v52 = vpack.i.bf16 %v20159_v60, %v20039_v12  ;;  %v22658_v54 = vpack.i.bf16 %v20134_v47, %v20131_v48  ;;  %v22659_v50 = vpack.i.bf16 %v20137_v46, %v20127_v33  ;;  %v22662_v47 = vld [vmem:[#allocation20_spill] sm:$0xff] }
 0x92f   :  { %v22660_v0 = vpack.i.bf16 %v20182_v42, %v20071_v58  ;;  %v7336_v12 = vsel %vm922_vm10, %v19555_v26, %v20358_v36  ;;  %v22661_v48 = vpack.i.bf16 %v20188_v24, %v20185_v16  ;;  %v7337_v33 = vsel %vm922_vm10, %v20358_v36, %v22662_v47 }
 0x930   :  { %v7338_v58 = vsel %vm922_vm10, %v22662_v47, %v20397_v23 }
 0x931   :  { %v20514_v19 = vpop.permute.xlu1 %7675  ;;  %v20516_v37 = vpop.permute.xlu0 %7673 }
 0x932   :  { %12115 = vrot.lane.b32.xlu0 %v12114_v57, %s12343_s5  ;;  %12110 = vrot.lane.b32.xlu1 %v22640_v1, %s12343_s5 }
 0x935   :  { %v7680_v62 = vpop.permute.xlu1 %7679  ;;  %v7678_v40 = vpop.permute.xlu0 %7677 }
 0x936   :  { %12125 = vrot.lane.b32.xlu0 %v22643_v27, %s12343_s5  ;;  %12120 = vrot.lane.b32.xlu1 %v22644_v28, %s12343_s5  ;;  %v20528_v51 = vsel %vm2008_vm3, %v20514_v19, %v7678_v40  ;;  %v20531_v63 = vsel %vm2008_vm3, %v7678_v40, %v7680_v62 }
 0x93a   :  { %12135 = vrot.lane.b32.xlu0 %v22645_v55, %s12343_s5  ;;  %12130 = vrot.lane.b32.xlu1 %v22648_v25, %s12343_s5 }
 0x93e   :  { %12145 = vrot.lane.b32.xlu0 %v22649_v13, %s12343_s5  ;;  %12140 = vrot.lane.b32.xlu1 %v22652_v6, %s12343_s5 }
 0x942   :  { %12155 = vrot.lane.b32.xlu0 %v22653_v45, %s12343_s5  ;;  %12150 = vrot.lane.b32.xlu1 %v22656_v59, %s12343_s5  ;;  %v11987_v45 = vunpack.i.l.bf16 %v20430_v43 }
 0x946   :  { %12165 = vrot.lane.b32.xlu0 %v22657_v52, %s12343_s5  ;;  %12160 = vrot.lane.b32.xlu1 %v22658_v54, %s12343_s5  ;;  %v11988_v54 = vunpack.i.h.bf16 %v20430_v43 }
 0x94a   :  { %12175 = vrot.lane.b32.xlu0 %v22659_v50, %s12343_s5  ;;  %12170 = vrot.lane.b32.xlu1 %v22660_v0, %s12343_s5 }
 0x94e   :  { %7693 = vrot.lane.b32.xlu0 %v7336_v12, %s12343_s5  ;;  %12180 = vrot.lane.b32.xlu1 %v22661_v48, %s12343_s5 }
 0x951   :  { %v7684_v26 = vpop.permute.xlu1 %7683  ;;  %v7682_v46 = vpop.permute.xlu0 %7681 }
 0x952   :  { %7697 = vrot.lane.b32.xlu0 %v7338_v58, %s12343_s5  ;;  %7695 = vrot.lane.b32.xlu1 %v7337_v33, %s12343_s5  ;;  %v20590_v42 = vsel %vm2008_vm3, %v7680_v62, %v7682_v46  ;;  %v20593_v60 = vsel %vm2008_vm3, %v7682_v46, %v7684_v26 }
 0x955   :  { %v7688_v16 = vpop.permute.xlu1 %7687  ;;  %v7686_v24 = vpop.permute.xlu0 %7685 }
 0x956   :  { %v20596_v36 = vsel %vm2008_vm3, %v7684_v26, %v7686_v24  ;;  %v20599_v17 = vsel %vm2008_vm3, %v7686_v24, %v7688_v16 }
 0x96d   :  { %v20601_v23 = vpop.permute.xlu1 %7691  ;;  %v20603_v53 = vpop.permute.xlu0 %7689 }
 0x96e   :  { %v20607_v20 = vsel %vm2008_vm3, %v7688_v16, %v20603_v53 }
 0x971   :  { %v11996_v44 = vpop.permute.xlu0 %11995 }
 0x972   :  { %v11998_v18 = vunpack.i.h.bf16 %v11996_v44  ;;  %v11997_v32 = vunpack.i.l.bf16 %v11996_v44 }
 0x973   :  { %v11991_v9 = vpop.permute.xlu1 %11990 }
 0x974   :  { %v11993_v39 = vunpack.i.h.bf16 %v11991_v9  ;;  %v11992_v7 = vunpack.i.l.bf16 %v11991_v9  ;;  %v7719_v22 = vsel %vm2008_vm3, %v11997_v32, %v11998_v18 }
 0x975   :  { %v20611_v15 = vpop.permute.xlu0 %12005 }
 0x976   :  { %v7700_v56 = vsel %vm2008_vm3, %v11992_v7, %v11993_v39  ;;  %v12007_v1 = vunpack.i.l.bf16 %v20611_v15  ;;  %v12008_v8 = vunpack.i.h.bf16 %v20611_v15 }
 0x977   :  { %v12001_v2 = vpop.permute.xlu1 %12000  ;;  %v9279_v57 = vpack.c.bf16 %v7719_v22, %v7700_v56 }
 0x978   :  { %v12003_v3 = vunpack.i.h.bf16 %v12001_v2  ;;  %v12002_v5 = vunpack.i.l.bf16 %v12001_v2  ;;  %v7701_v30 = vsel %vm2008_vm3, %v11993_v39, %v12007_v1  ;;  %v7702_v35 = vsel %vm2008_vm3, %v12007_v1, %v12008_v8 }
 0x979   :  { %9280 = vmatprep.subr.bf16.mxu0 %v9279_v57 }
 0x97a   :  { %v7718_v11 = vsel %vm2008_vm3, %v12003_v3, %v11997_v32  ;;  %v7699_v27 = vsel %vm2008_vm3, %v12002_v5, %v11992_v7  ;;  %v12016_v62 = vpop.permute.xlu0 %12015 }
 0x97b   :  { %v9281_v28 = vpack.c.bf16 %v7718_v11, %v7699_v27  ;;  %v12011_v40 = vpop.permute.xlu1 %12010  ;;  %v12017_v25 = vunpack.i.l.bf16 %v12016_v62  ;;  %v12018_v13 = vunpack.i.h.bf16 %v12016_v62  ;;  %v20646_v27 = vld [vmem:[%s21023_s4] sm:$0xf]  ;;  %v7778_v62 = vsel %vm2008_vm3, %v20492_v4, %v20490_v14 }
 0x97c   :  { %v12013_v55 = vunpack.i.h.bf16 %v12011_v40  ;;  %v12012_v41 = vunpack.i.l.bf16 %v12011_v40 }
 0x97d   :  { %9282 = vmatpush1.bf16.msra.mxu0 %v9281_v28  ;;  %v7737_v12 = vsel %vm2008_vm3, %v11987_v45, %v12017_v25  ;;  %v7738_v58 = vsel %vm2008_vm3, %v12017_v25, %v12018_v13  ;;  %v7775_v28 = vsel %vm2008_vm3, %v20428_v49, %v20469_v29  ;;  %v22663_v45 = vld [vmem:[#allocation90_spill] sm:$0xff] }
 0x97e   :  { %v7720_v61 = vsel %vm2008_vm3, %v11998_v18, %v12012_v41  ;;  %v7721_v6 = vsel %vm2008_vm3, %v12012_v41, %v12013_v55  ;;  %v20622_v21 = vpop.permute.xlu0 %12030  ;;  %v7776_v18 = vsel %vm2008_vm3, %v20469_v29, %v20471_v38 }
 0x97f   :  { %v9289_v10 = vpack.c.bf16 %v7720_v61, %v7701_v30  ;;  %v12021_v59 = vpop.permute.xlu1 %12020  ;;  %v9287_v52 = vpack.c.bf16 %v7721_v6, %v7702_v35  ;;  %v12032_v48 = vunpack.i.l.bf16 %v20622_v21  ;;  %v12033_v47 = vunpack.i.h.bf16 %v20622_v21 }
 0x980   :  { %v12023_v50 = vunpack.i.h.bf16 %v12021_v59  ;;  %v12022_v0 = vunpack.i.l.bf16 %v12021_v59  ;;  %v7780_v21 = vsel %vm2008_vm3, %v20507_v31, %v20505_v34 }
 0x981   :  { %9288 = vmatprep.subr.bf16.mxu1 %v9287_v52  ;;  %v7759_v15 = vsel %vm2008_vm3, %v12032_v48, %v12033_v47 }
 0x982   :  { %v7756_v33 = vsel %vm2008_vm3, %v11988_v54, %v12022_v0  ;;  %9290 = vmatpush1.bf16.msra.mxu1 %v9289_v10  ;;  %v7757_v26 = vsel %vm2008_vm3, %v12022_v0, %v12023_v50  ;;  %v12041_v16 = vpop.permute.xlu0 %12040  ;;  %v7758_v32 = vsel %vm2008_vm3, %v12023_v50, %v12032_v48  ;;  %v7777_v10 = vsel %vm2008_vm3, %v20471_v38, %v20492_v4 }
 0x983   :  { %v9285_v46 = vpack.c.bf16 %v7756_v33, %v7737_v12  ;;  %v12026_v24 = vpop.permute.xlu1 %12025  ;;  %v9283_v43 = vpack.c.bf16 %v7757_v26, %v7738_v58  ;;  %v12042_v39 = vunpack.i.l.bf16 %v12041_v16  ;;  %v12043_v7 = vunpack.i.h.bf16 %v12041_v16 }
 0x984   :  { %v12028_v44 = vunpack.i.h.bf16 %v12026_v24  ;;  %v12027_v9 = vunpack.i.l.bf16 %v12026_v24 }
 0x985   :  { %9284 = vmatprep.subr.bf16.mxu0 %v9283_v43  ;;  %v7722_v40 = vsel %vm2008_vm3, %v12013_v55, %v12042_v39  ;;  %v7723_v49 = vsel %vm2008_vm3, %v12042_v39, %v12043_v7 }
 0x986   :  { %v7739_v56 = vsel %vm2008_vm3, %v12018_v13, %v12027_v9  ;;  %9286 = vmatpush1.bf16.msra.mxu0 %v9285_v46  ;;  %v7740_v22 = vsel %vm2008_vm3, %v12027_v9, %v12028_v44  ;;  %v20640_v57 = vpop.permute.xlu0 %12045 }
 0x987   :  { %v9293_v2 = vpack.c.bf16 %v7758_v32, %v7739_v56  ;;  %v12036_v3 = vpop.permute.xlu1 %12035  ;;  %8929 = vmatprep.subr.msk.mxu0 %vm51_vm1, %v7776_v18  ;;  %v9291_v5 = vpack.c.bf16 %v7759_v15, %v7740_v22  ;;  %v12047_v41 = vunpack.i.l.bf16 %v20640_v57  ;;  %v12048_v30 = vunpack.i.h.bf16 %v20640_v57 }
 0x988   :  { %v12038_v1 = vunpack.i.h.bf16 %v12036_v3  ;;  %v12037_v11 = vunpack.i.l.bf16 %v12036_v3 }
 0x989   :  { %9292 = vmatprep.subr.bf16.mxu1 %v9291_v5  ;;  %v7706_v0 = vsel %vm2008_vm3, %v12047_v41, %v12048_v30 }
 0x98a   :  { %v7703_v25 = vsel %vm2008_vm3, %v12008_v8, %v12037_v11  ;;  %8930 = vmatpush1.msk.msra.mxu0 %vm51_vm1, %v7775_v28  ;;  %9294 = vmatpush1.bf16.msra.mxu1 %v9293_v2  ;;  %v7704_v13 = vsel %vm2008_vm3, %v12037_v11, %v12038_v1  ;;  %v7705_v59 = vsel %vm2008_vm3, %v12038_v1, %v12047_v41 }
 0x98b   :  { %v9297_v29 = vpack.c.bf16 %v7722_v40, %v7703_v25  ;;  %v12056_v61 = vpop.permute.xlu0 %12055  ;;  %8932 = vmatprep.subr.msk.mxu1 %vm51_vm1, %v7778_v62  ;;  %v9295_v55 = vpack.c.bf16 %v7723_v49, %v7704_v13  ;;  %8931 = vmatmul.mubr.msk.f32.vlgmr.msra.gmra.mrb[20].mxu0 %vm2008_vm3, %v20646_v27  ;;  %v7779_v13 = vsel %vm2008_vm3, %v20490_v14, %v20507_v31 }
 0x98c   :  { %v20661_v35 = vpop.permute.xlu1 %12050  ;;  %8123 = vmatprep.mubr.f32.mxu0 %v22663_v45  ;;  %v12057_v52 = vunpack.i.l.bf16 %v12056_v61  ;;  %v12058_v54 = vunpack.i.h.bf16 %v12056_v61  ;;  %v7782_v49 = vsel %vm2008_vm3, %v20516_v37, %v20514_v19 }
 0x98d   :  { %v12053_v6 = vunpack.i.h.bf16 %v20661_v35  ;;  %v12052_v8 = vunpack.i.l.bf16 %v20661_v35  ;;  %9296 = vmatprep.subr.bf16.mxu0 %v9295_v55 }
 0x98e   :  { %8933 = vmatpush1.msk.msra.mxu1 %vm51_vm1, %v7777_v10  ;;  %9298 = vmatpush1.bf16.msra.mxu0 %v9297_v29  ;;  %v7741_v46 = vsel %vm2008_vm3, %v12028_v44, %v12057_v52  ;;  %v7742_v9 = vsel %vm2008_vm3, %v12057_v52, %v12058_v54 }
 0x98f   :  { %v7724_v50 = vsel %vm2008_vm3, %v12043_v7, %v12052_v8  ;;  %v7725_v12 = vsel %vm2008_vm3, %v12052_v8, %v12053_v6  ;;  %8934 = vmatmul.mubr.msk.f32.vlgmr.msra.gmra.mrb[20].mxu1 %vm2008_vm3, %v20646_v27 }
 0x990   :  { %v9305_v48 = vpack.c.bf16 %v7724_v50, %v7705_v59  ;;  %v20679_v33 = vpop.permute.xlu0 %12065  ;;  %v12061_v38 = vpop.permute.xlu1 %12060  ;;  %v9303_v4 = vpack.c.bf16 %v7725_v12, %v7706_v0  ;;  %8194 = vmatprep.mubr.f32.mxu1 %v22663_v45 }
 0x991   :  { %v12063_v58 = vunpack.i.h.bf16 %v12061_v38  ;;  %v12062_v26 = vunpack.i.l.bf16 %v12061_v38  ;;  %v12067_v16 = vunpack.i.l.bf16 %v20679_v33  ;;  %v12068_v24 = vunpack.i.h.bf16 %v20679_v33 }
 0x992   :  { %9304 = vmatprep.subr.bf16.mxu1 %v9303_v4 }
 0x993   :  { %v7760_v43 = vsel %vm2008_vm3, %v12033_v47, %v12062_v26  ;;  %9306 = vmatpush1.bf16.msra.mxu1 %v9305_v48  ;;  %v7761_v18 = vsel %vm2008_vm3, %v12062_v26, %v12063_v58  ;;  %v7743_v47 = vsel %vm2008_vm3, %v12058_v54, %v12067_v16  ;;  %v7744_v5 = vsel %vm2008_vm3, %v12067_v16, %v12068_v24 }
 0x994   :  { %v9301_v32 = vpack.c.bf16 %v7760_v43, %v7741_v46  ;;  %v12076_v39 = vpop.permute.xlu0 %12075  ;;  %v20692_v7 = vpop.permute.xlu1 %12070  ;;  %v9299_v56 = vpack.c.bf16 %v7761_v18, %v7742_v9 }
 0x995   :  { %v12073_v44 = vunpack.i.h.bf16 %v20692_v7  ;;  %v12072_v22 = vunpack.i.l.bf16 %v20692_v7  ;;  %v12077_v15 = vunpack.i.l.bf16 %v12076_v39  ;;  %v12078_v2 = vunpack.i.h.bf16 %v12076_v39 }
 0x996   :  { %9300 = vmatprep.subr.bf16.mxu0 %v9299_v56 }
 0x997   :  { %v7762_v3 = vsel %vm2008_vm3, %v12063_v58, %v12072_v22  ;;  %9302 = vmatpush1.bf16.msra.mxu0 %v9301_v32  ;;  %v7763_v1 = vsel %vm2008_vm3, %v12072_v22, %v12073_v44  ;;  %v7707_v29 = vsel %vm2008_vm3, %v12048_v30, %v12077_v15  ;;  %v7708_v14 = vsel %vm2008_vm3, %v12077_v15, %v12078_v2 }
 0x998   :  { %v9309_v11 = vpack.c.bf16 %v7762_v3, %v7743_v47  ;;  %v20705_v28 = vpop.permute.xlu0 %12085  ;;  %v12081_v62 = vpop.permute.xlu1 %12080  ;;  %8935 = vmatprep.subr.msk.mxu0 %vm51_vm1, %v7780_v21  ;;  %v9307_v40 = vpack.c.bf16 %v7763_v1, %v7744_v5 }
 0x999   :  { %v12083_v41 = vunpack.i.h.bf16 %v12081_v62  ;;  %v12082_v25 = vunpack.i.l.bf16 %v12081_v62  ;;  %v12087_v61 = vunpack.i.l.bf16 %v20705_v28  ;;  %v12088_v35 = vunpack.i.h.bf16 %v20705_v28 }
 0x99a   :  { %9308 = vmatprep.subr.bf16.mxu1 %v9307_v40 }
 0x99b   :  { %v7726_v55 = vsel %vm2008_vm3, %v12053_v6, %v12082_v25  ;;  %8936 = vmatpush1.msk.msra.mxu0 %vm51_vm1, %v7779_v13  ;;  %9310 = vmatpush1.bf16.msra.mxu1 %v9309_v11  ;;  %v7727_v31 = vsel %vm2008_vm3, %v12082_v25, %v12083_v41  ;;  %v7781_v6 = vsel %vm2008_vm3, %v20505_v34, %v20516_v37 }
 0x99c   :  { %v9313_v8 = vpack.c.bf16 %v7726_v55, %v7707_v29  ;;  %v12096_v19 = vpop.permute.xlu0 %12095  ;;  %v12091_v10 = vpop.permute.xlu1 %12090  ;;  %8938 = vmatprep.subr.msk.mxu1 %vm51_vm1, %v7782_v49  ;;  %v9311_v57 = vpack.c.bf16 %v7727_v31, %v7708_v14  ;;  %8937 = vmatmul.mubr.msk.f32.vlgmr.msra.gmra.mrb[22].mxu0 %vm2008_vm3, %v20646_v27  ;;  %v7709_v52 = vsel %vm2008_vm3, %v12078_v2, %v12087_v61 }
 0x99d   :  { %v12093_v30 = vunpack.i.h.bf16 %v12091_v10  ;;  %v12092_v59 = vunpack.i.l.bf16 %v12091_v10  ;;  %8265 = vmatprep.mubr.f32.mxu0 %v22663_v45  ;;  %v12097_v54 = vunpack.i.l.bf16 %v12096_v19  ;;  %v12098_v50 = vunpack.i.h.bf16 %v12096_v19 }
 0x99e   :  { %9312 = vmatprep.subr.bf16.mxu0 %v9311_v57  ;;  %v7710_v12 = vsel %vm2008_vm3, %v12087_v61, %v12088_v35 }
 0x99f   :  { %v7728_v0 = vsel %vm2008_vm3, %v12083_v41, %v12092_v59  ;;  %8939 = vmatpush1.msk.msra.mxu1 %vm51_vm1, %v7781_v6  ;;  %9314 = vmatpush1.bf16.msra.mxu0 %v9313_v8  ;;  %v7729_v48 = vsel %vm2008_vm3, %v12092_v59, %v12093_v30  ;;  %v7745_v46 = vsel %vm2008_vm3, %v12068_v24, %v12097_v54 }
 0x9a0   :  { %v9321_v38 = vpack.c.bf16 %v7728_v0, %v7709_v52  ;;  %v20737_v4 = vpop.permute.xlu0 %12105  ;;  %v12101_v34 = vpop.permute.xlu1 %12100  ;;  %v9319_v37 = vpack.c.bf16 %v7729_v48, %v7710_v12  ;;  %8940 = vmatmul.mubr.msk.f32.vlgmr.msra.gmra.mrb[22].mxu1 %vm2008_vm3, %v20646_v27  ;;  %v7746_v18 = vsel %vm2008_vm3, %v12097_v54, %v12098_v50 }
 0x9a1   :  { %v12103_v58 = vunpack.i.h.bf16 %v12101_v34  ;;  %v12102_v26 = vunpack.i.l.bf16 %v12101_v34  ;;  %8336 = vmatprep.mubr.f32.mxu1 %v22663_v45  ;;  %v12107_v16 = vunpack.i.l.bf16 %v20737_v4  ;;  %v12108_v43 = vunpack.i.h.bf16 %v20737_v4 }
 0x9a2   :  { %9320 = vmatprep.subr.bf16.mxu1 %v9319_v37 }
 0x9a3   :  { %v7764_v9 = vsel %vm2008_vm3, %v12073_v44, %v12102_v26  ;;  %9322 = vmatpush1.bf16.msra.mxu1 %v9321_v38  ;;  %v7765_v32 = vsel %vm2008_vm3, %v12102_v26, %v12103_v58  ;;  %v7747_v24 = vsel %vm2008_vm3, %v12098_v50, %v12107_v16  ;;  %v7748_v44 = vsel %vm2008_vm3, %v12107_v16, %v12108_v43 }
 0x9a4   :  { %v9317_v39 = vpack.c.bf16 %v7764_v9, %v7745_v46  ;;  %v12116_v7 = vpop.permute.xlu0 %12115  ;;  %v12111_v56 = vpop.permute.xlu1 %12110  ;;  %v9315_v22 = vpack.c.bf16 %v7765_v32, %v7746_v18 }
 0x9a5   :  { %v12113_v21 = vunpack.i.h.bf16 %v12111_v56  ;;  %v12112_v33 = vunpack.i.l.bf16 %v12111_v56  ;;  %v12117_v47 = vunpack.i.l.bf16 %v12116_v7  ;;  %v12118_v15 = vunpack.i.h.bf16 %v12116_v7 }
 0x9a6   :  { %9316 = vmatprep.subr.bf16.mxu0 %v9315_v22 }
 0x9a7   :  { %v7766_v2 = vsel %vm2008_vm3, %v12103_v58, %v12112_v33  ;;  %9318 = vmatpush1.bf16.msra.mxu0 %v9317_v39  ;;  %v7767_v3 = vsel %vm2008_vm3, %v12112_v33, %v12113_v21  ;;  %v7711_v25 = vsel %vm2008_vm3, %v12088_v35, %v12117_v47 }
 0x9a8   :  { %v9325_v5 = vpack.c.bf16 %v7766_v2, %v7747_v24  ;;  %v20754_v1 = vpop.permute.xlu0 %12125  ;;  %v12121_v11 = vpop.permute.xlu1 %12120  ;;  %8941 = vmatprep.subr.msk.mxu0 %vm51_vm1, %v20531_v63  ;;  %v9323_v62 = vpack.c.bf16 %v7767_v3, %v7748_v44  ;;  %v7712_v63 = vsel %vm2008_vm3, %v12117_v47, %v12118_v15  ;;  %v7790_v2 = vsel %vm2008_vm3, %v20603_v53, %v20601_v23 }
 0x9a9   :  { %v12123_v40 = vunpack.i.h.bf16 %v12121_v11  ;;  %v12122_v41 = vunpack.i.l.bf16 %v12121_v11  ;;  %v12127_v13 = vunpack.i.l.bf16 %v20754_v1  ;;  %v12128_v49 = vunpack.i.h.bf16 %v20754_v1 }
 0x9aa   :  { %9324 = vmatprep.subr.bf16.mxu1 %v9323_v62 }
 0x9ab   :  { %v7730_v29 = vsel %vm2008_vm3, %v12093_v30, %v12122_v41  ;;  %8942 = vmatpush1.msk.msra.mxu0 %vm51_vm1, %v20528_v51  ;;  %9326 = vmatpush1.bf16.msra.mxu1 %v9325_v5  ;;  %v7731_v61 = vsel %vm2008_vm3, %v12122_v41, %v12123_v40  ;;  %v7713_v51 = vsel %vm2008_vm3, %v12118_v15, %v12127_v13 }
 0x9ac   :  { %v9329_v55 = vpack.c.bf16 %v7730_v29, %v7711_v25  ;;  %v12136_v14 = vpop.permute.xlu0 %12135  ;;  %v12131_v28 = vpop.permute.xlu1 %12130  ;;  %8943 = vmatmul.mubr.msk.f32.vlgmr.msra.gmra.mrb[24].mxu0 %vm2008_vm3, %v20646_v27  ;;  %8944 = vmatprep.subr.msk.mxu1 %vm51_vm1, %v20593_v60  ;;  %v9327_v35 = vpack.c.bf16 %v7731_v61, %v7712_v63  ;;  %v7714_v60 = vsel %vm2008_vm3, %v12127_v13, %v12128_v49 }
 0x9ad   :  { %v12133_v31 = vunpack.i.h.bf16 %v12131_v28  ;;  %v12132_v8 = vunpack.i.l.bf16 %v12131_v28  ;;  %8407 = vmatprep.mubr.f32.mxu0 %v22663_v45  ;;  %v12137_v19 = vunpack.i.l.bf16 %v12136_v14  ;;  %v12138_v10 = vunpack.i.h.bf16 %v12136_v14 }
 0x9ae   :  { %9328 = vmatprep.subr.bf16.mxu0 %v9327_v35 }
 0x9af   :  { %v7732_v57 = vsel %vm2008_vm3, %v12123_v40, %v12132_v8  ;;  %8945 = vmatpush1.msk.msra.mxu1 %vm51_vm1, %v20590_v42  ;;  %9330 = vmatpush1.bf16.msra.mxu0 %v9329_v55  ;;  %v7733_v30 = vsel %vm2008_vm3, %v12132_v8, %v12133_v31  ;;  %v7749_v42 = vsel %vm2008_vm3, %v12108_v43, %v12137_v19 }
 0x9b0   :  { %v9337_v59 = vpack.c.bf16 %v7732_v57, %v7713_v51  ;;  %v12146_v6 = vpop.permute.xlu0 %12145  ;;  %v12141_v52 = vpop.permute.xlu1 %12140  ;;  %8946 = vmatmul.mubr.msk.f32.vlgmr.msra.gmra.mrb[24].mxu1 %vm2008_vm3, %v20646_v27  ;;  %v9335_v54 = vpack.c.bf16 %v7733_v30, %v7714_v60  ;;  %v7750_v4 = vsel %vm2008_vm3, %v12137_v19, %v12138_v10 }
 0x9b1   :  { %v12143_v50 = vunpack.i.h.bf16 %v12141_v52  ;;  %v12142_v0 = vunpack.i.l.bf16 %v12141_v52  ;;  %8478 = vmatprep.mubr.f32.mxu1 %v22663_v45  ;;  %v12147_v12 = vunpack.i.l.bf16 %v12146_v6  ;;  %v12148_v48 = vunpack.i.h.bf16 %v12146_v6 }
 0x9b2   :  { %9336 = vmatprep.subr.bf16.mxu1 %v9335_v54 }
 0x9b3   :  { %v7768_v38 = vsel %vm2008_vm3, %v12113_v21, %v12142_v0  ;;  %9338 = vmatpush1.bf16.msra.mxu1 %v9337_v59  ;;  %v7769_v34 = vsel %vm2008_vm3, %v12142_v0, %v12143_v50  ;;  %v7751_v18 = vsel %vm2008_vm3, %v12138_v10, %v12147_v12  ;;  %v7752_v7 = vsel %vm2008_vm3, %v12147_v12, %v12148_v48 }
 0x9b4   :  { %v9333_v37 = vpack.c.bf16 %v7768_v38, %v7749_v42  ;;  %v12156_v58 = vpop.permute.xlu0 %12155  ;;  %v12151_v26 = vpop.permute.xlu1 %12150  ;;  %v9331_v46 = vpack.c.bf16 %v7769_v34, %v7750_v4 }
 0x9b5   :  { %v12153_v16 = vunpack.i.h.bf16 %v12151_v26  ;;  %v12152_v9 = vunpack.i.l.bf16 %v12151_v26  ;;  %v12157_v32 = vunpack.i.l.bf16 %v12156_v58  ;;  %v12158_v43 = vunpack.i.h.bf16 %v12156_v58  ;;  %v22664_v26 = vld [vmem:[#allocation40_spill] sm:$0xff] }
 0x9b6   :  { %9332 = vmatprep.subr.bf16.mxu0 %v9331_v46 }
 0x9b7   :  { %v7770_v39 = vsel %vm2008_vm3, %v12143_v50, %v12152_v9  ;;  %9334 = vmatpush1.bf16.msra.mxu0 %v9333_v37  ;;  %v7771_v56 = vsel %vm2008_vm3, %v12152_v9, %v12153_v16  ;;  %v7715_v44 = vsel %vm2008_vm3, %v12128_v49, %v12157_v32 }
 0x9b8   :  { %v9341_v22 = vpack.c.bf16 %v7770_v39, %v7751_v18  ;;  %v12166_v21 = vpop.permute.xlu0 %12165  ;;  %v12161_v33 = vpop.permute.xlu1 %12160  ;;  %8947 = vmatprep.subr.msk.mxu0 %vm51_vm1, %v20599_v17  ;;  %v9339_v24 = vpack.c.bf16 %v7771_v56, %v7752_v7  ;;  %v7716_v17 = vsel %vm2008_vm3, %v12157_v32, %v12158_v43  ;;  %v22665_v18 = vld [vmem:[#allocation47_spill] sm:$0xff] }
 0x9b9   :  { %v12163_v47 = vunpack.i.h.bf16 %v12161_v33  ;;  %v12162_v15 = vunpack.i.l.bf16 %v12161_v33  ;;  %v12168_v3 = vunpack.i.h.bf16 %v12166_v21  ;;  %v12167_v5 = vunpack.i.l.bf16 %v12166_v21 }
 0x9ba   :  { %9340 = vmatprep.subr.bf16.mxu1 %v9339_v24  ;;  %v22667_v24 = vld [vmem:[#allocation46_spill] sm:$0xff] }
 0x9bb   :  { %v7734_v11 = vsel %vm2008_vm3, %v12133_v31, %v12162_v15  ;;  %8948 = vmatpush1.msk.msra.mxu0 %vm51_vm1, %v20596_v36  ;;  %9342 = vmatpush1.bf16.msra.mxu1 %v9341_v22  ;;  %v7735_v62 = vsel %vm2008_vm3, %v12162_v15, %v12163_v47  ;;  %v7753_v36 = vsel %vm2008_vm3, %v12148_v48, %v12167_v5  ;;  %v22666_v22 = vld [vmem:[#allocation63_spill] sm:$0xff] }
 0x9bc   :  { %v9345_v40 = vpack.c.bf16 %v7734_v11, %v7715_v44  ;;  %v12176_v41 = vpop.permute.xlu0 %12175  ;;  %v12171_v53 = vpop.permute.xlu1 %12170  ;;  %8949 = vmatmul.mubr.msk.f32.vlgmr.msra.gmra.mrb[26].mxu0 %vm2008_vm3, %v20646_v27  ;;  %8950 = vmatprep.subr.msk.mxu1 %vm51_vm1, %v7790_v2  ;;  %v9343_v1 = vpack.c.bf16 %v7735_v62, %v7716_v17  ;;  %v7754_v63 = vsel %vm2008_vm3, %v12167_v5, %v12168_v3 }
 0x9bd   :  { %v12178_v25 = vunpack.i.h.bf16 %v12176_v41  ;;  %v12177_v13 = vunpack.i.l.bf16 %v12176_v41  ;;  %v12173_v49 = vunpack.i.h.bf16 %v12171_v53  ;;  %v12172_v29 = vunpack.i.l.bf16 %v12171_v53  ;;  %8549 = vmatprep.mubr.f32.mxu0 %v22663_v45 }
 0x9be   :  { %9344 = vmatprep.subr.bf16.mxu0 %v9343_v1 }
 0x9bf   :  { %v7717_v61 = vsel %vm2008_vm3, %v12158_v43, %v12177_v13  ;;  %v7736_v55 = vsel %vm2008_vm3, %v12163_v47, %v12178_v25  ;;  %v9351_v14 = vpack.c.bf16 %v12178_v25, %v12177_v13  ;;  %v7772_v28 = vsel %vm2008_vm3, %v12153_v16, %v12172_v29  ;;  %8951 = vmatpush1.msk.msra.mxu1 %vm51_vm1, %v20607_v20  ;;  %v22668_v25 = vld [vmem:[#allocation64_spill] sm:$0xff] }
 0x9c0   :  { %v9353_v35 = vpack.c.bf16 %v7736_v55, %v7717_v61  ;;  %v9349_v31 = vpack.c.bf16 %v7772_v28, %v7753_v36  ;;  %9346 = vmatpush1.bf16.msra.mxu0 %v9345_v40  ;;  %v7694_v8 = vpop.permute.xlu0 %7693  ;;  %v12181_v51 = vpop.permute.xlu1 %12180  ;;  %8952 = vmatmul.mubr.msk.f32.vlgmr.msra.gmra.mrb[26].mxu1 %vm2008_vm3, %v20646_v27  ;;  %v7773_v19 = vsel %vm2008_vm3, %v12172_v29, %v12173_v49  ;;  %v22669_v36 = vld [vmem:[#allocation65_spill] sm:$0xff] }
 0x9c1   :  { %v12183_v10 = vunpack.i.h.bf16 %v12181_v51  ;;  %v12182_v57 = vunpack.i.l.bf16 %v12181_v51  ;;  %9352 = vmatprep.subr.bf16.mxu1 %v9351_v14  ;;  %v9347_v60 = vpack.c.bf16 %v7773_v19, %v7754_v63  ;;  %8620 = vmatprep.mubr.f32.mxu1 %v22663_v45  ;;  %v7791_v45 = vsel %vm2008_vm3, %v20601_v23, %v7694_v8  ;;  %v22671_v19 = vld [vmem:[#allocation68_spill] sm:$0xff] }
 0x9c2   :  { %9354 = vmatpush1.bf16.msra.mxu1 %v9353_v35 }
 0x9c3   :  { %v7755_v30 = vsel %vm2008_vm3, %v12168_v3, %v12182_v57  ;;  %v7774_v20 = vsel %vm2008_vm3, %v12173_v49, %v12183_v10  ;;  %v9355_v59 = vpack.c.bf16 %v12183_v10, %v12182_v57  ;;  %9348 = vmatprep.subr.bf16.mxu0 %v9347_v60 }
 0x9c4   :  { %v9357_v6 = vpack.c.bf16 %v7774_v20, %v7755_v30  ;;  %9350 = vmatpush1.bf16.msra.mxu0 %v9349_v31  ;;  %v7696_v52 = vpop.permute.xlu1 %7695  ;;  %v7698_v50 = vpop.permute.xlu0 %7697  ;;  %v22670_v31 = vld [vmem:[#allocation51_spill] sm:$0xff] }
 0x9c5   :  { %v7792_v54 = vsel %vm2008_vm3, %v7694_v8, %v7696_v52  ;;  %9356 = vmatprep.subr.bf16.mxu1 %v9355_v59  ;;  %v7793_v0 = vsel %vm2008_vm3, %v7696_v52, %v7698_v50 }
 0x9c6   :  { %8953 = vmatprep.subr.msk.mxu0 %vm51_vm1, %v7792_v54  ;;  %9358 = vmatpush1.bf16.msra.mxu1 %v9357_v6 }
 0x9c7   :  { %8956 = vmatprep.subr.msk.mxu1 %vm51_vm1, %v7698_v50 }
 0x9c8   :  { %8954 = vmatpush1.msk.msra.mxu0 %vm51_vm1, %v7791_v45 }
 0x9c9   :  { %8955 = vmatmul.mubr.msk.f32.vlgmr.msra.gmra.mrb[28].mxu0 %vm2008_vm3, %v20646_v27 }
 0x9ca   :  { %8957 = vmatpush1.msk.msra.mxu1 %vm51_vm1, %v7793_v0 }
 0x9cb   :  { %8958 = vmatmul.mubr.msk.f32.vlgmr.msra.gmra.mrb[28].mxu1 %vm2008_vm3, %v20646_v27 }
 0xa5e   :  { %v20834_v42 = vpop.f32.mrb[20].mxu0 }
 0xa5f   :  { %v8627_v12 = vmul.f32 %v20834_v42, %v20834_v42  ;;  %v20838_v23 = vpop.f32.mrb[21].mxu0 }
 0xa60   :  { %v8628_v48 = vmul.f32 %v20838_v23, %v20838_v23 }
 0xa61   :  { %v8667_v38 = vrot.slane %v8627_v12, 4 }
 0xa62   :  { %v8668_v4 = vrot.slane %v8628_v48, 4  ;;  %v20842_v34 = vpop.f32.mrb[20].mxu1  ;;  %v22672_v48 = vld [vmem:[#allocation13_spill] sm:$0xff] }
 0xa63   :  { %v8707_v37 = vsel %vm51_vm1, %v20834_v42, %v8667_v38  ;;  %v8629_v27 = vmul.f32 %v20842_v34, %v20842_v34  ;;  %v20848_v58 = vpop.f32.mrb[21].mxu1 }
 0xa64   :  { %v8727_v46 = vmul.f32 %v8707_v37, %v22664_v26  ;;  %v8708_v16 = vsel %vm51_vm1, %v20838_v23, %v8668_v4  ;;  %v8630_v9 = vmul.f32 %v20848_v58, %v20848_v58 }
 0xa65   :  { %v8728_v32 = vmul.f32 %v8708_v16, %v22665_v18  ;;  %v8669_v43 = vrot.slane %v8629_v27, 4  ;;  %v22673_v27 = vld [vmem:[#allocation59_spill] sm:$0xff] }
 0xa66   :  { %v8670_v39 = vrot.slane %v8630_v9, 4 }
 0xa67   :  { %v8747_v7 = vadd.f32 %v8728_v32, %v8727_v46  ;;  %v8709_v56 = vsel %vm51_vm1, %v20842_v34, %v8669_v43  ;;  %v22674_v43 = vld [vmem:[#allocation75_spill] sm:$0xff] }
 0xa68   :  { %v8729_v21 = vmul.f32 %v8709_v56, %v22666_v22  ;;  %v8710_v33 = vsel %vm51_vm1, %v20848_v58, %v8670_v39  ;;  %v22675_v56 = vld [vmem:[#allocation55_spill] sm:$0xff] }
 0xa69   :  { %v8730_v47 = vmul.f32 %v8710_v33, %v22667_v24 }
 0xa6a   :  { %v8748_v15 = vadd.f32 %v8747_v7, %v8729_v21 }
 0xa6c   :  { %v8749_v2 = vadd.f32 %v8748_v15, %v8730_v47 }
 0xa6f   :  { %v20862_v44 = vpop.f32.mrb[22].mxu0 }
 0xa70   :  { %v8631_v3 = vmul.f32 %v20862_v44, %v20862_v44  ;;  %v20866_v5 = vpop.f32.mrb[23].mxu0 }
 0xa71   :  { %v8632_v11 = vmul.f32 %v20866_v5, %v20866_v5 }
 0xa72   :  { %v8671_v17 = vrot.slane %v8631_v3, 4 }
 0xa73   :  { %v8672_v62 = vrot.slane %v8632_v11, 4  ;;  %v20870_v40 = vpop.f32.mrb[22].mxu1 }
 0xa74   :  { %v8711_v41 = vsel %vm51_vm1, %v20862_v44, %v8671_v17  ;;  %v8633_v53 = vmul.f32 %v20870_v40, %v20870_v40  ;;  %v20876_v1 = vpop.f32.mrb[23].mxu1 }
 0xa75   :  { %v8731_v13 = vmul.f32 %v8711_v41, %v22668_v25  ;;  %v8712_v49 = vsel %vm51_vm1, %v20866_v5, %v8672_v62  ;;  %v8634_v29 = vmul.f32 %v20876_v1, %v20876_v1  ;;  %v22676_v25 = vld [vmem:[#allocation66_spill] sm:$0xff] }
 0xa76   :  { %v8732_v63 = vmul.f32 %v8712_v49, %v22669_v36  ;;  %v8673_v61 = vrot.slane %v8633_v53, 4  ;;  %v22677_v36 = vld [vmem:[#allocation72_spill] sm:$0xff] }
 0xa77   :  { %v8750_v55 = vadd.f32 %v8749_v2, %v8731_v13  ;;  %v8674_v14 = vrot.slane %v8634_v29, 4 }
 0xa78   :  { %v8713_v28 = vsel %vm51_vm1, %v20870_v40, %v8673_v61 }
 0xa79   :  { %v8751_v35 = vadd.f32 %v8750_v55, %v8732_v63  ;;  %v8733_v8 = vmul.f32 %v8713_v28, %v22670_v31  ;;  %v8714_v51 = vsel %vm51_vm1, %v20876_v1, %v8674_v14  ;;  %v22678_v31 = vld [vmem:[#allocation18_spill] sm:$0xff] }
 0xa7a   :  { %v8734_v10 = vmul.f32 %v8714_v51, %v22671_v19  ;;  %v22679_v19 = vld [vmem:[#allocation9_spill] sm:$0xff] }
 0xa7b   :  { %v8752_v57 = vadd.f32 %v8751_v35, %v8733_v8 }
 0xa7d   :  { %v8753_v60 = vadd.f32 %v8752_v57, %v8734_v10 }
 0xa7f   :  { %v20890_v30 = vpop.f32.mrb[24].mxu0 }
 0xa80   :  { %v8635_v20 = vmul.f32 %v20890_v30, %v20890_v30  ;;  %v20894_v59 = vpop.f32.mrb[25].mxu0 }
 0xa81   :  { %v8636_v6 = vmul.f32 %v20894_v59, %v20894_v59 }
 0xa82   :  { %v8675_v52 = vrot.slane %v8635_v20, 4 }
 0xa83   :  { %v8676_v54 = vrot.slane %v8636_v6, 4  ;;  %v20898_v50 = vpop.f32.mrb[24].mxu1 }
 0xa84   :  { %v8715_v45 = vsel %vm51_vm1, %v20890_v30, %v8675_v52  ;;  %v8637_v0 = vmul.f32 %v20898_v50, %v20898_v50  ;;  %v20904_v12 = vpop.f32.mrb[25].mxu1 }
 0xa85   :  { %v8735_v38 = vmul.f32 %v8715_v45, %v22672_v48  ;;  %v8716_v4 = vsel %vm51_vm1, %v20894_v59, %v8676_v54  ;;  %v8638_v37 = vmul.f32 %v20904_v12, %v20904_v12 }
 0xa86   :  { %v8736_v26 = vmul.f32 %v8716_v4, %v22673_v27  ;;  %v8677_v46 = vrot.slane %v8637_v0, 4 }
 0xa87   :  { %v8754_v16 = vadd.f32 %v8753_v60, %v8735_v38  ;;  %v8678_v9 = vrot.slane %v8638_v37, 4 }
 0xa88   :  { %v8717_v18 = vsel %vm51_vm1, %v20898_v50, %v8677_v46  ;;  %v22680_v46 = vld [vmem:[#allocation32_spill] sm:$0xff] }
 0xa89   :  { %v8755_v32 = vadd.f32 %v8754_v16, %v8736_v26  ;;  %v8737_v39 = vmul.f32 %v8717_v18, %v22674_v43  ;;  %v8718_v7 = vsel %vm51_vm1, %v20904_v12, %v8678_v9 }
 0xa8a   :  { %v8738_v22 = vmul.f32 %v8718_v7, %v22675_v56  ;;  %v22682_v56 = vld [vmem:[#allocation37_spill] sm:$0xff] }
 0xa8b   :  { %v8756_v21 = vadd.f32 %v8755_v32, %v8737_v39  ;;  %v22681_v32 = vld [vmem:[#allocation33_spill] sm:$0xff] }
 0xa8d   :  { %v8757_v33 = vadd.f32 %v8756_v21, %v8738_v22 }
 0xa8f   :  { %v20918_v24 = vpop.f32.mrb[26].mxu0 }
 0xa90   :  { %v8639_v47 = vmul.f32 %v20918_v24, %v20918_v24  ;;  %v20922_v15 = vpop.f32.mrb[27].mxu0 }
 0xa91   :  { %v8640_v2 = vmul.f32 %v20922_v15, %v20922_v15 }
 0xa92   :  { %v8679_v3 = vrot.slane %v8639_v47, 4 }
 0xa93   :  { %v8680_v11 = vrot.slane %v8640_v2, 4  ;;  %v20926_v17 = vpop.f32.mrb[26].mxu1 }
 0xa94   :  { %v8719_v62 = vsel %vm51_vm1, %v20918_v24, %v8679_v3  ;;  %v8641_v41 = vmul.f32 %v20926_v17, %v20926_v17  ;;  %v20932_v53 = vpop.f32.mrb[27].mxu1 }
 0xa95   :  { %v8739_v13 = vmul.f32 %v8719_v62, %v22676_v25  ;;  %v8720_v49 = vsel %vm51_vm1, %v20922_v15, %v8680_v11  ;;  %v8642_v29 = vmul.f32 %v20932_v53, %v20932_v53 }
 0xa96   :  { %v8740_v63 = vmul.f32 %v8720_v49, %v22677_v36  ;;  %v8681_v61 = vrot.slane %v8641_v41, 4 }
 0xa97   :  { %v8758_v55 = vadd.f32 %v8757_v33, %v8739_v13  ;;  %v8682_v14 = vrot.slane %v8642_v29, 4  ;;  %v22683_v33 = vld [vmem:[#allocation41_spill] sm:$0xff] }
 0xa98   :  { %v8721_v28 = vsel %vm51_vm1, %v20926_v17, %v8681_v61  ;;  %v8775_v61 = vld [vmem:[%s21024_s8] sm:$0xf] }
 0xa99   :  { %v8759_v35 = vadd.f32 %v8758_v55, %v8740_v63  ;;  %v8741_v8 = vmul.f32 %v8721_v28, %v22678_v31  ;;  %v8722_v51 = vsel %vm51_vm1, %v20932_v53, %v8682_v14  ;;  %v8782_v28 = vld [vmem:[%s21025_s9] sm:$0xf] }
 0xa9a   :  { %v8742_v10 = vmul.f32 %v8722_v51, %v22679_v19 }
 0xa9b   :  { %v8760_v57 = vadd.f32 %v8759_v35, %v8741_v8 }
 0xa9c   :  { %v20946_v60 = vpop.f32.mrb[28].mxu0 }
 0xa9d   :  { %v8761_v20 = vadd.f32 %v8760_v57, %v8742_v10  ;;  %v8643_v6 = vmul.f32 %v20946_v60, %v20946_v60  ;;  %v8553_v52 = vpop.f32.mrb[29].mxu0 }
 0xa9e   :  { %v8644_v54 = vmul.f32 %v8553_v52, %v8553_v52  ;;  %v8622_v45 = vpop.f32.mrb[28].mxu1 }
 0xa9f   :  { %v8683_v0 = vrot.slane %v8643_v6, 4  ;;  %v8645_v48 = vmul.f32 %v8622_v45, %v8622_v45  ;;  %v8624_v38 = vpop.f32.mrb[29].mxu1 }
 0xaa0   :  { %v8684_v4 = vrot.slane %v8644_v54, 4  ;;  %v8646_v37 = vmul.f32 %v8624_v38, %v8624_v38 }
 0xaa1   :  { %v8723_v27 = vsel %vm51_vm1, %v20946_v60, %v8683_v0  ;;  %v8685_v26 = vrot.slane %v8645_v48, 4 }
 0xaa2   :  { %v8743_v16 = vmul.f32 %v8723_v27, %v22680_v46  ;;  %v8724_v9 = vsel %vm51_vm1, %v8553_v52, %v8684_v4  ;;  %v8686_v18 = vrot.slane %v8646_v37, 4 }
 0xaa3   :  { %v8744_v43 = vmul.f32 %v8724_v9, %v22681_v32  ;;  %v8725_v39 = vsel %vm51_vm1, %v8622_v45, %v8685_v26 }
 0xaa4   :  { %v8762_v7 = vadd.f32 %v8761_v20, %v8743_v16  ;;  %v8745_v22 = vmul.f32 %v8725_v39, %v22682_v56  ;;  %v8726_v21 = vsel %vm51_vm1, %v8624_v38, %v8686_v18 }
 0xaa5   :  { %v8746_v47 = vmul.f32 %v8726_v21, %v22683_v33 }
 0xaa6   :  { %v8763_v2 = vadd.f32 %v8762_v7, %v8744_v43 }
 0xaa7   :  { %v8765_v3 = vsel %vm6468_vm14, %v8746_v47, 0.0 }
 0xaa8   :  { %v8764_v11 = vadd.f32 %v8763_v2, %v8745_v22 }
 0xaaa   :  { %v8766_v62 = vadd.f32 %v8765_v3, %v8764_v11 }
 0xaac   :  { %8767 = vadd.xlane.f32.xlu1 %v8766_v62 }
 0xb39   :  { %v8768_v41 = vpop.xlane.xlu1 %8767 }
 0xb3a   :  { %v8769_v25 = vmul.f32 0.00048828125, %v8768_v41 }
 0xb3c   :  { %v8770_v13 = vmul.f32 %v8769_v25, %v8769_v25 }
 0xb3e   :  { %v8772_v49 = vrot.slane %v8770_v13, 4 }
 0xb40   :  { %v8774_v29 = vsub.f32 %v8769_v25, %v8772_v49 }
 0xb42   :  { %v8776_v36 = vadd.f32 1e-05, %v8774_v29 }
 0xb44   :  { %12281 = vrsqrt.f32 %v8776_v36 }
 0xb4e   :  { %v12282_v63 = vpop.eup %12281 }
 0xb4f   :  { %v8779_v55 = vrot.slane %v12282_v63, 4 }
 0xb51   :  { %v8781_v14 = vmul.f32 %v8779_v55, %v8775_v61 }
 0xb53   :  { %v8783_v35 = vmul.f32 %v8781_v14, %v8769_v25  ;;  %8787 = vperm.xlu0 %11633, %v8781_v14  }
 0xb55   :  { %v8784_v31 = vsub.f32 %v8782_v28, %v8783_v35 }
 0xb57   :  { %8812 = vperm.xlu0 %11633, %v8784_v31  }
 0xbd2   :  { %v8788_v8 = vpop.permute.xlu0 %8787 }
 0xbd3   :  { %v8790_v51 = vmul.f32 %v8788_v8, %v20834_v42  ;;  %v8791_v19 = vmul.f32 %v8788_v8, %v20838_v23  ;;  %v8792_v10 = vmul.f32 %v8788_v8, %v20842_v34  ;;  %v8793_v57 = vmul.f32 %v8788_v8, %v20848_v58 }
 0xbd4   :  { %v8794_v20 = vmul.f32 %v8788_v8, %v20862_v44  ;;  %v8795_v6 = vmul.f32 %v8788_v8, %v20866_v5  ;;  %v8796_v54 = vmul.f32 %v8788_v8, %v20870_v40  ;;  %v8797_v0 = vmul.f32 %v8788_v8, %v20876_v1 }
 0xbd5   :  { %v8798_v48 = vmul.f32 %v8788_v8, %v20890_v30  ;;  %v8799_v4 = vmul.f32 %v8788_v8, %v20894_v59  ;;  %v8800_v42 = vmul.f32 %v8788_v8, %v20898_v50  ;;  %v8801_v23 = vmul.f32 %v8788_v8, %v20904_v12 }
 0xbd6   :  { %v8802_v34 = vmul.f32 %v8788_v8, %v20918_v24  ;;  %v8803_v58 = vmul.f32 %v8788_v8, %v20922_v15  ;;  %v8804_v44 = vmul.f32 %v8788_v8, %v20926_v17  ;;  %v8805_v5 = vmul.f32 %v8788_v8, %v20932_v53  ;;  %v8813_v37 = vpop.permute.xlu0 %8812 }
 0xbd7   :  { %v8806_v40 = vmul.f32 %v8788_v8, %v20946_v60  ;;  %v8807_v1 = vmul.f32 %v8788_v8, %v8553_v52  ;;  %v8808_v27 = vmul.f32 %v8788_v8, %v8622_v45  ;;  %v8809_v30 = vmul.f32 %v8788_v8, %v8624_v38 }
 0xbd8   :  { %v8815_v26 = vadd.f32 %v8813_v37, %v8790_v51  ;;  %v8816_v59 = vadd.f32 %v8813_v37, %v8791_v19  ;;  %v8817_v46 = vadd.f32 %v8813_v37, %v8792_v10  ;;  %v8818_v50 = vadd.f32 %v8813_v37, %v8793_v57 }
 0xbd9   :  { %v8819_v16 = vadd.f32 %v8813_v37, %v8794_v20  ;;  %v8820_v12 = vadd.f32 %v8813_v37, %v8795_v6  ;;  %v8821_v9 = vadd.f32 %v8813_v37, %v8796_v54  ;;  %v8822_v24 = vadd.f32 %v8813_v37, %v8797_v0 }
 0xbda   :  { %v8823_v18 = vadd.f32 %v8813_v37, %v8798_v48  ;;  %v8824_v15 = vadd.f32 %v8813_v37, %v8799_v4  ;;  %v8825_v32 = vadd.f32 %v8813_v37, %v8800_v42  ;;  %v8826_v17 = vadd.f32 %v8813_v37, %v8801_v23 }
 0xbdb   :  { %v8827_v43 = vadd.f32 %v8813_v37, %v8802_v34  ;;  %v8828_v53 = vadd.f32 %v8813_v37, %v8803_v58  ;;  %v8829_v39 = vadd.f32 %v8813_v37, %v8804_v44  ;;  %v8830_v7 = vadd.f32 %v8813_v37, %v8805_v5 }
 0xbdc   :  { %v8831_v60 = vadd.f32 %v8813_v37, %v8806_v40  ;;  %v8832_v52 = vadd.f32 %v8813_v37, %v8807_v1  ;;  %v8833_v45 = vadd.f32 %v8813_v37, %v8808_v27  ;;  %v8834_v38 = vadd.f32 %v8813_v37, %v8809_v30 }
 0xbdd   :  { %v8835_v56 = vmax.f32 %v8815_v26, 0.0  ;;  %v8836_v22 = vmax.f32 %v8816_v59, 0.0  ;;  %v8837_v21 = vmax.f32 %v8817_v46, 0.0  ;;  %v8838_v33 = vmax.f32 %v8818_v50, 0.0 }
 0xbde   :  { %v8839_v47 = vmax.f32 %v8819_v16, 0.0  ;;  %v8840_v2 = vmax.f32 %v8820_v12, 0.0  ;;  %v8841_v3 = vmax.f32 %v8821_v9, 0.0  ;;  %v8842_v11 = vmax.f32 %v8822_v24, 0.0 }
 0xbdf   :  { %v8843_v62 = vmax.f32 %v8823_v18, 0.0  ;;  %v8844_v41 = vmax.f32 %v8824_v15, 0.0  ;;  %v8845_v25 = vmax.f32 %v8825_v32, 0.0  ;;  %v8846_v13 = vmax.f32 %v8826_v17, 0.0 }
 0xbe0   :  { %v8847_v49 = vmax.f32 %v8827_v43, 0.0  ;;  %v8848_v29 = vmax.f32 %v8828_v53, 0.0  ;;  %v8849_v36 = vmax.f32 %v8829_v39, 0.0  ;;  %v8850_v63 = vmax.f32 %v8830_v7, 0.0 }
 0xbe1   :  { %v8851_v61 = vmax.f32 %v8831_v60, 0.0  ;;  %v8852_v55 = vmax.f32 %v8832_v52, 0.0  ;;  %v8853_v14 = vmax.f32 %v8833_v45, 0.0  ;;  %v8854_v28 = vmax.f32 %v8834_v38, 0.0 }
 0xbe2   :  { %v8875_v35 = vcombine.low %v8835_v56, %v8836_v22  ;;  %v8876_v31 = vcombine.low %v8837_v21, %v8838_v33  ;;  %v8877_v8 = vcombine.low %v8839_v47, %v8840_v2  ;;  %v8878_v51 = vcombine.low %v8841_v3, %v8842_v11 }
 0xbe3   :  { %v8879_v19 = vcombine.low %v8843_v62, %v8844_v41  ;;  %v8880_v10 = vcombine.low %v8845_v25, %v8846_v13  ;;  %v8881_v57 = vcombine.low %v8847_v49, %v8848_v29  ;;  %v8882_v20 = vcombine.low %v8849_v36, %v8850_v63 }
 0xbe4   :  { %v8883_v6 = vcombine.low %v8851_v61, %v8852_v55  ;;  %v8884_v54 = vcombine.low %v8853_v14, %v8854_v28  ;;  %8895 = vst [vmem:[%s21026_s11] sm:$0xff] %v8875_v35  ;;  %8896 = vst [vmem:[%s21026_s11 + $0x8] sm:$0xff] %v8876_v31 }
 0xbe5   :  { %8897 = vst [vmem:[%s21026_s11 + $0x10] sm:$0xff] %v8877_v8  ;;  %8898 = vst [vmem:[%s21026_s11 + $0x18] sm:$0xff] %v8878_v51 }
 0xbe6   :  { %8899 = vst [vmem:[%s21026_s11 + $0x20] sm:$0xff] %v8879_v19  ;;  %8900 = vst [vmem:[%s21026_s11 + $0x28] sm:$0xff] %v8880_v10 }
 0xbe7   :  { %8901 = vst [vmem:[%s21026_s11 + $0x30] sm:$0xff] %v8881_v57  ;;  %8902 = vst [vmem:[%s21026_s11 + $0x38] sm:$0xff] %v8882_v20 }
 0xbe8   :  { %8903 = vst [vmem:[%s21026_s11 + $0x40] sm:$0xff] %v8883_v6  ;;  %8904 = vst.msk [vmem:[%s21026_s11 + $0x48] sm:$0xff] %vm15840_vm12, %v8884_v54 }

</bundles_post_ra>
